<compile_context>
chip_gen: v6e
topology: v6e:2x2x1
jax: 0.10.0
libtpu: 0.0.40
codegen_flags: <defaults>
</compile_context>

<pallas_src>
import functools

import jax
import jax.numpy as jnp
from jax.experimental import pallas as pl
from jax.experimental.pallas import tpu as pltpu

EPS = 1e-5
LANES = 128


def _round_up(x, m):
    return (x + m - 1) // m * m


def basic_block_kernel(x_ref, w1_ref, b1_ref, w2_ref, b2_ref, o_ref, mid_sc,
                       *, H, W, Cp):
    """out = relu(bn2(conv2(relu(bn1(conv1(x))))) + x), one batch image.

    Layout: NHWC, C lane-padded to Cp, spatial dims flattened row-major over
    the zero-haloed (H+2, W+2) grid (flat index = r*(W+2)+c), plus 2 slop rows
    so the (kh=2,kw=2) tap slice stays in bounds.

    x_ref : (1, (H+2)*(W+2)+2, Cp) f32   haloed + flattened input
    w*_ref: (9*Cp, Cp)             bf16  conv weights, tap-major, BN folded
    b*_ref: (1, Cp)                f32   folded BN bias
    o_ref : (1, H*(W+2), Cp)       f32   output on the (H, W+2) grid; the last
                                         2 columns per row are wrap garbage,
                                         dropped by the wrapper
    mid_sc: ((H+2)*(W+2)+2, Cp)    bf16  haloed conv1 activation (VMEM scratch)
    """
    Wp = W + 2
    L = H * Wp                               # flat per-conv output length

    def conv3x3(load_tap, w_ref):
        acc = jnp.zeros((L, Cp), jnp.float32)
        for kh in range(3):
            for kw in range(3):
                t = kh * 3 + kw
                acc += jnp.dot(load_tap(kh * Wp + kw),
                               w_ref[t * Cp:(t + 1) * Cp, :],
                               preferred_element_type=jnp.float32)
        return acc

    # ---- conv1 + bn1 + relu (MXU in bf16, epilogue in f32) ------------------
    y1 = conv3x3(lambda off: x_ref[0, off:off + L, :].astype(jnp.bfloat16),
                 w1_ref)
    y1 = jnp.maximum(y1 + b1_ref[...], 0.0)
    # Columns W and W+1 of every flat row are wrap-around garbage; zero them so
    # the single contiguous interior store below also writes mid_sc's left /
    # right halo columns with valid zeros.
    col = jax.lax.broadcasted_iota(jnp.int32, (L, Cp), 0) % Wp
    y1 = jnp.where(col < W, y1, 0.0)

    # ---- place conv1 output into the haloed mid buffer ----------------------
    # Zero only the border (top row + bottom row + corner slop); the interior
    # and the L/R halo columns come from one contiguous store of y1.
    zero = jnp.zeros((Wp + 1, Cp), mid_sc.dtype)
    mid_sc[0:Wp + 1, :] = zero                                  # top border
    mid_sc[Wp + 1 + L:Wp + 1 + L + (Wp + 1), :] = zero          # bottom border
    mid_sc[Wp + 1:Wp + 1 + L, :] = y1.astype(mid_sc.dtype)      # interior + halo cols

    # ---- conv2 + bn2 + residual add + relu ----------------------------------
    y2 = conv3x3(lambda off: mid_sc[off:off + L, :], w2_ref)
    y2 = y2 + b2_ref[...]
    y2 = y2 + x_ref[0, Wp + 1:Wp + 1 + L, :]       # residual: interior of x (f32)
    o_ref[0] = jnp.maximum(y2, 0.0).astype(o_ref.dtype)


def _fold_bn_into_conv(w_oihw, gamma, beta, mean, var, cp, eps=EPS):
    """Fold inference BN into conv weights; pack tap-major for the kernel.

    Returns:
      w: (9*cp, cp) bf16, row index = (kh*3+kw)*cp + cin, BN scale folded
         along cout; cin/cout zero-padded to cp.
      b: (1, cp) f32, beta - mean*scale, zero-padded.
    """
    cout, cin, _, _ = w_oihw.shape
    scale = gamma / jnp.sqrt(var + eps)                       # (cout,)
    bias = beta - mean * scale                                # (cout,)
    w = jnp.transpose(w_oihw, (2, 3, 1, 0)) * scale[None, None, None, :]
    w = jnp.pad(w, ((0, 0), (0, 0), (0, cp - cin), (0, cp - cout)))
    w = w.reshape(9 * cp, cp).astype(jnp.bfloat16)
    bias = jnp.pad(bias, (0, cp - cout)).reshape(1, cp).astype(jnp.float32)
    return w, bias


def basic_block_forward(x_nchw, params):
    """BasicBlock.forward (stride=1, downsample=None) as one fused Pallas call."""
    N, C, H, W = x_nchw.shape
    Cp = _round_up(C, LANES)
    Hp, Wp = H + 2, W + 2
    L = H * Wp                       # flat per-conv output length
    Lin = Hp * Wp + 2                # flat haloed input length (+2 tap slop)

    # NCHW -> NHWC, lane-pad channels, ONE-TIME spatial halo pad, flatten.
    x = jnp.transpose(x_nchw, (0, 2, 3, 1))
    x = jnp.pad(x, ((0, 0), (1, 1), (1, 1), (0, Cp - C)))
    x = x.reshape(N, Hp * Wp, Cp)
    x = jnp.pad(x, ((0, 0), (0, 2), (0, 0)))      # slop rows for tap (2,2)

    w1, b1 = _fold_bn_into_conv(params["w1"], params["g1"], params["b1"],
                                params["m1"], params["v1"], Cp)
    w2, b2 = _fold_bn_into_conv(params["w2"], params["g2"], params["b2"],
                                params["m2"], params["v2"], Cp)

    kernel = functools.partial(basic_block_kernel, H=H, W=W, Cp=Cp)

    # Scoped-VMEM limit sized from the actual working set (+ headroom).
    work = (2 * Lin * Cp * 4             # x block, f32, double-buffered
            + 2 * L * Cp * 4             # out block, f32, double-buffered
            + 2 * 2 * 9 * Cp * Cp * 2    # two bf16 weight blocks, double-buffered
            + Lin * Cp * 2               # mid scratch, bf16
            + 4 * L * Cp * 4)            # accumulators / temporaries
    vmem_limit = int(min(max(2 * work, 32 << 20), 96 << 20))

    flops = 2 * 2 * N * H * W * 9 * Cp * Cp          # two convs, 2 flops/MAC
    bytes_accessed = (N * Lin * Cp * 4 + N * L * Cp * 4
                      + 2 * 9 * Cp * Cp * 2 + 2 * Cp * 4)

    out = pl.pallas_call(
        kernel,
        out_shape=jax.ShapeDtypeStruct((N, L, Cp), jnp.float32),
        grid=(N,),
        in_specs=[
            pl.BlockSpec((1, Lin, Cp), lambda n: (n, 0, 0)),
            pl.BlockSpec((9 * Cp, Cp), lambda n: (0, 0)),
            pl.BlockSpec((1, Cp), lambda n: (0, 0)),
            pl.BlockSpec((9 * Cp, Cp), lambda n: (0, 0)),
            pl.BlockSpec((1, Cp), lambda n: (0, 0)),
        ],
        out_specs=pl.BlockSpec((1, L, Cp), lambda n: (n, 0, 0)),
        scratch_shapes=[pltpu.VMEM((Lin, Cp), jnp.bfloat16)],
        compiler_params=pltpu.CompilerParams(
            dimension_semantics=("parallel",),
            vmem_limit_bytes=vmem_limit),
        cost_estimate=pl.CostEstimate(flops=flops, transcendentals=0,
                                      bytes_accessed=bytes_accessed),
    )(x, w1, b1, w2, b2)

    # (N, H*(W+2), Cp): drop the 2 wrap columns per row and the channel pad.
    out = out.reshape(N, H, Wp, Cp)[:, :, :W, :C]
    return jnp.transpose(out, (0, 3, 1, 2))           # NHWC -> NCHW


def ref_forward(x, p, eps=EPS):
    """Pure-JAX f32 reference (NCHW), mirrors the PyTorch forward in eval mode."""
    def conv(x, w):
        return jax.lax.conv_general_dilated(
            x, w, window_strides=(1, 1), padding=((1, 1), (1, 1)),
            dimension_numbers=("NCHW", "OIHW", "NCHW"))

    def bn(x, g, b, m, v):
        g, b, m, v = (t[None, :, None, None] for t in (g, b, m, v))
        return (x - m) / jnp.sqrt(v + eps) * g + b

    out = jax.nn.relu(bn(conv(x, p["w1"]), p["g1"], p["b1"], p["m1"], p["v1"]))
    out = bn(conv(out, p["w2"]), p["g2"], p["b2"], p["m2"], p["v2"]) + x
    return jax.nn.relu(out)


if __name__ == "__main__":
    key = jax.random.PRNGKey(0)
    N, C, H, W = 2, 4, 16, 16  # BasicBlock: in_channel == out_channel here
    keys = jax.random.split(key, 8)

    x = jax.random.normal(keys[0], (N, C, H, W), jnp.float32)
    params = {
        "w1": jax.random.normal(keys[1], (C, C, 3, 3), jnp.float32) * 0.1,
        "g1": 1.0 + 0.1 * jax.random.normal(keys[2], (C,), jnp.float32),
        "b1": 0.1 * jax.random.normal(keys[3], (C,), jnp.float32),
        "m1": 0.05 * jax.random.normal(keys[4], (C,), jnp.float32),
        "v1": jnp.abs(1.0 + 0.1 * jax.random.normal(keys[5], (C,), jnp.float32)),
        "w2": jax.random.normal(keys[6], (C, C, 3, 3), jnp.float32) * 0.1,
        "g2": 1.0 + 0.1 * jax.random.normal(keys[7], (C,), jnp.float32),
        "b2": jnp.linspace(-0.1, 0.1, C, dtype=jnp.float32),
        "m2": jnp.linspace(-0.05, 0.05, C, dtype=jnp.float32),
        "v2": jnp.linspace(0.9, 1.1, C, dtype=jnp.float32),
    }

    out = jax.block_until_ready(basic_block_forward(x, params))
    ref = jax.block_until_ready(ref_forward(x, params))

    assert out.shape == (N, C, H, W) and out.dtype == jnp.float32
    max_err = float(jnp.max(jnp.abs(out - ref)))
    # bf16 MXU path vs. pure-f32 reference -> tolerance sized for bf16 rounding.
    assert max_err < 5e-2, f"max abs error {max_err}"
    print("KERNEL_OK")
</pallas_src>

<mosaic_0001>
module attributes {stable_mosaic.version = 11 : i64} {
  func.func @basic_block_kernel(%arg0: i32, %arg1: memref<1x326x128xf32, #tpu.memory_space<vmem>>, %arg2: memref<1152x128xbf16, #tpu.memory_space<vmem>>, %arg3: memref<1x128xf32, #tpu.memory_space<vmem>>, %arg4: memref<1152x128xbf16, #tpu.memory_space<vmem>>, %arg5: memref<1x128xf32, #tpu.memory_space<vmem>>, %arg6: memref<1x288x128xf32, #tpu.memory_space<vmem>>, %arg7: memref<326x128xbf16, #tpu.memory_space<vmem>>) attributes {dimension_semantics = [#tpu.dimension_semantics<parallel>], iteration_bounds = array<i64: 2>, scalar_prefetch = 0 : i64, scratch_operands = 1 : i64, tpu.core_type = #tpu.core_type<tc>, window_params = [{transform_indices = @transform_0, window_bounds = array<i64: 1, 326, 128>}, {pipeline_mode = #tpu.pipeline_mode<synchronous>, transform_indices = @transform_1, window_bounds = array<i64: 1152, 128>}, {pipeline_mode = #tpu.pipeline_mode<synchronous>, transform_indices = @transform_2, window_bounds = array<i64: 1, 128>}, {pipeline_mode = #tpu.pipeline_mode<synchronous>, transform_indices = @transform_3, window_bounds = array<i64: 1152, 128>}, {pipeline_mode = #tpu.pipeline_mode<synchronous>, transform_indices = @transform_4, window_bounds = array<i64: 1, 128>}, {transform_indices = @transform_5, window_bounds = array<i64: 1, 288, 128>}]} {
    %cst = arith.constant 0.000000e+00 : f32
    %0 = vector.broadcast %cst : f32 to vector<288x128xf32>
    %c0 = arith.constant 0 : index
    %c0_0 = arith.constant 0 : index
    %c0_1 = arith.constant 0 : index
    %1 = vector.load %arg1[%c0, %c0_0, %c0_1] : memref<1x326x128xf32, #tpu.memory_space<vmem>>, vector<1x288x128xf32>
    %2 = vector.shape_cast %1 : vector<1x288x128xf32> to vector<288x128xf32>
    %3 = arith.truncf %2 : vector<288x128xf32> to vector<288x128xbf16>
    %c0_2 = arith.constant 0 : index
    %c0_3 = arith.constant 0 : index
    %4 = vector.load %arg2[%c0_2, %c0_3] : memref<1152x128xbf16, #tpu.memory_space<vmem>>, vector<128x128xbf16>
    %cst_4 = arith.constant dense<0.000000e+00> : vector<288x128xf32>
    %5 = tpu.matmul %3, %4, %cst_4 {dimension_numbers = #tpu.dot_dimension_numbers<[1], [0], [0], [1], [0, 0, 1, 1], [], []>} : vector<288x128xbf16>, vector<128x128xbf16>, vector<288x128xf32> -> vector<288x128xf32>
    %6 = arith.addf %0, %5 : vector<288x128xf32>
    %c0_5 = arith.constant 0 : index
    %c1 = arith.constant 1 : index
    %c0_6 = arith.constant 0 : index
    %7 = vector.load %arg1[%c0_5, %c1, %c0_6] : memref<1x326x128xf32, #tpu.memory_space<vmem>>, vector<1x288x128xf32>
    %8 = vector.shape_cast %7 : vector<1x288x128xf32> to vector<288x128xf32>
    %9 = arith.truncf %8 : vector<288x128xf32> to vector<288x128xbf16>
    %c128 = arith.constant 128 : index
    %c0_7 = arith.constant 0 : index
    %10 = vector.load %arg2[%c128, %c0_7] : memref<1152x128xbf16, #tpu.memory_space<vmem>>, vector<128x128xbf16>
    %cst_8 = arith.constant dense<0.000000e+00> : vector<288x128xf32>
    %11 = tpu.matmul %9, %10, %cst_8 {dimension_numbers = #tpu.dot_dimension_numbers<[1], [0], [0], [1], [0, 0, 1, 1], [], []>} : vector<288x128xbf16>, vector<128x128xbf16>, vector<288x128xf32> -> vector<288x128xf32>
    %12 = arith.addf %6, %11 : vector<288x128xf32>
    %c0_9 = arith.constant 0 : index
    %c2 = arith.constant 2 : index
    %c0_10 = arith.constant 0 : index
    %13 = vector.load %arg1[%c0_9, %c2, %c0_10] : memref<1x326x128xf32, #tpu.memory_space<vmem>>, vector<1x288x128xf32>
    %14 = vector.shape_cast %13 : vector<1x288x128xf32> to vector<288x128xf32>
    %15 = arith.truncf %14 : vector<288x128xf32> to vector<288x128xbf16>
    %c256 = arith.constant 256 : index
    %c0_11 = arith.constant 0 : index
    %16 = vector.load %arg2[%c256, %c0_11] : memref<1152x128xbf16, #tpu.memory_space<vmem>>, vector<128x128xbf16>
    %cst_12 = arith.constant dense<0.000000e+00> : vector<288x128xf32>
    %17 = tpu.matmul %15, %16, %cst_12 {dimension_numbers = #tpu.dot_dimension_numbers<[1], [0], [0], [1], [0, 0, 1, 1], [], []>} : vector<288x128xbf16>, vector<128x128xbf16>, vector<288x128xf32> -> vector<288x128xf32>
    %18 = arith.addf %12, %17 : vector<288x128xf32>
    %c0_13 = arith.constant 0 : index
    %c18 = arith.constant 18 : index
    %c0_14 = arith.constant 0 : index
    %19 = vector.load %arg1[%c0_13, %c18, %c0_14] : memref<1x326x128xf32, #tpu.memory_space<vmem>>, vector<1x288x128xf32>
    %20 = vector.shape_cast %19 : vector<1x288x128xf32> to vector<288x128xf32>
    %21 = arith.truncf %20 : vector<288x128xf32> to vector<288x128xbf16>
    %c384 = arith.constant 384 : index
    %c0_15 = arith.constant 0 : index
    %22 = vector.load %arg2[%c384, %c0_15] : memref<1152x128xbf16, #tpu.memory_space<vmem>>, vector<128x128xbf16>
    %cst_16 = arith.constant dense<0.000000e+00> : vector<288x128xf32>
    %23 = tpu.matmul %21, %22, %cst_16 {dimension_numbers = #tpu.dot_dimension_numbers<[1], [0], [0], [1], [0, 0, 1, 1], [], []>} : vector<288x128xbf16>, vector<128x128xbf16>, vector<288x128xf32> -> vector<288x128xf32>
    %24 = arith.addf %18, %23 : vector<288x128xf32>
    %c0_17 = arith.constant 0 : index
    %c19 = arith.constant 19 : index
    %c0_18 = arith.constant 0 : index
    %25 = vector.load %arg1[%c0_17, %c19, %c0_18] : memref<1x326x128xf32, #tpu.memory_space<vmem>>, vector<1x288x128xf32>
    %26 = vector.shape_cast %25 : vector<1x288x128xf32> to vector<288x128xf32>
    %27 = arith.truncf %26 : vector<288x128xf32> to vector<288x128xbf16>
    %c512 = arith.constant 512 : index
    %c0_19 = arith.constant 0 : index
    %28 = vector.load %arg2[%c512, %c0_19] : memref<1152x128xbf16, #tpu.memory_space<vmem>>, vector<128x128xbf16>
    %cst_20 = arith.constant dense<0.000000e+00> : vector<288x128xf32>
    %29 = tpu.matmul %27, %28, %cst_20 {dimension_numbers = #tpu.dot_dimension_numbers<[1], [0], [0], [1], [0, 0, 1, 1], [], []>} : vector<288x128xbf16>, vector<128x128xbf16>, vector<288x128xf32> -> vector<288x128xf32>
    %30 = arith.addf %24, %29 : vector<288x128xf32>
    %c0_21 = arith.constant 0 : index
    %c20 = arith.constant 20 : index
    %c0_22 = arith.constant 0 : index
    %31 = vector.load %arg1[%c0_21, %c20, %c0_22] : memref<1x326x128xf32, #tpu.memory_space<vmem>>, vector<1x288x128xf32>
    %32 = vector.shape_cast %31 : vector<1x288x128xf32> to vector<288x128xf32>
    %33 = arith.truncf %32 : vector<288x128xf32> to vector<288x128xbf16>
    %c640 = arith.constant 640 : index
    %c0_23 = arith.constant 0 : index
    %34 = vector.load %arg2[%c640, %c0_23] : memref<1152x128xbf16, #tpu.memory_space<vmem>>, vector<128x128xbf16>
    %cst_24 = arith.constant dense<0.000000e+00> : vector<288x128xf32>
    %35 = tpu.matmul %33, %34, %cst_24 {dimension_numbers = #tpu.dot_dimension_numbers<[1], [0], [0], [1], [0, 0, 1, 1], [], []>} : vector<288x128xbf16>, vector<128x128xbf16>, vector<288x128xf32> -> vector<288x128xf32>
    %36 = arith.addf %30, %35 : vector<288x128xf32>
    %c0_25 = arith.constant 0 : index
    %c36 = arith.constant 36 : index
    %c0_26 = arith.constant 0 : index
    %37 = vector.load %arg1[%c0_25, %c36, %c0_26] : memref<1x326x128xf32, #tpu.memory_space<vmem>>, vector<1x288x128xf32>
    %38 = vector.shape_cast %37 : vector<1x288x128xf32> to vector<288x128xf32>
    %39 = arith.truncf %38 : vector<288x128xf32> to vector<288x128xbf16>
    %c768 = arith.constant 768 : index
    %c0_27 = arith.constant 0 : index
    %40 = vector.load %arg2[%c768, %c0_27] : memref<1152x128xbf16, #tpu.memory_space<vmem>>, vector<128x128xbf16>
    %cst_28 = arith.constant dense<0.000000e+00> : vector<288x128xf32>
    %41 = tpu.matmul %39, %40, %cst_28 {dimension_numbers = #tpu.dot_dimension_numbers<[1], [0], [0], [1], [0, 0, 1, 1], [], []>} : vector<288x128xbf16>, vector<128x128xbf16>, vector<288x128xf32> -> vector<288x128xf32>
    %42 = arith.addf %36, %41 : vector<288x128xf32>
    %c0_29 = arith.constant 0 : index
    %c37 = arith.constant 37 : index
    %c0_30 = arith.constant 0 : index
    %43 = vector.load %arg1[%c0_29, %c37, %c0_30] : memref<1x326x128xf32, #tpu.memory_space<vmem>>, vector<1x288x128xf32>
    %44 = vector.shape_cast %43 : vector<1x288x128xf32> to vector<288x128xf32>
    %45 = arith.truncf %44 : vector<288x128xf32> to vector<288x128xbf16>
    %c896 = arith.constant 896 : index
    %c0_31 = arith.constant 0 : index
    %46 = vector.load %arg2[%c896, %c0_31] : memref<1152x128xbf16, #tpu.memory_space<vmem>>, vector<128x128xbf16>
    %cst_32 = arith.constant dense<0.000000e+00> : vector<288x128xf32>
    %47 = tpu.matmul %45, %46, %cst_32 {dimension_numbers = #tpu.dot_dimension_numbers<[1], [0], [0], [1], [0, 0, 1, 1], [], []>} : vector<288x128xbf16>, vector<128x128xbf16>, vector<288x128xf32> -> vector<288x128xf32>
    %48 = arith.addf %42, %47 : vector<288x128xf32>
    %c0_33 = arith.constant 0 : index
    %c38 = arith.constant 38 : index
    %c0_34 = arith.constant 0 : index
    %49 = vector.load %arg1[%c0_33, %c38, %c0_34] : memref<1x326x128xf32, #tpu.memory_space<vmem>>, vector<1x288x128xf32>
    %50 = vector.shape_cast %49 : vector<1x288x128xf32> to vector<288x128xf32>
    %51 = arith.truncf %50 : vector<288x128xf32> to vector<288x128xbf16>
    %c1024 = arith.constant 1024 : index
    %c0_35 = arith.constant 0 : index
    %52 = vector.load %arg2[%c1024, %c0_35] : memref<1152x128xbf16, #tpu.memory_space<vmem>>, vector<128x128xbf16>
    %cst_36 = arith.constant dense<0.000000e+00> : vector<288x128xf32>
    %53 = tpu.matmul %51, %52, %cst_36 {dimension_numbers = #tpu.dot_dimension_numbers<[1], [0], [0], [1], [0, 0, 1, 1], [], []>} : vector<288x128xbf16>, vector<128x128xbf16>, vector<288x128xf32> -> vector<288x128xf32>
    %54 = arith.addf %48, %53 : vector<288x128xf32>
    %c0_37 = arith.constant 0 : index
    %c0_38 = arith.constant 0 : index
    %55 = vector.load %arg3[%c0_37, %c0_38] : memref<1x128xf32, #tpu.memory_space<vmem>>, vector<1x128xf32>
    %56 = vector.broadcast %55 : vector<1x128xf32> to vector<288x128xf32>
    %57 = arith.addf %54, %56 : vector<288x128xf32>
    %cst_39 = arith.constant 0.000000e+00 : f32
    %58 = vector.broadcast %cst_39 : f32 to vector<288x128xf32>
    %59 = arith.maximumf %57, %58 : vector<288x128xf32>
    %60 = tpu.iota {dimensions = array<i32: 0>} : vector<288x128xi32>
    %c18_i32 = arith.constant 18 : i32
    %c0_i32 = arith.constant 0 : i32
    %61 = arith.cmpi eq, %c18_i32, %c0_i32 : i32
    %c1_i32 = arith.constant 1 : i32
    %62 = arith.select %61, %c1_i32, %c18_i32 : i32
    %63 = vector.broadcast %62 : i32 to vector<288x128xi32>
    %64 = arith.remsi %60, %63 : vector<288x128xi32>
    %c0_i32_40 = arith.constant 0 : i32
    %65 = vector.broadcast %c0_i32_40 : i32 to vector<288x128xi32>
    %66 = arith.cmpi ne, %64, %65 : vector<288x128xi32>
    %c0_i32_41 = arith.constant 0 : i32
    %67 = vector.broadcast %c0_i32_41 : i32 to vector<288x128xi32>
    %68 = arith.cmpi slt, %64, %67 : vector<288x128xi32>
    %c0_i32_42 = arith.constant 0 : i32
    %69 = arith.cmpi slt, %62, %c0_i32_42 : i32
    %70 = vector.broadcast %69 : i1 to vector<288x128xi1>
    %71 = vector.broadcast %70 : vector<288x128xi1> to vector<288x128xi1>
    %72 = arith.xori %68, %71 : vector<288x128xi1>
    %73 = arith.andi %72, %66 : vector<288x128xi1>
    %74 = vector.broadcast %62 : i32 to vector<288x128xi32>
    %75 = arith.addi %64, %74 : vector<288x128xi32>
    %76 = arith.select %73, %75, %64 : vector<288x128xi1>, vector<288x128xi32>
    %c16_i32 = arith.constant 16 : i32
    %77 = vector.broadcast %c16_i32 : i32 to vector<288x128xi32>
    %78 = arith.cmpi slt, %76, %77 : vector<288x128xi32>
    %cst_43 = arith.constant 0.000000e+00 : f32
    %79 = vector.broadcast %cst_43 : f32 to vector<288x128xf32>
    %80 = arith.select %78, %59, %79 : vector<288x128xi1>, vector<288x128xf32>
    %cst_44 = arith.constant 0.000000e+00 : bf16
    %81 = vector.broadcast %cst_44 : bf16 to vector<19x128xbf16>
    %c0_45 = arith.constant 0 : index
    %c0_46 = arith.constant 0 : index
    %82 = vector.load %arg7[%c0_45, %c0_46] : memref<326x128xbf16, #tpu.memory_space<vmem>>, vector<19x128xbf16>
    tpu.vector_store %arg7[%c0_45, %c0_46], %81 {strides = array<i32>} : memref<326x128xbf16, #tpu.memory_space<vmem>>, vector<19x128xbf16>,
    %c307 = arith.constant 307 : index
    %c0_47 = arith.constant 0 : index
    %83 = vector.load %arg7[%c307, %c0_47] : memref<326x128xbf16, #tpu.memory_space<vmem>>, vector<19x128xbf16>
    tpu.vector_store %arg7[%c307, %c0_47], %81 {strides = array<i32>} : memref<326x128xbf16, #tpu.memory_space<vmem>>, vector<19x128xbf16>,
    %84 = arith.truncf %80 : vector<288x128xf32> to vector<288x128xbf16>
    %c19_48 = arith.constant 19 : index
    %c0_49 = arith.constant 0 : index
    %85 = vector.load %arg7[%c19_48, %c0_49] : memref<326x128xbf16, #tpu.memory_space<vmem>>, vector<288x128xbf16>
    tpu.vector_store %arg7[%c19_48, %c0_49], %84 {strides = array<i32>} : memref<326x128xbf16, #tpu.memory_space<vmem>>, vector<288x128xbf16>,
    %cst_50 = arith.constant 0.000000e+00 : f32
    %86 = vector.broadcast %cst_50 : f32 to vector<288x128xf32>
    %c0_51 = arith.constant 0 : index
    %c0_52 = arith.constant 0 : index
    %87 = vector.load %arg7[%c0_51, %c0_52] : memref<326x128xbf16, #tpu.memory_space<vmem>>, vector<288x128xbf16>
    %c0_53 = arith.constant 0 : index
    %c0_54 = arith.constant 0 : index
    %88 = vector.load %arg4[%c0_53, %c0_54] : memref<1152x128xbf16, #tpu.memory_space<vmem>>, vector<128x128xbf16>
    %cst_55 = arith.constant dense<0.000000e+00> : vector<288x128xf32>
    %89 = tpu.matmul %87, %88, %cst_55 {dimension_numbers = #tpu.dot_dimension_numbers<[1], [0], [0], [1], [0, 0, 1, 1], [], []>} : vector<288x128xbf16>, vector<128x128xbf16>, vector<288x128xf32> -> vector<288x128xf32>
    %90 = arith.addf %86, %89 : vector<288x128xf32>
    %c1_56 = arith.constant 1 : index
    %c0_57 = arith.constant 0 : index
    %91 = vector.load %arg7[%c1_56, %c0_57] : memref<326x128xbf16, #tpu.memory_space<vmem>>, vector<288x128xbf16>
    %c128_58 = arith.constant 128 : index
    %c0_59 = arith.constant 0 : index
    %92 = vector.load %arg4[%c128_58, %c0_59] : memref<1152x128xbf16, #tpu.memory_space<vmem>>, vector<128x128xbf16>
    %cst_60 = arith.constant dense<0.000000e+00> : vector<288x128xf32>
    %93 = tpu.matmul %91, %92, %cst_60 {dimension_numbers = #tpu.dot_dimension_numbers<[1], [0], [0], [1], [0, 0, 1, 1], [], []>} : vector<288x128xbf16>, vector<128x128xbf16>, vector<288x128xf32> -> vector<288x128xf32>
    %94 = arith.addf %90, %93 : vector<288x128xf32>
    %c2_61 = arith.constant 2 : index
    %c0_62 = arith.constant 0 : index
    %95 = vector.load %arg7[%c2_61, %c0_62] : memref<326x128xbf16, #tpu.memory_space<vmem>>, vector<288x128xbf16>
    %c256_63 = arith.constant 256 : index
    %c0_64 = arith.constant 0 : index
    %96 = vector.load %arg4[%c256_63, %c0_64] : memref<1152x128xbf16, #tpu.memory_space<vmem>>, vector<128x128xbf16>
    %cst_65 = arith.constant dense<0.000000e+00> : vector<288x128xf32>
    %97 = tpu.matmul %95, %96, %cst_65 {dimension_numbers = #tpu.dot_dimension_numbers<[1], [0], [0], [1], [0, 0, 1, 1], [], []>} : vector<288x128xbf16>, vector<128x128xbf16>, vector<288x128xf32> -> vector<288x128xf32>
    %98 = arith.addf %94, %97 : vector<288x128xf32>
    %c18_66 = arith.constant 18 : index
    %c0_67 = arith.constant 0 : index
    %99 = vector.load %arg7[%c18_66, %c0_67] : memref<326x128xbf16, #tpu.memory_space<vmem>>, vector<288x128xbf16>
    %c384_68 = arith.constant 384 : index
    %c0_69 = arith.constant 0 : index
    %100 = vector.load %arg4[%c384_68, %c0_69] : memref<1152x128xbf16, #tpu.memory_space<vmem>>, vector<128x128xbf16>
    %cst_70 = arith.constant dense<0.000000e+00> : vector<288x128xf32>
    %101 = tpu.matmul %99, %100, %cst_70 {dimension_numbers = #tpu.dot_dimension_numbers<[1], [0], [0], [1], [0, 0, 1, 1], [], []>} : vector<288x128xbf16>, vector<128x128xbf16>, vector<288x128xf32> -> vector<288x128xf32>
    %102 = arith.addf %98, %101 : vector<288x128xf32>
    %c19_71 = arith.constant 19 : index
    %c0_72 = arith.constant 0 : index
    %103 = vector.load %arg7[%c19_71, %c0_72] : memref<326x128xbf16, #tpu.memory_space<vmem>>, vector<288x128xbf16>
    %c512_73 = arith.constant 512 : index
    %c0_74 = arith.constant 0 : index
    %104 = vector.load %arg4[%c512_73, %c0_74] : memref<1152x128xbf16, #tpu.memory_space<vmem>>, vector<128x128xbf16>
    %cst_75 = arith.constant dense<0.000000e+00> : vector<288x128xf32>
    %105 = tpu.matmul %103, %104, %cst_75 {dimension_numbers = #tpu.dot_dimension_numbers<[1], [0], [0], [1], [0, 0, 1, 1], [], []>} : vector<288x128xbf16>, vector<128x128xbf16>, vector<288x128xf32> -> vector<288x128xf32>
    %106 = arith.addf %102, %105 : vector<288x128xf32>
    %c20_76 = arith.constant 20 : index
    %c0_77 = arith.constant 0 : index
    %107 = vector.load %arg7[%c20_76, %c0_77] : memref<326x128xbf16, #tpu.memory_space<vmem>>, vector<288x128xbf16>
    %c640_78 = arith.constant 640 : index
    %c0_79 = arith.constant 0 : index
    %108 = vector.load %arg4[%c640_78, %c0_79] : memref<1152x128xbf16, #tpu.memory_space<vmem>>, vector<128x128xbf16>
    %cst_80 = arith.constant dense<0.000000e+00> : vector<288x128xf32>
    %109 = tpu.matmul %107, %108, %cst_80 {dimension_numbers = #tpu.dot_dimension_numbers<[1], [0], [0], [1], [0, 0, 1, 1], [], []>} : vector<288x128xbf16>, vector<128x128xbf16>, vector<288x128xf32> -> vector<288x128xf32>
    %110 = arith.addf %106, %109 : vector<288x128xf32>
    %c36_81 = arith.constant 36 : index
    %c0_82 = arith.constant 0 : index
    %111 = vector.load %arg7[%c36_81, %c0_82] : memref<326x128xbf16, #tpu.memory_space<vmem>>, vector<288x128xbf16>
    %c768_83 = arith.constant 768 : index
    %c0_84 = arith.constant 0 : index
    %112 = vector.load %arg4[%c768_83, %c0_84] : memref<1152x128xbf16, #tpu.memory_space<vmem>>, vector<128x128xbf16>
    %cst_85 = arith.constant dense<0.000000e+00> : vector<288x128xf32>
    %113 = tpu.matmul %111, %112, %cst_85 {dimension_numbers = #tpu.dot_dimension_numbers<[1], [0], [0], [1], [0, 0, 1, 1], [], []>} : vector<288x128xbf16>, vector<128x128xbf16>, vector<288x128xf32> -> vector<288x128xf32>
    %114 = arith.addf %110, %113 : vector<288x128xf32>
    %c37_86 = arith.constant 37 : index
    %c0_87 = arith.constant 0 : index
    %115 = vector.load %arg7[%c37_86, %c0_87] : memref<326x128xbf16, #tpu.memory_space<vmem>>, vector<288x128xbf16>
    %c896_88 = arith.constant 896 : index
    %c0_89 = arith.constant 0 : index
    %116 = vector.load %arg4[%c896_88, %c0_89] : memref<1152x128xbf16, #tpu.memory_space<vmem>>, vector<128x128xbf16>
    %cst_90 = arith.constant dense<0.000000e+00> : vector<288x128xf32>
    %117 = tpu.matmul %115, %116, %cst_90 {dimension_numbers = #tpu.dot_dimension_numbers<[1], [0], [0], [1], [0, 0, 1, 1], [], []>} : vector<288x128xbf16>, vector<128x128xbf16>, vector<288x128xf32> -> vector<288x128xf32>
    %118 = arith.addf %114, %117 : vector<288x128xf32>
    %c38_91 = arith.constant 38 : index
    %c0_92 = arith.constant 0 : index
    %119 = vector.load %arg7[%c38_91, %c0_92] : memref<326x128xbf16, #tpu.memory_space<vmem>>, vector<288x128xbf16>
    %c1024_93 = arith.constant 1024 : index
    %c0_94 = arith.constant 0 : index
    %120 = vector.load %arg4[%c1024_93, %c0_94] : memref<1152x128xbf16, #tpu.memory_space<vmem>>, vector<128x128xbf16>
    %cst_95 = arith.constant dense<0.000000e+00> : vector<288x128xf32>
    %121 = tpu.matmul %119, %120, %cst_95 {dimension_numbers = #tpu.dot_dimension_numbers<[1], [0], [0], [1], [0, 0, 1, 1], [], []>} : vector<288x128xbf16>, vector<128x128xbf16>, vector<288x128xf32> -> vector<288x128xf32>
    %122 = arith.addf %118, %121 : vector<288x128xf32>
    %c0_96 = arith.constant 0 : index
    %c0_97 = arith.constant 0 : index
    %123 = vector.load %arg5[%c0_96, %c0_97] : memref<1x128xf32, #tpu.memory_space<vmem>>, vector<1x128xf32>
    %124 = vector.broadcast %123 : vector<1x128xf32> to vector<288x128xf32>
    %125 = arith.addf %122, %124 : vector<288x128xf32>
    %c0_98 = arith.constant 0 : index
    %c19_99 = arith.constant 19 : index
    %c0_100 = arith.constant 0 : index
    %126 = vector.load %arg1[%c0_98, %c19_99, %c0_100] : memref<1x326x128xf32, #tpu.memory_space<vmem>>, vector<1x288x128xf32>
    %127 = vector.shape_cast %126 : vector<1x288x128xf32> to vector<288x128xf32>
    %128 = arith.addf %125, %127 : vector<288x128xf32>
    %cst_101 = arith.constant 0.000000e+00 : f32
    %129 = vector.broadcast %cst_101 : f32 to vector<288x128xf32>
    %130 = arith.maximumf %128, %129 : vector<288x128xf32>
    %c0_102 = arith.constant 0 : index
    %c0_103 = arith.constant 0 : index
    %c0_104 = arith.constant 0 : index
    %131 = vector.load %arg6[%c0_102, %c0_103, %c0_104] : memref<1x288x128xf32, #tpu.memory_space<vmem>>, vector<1x288x128xf32>
    %132 = vector.shape_cast %131 : vector<1x288x128xf32> to vector<288x128xf32>
    %133 = vector.shape_cast %130 : vector<288x128xf32> to vector<1x288x128xf32>
    tpu.vector_store %arg6[%c0_102, %c0_103, %c0_104], %133 {strides = array<i32>} : memref<1x288x128xf32, #tpu.memory_space<vmem>>, vector<1x288x128xf32>,
    return
  }
  func.func @transform_0(%arg0: i32) -> (i32, i32, i32) {
    %c0_i32 = arith.constant 0 : i32
    %c0_i32_0 = arith.constant 0 : i32
    %c0_i32_1 = arith.constant 0 : i32
    return %arg0, %c0_i32, %c0_i32_0 : i32, i32, i32
  }
  func.func @transform_1(%arg0: i32) -> (i32, i32) {
    %c0_i32 = arith.constant 0 : i32
    %c0_i32_0 = arith.constant 0 : i32
    %c0_i32_1 = arith.constant 0 : i32
    return %c0_i32, %c0_i32_0 : i32, i32
  }
  func.func @transform_2(%arg0: i32) -> (i32, i32) {
    %c0_i32 = arith.constant 0 : i32
    %c0_i32_0 = arith.constant 0 : i32
    %c0_i32_1 = arith.constant 0 : i32
    return %c0_i32, %c0_i32_0 : i32, i32
  }
  func.func @transform_3(%arg0: i32) -> (i32, i32) {
    %c0_i32 = arith.constant 0 : i32
    %c0_i32_0 = arith.constant 0 : i32
    %c0_i32_1 = arith.constant 0 : i32
    return %c0_i32, %c0_i32_0 : i32, i32
  }
  func.func @transform_4(%arg0: i32) -> (i32, i32) {
    %c0_i32 = arith.constant 0 : i32
    %c0_i32_0 = arith.constant 0 : i32
    %c0_i32_1 = arith.constant 0 : i32
    return %c0_i32, %c0_i32_0 : i32, i32
  }
  func.func @transform_5(%arg0: i32) -> (i32, i32, i32) {
    %c0_i32 = arith.constant 0 : i32
    %c0_i32_0 = arith.constant 0 : i32
    %c0_i32_1 = arith.constant 0 : i32
    return %arg0, %c0_i32, %c0_i32_0 : i32, i32, i32
  }
}

</mosaic_0001>

<bundles_post_ra>
// kernel: tpu_custom_call.1
= control target key start
LH: loop header
LB: loop body
LE: loop exit
PB: predicated region body
PF: predicated region fallthrough
CT: control target
= control target key end

     0   :  { %10 = vsyncpa [#allocation4], 0  ;;  %s15121_s0 = inlined_call_operand.vmem [shape: f32[2,326,128], index: 0, kind: input, shape index: {}]   ;;  %s15122_s1 = inlined_call_operand.vmem [shape: bf16[1152,128], index: 1, kind: input, shape index: {}]   ;;  %s15123_s2 = inlined_call_operand.vmem [shape: f32[1,128], index: 2, kind: input, shape index: {}]   ;;  %s15124_s3 = inlined_call_operand.vmem [shape: bf16[1152,128], index: 3, kind: input, shape index: {}]   ;;  %s15125_s4 = inlined_call_operand.vmem [shape: f32[1,128], index: 4, kind: input, shape index: {}]   ;;  %s15126_s5 = inlined_call_operand.hbm [shape: f32[2,288,128], index: 5, kind: output, shape index: {}]  }
   0x1   :  { %12 = vsyncpa [#allocation4 + $0x1], 0  ;;  %s10514_s18 = smov 0   ;;  %s10516_s19 = smov 0  }
   0x2   :  { %s10518_s20 = smov 0   ;;  %s10520_s21 = smov 0  }
   0x3 LB: > { %s10535_s22 = sadd.s32 4294967295, %s10478_s21   ;;  %s8393_s23 = sadd.s32 4294967294, %s10478_s21   ;;  %s10478_s21 = sphi %s10520_s21, %s15827_s21   ;;  %s10474_s20 = sphi %s10518_s20, %s15826_s20   ;;  %s10470_s19 = sphi %s10516_s19, %s15825_s19   ;;  %s10466_s18 = sphi %s10514_s18, %s15824_s18  }
   0x4   : > { %s10539_s24 = sadd.s32 1, %s10478_s21   ;;  %s135_s25 = sadd.s32 1, %s10474_s20 }
   0x5   : > { %s132_s26 = ssub.s32 %s10478_s21, %s10539_s24  ;;  %p145_p0 = scmp.ne.s32.totalorder %s10474_s20, %s10470_s19 }
   0x6   : > { %p133_p1 = scmp.eq.s32.totalorder %s132_s26, 0  ;;  %p146_p2 = scmp.eq.s32.totalorder %s10535_s22, 1 }
   0x7   : > { %p151_p3 = scmp.ne.s32.totalorder %s10470_s19, %s10466_s18  ;;  %p152_p4 = scmp.eq.s32.totalorder %s8393_s23, 1 }
   0x8   : > { %s10550_s27 = scalar_select %p133_p1, %s10474_s20, %s135_s25  }
   0x9   : > { %p10552_p5 = por %p146_p2, %p145_p0  ;;  %p10556_p6 = por %p152_p4, %p151_p3 }
   0xa   : > { %p8396_p7 = scmp.ge.s32.totalorder %s10478_s21, 1  ;;  %p190_p8 = scmp.lt.s32.totalorder %s10478_s21, 3 }
   0xc   : > { %p191_p9 = pnand %p8396_p7, %p190_p8 }
   0xe   : > { %194 = sbr.rel (%p191_p9) target bundleno = 1230 (0x4ce), region = 40 }
  0x13   : > { %v10202_v0 = vld [vmem:[%s15122_s1 + $0x78] sm:$0xff]   ;;  %p218_p10 = scmp.lt.s32.totalorder %s10535_s22, 1  ;;  %v10204_v2 = vld [vmem:[%s15122_s1 + $0x70] sm:$0xff]   ;;  %v10206_v4 = vld [vmem:[%s15122_s1 + $0x68] sm:$0xff]   ;;  %vm3897_vm0 = vcmask 1041408   ;;  %vm3903_vm3 = vcmask 1043457  }
  0x14   : > { %v10203_v1 = vld [vmem:[%s15122_s1 + $0x38] sm:$0xff]   ;;  %9149 = vmatprep.subr.bf16.mxu0 %v10202_v0  ;;  %v10205_v3 = vld [vmem:[%s15122_s1 + $0x30] sm:$0xff]   ;;  %v10207_v5 = vld [vmem:[%s15122_s1 + $0x28] sm:$0xff]   ;;  %vm15153_vm1 = vsmask.f32 1280  ;;  %s215_s23 = sand.u32 1, %s10470_s19  }
  0x15   : > { %9201 = vmatprep.subr.bf16.mxu1 %v10203_v1  ;;  %9150 = vmatpush3.bf16.msra.mxu0 %v10202_v0  ;;  %s219_s17 = scalar_select %p218_p10, %s10535_s22, 1  ;;  %v10208_v6 = vld [vmem:[%s15122_s1 + $0x60] sm:$0xff]   ;;  %v10210_v8 = vld [vmem:[%s15122_s1 + $0x58] sm:$0xff]   ;;  %v10212_v10 = vld [vmem:[%s15122_s1 + $0x50] sm:$0xff]   ;;  %vm3904_vm4 = vsmask.f32 7942 }
  0x16   : > { %9202 = vmatpush3.bf16.msra.mxu1 %v10203_v1  ;;  %9151 = vmatprep.subr.bf16.mxu0 %v10204_v2  ;;  %v10209_v7 = vld [vmem:[%s15122_s1 + $0x20] sm:$0xff]   ;;  %v10211_v9 = vld [vmem:[%s15122_s1 + $0x18] sm:$0xff]   ;;  %v10213_v14 = vld [vmem:[%s15122_s1 + $0x10] sm:$0xff]   ;;  %s10085_s30 = smul.u32 288, %s215_s23  ;;  %s10481_s12 = smov [#allocation3]  }
  0x17   : > { %9203 = vmatprep.subr.bf16.mxu1 %v10205_v3  ;;  %s10086_s6 = smul.u32 328, %s219_s17  ;;  %v10214_v18 = vld [vmem:[%s15122_s1 + $0x48] sm:$0xff]   ;;  %v10216_v20 = vld [vmem:[%s15122_s1 + $0x40] sm:$0xff]   ;;  %v10218_v26 = vld [vmem:[%s15122_s1 + $0xb8] sm:$0xff]   ;;  %s10422_s14 = sshll.u32 %s10481_s12, 4  ;;  %s10423_s14 = int_to_ptr.vmem [resolvable:$false] %s10422_s14 }
  0x18   : > { %v10215_v19 = vld [vmem:[%s15122_s1 + $0x8] sm:$0xff]   ;;  %v10217_v21 = vld [vmem:[%s15122_s1] sm:$0xff]   ;;  %v10219_v35 = vld [vmem:[%s15122_s1 + $0xb0] sm:$0xff]   ;;  %s10159_s7 = smul.u32 4608, %s10535_s22  ;;  %s15081_s22 = scalar_lea.sflag [#allocation4], %s215_s23 }
  0x19   : > { %9152 = vmatpush3.bf16.msra.mxu0 %v10204_v2  ;;  %s10597_s13 = scalar_lea.vmem %s15121_s0, %s10086_s6  ;;  %v10220_v44 = vld [vmem:[%s15122_s1 + $0xa8] sm:$0xff]   ;;  %v10223_v45 = vld [vmem:[%s15122_s1 + $0xf8] sm:$0xff]   ;;  %v10225_v49 = vld [vmem:[%s15122_s1 + $0xf0] sm:$0xff]   ;;  %s14898_s6 = scalar_lea.vmem [#allocation3], %s10085_s30 }
  0x1a   : > { %9204 = vmatpush3.bf16.msra.mxu1 %v10205_v3  ;;  %9153 = vmatprep.subr.bf16.mxu0 %v10206_v4  ;;  %v294_v11 = vld [vmem:[%s10597_s13 + $0x1] sm:$0xff]  ;;  %v295_v12 = vld [vmem:[%s10597_s13 + $0x9] sm:$0xff]  ;;  %v296_v22 = vld [vmem:[%s10597_s13 + $0x11] sm:$0xff]  ;;  %s8331_s8 = sshll.u32 %s14898_s6, 4  ;;  %s15073_s11 = scalar_lea.hbm %s15126_s5, %s10159_s7  ;;  %s15076_s8 = int_to_ptr.vmem [resolvable:$true] %s8331_s8 }
  0x1b   : > { %9205 = vmatprep.subr.bf16.mxu1 %v10207_v5  ;;  %v224_v13 = vld [vmem:[%s10597_s13] sm:$0xff]  ;;  %v330_v15 = vpack.c.bf16 %v295_v12, %v294_v11  ;;  %v225_v16 = vld [vmem:[%s10597_s13 + $0x8] sm:$0xff]  ;;  %v226_v24 = vld [vmem:[%s10597_s13 + $0x10] sm:$0xff]  ;;  %s10424_s15 = scalar_lea.vmem %s10423_s14, 9216  ;;  %p10425_p0 = scmp.lt.s32.totalorder %s15076_s8, %s10423_s14 }
  0x1c   : > { %v260_v17 = vpack.c.bf16 %v225_v16, %v224_v13  ;;  %v297_v23 = vld [vmem:[%s10597_s13 + $0x19] sm:$0xff]  ;;  %v298_v27 = vld [vmem:[%s10597_s13 + $0x21] sm:$0xff]  ;;  %v299_v28 = vld [vmem:[%s10597_s13 + $0x29] sm:$0xff] }
  0x1d   : > { %9154 = vmatpush3.bf16.msra.mxu0 %v10206_v4  ;;  %9165 = vmatprep.mubr.bf16.mxu0 %v330_v15  ;;  %v227_v25 = vld [vmem:[%s10597_s13 + $0x18] sm:$0xff]  ;;  %v228_v29 = vld [vmem:[%s10597_s13 + $0x20] sm:$0xff]  ;;  %v229_v30 = vld [vmem:[%s10597_s13 + $0x28] sm:$0xff]  ;;  %v331_v31 = vpack.c.bf16 %v297_v23, %v296_v22  ;;  %v332_v33 = vpack.c.bf16 %v299_v28, %v298_v27 }
  0x1e   : > { %9206 = vmatpush3.bf16.msra.mxu1 %v10207_v5  ;;  %9155 = vmatprep.subr.bf16.mxu0 %v10208_v6  ;;  %v261_v32 = vpack.c.bf16 %v227_v25, %v226_v24  ;;  %v262_v34 = vpack.c.bf16 %v229_v30, %v228_v29  ;;  %v300_v36 = vld [vmem:[%s10597_s13 + $0x31] sm:$0xff]  ;;  %v301_v37 = vld [vmem:[%s10597_s13 + $0x39] sm:$0xff]  ;;  %v302_v40 = vld [vmem:[%s10597_s13 + $0x41] sm:$0xff] }
  0x1f   : > { %9207 = vmatprep.subr.bf16.mxu1 %v10209_v7  ;;  %9217 = vmatprep.mubr.bf16.mxu1 %v260_v17  ;;  %v230_v38 = vld [vmem:[%s10597_s13 + $0x30] sm:$0xff]  ;;  %v231_v39 = vld [vmem:[%s10597_s13 + $0x38] sm:$0xff]  ;;  %v232_v42 = vld [vmem:[%s10597_s13 + $0x40] sm:$0xff]  ;;  %v333_v46 = vpack.c.bf16 %v301_v37, %v300_v36 }
  0x20   : > { %v303_v41 = vld [vmem:[%s10597_s13 + $0x49] sm:$0xff]  ;;  %v263_v47 = vpack.c.bf16 %v231_v39, %v230_v38  ;;  %v304_v51 = vld [vmem:[%s10597_s13 + $0x51] sm:$0xff]  ;;  %v305_v52 = vld [vmem:[%s10597_s13 + $0x59] sm:$0xff] }
  0x21   : > { %9156 = vmatpush3.bf16.msra.mxu0 %v10208_v6  ;;  %v233_v43 = vld [vmem:[%s10597_s13 + $0x48] sm:$0xff]  ;;  %v334_v48 = vpack.c.bf16 %v303_v41, %v302_v40  ;;  %v10221_v53 = vld [vmem:[%s15122_s1 + $0xa0] sm:$0xff]   ;;  %v234_v54 = vld [vmem:[%s10597_s13 + $0x50] sm:$0xff]  ;;  %v335_v62 = vpack.c.bf16 %v305_v52, %v304_v51 }
  0x22   : > { %9208 = vmatpush3.bf16.msra.mxu1 %v10209_v7  ;;  %9157 = vmatprep.subr.bf16.mxu0 %v10210_v8  ;;  %v264_v50 = vpack.c.bf16 %v233_v43, %v232_v42  ;;  %v235_v55 = vld [vmem:[%s10597_s13 + $0x58] sm:$0xff]  ;;  %v306_v56 = vld [vmem:[%s10597_s13 + $0x61] sm:$0xff]  ;;  %v307_v57 = vld [vmem:[%s10597_s13 + $0x69] sm:$0xff] }
  0x23   : > { %9209 = vmatprep.subr.bf16.mxu1 %v10211_v9  ;;  %v10226_v58 = vld [vmem:[%s15122_s1 + $0xe8] sm:$0xff]   ;;  %v236_v59 = vld [vmem:[%s10597_s13 + $0x60] sm:$0xff]  ;;  %v10222_v61 = vld [vmem:[%s15122_s1 + $0x98] sm:$0xff]   ;;  %v265_v0 = vpack.c.bf16 %v235_v55, %v234_v54  ;;  %v336_v1 = vpack.c.bf16 %v307_v57, %v306_v56 }
  0x24   : > { %v237_v60 = vld [vmem:[%s10597_s13 + $0x68] sm:$0xff]  ;;  %v10228_v63 = vld [vmem:[%s15122_s1 + $0xe0] sm:$0xff]   ;;  %v10224_v3 = vld [vmem:[%s15122_s1 + $0x90] sm:$0xff]  }
  0x25   : > { %9158 = vmatpush3.bf16.msra.mxu0 %v10210_v8  ;;  %v266_v2 = vpack.c.bf16 %v237_v60, %v236_v59  ;;  %v308_v4 = vld [vmem:[%s10597_s13 + $0x71] sm:$0xff]  ;;  %v309_v5 = vld [vmem:[%s10597_s13 + $0x79] sm:$0xff]  ;;  %v241_v12 = vld [vmem:[%s10597_s13 + $0x88] sm:$0xff] }
  0x26   : > { %9210 = vmatpush3.bf16.msra.mxu1 %v10211_v9  ;;  %9159 = vmatprep.subr.bf16.mxu0 %v10212_v10  ;;  %v10229_v6 = vld [vmem:[%s15122_s1 + $0xd8] sm:$0xff]   ;;  %v238_v7 = vld [vmem:[%s10597_s13 + $0x70] sm:$0xff]  ;;  %v310_v9 = vld [vmem:[%s10597_s13 + $0x81] sm:$0xff] }
  0x27   : > { %9211 = vmatprep.subr.bf16.mxu1 %v10213_v14  ;;  %v239_v8 = vld [vmem:[%s10597_s13 + $0x78] sm:$0xff]  ;;  %v240_v11 = vld [vmem:[%s10597_s13 + $0x80] sm:$0xff]  ;;  %v10227_v13 = vld [vmem:[%s15122_s1 + $0x88] sm:$0xff]  }
  0x28   : > { %v10230_v15 = vld [vmem:[%s15122_s1 + $0xd0] sm:$0xff]   ;;  %v267_v16 = vpack.c.bf16 %v239_v8, %v238_v7  ;;  %v10232_v22 = vld [vmem:[%s15122_s1 + $0xc8] sm:$0xff]   ;;  %v243_v24 = vld [vmem:[%s10597_s13 + $0x98] sm:$0xff] }
  0x29   : > { %9160 = vmatpush3.bf16.msra.mxu0 %v10212_v10  ;;  %v311_v10 = vld [vmem:[%s10597_s13 + $0x89] sm:$0xff]  ;;  %v314_v25 = vld [vmem:[%s10597_s13 + $0xa1] sm:$0xff]  ;;  %v10709_v29 = vld [vmem:[%s15122_s1 + $0x138] sm:$0xff]  }
  0x2a   : > { %9212 = vmatpush3.bf16.msra.mxu1 %v10213_v14  ;;  %9161 = vmatprep.subr.bf16.mxu0 %v10214_v18  ;;  %v337_v14 = vpack.c.bf16 %v309_v5, %v308_v4  ;;  %v338_v17 = vpack.c.bf16 %v311_v10, %v310_v9  ;;  %v242_v23 = vld [vmem:[%s10597_s13 + $0x90] sm:$0xff]  ;;  %v244_v27 = vld [vmem:[%s10597_s13 + $0xa0] sm:$0xff]  ;;  %v245_v28 = vld [vmem:[%s10597_s13 + $0xa8] sm:$0xff] }
  0x2b   : > { %9213 = vmatprep.subr.bf16.mxu1 %v10215_v19  ;;  %v317_v36 = vld [vmem:[%s10597_s13 + $0xb9] sm:$0xff]  ;;  %v246_v37 = vld [vmem:[%s10597_s13 + $0xb0] sm:$0xff]  ;;  %v318_v39 = vld [vmem:[%s10597_s13 + $0xc1] sm:$0xff] }
  0x2c   : > { %v247_v38 = vld [vmem:[%s10597_s13 + $0xb8] sm:$0xff]  ;;  %v319_v40 = vld [vmem:[%s10597_s13 + $0xc9] sm:$0xff]  ;;  %v248_v41 = vld [vmem:[%s10597_s13 + $0xc0] sm:$0xff] }
  0x2d   : > { %9162 = vmatpush3.bf16.msra.mxu0 %v10214_v18  ;;  %v268_v18 = vpack.c.bf16 %v241_v12, %v240_v11  ;;  %v249_v42 = vld [vmem:[%s10597_s13 + $0xc8] sm:$0xff]  ;;  %v251_v51 = vld [vmem:[%s10597_s13 + $0xd8] sm:$0xff]  ;;  %v252_v54 = vld [vmem:[%s10597_s13 + $0xe0] sm:$0xff] }
  0x2e   : > { %9214 = vmatpush3.bf16.msra.mxu1 %v10215_v19  ;;  %9163 = vmatprep.subr.bf16.mxu0 %v10216_v20  ;;  %v10231_v19 = vld [vmem:[%s15122_s1 + $0x80] sm:$0xff]   ;;  %v253_v55 = vld [vmem:[%s10597_s13 + $0xe8] sm:$0xff]  ;;  %v324_v60 = vld [vmem:[%s10597_s13 + $0xf1] sm:$0xff] }
  0x2f   : > { %9215 = vmatprep.subr.bf16.mxu1 %v10217_v21  ;;  %v322_v52 = vld [vmem:[%s10597_s13 + $0xe1] sm:$0xff]  ;;  %v274_v59 = vpack.c.bf16 %v253_v55, %v252_v54  ;;  %v328_v8 = vld [vmem:[%s10597_s13 + $0x111] sm:$0xff]  ;;  %v329_v9 = vld [vmem:[%s10597_s13 + $0x119] sm:$0xff] }
  0x30   : > { %v258_v10 = vld [vmem:[%s10597_s13 + $0x110] sm:$0xff]  ;;  %v259_v11 = vld [vmem:[%s10597_s13 + $0x118] sm:$0xff]  ;;  %v814_v12 = vld [vmem:[%s10597_s13 + $0x2] sm:$0xff] }
  0x31   : > { %9164 = vmatpush3.bf16.msra.mxu0 %v10216_v20  ;;  %v312_v20 = vld [vmem:[%s10597_s13 + $0x91] sm:$0xff]  ;;  %vm11413_vm2 = vmand %vm3897_vm0, %vm15153_vm1 }
  0x32   : > { %9216 = vmatpush3.bf16.msra.mxu1 %v10217_v21  ;;  %9253 = vmatprep.subr.bf16.mxu0 %v10218_v26  ;;  %v313_v21 = vld [vmem:[%s10597_s13 + $0x99] sm:$0xff]  ;;  %vm11452_vm5 = vmand %vm3903_vm3, %vm3904_vm4 }
  0x33   : > { %9305 = vmatprep.subr.bf16.mxu1 %v10223_v45  ;;  %v339_v30 = vpack.c.bf16 %v313_v21, %v312_v20  ;;  %v1147_v20 = vld [vmem:[%s10597_s13 + $0x22] sm:$0xff]  ;;  %v1148_v21 = vld [vmem:[%s10597_s13 + $0x2a] sm:$0xff] }
  0x34   : > { %9166 = vmatmul.mubr.bf16.vlgmr.msra.gmra.mxu0 %v331_v31  ;;  %v10233_v31 = vld [vmem:[%s15122_s1 + $0xc0] sm:$0xff]  }
  0x35   : > { %9218 = vmatmul.mubr.bf16.vlgmr.msra.gmra.mxu1 %v261_v32  ;;  %9254 = vmatpush3.bf16.msra.mxu0 %v10218_v26  ;;  %v315_v26 = vld [vmem:[%s10597_s13 + $0xa9] sm:$0xff]  ;;  %v269_v32 = vpack.c.bf16 %v243_v24, %v242_v23  ;;  %v821_v23 = vld [vmem:[%s10597_s13 + $0x3a] sm:$0xff]  ;;  %v1182_v24 = vpack.c.bf16 %v1148_v21, %v1147_v20 }
  0x36   : > { %9169 = vmatprep.mubr.bf16.mxu0 %v332_v33  ;;  %9221 = vmatprep.mubr.bf16.mxu1 %v262_v34  ;;  %v340_v33 = vpack.c.bf16 %v315_v26, %v314_v25  ;;  %v270_v34 = vpack.c.bf16 %v245_v28, %v244_v27  ;;  %v10235_v26 = vld [vmem:[%s15122_s1 + $0x130] sm:$0xff]   ;;  %v1151_v28 = vld [vmem:[%s10597_s13 + $0x42] sm:$0xff] }
  0x37   : > { %9255 = vmatprep.subr.bf16.mxu0 %v10219_v35  ;;  %9306 = vmatpush3.bf16.msra.mxu1 %v10223_v45  ;;  %v271_v45 = vpack.c.bf16 %v247_v38, %v246_v37  ;;  %v10241_v27 = vld [vmem:[%s15122_s1 + $0x170] sm:$0xff]   ;;  %v10244_v37 = vld [vmem:[%s15122_s1 + $0x160] sm:$0xff]  }
  0x38   : > { %9307 = vmatprep.subr.bf16.mxu1 %v10225_v49  ;;  %v1155_v38 = vld [vmem:[%s10597_s13 + $0x62] sm:$0xff]  ;;  %v1180_v21 = vld [vmem:[%s10597_s13 + $0x12a] sm:$0xff] }
  0x39   : > { %9256 = vmatpush3.bf16.msra.mxu0 %v10219_v35  ;;  %v316_v35 = vld [vmem:[%s10597_s13 + $0xb1] sm:$0xff]  ;;  %v1179_v20 = vld [vmem:[%s10597_s13 + $0x122] sm:$0xff] }
  0x3a   : > { %9257 = vmatprep.subr.bf16.mxu0 %v10220_v44  ;;  %v341_v43 = vpack.c.bf16 %v317_v36, %v316_v35  ;;  %v10237_v36 = vld [vmem:[%s15122_s1 + $0x120] sm:$0xff]  }
  0x3b   : > { %9308 = vmatpush3.bf16.msra.mxu1 %v10225_v49  ;;  %v321_v49 = vld [vmem:[%s10597_s13 + $0xd9] sm:$0xff] }
  0x3c   : > { %9170 = vmatmul.mubr.bf16.gmra.mxu0 %v333_v46  ;;  %9309 = vmatprep.subr.bf16.mxu1 %v10226_v58  ;;  %v342_v46 = vpack.c.bf16 %v319_v40, %v318_v39  ;;  %v1156_v39 = vld [vmem:[%s10597_s13 + $0x6a] sm:$0xff]  ;;  %v828_v40 = vld [vmem:[%s10597_s13 + $0x72] sm:$0xff] }
  0x3d   : > { %9222 = vmatmul.mubr.bf16.gmra.mxu1 %v263_v47  ;;  %9173 = vmatprep.mubr.bf16.mxu0 %v334_v48  ;;  %v272_v47 = vpack.c.bf16 %v249_v42, %v248_v41  ;;  %v320_v48 = vld [vmem:[%s10597_s13 + $0xd1] sm:$0xff]  ;;  %v829_v41 = vld [vmem:[%s10597_s13 + $0x7a] sm:$0xff] }
  0x3e   : > { %9225 = vmatprep.mubr.bf16.mxu1 %v264_v50  ;;  %9258 = vmatpush3.bf16.msra.mxu0 %v10220_v44  ;;  %v10726_v44 = vld [vmem:[%s15122_s1 + $0x178] sm:$0xff]   ;;  %v250_v50 = vld [vmem:[%s10597_s13 + $0xd0] sm:$0xff]  ;;  %v343_v56 = vpack.c.bf16 %v321_v49, %v320_v48 }
  0x3f   : > { %9259 = vmatprep.subr.bf16.mxu0 %v10221_v53  ;;  %9310 = vmatpush3.bf16.msra.mxu1 %v10226_v58  ;;  %v273_v57 = vpack.c.bf16 %v251_v51, %v250_v50  ;;  %v10238_v42 = vld [vmem:[%s15122_s1 + $0x118] sm:$0xff]   ;;  %v10246_v48 = vld [vmem:[%s15122_s1 + $0x150] sm:$0xff]  }
  0x40   : > { %9311 = vmatprep.subr.bf16.mxu1 %v10228_v63  ;;  %v1160_v49 = vld [vmem:[%s10597_s13 + $0x8a] sm:$0xff]  ;;  %v832_v50 = vld [vmem:[%s10597_s13 + $0x92] sm:$0xff]  ;;  %v833_v51 = vld [vmem:[%s10597_s13 + $0x9a] sm:$0xff] }
  0x41   : > { %v859_v55 = vpack.c.bf16 %v833_v51, %v832_v50  ;;  %v1815_v50 = vld [vmem:[%s10597_s13 + $0x54] sm:$0xff]  ;;  %v1816_v51 = vld [vmem:[%s10597_s13 + $0x5c] sm:$0xff] }
  0x42   : > { %9260 = vmatpush3.bf16.msra.mxu0 %v10221_v53  ;;  %v323_v53 = vld [vmem:[%s10597_s13 + $0xe9] sm:$0xff] }
  0x43   : > { %9261 = vmatprep.subr.bf16.mxu0 %v10222_v61  ;;  %9312 = vmatpush3.bf16.msra.mxu1 %v10228_v63  ;;  %v344_v58 = vpack.c.bf16 %v323_v53, %v322_v52  ;;  %v255_v63 = vld [vmem:[%s10597_s13 + $0xf8] sm:$0xff]  ;;  %v10243_v52 = vld [vmem:[%s15122_s1 + $0x108] sm:$0xff]  }
  0x44   : > { %9174 = vmatmul.mubr.bf16.gmra.mxu0 %v335_v62  ;;  %9313 = vmatprep.subr.bf16.mxu1 %v10229_v6  ;;  %v254_v62 = vld [vmem:[%s10597_s13 + $0xf0] sm:$0xff]  ;;  %v10248_v53 = vld [vmem:[%s15122_s1 + $0x148] sm:$0xff]  }
  0x45   : > { %9226 = vmatmul.mubr.bf16.gmra.mxu1 %v265_v0  ;;  %9177 = vmatprep.mubr.bf16.mxu0 %v336_v1  ;;  %v326_v0 = vld [vmem:[%s10597_s13 + $0x101] sm:$0xff]  ;;  %v327_v1 = vld [vmem:[%s10597_s13 + $0x109] sm:$0xff]  ;;  %v275_v5 = vpack.c.bf16 %v255_v63, %v254_v62  ;;  %v10820_v62 = vld [vmem:[%s15122_s1 + $0x1b8] sm:$0xff]  }
  0x46   : > { %9229 = vmatprep.mubr.bf16.mxu1 %v266_v2  ;;  %9262 = vmatpush3.bf16.msra.mxu0 %v10222_v61  ;;  %v325_v61 = vld [vmem:[%s10597_s13 + $0xf9] sm:$0xff] }
  0x47   : > { %9263 = vmatprep.subr.bf16.mxu0 %v10224_v3  ;;  %9314 = vmatpush3.bf16.msra.mxu1 %v10229_v6  ;;  %v256_v2 = vld [vmem:[%s10597_s13 + $0x100] sm:$0xff]  ;;  %v345_v4 = vpack.c.bf16 %v325_v61, %v324_v60  ;;  %v346_v6 = vpack.c.bf16 %v327_v1, %v326_v0  ;;  %v836_v60 = vld [vmem:[%s10597_s13 + $0xb2] sm:$0xff] }
  0x48   : > { %9315 = vmatprep.subr.bf16.mxu1 %v10230_v15  ;;  %v837_v61 = vld [vmem:[%s10597_s13 + $0xba] sm:$0xff] }
  0x49   : > { %v10825_v63 = vld [vmem:[%s15122_s1 + $0x1f8] sm:$0xff]   ;;  %v861_v1 = vpack.c.bf16 %v837_v61, %v836_v60  ;;  %v1817_v60 = vld [vmem:[%s10597_s13 + $0x64] sm:$0xff]  ;;  %v1818_v61 = vld [vmem:[%s10597_s13 + $0x6c] sm:$0xff] }
  0x4a   : > { %9264 = vmatpush3.bf16.msra.mxu0 %v10224_v3  ;;  %v257_v3 = vld [vmem:[%s10597_s13 + $0x108] sm:$0xff] }
  0x4b   : > { %9265 = vmatprep.subr.bf16.mxu0 %v10227_v13  ;;  %9316 = vmatpush3.bf16.msra.mxu1 %v10230_v15  ;;  %v276_v7 = vpack.c.bf16 %v257_v3, %v256_v2  ;;  %v817_v15 = vld [vmem:[%s10597_s13 + $0x1a] sm:$0xff]  ;;  %v1167_v2 = vld [vmem:[%s10597_s13 + $0xc2] sm:$0xff]  ;;  %v1168_v3 = vld [vmem:[%s10597_s13 + $0xca] sm:$0xff] }
  0x4c   : > { %9178 = vmatmul.mubr.bf16.gmra.mxu0 %v337_v14  ;;  %9317 = vmatprep.subr.bf16.mxu1 %v10232_v22  ;;  %v816_v14 = vld [vmem:[%s10597_s13 + $0x12] sm:$0xff] }
  0x4d   : > { %9230 = vmatmul.mubr.bf16.gmra.mxu1 %v267_v16  ;;  %9181 = vmatprep.mubr.bf16.mxu0 %v338_v17  ;;  %v347_v16 = vpack.c.bf16 %v329_v9, %v328_v8  ;;  %v277_v17 = vpack.c.bf16 %v259_v11, %v258_v10  ;;  %v1171_v8 = vld [vmem:[%s10597_s13 + $0xe2] sm:$0xff]  ;;  %v1172_v9 = vld [vmem:[%s10597_s13 + $0xea] sm:$0xff]  ;;  %v844_v10 = vld [vmem:[%s10597_s13 + $0xf2] sm:$0xff] }
  0x4e   : > { %9233 = vmatprep.mubr.bf16.mxu1 %v268_v18  ;;  %9266 = vmatpush3.bf16.msra.mxu0 %v10227_v13  ;;  %v815_v13 = vld [vmem:[%s10597_s13 + $0xa] sm:$0xff]  ;;  %v845_v11 = vld [vmem:[%s10597_s13 + $0xfa] sm:$0xff] }
  0x4f   : > { %9267 = vmatprep.subr.bf16.mxu0 %v10231_v19  ;;  %9318 = vmatpush3.bf16.msra.mxu1 %v10232_v22  ;;  %v850_v18 = vpack.c.bf16 %v815_v13, %v814_v12  ;;  %v820_v22 = vld [vmem:[%s10597_s13 + $0x32] sm:$0xff]  ;;  %v1194_v12 = vpack.c.bf16 %v1172_v9, %v1171_v8  ;;  %v865_v13 = vpack.c.bf16 %v845_v11, %v844_v10  ;;  %v1490_v11 = vld [vmem:[%s10597_s13 + $0x83] sm:$0xff] }
  0x50   : > { %9319 = vmatprep.subr.bf16.mxu1 %v10233_v31  ;;  %v853_v25 = vpack.c.bf16 %v821_v23, %v820_v22  ;;  %v1476_v22 = vld [vmem:[%s10597_s13 + $0x13] sm:$0xff]  ;;  %v1477_v23 = vld [vmem:[%s10597_s13 + $0x1b] sm:$0xff] }
  0x51   : > { %v10256_v9 = vld [vmem:[%s15122_s1 + $0x190] sm:$0xff]  }
  0x52   : > { %9268 = vmatpush3.bf16.msra.mxu0 %v10231_v19  ;;  %v851_v19 = vpack.c.bf16 %v817_v15, %v816_v14  ;;  %v1175_v14 = vld [vmem:[%s10597_s13 + $0x102] sm:$0xff]  ;;  %v1176_v15 = vld [vmem:[%s10597_s13 + $0x10a] sm:$0xff] }
  0x53   : > { %9357 = vmatprep.subr.bf16.mxu0 %v10709_v29  ;;  %9320 = vmatpush3.bf16.msra.mxu1 %v10233_v31  ;;  %v10236_v31 = vld [vmem:[%s15122_s1 + $0x128] sm:$0xff]   ;;  %v10262_v10 = vld [vmem:[%s15122_s1 + $0x1d0] sm:$0xff]  }
  0x54   : > { %9182 = vmatmul.mubr.bf16.gmra.mxu0 %v339_v30  ;;  %9409 = vmatprep.subr.bf16.mxu1 %v10726_v44  ;;  %v1152_v30 = vld [vmem:[%s10597_s13 + $0x4a] sm:$0xff] }
  0x55   : > { %9234 = vmatmul.mubr.bf16.gmra.mxu1 %v269_v32  ;;  %9185 = vmatprep.mubr.bf16.mxu0 %v340_v33  ;;  %v824_v32 = vld [vmem:[%s10597_s13 + $0x52] sm:$0xff]  ;;  %v825_v33 = vld [vmem:[%s10597_s13 + $0x5a] sm:$0xff] }
  0x56   : > { %9237 = vmatprep.mubr.bf16.mxu1 %v270_v34  ;;  %v1184_v34 = vpack.c.bf16 %v1152_v30, %v1151_v28  ;;  %v855_v35 = vpack.c.bf16 %v825_v33, %v824_v32  ;;  %v1478_v30 = vld [vmem:[%s10597_s13 + $0x23] sm:$0xff]  ;;  %v1810_v33 = vld [vmem:[%s10597_s13 + $0x2c] sm:$0xff] }
  0x57   : > { %v1809_v32 = vld [vmem:[%s10597_s13 + $0x24] sm:$0xff] }
  0x5c   : > { %9186 = vmatmul.mubr.bf16.gmra.mxu0 %v341_v43  ;;  %v10245_v43 = vld [vmem:[%s15122_s1 + $0x158] sm:$0xff]  }
  0x5d   : > { %9238 = vmatmul.mubr.bf16.gmra.mxu1 %v271_v45  ;;  %9189 = vmatprep.mubr.bf16.mxu0 %v342_v46  ;;  %v857_v45 = vpack.c.bf16 %v829_v41, %v828_v40  ;;  %v10240_v46 = vld [vmem:[%s15122_s1 + $0x110] sm:$0xff]   ;;  %v1482_v41 = vld [vmem:[%s10597_s13 + $0x43] sm:$0xff] }
  0x5e   : > { %9241 = vmatprep.mubr.bf16.mxu1 %v272_v47  ;;  %v1159_v47 = vld [vmem:[%s10597_s13 + $0x82] sm:$0xff] }
  0x5f   : > { %v1188_v54 = vpack.c.bf16 %v1160_v49, %v1159_v47  ;;  %v1485_v47 = vld [vmem:[%s10597_s13 + $0x5b] sm:$0xff]  ;;  %v10257_v49 = vld [vmem:[%s15122_s1 + $0x1f0] sm:$0xff]  }
  0x64   : > { %9190 = vmatmul.mubr.bf16.gmra.mxu0 %v343_v56  ;;  %v10247_v56 = vld [vmem:[%s15122_s1 + $0x100] sm:$0xff]  }
  0x65   : > { %9242 = vmatmul.mubr.bf16.gmra.mxu1 %v273_v57  ;;  %9193 = vmatprep.mubr.bf16.mxu0 %v344_v58  ;;  %v1163_v57 = vld [vmem:[%s10597_s13 + $0xa2] sm:$0xff]  ;;  %v1164_v58 = vld [vmem:[%s10597_s13 + $0xaa] sm:$0xff] }
  0x66   : > { %9245 = vmatprep.mubr.bf16.mxu1 %v274_v59  ;;  %v10249_v59 = vld [vmem:[%s15122_s1 + $0x140] sm:$0xff]   ;;  %v1190_v0 = vpack.c.bf16 %v1164_v58, %v1163_v57  ;;  %v1487_v58 = vld [vmem:[%s10597_s13 + $0x6b] sm:$0xff] }
  0x67   : > { %v1486_v57 = vld [vmem:[%s10597_s13 + $0x63] sm:$0xff] }
  0x6c   : > { %9194 = vmatmul.mubr.bf16.gmra.mxu0 %v345_v4  ;;  %v840_v4 = vld [vmem:[%s10597_s13 + $0xd2] sm:$0xff] }
  0x6d   : > { %9246 = vmatmul.mubr.bf16.gmra.mxu1 %v275_v5  ;;  %9197 = vmatprep.mubr.bf16.mxu0 %v346_v6  ;;  %v841_v5 = vld [vmem:[%s10597_s13 + $0xda] sm:$0xff]  ;;  %v1192_v6 = vpack.c.bf16 %v1168_v3, %v1167_v2 }
  0x6e   : > { %9249 = vmatprep.mubr.bf16.mxu1 %v276_v7  ;;  %v863_v7 = vpack.c.bf16 %v841_v5, %v840_v4  ;;  %v1820_v2 = vld [vmem:[%s10597_s13 + $0x7c] sm:$0xff]  ;;  %v1517_v5 = vpack.c.bf16 %v1487_v58, %v1486_v57  ;;  %v1503_v57 = vld [vmem:[%s10597_s13 + $0xeb] sm:$0xff] }
  0x6f   : > { %v10254_v3 = vld [vmem:[%s15122_s1 + $0x198] sm:$0xff]   ;;  %v1833_v58 = vld [vmem:[%s10597_s13 + $0xe4] sm:$0xff] }
  0x70   : > { %v10261_v4 = vld [vmem:[%s15122_s1 + $0x1d8] sm:$0xff]  }
  0x74   : > { %9198 = vmatmul.mubr.bf16.gmra.mxu0 %v347_v16  ;;  %v848_v16 = vld [vmem:[%s10597_s13 + $0x112] sm:$0xff] }
  0x75   : > { %9250 = vmatmul.mubr.bf16.gmra.mxu1 %v277_v17  ;;  %9269 = vmatprep.mubr.bf16.mxu0 %v850_v18  ;;  %v849_v17 = vld [vmem:[%s10597_s13 + $0x11a] sm:$0xff]  ;;  %v1196_v18 = vpack.c.bf16 %v1176_v15, %v1175_v14  ;;  %v1822_v14 = vld [vmem:[%s10597_s13 + $0x8c] sm:$0xff] }
  0x76   : > { %9321 = vmatprep.mubr.bf16.mxu1 %v851_v19  ;;  %v1492_v15 = vld [vmem:[%s10597_s13 + $0x93] sm:$0xff] }
  0x7c   : > { %9270 = vmatmul.mubr.bf16.vlgmr.msra.gmra.mxu0 %v851_v19  ;;  %v867_v19 = vpack.c.bf16 %v849_v17, %v848_v16  ;;  %v1493_v16 = vld [vmem:[%s10597_s13 + $0x9b] sm:$0xff] }
  0x7d   : > { %9358 = vmatpush3.bf16.msra.mxu0 %v10709_v29  ;;  %9322 = vmatmul.mubr.bf16.vlgmr.msra.gmra.mxu1 %v1182_v24  ;;  %v10242_v29 = vld [vmem:[%s15122_s1 + $0x168] sm:$0xff]   ;;  %v1823_v17 = vld [vmem:[%s10597_s13 + $0x94] sm:$0xff] }
  0x7e   : > { %9273 = vmatprep.mubr.bf16.mxu0 %v1182_v24  ;;  %9325 = vmatprep.mubr.bf16.mxu1 %v853_v25  ;;  %v1807_v24 = vld [vmem:[%s10597_s13 + $0x14] sm:$0xff] }
  0x7f   : > { %9359 = vmatprep.subr.bf16.mxu0 %v10235_v26  ;;  %9410 = vmatpush3.bf16.msra.mxu1 %v10726_v44  ;;  %v1186_v44 = vpack.c.bf16 %v1156_v39, %v1155_v38  ;;  %v10855_v38 = vpack.c.bf16 %v1810_v33, %v1809_v32  ;;  %v1496_v32 = vld [vmem:[%s10597_s13 + $0xb3] sm:$0xff]  ;;  %v1497_v33 = vld [vmem:[%s10597_s13 + $0xbb] sm:$0xff] }
  0x80   : > { %9411 = vmatprep.subr.bf16.mxu1 %v10241_v27 }
  0x81   : > { %9360 = vmatpush3.bf16.msra.mxu0 %v10235_v26  ;;  %v1198_v26 = vpack.c.bf16 %v1180_v21, %v1179_v20  ;;  %v10264_v21 = vld [vmem:[%s15122_s1 + $0x1c8] sm:$0xff]  }
  0x82   : > { %9361 = vmatprep.subr.bf16.mxu0 %v10236_v31 }
  0x83   : > { %9412 = vmatpush3.bf16.msra.mxu1 %v10241_v27  ;;  %v1512_v27 = vpack.c.bf16 %v1477_v23, %v1476_v22  ;;  %v1520_v23 = vpack.c.bf16 %v1493_v16, %v1492_v15  ;;  %v1509_v15 = vld [vmem:[%s10597_s13 + $0x11b] sm:$0xff] }
  0x84   : > { %9274 = vmatmul.mubr.bf16.gmra.mxu0 %v853_v25  ;;  %9413 = vmatprep.subr.bf16.mxu1 %v10242_v29  ;;  %v1808_v25 = vld [vmem:[%s10597_s13 + $0x1c] sm:$0xff] }
  0x85   : > { %9326 = vmatmul.mubr.bf16.gmra.mxu1 %v1184_v34  ;;  %9277 = vmatprep.mubr.bf16.mxu0 %v1184_v34  ;;  %v1843_v28 = vpack.c.bf16 %v1808_v25, %v1807_v24  ;;  %v1481_v34 = vld [vmem:[%s10597_s13 + $0x3b] sm:$0xff] }
  0x86   : > { %9329 = vmatprep.mubr.bf16.mxu1 %v855_v35  ;;  %9362 = vmatpush3.bf16.msra.mxu0 %v10236_v31  ;;  %v1479_v31 = vld [vmem:[%s10597_s13 + $0x2b] sm:$0xff]  ;;  %v10263_v25 = vld [vmem:[%s15122_s1 + $0x180] sm:$0xff]  }
  0x87   : > { %9363 = vmatprep.subr.bf16.mxu0 %v10237_v36  ;;  %9414 = vmatpush3.bf16.msra.mxu1 %v10242_v29  ;;  %v1480_v29 = vld [vmem:[%s10597_s13 + $0x33] sm:$0xff] }
  0x88   : > { %9415 = vmatprep.subr.bf16.mxu1 %v10244_v37  ;;  %v1514_v39 = vpack.c.bf16 %v1481_v34, %v1480_v29  ;;  %v1827_v29 = vld [vmem:[%s10597_s13 + $0xb4] sm:$0xff]  ;;  %v1828_v34 = vld [vmem:[%s10597_s13 + $0xbc] sm:$0xff] }
  0x8a   : > { %9364 = vmatpush3.bf16.msra.mxu0 %v10237_v36  ;;  %v1812_v36 = vld [vmem:[%s10597_s13 + $0x3c] sm:$0xff] }
  0x8b   : > { %9365 = vmatprep.subr.bf16.mxu0 %v10238_v42  ;;  %9416 = vmatpush3.bf16.msra.mxu1 %v10244_v37  ;;  %v1513_v37 = vpack.c.bf16 %v1479_v31, %v1478_v30  ;;  %v1825_v30 = vld [vmem:[%s10597_s13 + $0xa4] sm:$0xff]  ;;  %v1826_v31 = vld [vmem:[%s10597_s13 + $0xac] sm:$0xff] }
  0x8c   : > { %9278 = vmatmul.mubr.bf16.gmra.mxu0 %v855_v35  ;;  %9417 = vmatprep.subr.bf16.mxu1 %v10245_v43  ;;  %v1811_v35 = vld [vmem:[%s10597_s13 + $0x34] sm:$0xff] }
  0x8d   : > { %9330 = vmatmul.mubr.bf16.gmra.mxu1 %v1186_v44  ;;  %9281 = vmatprep.mubr.bf16.mxu0 %v1186_v44  ;;  %v10857_v40 = vpack.c.bf16 %v1812_v36, %v1811_v35  ;;  %v1813_v44 = vld [vmem:[%s10597_s13 + $0x44] sm:$0xff]  ;;  %v10958_v35 = vld [vmem:[%s15122_s1 + $0x238] sm:$0xff]  }
  0x8e   : > { %9333 = vmatprep.mubr.bf16.mxu1 %v857_v45  ;;  %9366 = vmatpush3.bf16.msra.mxu0 %v10238_v42  ;;  %v1483_v42 = vld [vmem:[%s10597_s13 + $0x4b] sm:$0xff] }
  0x8f   : > { %9367 = vmatprep.subr.bf16.mxu0 %v10240_v46  ;;  %9418 = vmatpush3.bf16.msra.mxu1 %v10245_v43  ;;  %v10251_v43 = vld [vmem:[%s15122_s1 + $0x1b0] sm:$0xff]  }
  0x90   : > { %9419 = vmatprep.subr.bf16.mxu1 %v10246_v48 }
  0x92   : > { %9368 = vmatpush3.bf16.msra.mxu0 %v10240_v46  ;;  %v1484_v46 = vld [vmem:[%s10597_s13 + $0x53] sm:$0xff] }
  0x93   : > { %9369 = vmatprep.subr.bf16.mxu0 %v10243_v52  ;;  %9420 = vmatpush3.bf16.msra.mxu1 %v10246_v48  ;;  %v10252_v48 = vld [vmem:[%s15122_s1 + $0x1a8] sm:$0xff]  }
  0x94   : > { %9282 = vmatmul.mubr.bf16.gmra.mxu0 %v857_v45  ;;  %9421 = vmatprep.subr.bf16.mxu1 %v10248_v53  ;;  %v1814_v45 = vld [vmem:[%s10597_s13 + $0x4c] sm:$0xff] }
  0x95   : > { %9334 = vmatmul.mubr.bf16.gmra.mxu1 %v1188_v54  ;;  %9285 = vmatprep.mubr.bf16.mxu0 %v1188_v54  ;;  %v10883_v54 = vpack.c.bf16 %v1814_v45, %v1813_v44  ;;  %v1829_v44 = vld [vmem:[%s10597_s13 + $0xc4] sm:$0xff]  ;;  %v1830_v45 = vld [vmem:[%s10597_s13 + $0xcc] sm:$0xff] }
  0x96   : > { %9337 = vmatprep.mubr.bf16.mxu1 %v859_v55  ;;  %9370 = vmatpush3.bf16.msra.mxu0 %v10243_v52  ;;  %v10258_v52 = vld [vmem:[%s15122_s1 + $0x1e8] sm:$0xff]  }
  0x97   : > { %9371 = vmatprep.subr.bf16.mxu0 %v10247_v56  ;;  %9422 = vmatpush3.bf16.msra.mxu1 %v10248_v53  ;;  %v1515_v53 = vpack.c.bf16 %v1483_v42, %v1482_v41  ;;  %v10962_v41 = vpack.c.bf16 %v1828_v34, %v1827_v29  ;;  %v1498_v42 = vld [vmem:[%s10597_s13 + $0xc3] sm:$0xff] }
  0x98   : > { %9423 = vmatprep.subr.bf16.mxu1 %v10249_v59  ;;  %v1510_v34 = vld [vmem:[%s10597_s13 + $0x123] sm:$0xff] }
  0x9a   : > { %9372 = vmatpush3.bf16.msra.mxu0 %v10247_v56  ;;  %v10885_v56 = vpack.c.bf16 %v1816_v51, %v1815_v50  ;;  %v10975_v51 = vpack.c.bf16 %v1830_v45, %v1829_v44  ;;  %v1842_v44 = vld [vmem:[%s10597_s13 + $0x12c] sm:$0xff] }
  0x9b   : > { %9424 = vmatpush3.bf16.msra.mxu1 %v10249_v59  ;;  %9461 = vmatprep.subr.bf16.mxu0 %v10820_v62  ;;  %v10253_v59 = vld [vmem:[%s15122_s1 + $0x1a0] sm:$0xff]  }
  0x9c   : > { %9286 = vmatmul.mubr.bf16.gmra.mxu0 %v859_v55  ;;  %9513 = vmatprep.subr.bf16.mxu1 %v10825_v63  ;;  %v1516_v55 = vpack.c.bf16 %v1485_v47, %v1484_v46  ;;  %v1500_v46 = vld [vmem:[%s10597_s13 + $0xd3] sm:$0xff]  ;;  %v1501_v47 = vld [vmem:[%s10597_s13 + $0xdb] sm:$0xff] }
  0x9d   : > { %9338 = vmatmul.mubr.bf16.gmra.mxu1 %v1190_v0  ;;  %9289 = vmatprep.mubr.bf16.mxu0 %v1190_v0  ;;  %v10260_v0 = vld [vmem:[%s15122_s1 + $0x1e0] sm:$0xff]  }
  0x9e   : > { %9341 = vmatprep.mubr.bf16.mxu1 %v861_v1 }
  0xa4   : > { %9290 = vmatmul.mubr.bf16.gmra.mxu0 %v861_v1  ;;  %v1819_v1 = vld [vmem:[%s10597_s13 + $0x74] sm:$0xff] }
  0xa5   : > { %9342 = vmatmul.mubr.bf16.gmra.mxu1 %v1192_v6  ;;  %9293 = vmatprep.mubr.bf16.mxu0 %v1192_v6  ;;  %v10909_v6 = vpack.c.bf16 %v1818_v61, %v1817_v60  ;;  %v10911_v8 = vpack.c.bf16 %v1820_v2, %v1819_v1  ;;  %v1504_v60 = vld [vmem:[%s10597_s13 + $0xf3] sm:$0xff]  ;;  %v1505_v61 = vld [vmem:[%s10597_s13 + $0xfb] sm:$0xff] }
  0xa6   : > { %9345 = vmatprep.mubr.bf16.mxu1 %v863_v7  ;;  %v1526_v2 = vpack.c.bf16 %v1505_v61, %v1504_v60 }
  0xac   : > { %9294 = vmatmul.mubr.bf16.gmra.mxu0 %v863_v7 }
  0xad   : > { %9346 = vmatmul.mubr.bf16.gmra.mxu1 %v1194_v12  ;;  %9297 = vmatprep.mubr.bf16.mxu0 %v1194_v12  ;;  %v1491_v12 = vld [vmem:[%s10597_s13 + $0x8b] sm:$0xff] }
  0xae   : > { %9349 = vmatprep.mubr.bf16.mxu1 %v865_v13  ;;  %v1519_v20 = vpack.c.bf16 %v1491_v12, %v1490_v11 }
  0xb4   : > { %9298 = vmatmul.mubr.bf16.gmra.mxu0 %v865_v13  ;;  %v1821_v13 = vld [vmem:[%s10597_s13 + $0x84] sm:$0xff] }
  0xb5   : > { %9350 = vmatmul.mubr.bf16.gmra.mxu1 %v1196_v18  ;;  %9301 = vmatprep.mubr.bf16.mxu0 %v1196_v18  ;;  %v1824_v18 = vld [vmem:[%s10597_s13 + $0x9c] sm:$0xff]  ;;  %v10935_v22 = vpack.c.bf16 %v1822_v14, %v1821_v13  ;;  %v1838_v13 = vld [vmem:[%s10597_s13 + $0x10c] sm:$0xff] }
  0xb6   : > { %9353 = vmatprep.mubr.bf16.mxu1 %v867_v19  ;;  %v10937_v24 = vpack.c.bf16 %v1824_v18, %v1823_v17  ;;  %v1508_v14 = vld [vmem:[%s10597_s13 + $0x113] sm:$0xff]  ;;  %v1840_v18 = vld [vmem:[%s10597_s13 + $0x11c] sm:$0xff] }
  0xb7   : > { %v1839_v17 = vld [vmem:[%s10597_s13 + $0x114] sm:$0xff] }
  0xbc   : > { %9302 = vmatmul.mubr.bf16.gmra.mxu0 %v867_v19  ;;  %v10259_v19 = vld [vmem:[%s15122_s1 + $0x188] sm:$0xff]  }
  0xbd   : > { %9354 = vmatmul.mubr.bf16.gmra.mxu1 %v1198_v26  ;;  %9373 = vmatprep.mubr.bf16.mxu0 %v1512_v27  ;;  %v10265_v26 = vld [vmem:[%s15122_s1 + $0x1c0] sm:$0xff]  }
  0xbe   : > { %9425 = vmatprep.mubr.bf16.mxu1 %v1843_v28  ;;  %v1494_v27 = vld [vmem:[%s10597_s13 + $0xa3] sm:$0xff]  ;;  %v1495_v28 = vld [vmem:[%s10597_s13 + $0xab] sm:$0xff] }
  0xbf   : > { %v1521_v36 = vpack.c.bf16 %v1495_v28, %v1494_v27 }
  0xc4   : > { %9374 = vmatmul.mubr.bf16.vlgmr.msra.gmra.mxu0 %v1513_v37  ;;  %v10960_v37 = vpack.c.bf16 %v1826_v31, %v1825_v30  ;;  %v11011_v30 = vpack.c.bf16 %v1840_v18, %v1839_v17 }
  0xc5   : > { %9462 = vmatpush3.bf16.msra.mxu0 %v10820_v62  ;;  %9426 = vmatmul.mubr.bf16.vlgmr.msra.gmra.mxu1 %v10855_v38  ;;  %v1488_v62 = vld [vmem:[%s10597_s13 + $0x73] sm:$0xff] }
  0xc6   : > { %9377 = vmatprep.mubr.bf16.mxu0 %v1514_v39  ;;  %9429 = vmatprep.mubr.bf16.mxu1 %v10857_v40  ;;  %v1522_v39 = vpack.c.bf16 %v1497_v33, %v1496_v32 }
  0xc7   : > { %9463 = vmatprep.subr.bf16.mxu0 %v10251_v43  ;;  %9514 = vmatpush3.bf16.msra.mxu1 %v10825_v63  ;;  %v1489_v63 = vld [vmem:[%s10597_s13 + $0x7b] sm:$0xff] }
  0xc8   : > { %9515 = vmatprep.subr.bf16.mxu1 %v10257_v49  ;;  %v1518_v7 = vpack.c.bf16 %v1489_v63, %v1488_v62  ;;  %v1835_v62 = vld [vmem:[%s10597_s13 + $0xf4] sm:$0xff]  ;;  %v1836_v63 = vld [vmem:[%s10597_s13 + $0xfc] sm:$0xff] }
  0xc9   : > { %9464 = vmatpush3.bf16.msra.mxu0 %v10251_v43  ;;  %v1499_v43 = vld [vmem:[%s10597_s13 + $0xcb] sm:$0xff] }
  0xca   : > { %9465 = vmatprep.subr.bf16.mxu0 %v10252_v48  ;;  %v1523_v50 = vpack.c.bf16 %v1499_v43, %v1498_v42  ;;  %v1841_v43 = vld [vmem:[%s10597_s13 + $0x124] sm:$0xff] }
  0xcb   : > { %9516 = vmatpush3.bf16.msra.mxu1 %v10257_v49  ;;  %v1832_v49 = vld [vmem:[%s10597_s13 + $0xdc] sm:$0xff] }
  0xcc   : > { %9378 = vmatmul.mubr.bf16.gmra.mxu0 %v1515_v53  ;;  %9517 = vmatprep.subr.bf16.mxu1 %v10258_v52 }
  0xcd   : > { %9430 = vmatmul.mubr.bf16.gmra.mxu1 %v10883_v54  ;;  %9381 = vmatprep.mubr.bf16.mxu0 %v1516_v55  ;;  %v1502_v55 = vld [vmem:[%s10597_s13 + $0xe3] sm:$0xff] }
  0xce   : > { %9433 = vmatprep.mubr.bf16.mxu1 %v10885_v56  ;;  %9466 = vmatpush3.bf16.msra.mxu0 %v10252_v48  ;;  %v1831_v48 = vld [vmem:[%s10597_s13 + $0xd4] sm:$0xff] }
  0xcf   : > { %9467 = vmatprep.subr.bf16.mxu0 %v10253_v59  ;;  %9518 = vmatpush3.bf16.msra.mxu1 %v10258_v52  ;;  %v1524_v52 = vpack.c.bf16 %v1501_v47, %v1500_v46  ;;  %v10977_v53 = vpack.c.bf16 %v1832_v49, %v1831_v48  ;;  %v2469_v46 = vld [vmem:[%s10597_s13 + $0x25] sm:$0xff]  ;;  %v2470_v47 = vld [vmem:[%s10597_s13 + $0x2d] sm:$0xff] }
  0xd0   : > { %9519 = vmatprep.subr.bf16.mxu1 %v10260_v0 }
  0xd2   : > { %9468 = vmatpush3.bf16.msra.mxu0 %v10253_v59  ;;  %v1834_v59 = vld [vmem:[%s10597_s13 + $0xec] sm:$0xff] }
  0xd3   : > { %9469 = vmatprep.subr.bf16.mxu0 %v10254_v3  ;;  %9520 = vmatpush3.bf16.msra.mxu1 %v10260_v0  ;;  %v1525_v0 = vpack.c.bf16 %v1503_v57, %v1502_v55  ;;  %v10989_v1 = vpack.c.bf16 %v1834_v59, %v1833_v58  ;;  %v11027_v55 = vpack.c.bf16 %v1842_v44, %v1841_v43 }
  0xd4   : > { %9382 = vmatmul.mubr.bf16.gmra.mxu0 %v1517_v5  ;;  %9521 = vmatprep.subr.bf16.mxu1 %v10261_v4  ;;  %v2505_v59 = vpack.c.bf16 %v2470_v47, %v2469_v46 }
  0xd5   : > { %9434 = vmatmul.mubr.bf16.gmra.mxu1 %v10909_v6  ;;  %9385 = vmatprep.mubr.bf16.mxu0 %v1518_v7  ;;  %v1506_v7 = vld [vmem:[%s10597_s13 + $0x103] sm:$0xff] }
  0xd6   : > { %9437 = vmatprep.mubr.bf16.mxu1 %v10911_v8  ;;  %9470 = vmatpush3.bf16.msra.mxu0 %v10254_v3  ;;  %v10991_v3 = vpack.c.bf16 %v1836_v63, %v1835_v62 }
  0xd7   : > { %9471 = vmatprep.subr.bf16.mxu0 %v10256_v9  ;;  %9522 = vmatpush3.bf16.msra.mxu1 %v10261_v4 }
  0xd8   : > { %9523 = vmatprep.subr.bf16.mxu1 %v10262_v10 }
  0xda   : > { %9472 = vmatpush3.bf16.msra.mxu0 %v10256_v9  ;;  %v1507_v9 = vld [vmem:[%s10597_s13 + $0x10b] sm:$0xff] }
  0xdb   : > { %9473 = vmatprep.subr.bf16.mxu0 %v10259_v19  ;;  %9524 = vmatpush3.bf16.msra.mxu1 %v10262_v10  ;;  %v1837_v10 = vld [vmem:[%s10597_s13 + $0x104] sm:$0xff] }
  0xdc   : > { %9386 = vmatmul.mubr.bf16.gmra.mxu0 %v1519_v20  ;;  %9525 = vmatprep.subr.bf16.mxu1 %v10264_v21 }
  0xdd   : > { %9438 = vmatmul.mubr.bf16.gmra.mxu1 %v10935_v22  ;;  %9389 = vmatprep.mubr.bf16.mxu0 %v1520_v23 }
  0xde   : > { %9441 = vmatprep.mubr.bf16.mxu1 %v10937_v24  ;;  %9474 = vmatpush3.bf16.msra.mxu0 %v10259_v19 }
  0xdf   : > { %9475 = vmatprep.subr.bf16.mxu0 %v10263_v25  ;;  %9526 = vmatpush3.bf16.msra.mxu1 %v10264_v21  ;;  %v1527_v21 = vpack.c.bf16 %v1507_v9, %v1506_v7  ;;  %v2473_v9 = vld [vmem:[%s10597_s13 + $0x45] sm:$0xff] }
  0xe0   : > { %9527 = vmatprep.subr.bf16.mxu1 %v10265_v26 }
  0xe2   : > { %9476 = vmatpush3.bf16.msra.mxu0 %v10263_v25  ;;  %v11007_v25 = vpack.c.bf16 %v1838_v13, %v1837_v10  ;;  %v2474_v10 = vld [vmem:[%s10597_s13 + $0x4d] sm:$0xff] }
  0xe3   : > { %9528 = vmatpush3.bf16.msra.mxu1 %v10265_v26  ;;  %9565 = vmatprep.subr.bf16.mxu0 %v10958_v35  ;;  %v1528_v26 = vpack.c.bf16 %v1509_v15, %v1508_v14 }
  0xe4   : > { %9390 = vmatmul.mubr.bf16.gmra.mxu0 %v1521_v36  ;;  %v1511_v36 = vld [vmem:[%s10597_s13 + $0x12b] sm:$0xff] }
  0xe5   : > { %9442 = vmatmul.mubr.bf16.gmra.mxu1 %v10960_v37  ;;  %9393 = vmatprep.mubr.bf16.mxu0 %v1522_v39 }
  0xe6   : > { %9445 = vmatprep.mubr.bf16.mxu1 %v10962_v41 }
  0xec   : > { %9394 = vmatmul.mubr.bf16.gmra.mxu0 %v1523_v50  ;;  %v1529_v50 = vpack.c.bf16 %v1511_v36, %v1510_v34  ;;  %v10268_v34 = vld [vmem:[%s15122_s1 + $0x228] sm:$0xff]  }
  0xed   : > { %9446 = vmatmul.mubr.bf16.gmra.mxu1 %v10975_v51  ;;  %9397 = vmatprep.mubr.bf16.mxu0 %v1524_v52 }
  0xee   : > { %9449 = vmatprep.mubr.bf16.mxu1 %v10977_v53 }
  0xf4   : > { %v9167_v4 = vpop.f32.mrf.mxu0  ;;  %9398 = vmatmul.mubr.bf16.gmra.mxu0 %v1525_v0 }
  0xf5   : > { %v9219_v5 = vpop.f32.mrf.mxu1  ;;  %9450 = vmatmul.mubr.bf16.gmra.mxu1 %v10989_v1  ;;  %9401 = vmatprep.mubr.bf16.mxu0 %v1526_v2 }
  0xf6   : > { %v10997_v11 = vadd.f32 %v9219_v5, %v9167_v4  ;;  %v446_v12 = vpop.f32.mrf.mxu0  ;;  %9453 = vmatprep.mubr.bf16.mxu1 %v10991_v3  ;;  %v2471_v4 = vld [vmem:[%s10597_s13 + $0x35] sm:$0xff]  ;;  %v2472_v5 = vld [vmem:[%s10597_s13 + $0x3d] sm:$0xff] }
  0xf7   : > { %v671_v16 = vpop.f32.mrf.mxu1  ;;  %v2506_v15 = vpack.c.bf16 %v2472_v5, %v2471_v4  ;;  %v2481_v5 = vld [vmem:[%s10597_s13 + $0x85] sm:$0xff] }
  0xf8   : > { %v11005_v19 = vadd.f32 %v671_v16, %v446_v12  ;;  %v9168_v20 = vpop.f32.mrf.mxu0 }
  0xf9   : > { %v9220_v23 = vpop.f32.mrf.mxu1 }
  0xfa   : > { %v11009_v27 = vadd.f32 %v9220_v23, %v9168_v20  ;;  %v449_v28 = vpop.f32.mrf.mxu0  ;;  %v10267_v20 = vld [vmem:[%s15122_s1 + $0x230] sm:$0xff]  }
  0xfb   : > { %v674_v31 = vpop.f32.mrf.mxu1 }
  0xfc   : > { %v11013_v32 = vadd.f32 %v674_v31, %v449_v28  ;;  %v9171_v33 = vpop.f32.mrf.mxu0  ;;  %9402 = vmatmul.mubr.bf16.gmra.mxu0 %v1527_v21 }
  0xfd   : > { %v9223_v29 = vpop.f32.mrf.mxu1  ;;  %9454 = vmatmul.mubr.bf16.gmra.mxu1 %v11007_v25  ;;  %9405 = vmatprep.mubr.bf16.mxu0 %v1528_v26 }
  0xfe   : > { %v11018_v39 = vadd.f32 %v9223_v29, %v9171_v33  ;;  %v462_v42 = vpop.f32.mrf.mxu0  ;;  %9457 = vmatprep.mubr.bf16.mxu1 %v11011_v30  ;;  %v2475_v33 = vld [vmem:[%s10597_s13 + $0x55] sm:$0xff]  ;;  %v2476_v29 = vld [vmem:[%s10597_s13 + $0x5d] sm:$0xff] }
  0xff   : > { %v687_v45 = vpop.f32.mrf.mxu1 }
 0x100   : > { %v11025_v48 = vadd.f32 %v687_v45, %v462_v42  ;;  %v9172_v49 = vpop.f32.mrf.mxu0  ;;  %v2477_v42 = vld [vmem:[%s10597_s13 + $0x65] sm:$0xff]  ;;  %v2508_v45 = vpack.c.bf16 %v2476_v29, %v2475_v33  ;;  %v2483_v29 = vld [vmem:[%s10597_s13 + $0x95] sm:$0xff] }
 0x101   : > { %v9224_v52 = vpop.f32.mrf.mxu1 }
 0x102   : > { %v11029_v57 = vadd.f32 %v9224_v52, %v9172_v49  ;;  %v465_v58 = vpop.f32.mrf.mxu0 }
 0x103   : > { %v690_v60 = vpop.f32.mrf.mxu1 }
 0x104   : > { %v11031_v61 = vadd.f32 %v690_v60, %v465_v58  ;;  %v9175_v62 = vpop.f32.mrf.mxu0  ;;  %9406 = vmatmul.mubr.bf16.gmra.mxu0 %v1529_v50  ;;  %v10269_v50 = vld [vmem:[%s15122_s1 + $0x220] sm:$0xff]  }
 0x105   : > { %v9227_v63 = vpop.f32.mrf.mxu1  ;;  %9458 = vmatmul.mubr.bf16.gmra.mxu1 %v11027_v55  ;;  %9477 = vmatprep.mubr.bf16.mxu0 %v10855_v38  ;;  %v2507_v38 = vpack.c.bf16 %v2474_v10, %v2473_v9  ;;  %v10270_v9 = vld [vmem:[%s15122_s1 + $0x218] sm:$0xff]  }
 0x106   : > { %v11035_v0 = vadd.f32 %v9227_v63, %v9175_v62  ;;  %v478_v2 = vpop.f32.mrf.mxu0  ;;  %9529 = vmatprep.mubr.bf16.mxu1 %v2505_v59  ;;  %v2479_v63 = vld [vmem:[%s10597_s13 + $0x75] sm:$0xff] }
 0x107   : > { %v703_v7 = vpop.f32.mrf.mxu1 }
 0x108   : > { %v11041_v12 = vadd.f32 %v703_v7, %v478_v2  ;;  %v9176_v13 = vpop.f32.mrf.mxu0  ;;  %v2480_v2 = vld [vmem:[%s10597_s13 + $0x7d] sm:$0xff]  ;;  %v2482_v7 = vld [vmem:[%s10597_s13 + $0x8d] sm:$0xff] }
 0x109   : > { %v9228_v14 = vpop.f32.mrf.mxu1 }
 0x10a   : > { %v11043_v16 = vadd.f32 %v9228_v14, %v9176_v13  ;;  %v481_v17 = vpop.f32.mrf.mxu0 }
 0x10b   : > { %v706_v18 = vpop.f32.mrf.mxu1 }
 0x10c   : > { %v11048_v21 = vadd.f32 %v706_v18, %v481_v17  ;;  %v9179_v23 = vpop.f32.mrf.mxu0  ;;  %9478 = vmatmul.mubr.bf16.vlgmr.msra.gmra.mxu0 %v10857_v40  ;;  %v2478_v40 = vld [vmem:[%s10597_s13 + $0x6d] sm:$0xff]  ;;  %v2511_v17 = vpack.c.bf16 %v2482_v7, %v2481_v5  ;;  %v2487_v5 = vld [vmem:[%s10597_s13 + $0xb5] sm:$0xff]  ;;  %v2488_v7 = vld [vmem:[%s10597_s13 + $0xbd] sm:$0xff] }
 0x10d   : > { %v9231_v26 = vpop.f32.mrf.mxu1  ;;  %9566 = vmatpush3.bf16.msra.mxu0 %v10958_v35  ;;  %9530 = vmatmul.mubr.bf16.vlgmr.msra.gmra.mxu1 %v2506_v15  ;;  %v2509_v47 = vpack.c.bf16 %v2478_v40, %v2477_v42  ;;  %v10271_v18 = vld [vmem:[%s15122_s1 + $0x210] sm:$0xff]   ;;  %v2485_v42 = vld [vmem:[%s10597_s13 + $0xa5] sm:$0xff] }
 0x10e   : > { %v11052_v28 = vadd.f32 %v9231_v26, %v9179_v23  ;;  %v494_v31 = vpop.f32.mrf.mxu0  ;;  %9481 = vmatprep.mubr.bf16.mxu0 %v10883_v54  ;;  %9533 = vmatprep.mubr.bf16.mxu1 %v2507_v38  ;;  %v2486_v40 = vld [vmem:[%s10597_s13 + $0xad] sm:$0xff] }
 0x10f   : > { %v719_v36 = vpop.f32.mrf.mxu1  ;;  %9567 = vmatprep.subr.bf16.mxu0 %v10267_v20 }
 0x110   : > { %v11062_v43 = vadd.f32 %v719_v36, %v494_v31  ;;  %v9180_v35 = vpop.f32.mrf.mxu0 }
 0x111   : > { %v9232_v44 = vpop.f32.mrf.mxu1  ;;  %9568 = vmatpush3.bf16.msra.mxu0 %v10267_v20 }
 0x112   : > { %v11064_v46 = vadd.f32 %v9232_v44, %v9180_v35  ;;  %v497_v54 = vpop.f32.mrf.mxu0  ;;  %9569 = vmatprep.subr.bf16.mxu0 %v10268_v34  ;;  %v10272_v35 = vld [vmem:[%s15122_s1 + $0x208] sm:$0xff]  }
 0x113   : > { %v722_v49 = vpop.f32.mrf.mxu1 }
 0x114   : > { %v11069_v52 = vadd.f32 %v722_v49, %v497_v54  ;;  %v9183_v58 = vpop.f32.mrf.mxu0  ;;  %9482 = vmatmul.mubr.bf16.gmra.mxu0 %v10885_v56  ;;  %v2513_v49 = vpack.c.bf16 %v2486_v40, %v2485_v42  ;;  %v2491_v42 = vld [vmem:[%s10597_s13 + $0xd5] sm:$0xff]  ;;  %v2492_v40 = vld [vmem:[%s10597_s13 + $0xdd] sm:$0xff] }
 0x115   : > { %v9235_v59 = vpop.f32.mrf.mxu1  ;;  %9534 = vmatmul.mubr.bf16.gmra.mxu1 %v2508_v45  ;;  %9485 = vmatprep.mubr.bf16.mxu0 %v10909_v6  ;;  %v2510_v6 = vpack.c.bf16 %v2480_v2, %v2479_v63 }
 0x116   : > { %v11073_v60 = vadd.f32 %v9235_v59, %v9183_v58  ;;  %v510_v62 = vpop.f32.mrf.mxu0  ;;  %9537 = vmatprep.mubr.bf16.mxu1 %v2509_v47  ;;  %9570 = vmatpush3.bf16.msra.mxu0 %v10268_v34  ;;  %v2484_v34 = vld [vmem:[%s10597_s13 + $0x9d] sm:$0xff] }
 0x117   : > { %v735_v4 = vpop.f32.mrf.mxu1  ;;  %9571 = vmatprep.subr.bf16.mxu0 %v10269_v50  ;;  %v10273_v58 = vld [vmem:[%s15122_s1 + $0x200] sm:$0xff]  }
 0x118   : > { %v11082_v56 = vadd.f32 %v735_v4, %v510_v62  ;;  %v9184_v10 = vpop.f32.mrf.mxu0 }
 0x119   : > { %v9236_v13 = vpop.f32.mrf.mxu1 }
 0x11a   : > { %v11084_v14 = vadd.f32 %v9236_v13, %v9184_v10  ;;  %v513_v15 = vpop.f32.mrf.mxu0  ;;  %9572 = vmatpush3.bf16.msra.mxu0 %v10269_v50  ;;  %v2489_v10 = vld [vmem:[%s10597_s13 + $0xc5] sm:$0xff]  ;;  %v2490_v13 = vld [vmem:[%s10597_s13 + $0xcd] sm:$0xff] }
 0x11b   : > { %v738_v38 = vpop.f32.mrf.mxu1  ;;  %9573 = vmatprep.subr.bf16.mxu0 %v10270_v9 }
 0x11c   : > { %v11089_v20 = vadd.f32 %v738_v38, %v513_v15  ;;  %v9187_v23 = vpop.f32.mrf.mxu0  ;;  %9486 = vmatmul.mubr.bf16.gmra.mxu0 %v10911_v8 }
 0x11d   : > { %v9239_v26 = vpop.f32.mrf.mxu1  ;;  %9538 = vmatmul.mubr.bf16.gmra.mxu1 %v2510_v6  ;;  %9489 = vmatprep.mubr.bf16.mxu0 %v10935_v22  ;;  %v2512_v22 = vpack.c.bf16 %v2484_v34, %v2483_v29 }
 0x11e   : > { %v11093_v31 = vadd.f32 %v9239_v26, %v9187_v23  ;;  %v526_v33 = vpop.f32.mrf.mxu0  ;;  %9541 = vmatprep.mubr.bf16.mxu1 %v2511_v17  ;;  %9574 = vmatpush3.bf16.msra.mxu0 %v10270_v9 }
 0x11f   : > { %v751_v36 = vpop.f32.mrf.mxu1  ;;  %9575 = vmatprep.subr.bf16.mxu0 %v10271_v18 }
 0x120   : > { %v11102_v8 = vadd.f32 %v751_v36, %v526_v33  ;;  %v9188_v44 = vpop.f32.mrf.mxu0 }
 0x121   : > { %v9240_v45 = vpop.f32.mrf.mxu1 }
 0x122   : > { %v11104_v54 = vadd.f32 %v9240_v45, %v9188_v44  ;;  %v529_v47 = vpop.f32.mrf.mxu0  ;;  %9576 = vmatpush3.bf16.msra.mxu0 %v10271_v18  ;;  %v2515_v18 = vpack.c.bf16 %v2490_v13, %v2489_v10  ;;  %v2493_v44 = vld [vmem:[%s10597_s13 + $0xe5] sm:$0xff]  ;;  %v2494_v45 = vld [vmem:[%s10597_s13 + $0xed] sm:$0xff]  ;;  %v2495_v10 = vld [vmem:[%s10597_s13 + $0xf5] sm:$0xff] }
 0x123   : > { %v754_v50 = vpop.f32.mrf.mxu1  ;;  %9577 = vmatprep.subr.bf16.mxu0 %v10272_v35  ;;  %v2496_v13 = vld [vmem:[%s10597_s13 + $0xfd] sm:$0xff] }
 0x124   : > { %v11109_v59 = vadd.f32 %v754_v50, %v529_v47  ;;  %v9191_v62 = vpop.f32.mrf.mxu0  ;;  %9490 = vmatmul.mubr.bf16.gmra.mxu0 %v10937_v24  ;;  %v2514_v24 = vpack.c.bf16 %v2488_v7, %v2487_v5 }
 0x125   : > { %v9243_v63 = vpop.f32.mrf.mxu1  ;;  %9542 = vmatmul.mubr.bf16.gmra.mxu1 %v2512_v22  ;;  %9493 = vmatprep.mubr.bf16.mxu0 %v10960_v37 }
 0x126   : > { %v11113_v2 = vadd.f32 %v9243_v63, %v9191_v62  ;;  %v542_v4 = vpop.f32.mrf.mxu0  ;;  %9545 = vmatprep.mubr.bf16.mxu1 %v2513_v49  ;;  %9578 = vmatpush3.bf16.msra.mxu0 %v10272_v35 }
 0x127   : > { %v767_v9 = vpop.f32.mrf.mxu1  ;;  %9579 = vmatprep.subr.bf16.mxu0 %v10273_v58 }
 0x128   : > { %v11119_v6 = vadd.f32 %v767_v9, %v542_v4  ;;  %v9192_v15 = vpop.f32.mrf.mxu0 }
 0x129   : > { %v9244_v17 = vpop.f32.mrf.mxu1 }
 0x12a   : > { %v11121_v38 = vadd.f32 %v9244_v17, %v9192_v15  ;;  %v545_v37 = vpop.f32.mrf.mxu0  ;;  %9580 = vmatpush3.bf16.msra.mxu0 %v10273_v58  ;;  %v2517_v58 = vpack.c.bf16 %v2494_v45, %v2493_v44  ;;  %v2497_v17 = vld [vmem:[%s10597_s13 + $0x105] sm:$0xff]  ;;  %v2499_v45 = vld [vmem:[%s10597_s13 + $0x115] sm:$0xff] }
 0x12b   : > { %v770_v23 = vpop.f32.mrf.mxu1 }
 0x12c   : > { %v11123_v26 = vadd.f32 %v770_v23, %v545_v37  ;;  %v9195_v33 = vpop.f32.mrf.mxu0  ;;  %9494 = vmatmul.mubr.bf16.gmra.mxu0 %v10962_v41  ;;  %v2516_v41 = vpack.c.bf16 %v2492_v40, %v2491_v42 }
 0x12d   : > { %v9247_v29 = vpop.f32.mrf.mxu1  ;;  %9546 = vmatmul.mubr.bf16.gmra.mxu1 %v2514_v24  ;;  %9497 = vmatprep.mubr.bf16.mxu0 %v10975_v51  ;;  %v2498_v24 = vld [vmem:[%s10597_s13 + $0x10d] sm:$0xff] }
 0x12e   : > { %v11127_v34 = vadd.f32 %v9247_v29, %v9195_v33  ;;  %v558_v36 = vpop.f32.mrf.mxu0  ;;  %9549 = vmatprep.mubr.bf16.mxu1 %v2515_v18 }
 0x12f   : > { %v783_v35 = vpop.f32.mrf.mxu1 }
 0x130   : > { %v11133_v22 = vadd.f32 %v783_v35, %v558_v36  ;;  %v9196_v47 = vpop.f32.mrf.mxu0 }
 0x131   : > { %v9248_v49 = vpop.f32.mrf.mxu1 }
 0x132   : > { %v11135_v50 = vadd.f32 %v9248_v49, %v9196_v47  ;;  %v561_v51 = vpop.f32.mrf.mxu0  ;;  %v2500_v47 = vld [vmem:[%s10597_s13 + $0x11d] sm:$0xff] }
 0x133   : > { %v786_v62 = vpop.f32.mrf.mxu1 }
 0x134   : > { %v11137_v63 = vadd.f32 %v786_v62, %v561_v51  ;;  %v9199_v4 = vpop.f32.mrf.mxu0  ;;  %9498 = vmatmul.mubr.bf16.gmra.mxu0 %v10977_v53  ;;  %v2518_v53 = vpack.c.bf16 %v2496_v13, %v2495_v10  ;;  %v2502_v62 = vld [vmem:[%s10597_s13 + $0x12d] sm:$0xff] }
 0x135   : > { %v9251_v5 = vpop.f32.mrf.mxu1  ;;  %9550 = vmatmul.mubr.bf16.gmra.mxu1 %v2516_v41  ;;  %9501 = vmatprep.mubr.bf16.mxu0 %v10989_v1  ;;  %v2519_v1 = vpack.c.bf16 %v2498_v24, %v2497_v17 }
 0x136   : > { %v11141_v7 = vadd.f32 %v9251_v5, %v9199_v4  ;;  %v574_v9 = vpop.f32.mrf.mxu0  ;;  %9553 = vmatprep.mubr.bf16.mxu1 %v2517_v58  ;;  %v2501_v58 = vld [vmem:[%s10597_s13 + $0x125] sm:$0xff]  ;;  %v2520_v5 = vpack.c.bf16 %v2500_v47, %v2499_v45 }
 0x137   : > { %v799_v15 = vpop.f32.mrf.mxu1  ;;  %v2521_v10 = vpack.c.bf16 %v2502_v62, %v2501_v58 }
 0x138   : > { %v11147_v37 = vadd.f32 %v799_v15, %v574_v9  ;;  %v9200_v18 = vpop.f32.mrf.mxu0 }
 0x139   : > { %v9252_v23 = vpop.f32.mrf.mxu1 }
 0x13a   : > { %v11149_v33 = vadd.f32 %v9252_v23, %v9200_v18  ;;  %v11151_v29 = vpop.f32.mrf.mxu0  ;;  %v2172_v18 = vld [vmem:[%s10597_s13 + $0x134] sm:$0xff]  ;;  %v2173_v23 = vld [vmem:[%s10597_s13 + $0x13c] sm:$0xff] }
 0x13b   : > { %v11153_v36 = vpop.f32.mrf.mxu1  ;;  %v2191_v47 = vpack.c.bf16 %v2173_v23, %v2172_v18 }
 0x13c   : > { %v9271_v42 = vpop.f32.mrf.mxu0  ;;  %9502 = vmatmul.mubr.bf16.gmra.mxu0 %v10991_v3 }
 0x13d   : > { %v1111_v40 = vadd.f32 %v9271_v42, %v10997_v11  ;;  %v9323_v35 = vpop.f32.mrf.mxu1  ;;  %9554 = vmatmul.mubr.bf16.gmra.mxu1 %v2518_v53  ;;  %9505 = vmatprep.mubr.bf16.mxu0 %v11007_v25  ;;  %v2503_v53 = vld [vmem:[%s10597_s13 + $0x135] sm:$0xff]  ;;  %v2800_v42 = vld [vmem:[%s10597_s13 + $0x26] sm:$0xff] }
 0x13e   : > { %v966_v44 = vpop.f32.mrf.mxu0  ;;  %9557 = vmatprep.mubr.bf16.mxu1 %v2519_v1 }
 0x13f   : > { %v1109_v49 = vadd.f32 %v966_v44, %v11005_v19  ;;  %v11161_v41 = vadd.f32 %v9323_v35, %v1111_v40  ;;  %v1297_v51 = vpop.f32.mrf.mxu1  ;;  %v2801_v40 = vld [vmem:[%s10597_s13 + $0x2e] sm:$0xff] }
 0x140   : > { %v9272_v4 = vpop.f32.mrf.mxu0  ;;  %v2836_v58 = vpack.c.bf16 %v2801_v40, %v2800_v42 }
 0x141   : > { %v1112_v3 = vadd.f32 %v9272_v4, %v11009_v27  ;;  %v11166_v11 = vadd.f32 %v1297_v51, %v1109_v49  ;;  %v9324_v25 = vpop.f32.mrf.mxu1 }
 0x142   : > { %v969_v9 = vpop.f32.mrf.mxu0 }
 0x143   : > { %v11169_v19 = vadd.f32 %v969_v9, %v11013_v32  ;;  %v11171_v13 = vadd.f32 %v9324_v25, %v1112_v3  ;;  %v11173_v15 = vpop.f32.mrf.mxu1  ;;  %v2504_v32 = vld [vmem:[%s10597_s13 + $0x13d] sm:$0xff] }
 0x144   : > { %v9275_v17 = vpop.f32.mrf.mxu0  ;;  %9506 = vmatmul.mubr.bf16.gmra.mxu0 %v11011_v30  ;;  %v2522_v51 = vpack.c.bf16 %v2504_v32, %v2503_v53  ;;  %v2802_v9 = vld [vmem:[%s10597_s13 + $0x36] sm:$0xff] }
 0x145   : > { %v1115_v27 = vadd.f32 %v9275_v17, %v11018_v39  ;;  %v9327_v24 = vpop.f32.mrf.mxu1  ;;  %9558 = vmatmul.mubr.bf16.gmra.mxu1 %v2520_v5  ;;  %9509 = vmatprep.mubr.bf16.mxu0 %v11027_v55 }
 0x146   : > { %v982_v1 = vpop.f32.mrf.mxu0  ;;  %9561 = vmatprep.mubr.bf16.mxu1 %v2521_v10  ;;  %v2803_v10 = vld [vmem:[%s10597_s13 + $0x3e] sm:$0xff] }
 0x147   : > { %v1113_v35 = vadd.f32 %v982_v1, %v11025_v48  ;;  %v11185_v44 = vadd.f32 %v9327_v24, %v1115_v27  ;;  %v1313_v45 = vpop.f32.mrf.mxu1  ;;  %v2804_v27 = vld [vmem:[%s10597_s13 + $0x46] sm:$0xff]  ;;  %v2805_v24 = vld [vmem:[%s10597_s13 + $0x4e] sm:$0xff]  ;;  %v2837_v1 = vpack.c.bf16 %v2803_v10, %v2802_v9 }
 0x148   : > { %v9276_v30 = vpop.f32.mrf.mxu0  ;;  %v2838_v40 = vpack.c.bf16 %v2805_v24, %v2804_v27 }
 0x149   : > { %v1116_v39 = vadd.f32 %v9276_v30, %v11029_v57  ;;  %v11188_v55 = vadd.f32 %v1313_v45, %v1113_v35  ;;  %v9328_v49 = vpop.f32.mrf.mxu1 }
 0x14a   : > { %v985_v62 = vpop.f32.mrf.mxu0 }
 0x14b   : > { %v11191_v4 = vadd.f32 %v985_v62, %v11031_v61  ;;  %v11193_v48 = vadd.f32 %v9328_v49, %v1116_v39  ;;  %v11195_v3 = vpop.f32.mrf.mxu1  ;;  %v2808_v62 = vld [vmem:[%s10597_s13 + $0x66] sm:$0xff] }
 0x14c   : > { %v9279_v25 = vpop.f32.mrf.mxu0  ;;  %9510 = vmatmul.mubr.bf16.gmra.mxu0 %v2191_v47 }
 0x14d   : > { %v1119_v57 = vadd.f32 %v9279_v25, %v11035_v0  ;;  %v9331_v5 = vpop.f32.mrf.mxu1  ;;  %9562 = vmatmul.mubr.bf16.gmra.mxu1 %v2522_v51  ;;  %9581 = vmatprep.mubr.bf16.mxu0 %v2836_v58  ;;  %v2807_v51 = vld [vmem:[%s10597_s13 + $0x5e] sm:$0xff]  ;;  %v2809_v25 = vld [vmem:[%s10597_s13 + $0x6e] sm:$0xff] }
 0x14e   : > { %v998_v17 = vpop.f32.mrf.mxu0  ;;  %v2840_v24 = vpack.c.bf16 %v2809_v25, %v2808_v62 }
 0x14f   : > { %v1117_v18 = vadd.f32 %v998_v17, %v11041_v12  ;;  %v11203_v61 = vadd.f32 %v9331_v5, %v1119_v57  ;;  %v1329_v23 = vpop.f32.mrf.mxu1 }
 0x150   : > { %v9280_v53 = vpop.f32.mrf.mxu0 }
 0x151   : > { %v1120_v32 = vadd.f32 %v9280_v53, %v11043_v16  ;;  %v11206_v0 = vadd.f32 %v1329_v23, %v1117_v18  ;;  %v9332_v42 = vpop.f32.mrf.mxu1  ;;  %v2806_v16 = vld [vmem:[%s10597_s13 + $0x56] sm:$0xff] }
 0x152   : > { %v1001_v35 = vpop.f32.mrf.mxu0  ;;  %v2839_v10 = vpack.c.bf16 %v2807_v51, %v2806_v16 }
 0x153   : > { %v11209_v45 = vadd.f32 %v1001_v35, %v11048_v21  ;;  %v11211_v12 = vadd.f32 %v9332_v42, %v1120_v32  ;;  %v11213_v30 = vpop.f32.mrf.mxu1 }
 0x154   : > { %v9283_v47 = vpop.f32.mrf.mxu0  ;;  %9582 = vmatmul.mubr.bf16.vlgmr.msra.gmra.mxu0 %v2837_v1 }
 0x155   : > { %v1123_v39 = vadd.f32 %v9283_v47, %v11052_v28  ;;  %v9335_v49 = vpop.f32.mrf.mxu1  ;;  %9585 = vmatprep.mubr.bf16.mxu0 %v2838_v40  ;;  %v2811_v40 = vld [vmem:[%s10597_s13 + $0x7e] sm:$0xff]  ;;  %v2812_v47 = vld [vmem:[%s10597_s13 + $0x86] sm:$0xff] }
 0x156   : > { %v1014_v58 = vpop.f32.mrf.mxu0 }
 0x157   : > { %v1121_v57 = vadd.f32 %v1014_v58, %v11062_v43  ;;  %v11221_v5 = vadd.f32 %v9335_v49, %v1123_v39  ;;  %v1345_v21 = vpop.f32.mrf.mxu1  ;;  %v2813_v39 = vld [vmem:[%s10597_s13 + $0x8e] sm:$0xff] }
 0x158   : > { %v9284_v9 = vpop.f32.mrf.mxu0 }
 0x159   : > { %v1124_v17 = vadd.f32 %v9284_v9, %v11064_v46  ;;  %v11224_v28 = vadd.f32 %v1345_v21, %v1121_v57  ;;  %v9336_v27 = vpop.f32.mrf.mxu1  ;;  %v2810_v46 = vld [vmem:[%s10597_s13 + $0x76] sm:$0xff]  ;;  %v2842_v57 = vpack.c.bf16 %v2813_v39, %v2812_v47 }
 0x15a   : > { %v1017_v18 = vpop.f32.mrf.mxu0  ;;  %v2841_v58 = vpack.c.bf16 %v2811_v40, %v2810_v46 }
 0x15b   : > { %v11227_v23 = vadd.f32 %v1017_v18, %v11069_v52  ;;  %v11229_v43 = vadd.f32 %v9336_v27, %v1124_v17  ;;  %v11231_v53 = vpop.f32.mrf.mxu1  ;;  %v2815_v18 = vld [vmem:[%s10597_s13 + $0x9e] sm:$0xff] }
 0x15c   : > { %v9287_v1 = vpop.f32.mrf.mxu0  ;;  %9586 = vmatmul.mubr.bf16.gmra.mxu0 %v2839_v10 }
 0x15d   : > { %v1127_v32 = vadd.f32 %v9287_v1, %v11073_v60  ;;  %v9339_v42 = vpop.f32.mrf.mxu1  ;;  %9589 = vmatprep.mubr.bf16.mxu0 %v2840_v24 }
 0x15e   : > { %v1030_v35 = vpop.f32.mrf.mxu0 }
 0x15f   : > { %v1125_v49 = vadd.f32 %v1030_v35, %v11082_v56  ;;  %v11239_v16 = vadd.f32 %v9339_v42, %v1127_v32  ;;  %v1361_v52 = vpop.f32.mrf.mxu1  ;;  %v2816_v32 = vld [vmem:[%s10597_s13 + $0xa6] sm:$0xff]  ;;  %v2817_v42 = vld [vmem:[%s10597_s13 + $0xae] sm:$0xff] }
 0x160   : > { %v9288_v51 = vpop.f32.mrf.mxu0 }
 0x161   : > { %v1128_v62 = vadd.f32 %v9288_v51, %v11084_v14  ;;  %v11242_v60 = vadd.f32 %v1361_v52, %v1125_v49  ;;  %v9340_v25 = vpop.f32.mrf.mxu1  ;;  %v2814_v14 = vld [vmem:[%s10597_s13 + $0x96] sm:$0xff]  ;;  %v2844_v52 = vpack.c.bf16 %v2817_v42, %v2816_v32 }
 0x162   : > { %v1033_v21 = vpop.f32.mrf.mxu0  ;;  %v2843_v47 = vpack.c.bf16 %v2815_v18, %v2814_v14  ;;  %v2821_v14 = vld [vmem:[%s10597_s13 + $0xce] sm:$0xff] }
 0x163   : > { %v11245_v9 = vadd.f32 %v1033_v21, %v11089_v20  ;;  %v11247_v56 = vadd.f32 %v9340_v25, %v1128_v62  ;;  %v11249_v10 = vpop.f32.mrf.mxu1 }
 0x164   : > { %v9291_v17 = vpop.f32.mrf.mxu0  ;;  %9590 = vmatmul.mubr.bf16.gmra.mxu0 %v2841_v58 }
 0x165   : > { %v1131_v27 = vadd.f32 %v9291_v17, %v11093_v31  ;;  %v9343_v24 = vpop.f32.mrf.mxu1  ;;  %9593 = vmatprep.mubr.bf16.mxu0 %v2842_v57  ;;  %v2819_v17 = vld [vmem:[%s10597_s13 + $0xbe] sm:$0xff] }
 0x166   : > { %v1046_v1 = vpop.f32.mrf.mxu0 }
 0x167   : > { %v1129_v46 = vadd.f32 %v1046_v1, %v11102_v8  ;;  %v11257_v40 = vadd.f32 %v9343_v24, %v1131_v27  ;;  %v1377_v20 = vpop.f32.mrf.mxu1  ;;  %v2820_v24 = vld [vmem:[%s10597_s13 + $0xc6] sm:$0xff] }
 0x168   : > { %v9292_v35 = vpop.f32.mrf.mxu0 }
 0x169   : > { %v1132_v39 = vadd.f32 %v9292_v35, %v11104_v54  ;;  %v11260_v31 = vadd.f32 %v1377_v20, %v1129_v46  ;;  %v9344_v49 = vpop.f32.mrf.mxu1  ;;  %v2818_v54 = vld [vmem:[%s10597_s13 + $0xb6] sm:$0xff]  ;;  %v2846_v35 = vpack.c.bf16 %v2821_v14, %v2820_v24 }
 0x16a   : > { %v1049_v51 = vpop.f32.mrf.mxu0  ;;  %v2845_v42 = vpack.c.bf16 %v2819_v17, %v2818_v54  ;;  %v2824_v17 = vld [vmem:[%s10597_s13 + $0xe6] sm:$0xff] }
 0x16b   : > { %v11263_v58 = vadd.f32 %v1049_v51, %v11109_v59  ;;  %v11265_v8 = vadd.f32 %v9344_v49, %v1132_v39  ;;  %v11267_v62 = vpop.f32.mrf.mxu1 }
 0x16c   : > { %v9295_v25 = vpop.f32.mrf.mxu0  ;;  %9594 = vmatmul.mubr.bf16.gmra.mxu0 %v2843_v47 }
 0x16d   : > { %v1135_v57 = vadd.f32 %v9295_v25, %v11113_v2  ;;  %v9347_v21 = vpop.f32.mrf.mxu1  ;;  %9597 = vmatprep.mubr.bf16.mxu0 %v2844_v52 }
 0x16e   : > { %v1062_v27 = vpop.f32.mrf.mxu0 }
 0x16f   : > { %v1133_v18 = vadd.f32 %v1062_v27, %v11119_v6  ;;  %v11275_v1 = vadd.f32 %v9347_v21, %v1135_v57  ;;  %v1393_v59 = vpop.f32.mrf.mxu1  ;;  %v2823_v57 = vld [vmem:[%s10597_s13 + $0xde] sm:$0xff] }
 0x170   : > { %v9296_v32 = vpop.f32.mrf.mxu0  ;;  %v10274_v21 = vld [vmem:[%s15124_s3 + $0x78] sm:$0xff]  }
 0x171   : > { %v1136_v46 = vadd.f32 %v9296_v32, %v11121_v38  ;;  %v11278_v20 = vadd.f32 %v1393_v59, %v1133_v18  ;;  %v9348_v2 = vpop.f32.mrf.mxu1  ;;  %v2822_v38 = vld [vmem:[%s10597_s13 + $0xd6] sm:$0xff]  ;;  %9617 = vmatprep.subr.bf16.mxu1 %v10274_v21 }
 0x172   : > { %v1065_v47 = vpop.f32.mrf.mxu0  ;;  %9618 = vmatpush3.bf16.msra.mxu1 %v10274_v21 }
 0x173   : > { %v11281_v39 = vadd.f32 %v1065_v47, %v11123_v26  ;;  %v11283_v6 = vadd.f32 %v9348_v2, %v1136_v46  ;;  %v11285_v49 = vpop.f32.mrf.mxu1  ;;  %v2825_v26 = vld [vmem:[%s10597_s13 + $0xee] sm:$0xff] }
 0x174   : > { %v9299_v52 = vpop.f32.mrf.mxu0  ;;  %9598 = vmatmul.mubr.bf16.gmra.mxu0 %v2845_v42  ;;  %v2848_v46 = vpack.c.bf16 %v2825_v26, %v2824_v17 }
 0x175   : > { %v1139_v51 = vadd.f32 %v9299_v52, %v11127_v34  ;;  %v9351_v25 = vpop.f32.mrf.mxu1  ;;  %9601 = vmatprep.mubr.bf16.mxu0 %v2846_v35  ;;  %v2847_v34 = vpack.c.bf16 %v2823_v57, %v2822_v38  ;;  %v2827_v38 = vld [vmem:[%s10597_s13 + $0xfe] sm:$0xff]  ;;  %v10275_v57 = vld [vmem:[%s15124_s3 + $0x70] sm:$0xff]  }
 0x176   : > { %v1078_v54 = vpop.f32.mrf.mxu0  ;;  %9619 = vmatprep.subr.bf16.mxu1 %v10275_v57 }
 0x177   : > { %v1137_v27 = vadd.f32 %v1078_v54, %v11133_v22  ;;  %v11296_v24 = vadd.f32 %v9351_v25, %v1139_v51  ;;  %v1409_v14 = vpop.f32.mrf.mxu1  ;;  %v2828_v54 = vld [vmem:[%s10597_s13 + $0x106] sm:$0xff]  ;;  %9620 = vmatpush3.bf16.msra.mxu1 %v10275_v57 }
 0x178   : > { %v9300_v18 = vpop.f32.mrf.mxu0  ;;  %v2832_v57 = vld [vmem:[%s10597_s13 + $0x126] sm:$0xff] }
 0x179   : > { %v1140_v59 = vadd.f32 %v9300_v18, %v11135_v50  ;;  %v11299_v32 = vadd.f32 %v1409_v14, %v1137_v27  ;;  %v9352_v42 = vpop.f32.mrf.mxu1  ;;  %v2826_v50 = vld [vmem:[%s10597_s13 + $0xf6] sm:$0xff] }
 0x17a   : > { %v1081_v2 = vpop.f32.mrf.mxu0 }
 0x17b   : > { %v11302_v22 = vadd.f32 %v1081_v2, %v11137_v63  ;;  %v11304_v35 = vadd.f32 %v9352_v42, %v1140_v59  ;;  %v11306_v47 = vpop.f32.mrf.mxu1  ;;  %v2829_v63 = vld [vmem:[%s10597_s13 + $0x10e] sm:$0xff] }
 0x17c   : > { %v9303_v52 = vpop.f32.mrf.mxu0  ;;  %9602 = vmatmul.mubr.bf16.gmra.mxu0 %v2847_v34  ;;  %v2850_v42 = vpack.c.bf16 %v2829_v63, %v2828_v54 }
 0x17d   : > { %v1143_v51 = vadd.f32 %v9303_v52, %v11141_v7  ;;  %v9355_v25 = vpop.f32.mrf.mxu1  ;;  %9605 = vmatprep.mubr.bf16.mxu0 %v2848_v46  ;;  %v2849_v7 = vpack.c.bf16 %v2827_v38, %v2826_v50  ;;  %v2830_v50 = vld [vmem:[%s10597_s13 + $0x116] sm:$0xff]  ;;  %v2831_v38 = vld [vmem:[%s10597_s13 + $0x11e] sm:$0xff] }
 0x17e   : > { %v1094_v21 = vpop.f32.mrf.mxu0 }
 0x17f   : > { %v1141_v17 = vadd.f32 %v1094_v21, %v11147_v37  ;;  %v11317_v26 = vadd.f32 %v9355_v25, %v1143_v51  ;;  %v1425_v27 = vpop.f32.mrf.mxu1  ;;  %v2833_v21 = vld [vmem:[%s10597_s13 + $0x12e] sm:$0xff] }
 0x180   : > { %v9304_v14 = vpop.f32.mrf.mxu0 }
 0x181   : > { %15254 = vst [vmem:[#allocation6_spill] sm:$0xff] %v11317_v26  ;;  %v1144_v18 = vadd.f32 %v9304_v14, %v11149_v33  ;;  %v11320_v34 = vadd.f32 %v1425_v27, %v1141_v17  ;;  %v9356_v59 = vpop.f32.mrf.mxu1  ;;  %v10276_v27 = vld [vmem:[%s15124_s3 + $0x68] sm:$0xff]  }
 0x182   : > { %v11322_v46 = vpop.f32.mrf.mxu0  ;;  %9621 = vmatprep.subr.bf16.mxu1 %v10276_v27 }
 0x183   : > { %15255 = vst [vmem:[#allocation7_spill] sm:$0xff] %v11320_v34  ;;  %v11324_v37 = vadd.f32 %v9356_v59, %v1144_v18  ;;  %v11326_v2 = vpop.f32.mrf.mxu1  ;;  %9622 = vmatpush3.bf16.msra.mxu1 %v10276_v27 }
 0x184   : > { %v9375_v52 = vpop.f32.mrf.mxu0  ;;  %9606 = vmatmul.mubr.bf16.gmra.mxu0 %v2849_v7  ;;  %v2851_v7 = vpack.c.bf16 %v2831_v38, %v2830_v50 }
 0x185   : > { %15256 = vst [vmem:[#allocation8_spill] sm:$0xff] %v11324_v37  ;;  %v1773_v51 = vadd.f32 %v9375_v52, %v11161_v41  ;;  %v9427_v25 = vpop.f32.mrf.mxu1  ;;  %9609 = vmatprep.mubr.bf16.mxu0 %v2850_v42  ;;  %v2852_v42 = vpack.c.bf16 %v2833_v21, %v2832_v57 }
 0x186   : > { %v1628_v33 = vpop.f32.mrf.mxu0 }
 0x187   : > { %v1771_v17 = vadd.f32 %v1628_v33, %v11166_v11  ;;  %v11334_v54 = vadd.f32 %v9427_v25, %v1773_v51  ;;  %v1959_v63 = vpop.f32.mrf.mxu1  ;;  %v3210_v11 = vlaneseq }
 0x188   : > { %v9376_v14 = vpop.f32.mrf.mxu0 }
 0x189   : > { %15257 = vst [vmem:[#allocation9_spill] sm:$0xff] %v11334_v54  ;;  %v1774_v41 = vadd.f32 %v9376_v14, %v11171_v13  ;;  %v11340_v18 = vadd.f32 %v1959_v63, %v1771_v17  ;;  %v9428_v59 = vpop.f32.mrf.mxu1  ;;  %v2834_v13 = vld [vmem:[%s10597_s13 + $0x136] sm:$0xff]  ;;  %v2835_v17 = vld [vmem:[%s10597_s13 + $0x13e] sm:$0xff]  ;;  %v11351_v14 = vshrl.u32 %v3210_v11, 7 }
 0x18a   : > { %v11342_v52 = vpop.f32.mrf.mxu0 }
 0x18b   : > { %15258 = vst [vmem:[#allocation10_spill] sm:$0xff] %v11340_v18  ;;  %v11344_v51 = vadd.f32 %v9428_v59, %v1774_v41  ;;  %v11346_v25 = vpop.f32.mrf.mxu1  ;;  %v10277_v41 = vld [vmem:[%s15124_s3 + $0x60] sm:$0xff]  }
 0x18c   : > { %v9379_v33 = vpop.f32.mrf.mxu0  ;;  %9610 = vmatmul.mubr.bf16.gmra.mxu0 %v2851_v7  ;;  %v2853_v7 = vpack.c.bf16 %v2835_v17, %v2834_v13  ;;  %9623 = vmatprep.subr.bf16.mxu1 %v10277_v41 }
 0x18d   : > { %15259 = vst [vmem:[#allocation11_spill] sm:$0xff] %v11344_v51  ;;  %v1777_v50 = vadd.f32 %v9379_v33, %v11185_v44  ;;  %v9431_v38 = vpop.f32.mrf.mxu1  ;;  %9613 = vmatprep.mubr.bf16.mxu0 %v2852_v42  ;;  %9624 = vmatpush3.bf16.msra.mxu1 %v10277_v41 }
 0x18e   : > { %v1644_v63 = vpop.f32.mrf.mxu0 }
 0x18f   : > { %v1775_v57 = vadd.f32 %v1644_v63, %v11188_v55  ;;  %v11354_v21 = vadd.f32 %v9431_v38, %v1777_v50  ;;  %v1975_v27 = vpop.f32.mrf.mxu1  ;;  %v11365_v55 = vadd.s32 16, %v11351_v14  ;;  %v10278_v38 = vld [vmem:[%s15124_s3 + $0x38] sm:$0xff]  }
 0x190   : > { %v9380_v59 = vpop.f32.mrf.mxu0  ;;  %9669 = vmatprep.subr.bf16.mxu0 %v10278_v38 }
 0x191   : > { %15260 = vst [vmem:[#allocation12_spill] sm:$0xff] %v11354_v21  ;;  %v1778_v44 = vadd.f32 %v9380_v59, %v11193_v48  ;;  %v11360_v33 = vadd.f32 %v1975_v27, %v1775_v57  ;;  %v9432_v42 = vpop.f32.mrf.mxu1  ;;  %v11376_v57 = vmul.u32.u64.low 3817748708, %v11365_v55  ;;  %v11377_v27 = vmul.u32.u64.high 3817748708, %v11365_v55, %v11376_v57  ;;  %9670 = vmatpush3.bf16.msra.mxu0 %v10278_v38 }
 0x192   : > { %v11362_v51 = vpop.f32.mrf.mxu0  ;;  %v11402_v57 = vadd.s32 8, %v11351_v14 }
 0x193   : > { %15261 = vst [vmem:[#allocation13_spill] sm:$0xff] %v11360_v33  ;;  %v11367_v11 = vadd.f32 %v9432_v42, %v1778_v44  ;;  %v11369_v50 = vpop.f32.mrf.mxu1  ;;  %v10280_v42 = vld [vmem:[%s15124_s3 + $0x30] sm:$0xff]  }
 0x194   : > { %v9383_v13 = vpop.f32.mrf.mxu0  ;;  %9614 = vmatmul.mubr.bf16.gmra.mxu0 %v2853_v7  ;;  %9671 = vmatprep.subr.bf16.mxu0 %v10280_v42 }
 0x195   : > { %15262 = vst [vmem:[#allocation14_spill] sm:$0xff] %v11367_v11  ;;  %v1781_v48 = vadd.f32 %v9383_v13, %v11203_v61  ;;  %v9435_v17 = vpop.f32.mrf.mxu1  ;;  %v11386_v61 = vadd.s32 24, %v11351_v14  ;;  %9672 = vmatpush3.bf16.msra.mxu0 %v10280_v42 }
 0x196   : > { %v1660_v63 = vpop.f32.mrf.mxu0 }
 0x197   : > { %v1779_v41 = vadd.f32 %v1660_v63, %v11206_v0  ;;  %v11380_v59 = vadd.f32 %v9435_v17, %v1781_v48  ;;  %v1991_v44 = vpop.f32.mrf.mxu1  ;;  %v11394_v0 = vmul.u32.u64.low 3817748708, %v11351_v14  ;;  %v11395_v48 = vmul.u32.u64.high 3817748708, %v11351_v14, %v11394_v0 }
 0x198   : > { %v9384_v7 = vpop.f32.mrf.mxu0  ;;  %v3900_v0 = vld [vmem:[#allocation2 + $0x8] sm:$0x3] }
 0x199   : > { %15263 = vst [vmem:[#allocation15_spill] sm:$0xff] %v11380_v59  ;;  %v1782_v13 = vadd.f32 %v9384_v7, %v11211_v12  ;;  %v11389_v11 = vadd.f32 %v1991_v44, %v1779_v41  ;;  %v9436_v33 = vpop.f32.mrf.mxu1  ;;  %v10281_v12 = vld [vmem:[%s15124_s3 + $0x28] sm:$0xff]   ;;  %v11408_v44 = vmul.u32.u64.low 3817748708, %v11386_v61  ;;  %v11409_v7 = vmul.u32.u64.high 3817748708, %v11386_v61, %v11408_v44 }
 0x19a   : > { %v11391_v38 = vpop.f32.mrf.mxu0  ;;  %9673 = vmatprep.subr.bf16.mxu0 %v10281_v12  ;;  %v3901_v59 = vsel %vm11413_vm2, 0, %v3900_v0  ;;  %v1445_v0 = vadd.f32 %v11195_v3, %v11191_v4 }
 0x19b   : > { %15264 = vst [vmem:[#allocation16_spill] sm:$0xff] %v11389_v11  ;;  %v11397_v17 = vadd.f32 %v9436_v33, %v1782_v13  ;;  %v11399_v63 = vpop.f32.mrf.mxu1  ;;  %v15266_v13 = vmov 0  ;;  %v3275_v11 = vshrl.u32 %v11377_v27, 4  ;;  %9674 = vmatpush3.bf16.msra.mxu0 %v10281_v12  ;;  %3902 = vst [vmem:[#allocation2 + $0x8] sm:$0x3] %v3901_v59  ;;  %v3253_v12 = vshrl.u32 %v11395_v48, 4 }
 0x19c   : > { %v9387_v41 = vpop.f32.mrf.mxu0  ;;  %v15267_v13 = vsel %vm11413_vm2, 4294967295, %v15266_v13  ;;  %v803_v59 = vadd.f32 %v11153_v36, %v11151_v29  ;;  %v3286_v48 = vshrl.u32 %v11409_v7, 4  ;;  %v11449_v29 = vadd.f32 %v11213_v30, %v11209_v45 }
 0x19d   : > { %15265 = vst [vmem:[#allocation17_spill] sm:$0xff] %v11397_v17  ;;  %v1785_v42 = vadd.f32 %v9387_v41, %v11221_v5  ;;  %v9439_v33 = vpop.f32.mrf.mxu1  ;;  %15268 = vst [vmem:[#allocation18_spill] sm:$0xff] %v15267_v13  ;;  %v11424_v41 = vmul.u32.u64.low 3817748708, %v11402_v57  ;;  %v11425_v18 = vmul.u32.u64.high 3817748708, %v11402_v57, %v11424_v41 }
 0x19e   : > { %v1676_v17 = vpop.f32.mrf.mxu0  ;;  %v1142_v45 = vadd.f32 %v11322_v46, %v803_v59  ;;  %v3287_v59 = vmul.u32 18, %v3286_v48 }
 0x19f   : > { %v1783_v21 = vadd.f32 %v1676_v17, %v11224_v28  ;;  %v11421_v44 = vadd.f32 %v9439_v33, %v1785_v42  ;;  %v2007_v5 = vpop.f32.mrf.mxu1  ;;  %v11434_v28 = vadd.s32 48, %v11351_v14  ;;  %v3276_v33 = vmul.u32 18, %v3275_v11 }
 0x1a0   : > { %v9388_v54 = vpop.f32.mrf.mxu0  ;;  %v15269_v11 = vmov 0 }
 0x1a1   : > { %v1786_v37 = vadd.f32 %v9388_v54, %v11229_v43  ;;  %v11428_v34 = vadd.f32 %v2007_v5, %v1783_v21  ;;  %v9440_v27 = vpop.f32.mrf.mxu1  ;;  %v1441_v43 = vadd.f32 %v11173_v15, %v11169_v19  ;;  %v3906_v21 = vld [vmem:[#allocation2 + $0x98] sm:$0xe]  ;;  %v15270_v11 = vsel %vm11452_vm5, 4294967295, %v15269_v11 }
 0x1a2   : > { %v11430_v26 = vpop.f32.mrf.mxu0  ;;  %15271 = vst [vmem:[#allocation19_spill] sm:$0xff] %v15270_v11  ;;  %v11457_v19 = vadd.s32 32, %v11351_v14  ;;  %v3254_v5 = vmul.u32 18, %v3253_v12  ;;  %v3907_v7 = vsel %vm11452_vm5, 0, %v3906_v21  ;;  %v10283_v12 = vld [vmem:[%s15124_s3 + $0x20] sm:$0xff]   ;;  %v11479_v21 = vadd.f32 %v11249_v10, %v11245_v9  ;;  %v10279_v10 = vld [vmem:[%s15124_s3 + $0x58] sm:$0xff]  }
 0x1a3   : > { %v11438_v17 = vadd.f32 %v9440_v27, %v1786_v37  ;;  %v11440_v42 = vpop.f32.mrf.mxu1  ;;  %v11462_v4 = vmul.u32.u64.low 3817748708, %v11434_v28  ;;  %v11463_v3 = vmul.u32.u64.high 3817748708, %v11434_v28, %v11462_v4  ;;  %3908 = vst [vmem:[#allocation2 + $0x98] sm:$0xe] %v3907_v7  ;;  %v3264_v27 = vshrl.u32 %v11425_v18, 4  ;;  %9675 = vmatprep.subr.bf16.mxu0 %v10283_v12  ;;  %9625 = vmatprep.subr.bf16.mxu1 %v10279_v10 }
 0x1a4   : > { %v9391_v54 = vpop.f32.mrf.mxu0  ;;  %9676 = vmatpush3.bf16.msra.mxu0 %v10283_v12  ;;  %v1776_v4 = vadd.f32 %v11362_v51, %v1445_v0  ;;  %9626 = vmatpush3.bf16.msra.mxu1 %v10279_v10  ;;  %v11708_v11 = vadd.s32 112, %v11351_v14 }
 0x1a5   : > { %v1789_v36 = vadd.f32 %v9391_v54, %v11239_v16  ;;  %v9443_v37 = vpop.f32.mrf.mxu1  ;;  %v11475_v54 = vadd.f32 %v11231_v53, %v11227_v23  ;;  %v11493_v23 = vadd.f32 %v11267_v62, %v11263_v58  ;;  %v11497_v53 = vadd.f32 %v11285_v49, %v11281_v39  ;;  %v10284_v58 = vld [vmem:[%s15124_s3 + $0x18] sm:$0xff]  }
 0x1a6   : > { %v1692_v15 = vpop.f32.mrf.mxu0  ;;  %v11515_v62 = vadd.f32 %v11306_v47, %v11302_v22  ;;  %v11518_v39 = vadd.f32 %v11326_v2, %v1142_v45  ;;  %v3265_v48 = vmul.u32 18, %v3264_v27  ;;  %v11530_v22 = vadd.s32 40, %v11351_v14  ;;  %9677 = vmatprep.subr.bf16.mxu0 %v10284_v58 }
 0x1a7   : > { %v1787_v30 = vadd.f32 %v1692_v15, %v11242_v60  ;;  %v11467_v16 = vadd.f32 %v9443_v37, %v1789_v36  ;;  %v2023_v41 = vpop.f32.mrf.mxu1  ;;  %v11482_v60 = vsub.s32 %v11365_v55, %v3276_v33  ;;  %v11508_v55 = vadd.s32 56, %v11351_v14 }
 0x1a8   : > { %v9392_v46 = vpop.f32.mrf.mxu0  ;;  %v11488_v15 = vmul.u32.u64.low 3817748708, %v11457_v19  ;;  %v11489_v7 = vmul.u32.u64.high 3817748708, %v11457_v19, %v11488_v15  ;;  %9678 = vmatpush3.bf16.msra.mxu0 %v10284_v58  ;;  %v11573_v58 = vadd.s32 80, %v11351_v14 }
 0x1a9   : > { %15272 = vst [vmem:[#allocation20_spill] sm:$0xff] %v11482_v60  ;;  %v1790_v36 = vadd.f32 %v9392_v46, %v11247_v56  ;;  %v11485_v18 = vadd.f32 %v2023_v41, %v1787_v30  ;;  %v9444_v37 = vpop.f32.mrf.mxu1  ;;  %v11502_v56 = vsub.s32 %v11351_v14, %v3254_v5  ;;  %v1772_v5 = vadd.f32 %v11342_v52, %v1441_v43 }
 0x1aa   : > { %v11499_v9 = vpop.f32.mrf.mxu0  ;;  %v11527_v41 = vsub.s32 %v11386_v61, %v3287_v59  ;;  %vm3645_vm6 = vcmp.ne.s32.totalorder %v11482_v60, 0  ;;  %vm3681_vm7 = vcmp.lt.s32.totalorder %v11482_v60, 0  ;;  %v11536_v52 = vadd.s32 18, %v11482_v60 }
 0x1ab   : > { %15273 = vst [vmem:[#allocation21_spill] sm:$0xff] %v11485_v18  ;;  %15274 = vst [vmem:[#allocation22_spill] sm:$0xff] %v11502_v56  ;;  %v11520_v49 = vadd.f32 %v9444_v37, %v1790_v36  ;;  %v11522_v33 = vpop.f32.mrf.mxu1  ;;  %vm3643_vm8 = vcmp.ne.s32.totalorder %v11502_v56, 0  ;;  %v3319_v61 = vshrl.u32 %v11463_v3, 4  ;;  %vm3679_vm9 = vcmp.lt.s32.totalorder %v11502_v56, 0 }
 0x1ac   : > { %v9395_v30 = vpop.f32.mrf.mxu0  ;;  %15276 = vst [vmem:[#allocation24_spill] sm:$0xff] %v11527_v41  ;;  %15277 = vst [vmem:[#allocation25_spill] sm:$0xff] %v11536_v52  ;;  %v11541_v43 = vmul.u32.u64.low 3817748708, %v11508_v55  ;;  %v11542_v0 = vmul.u32.u64.high 3817748708, %v11508_v55, %v11541_v43  ;;  %v11552_v46 = vsub.s32 %v11402_v57, %v3265_v48  ;;  %vm3646_vm10 = vcmp.ne.s32.totalorder %v11527_v41, 0  ;;  %v15317_v52 = vld [vmem:[#allocation6_spill] sm:$0xff] }
 0x1ad   : > { %15275 = vst [vmem:[#allocation23_spill] sm:$0xff] %v11520_v49  ;;  %v1793_v47 = vadd.f32 %v9395_v30, %v11257_v40  ;;  %v9447_v2 = vpop.f32.mrf.mxu1  ;;  %v10285_v40 = vld [vmem:[%s15124_s3 + $0x10] sm:$0xff]   ;;  %vm3682_vm11 = vcmp.lt.s32.totalorder %v11527_v41, 0  ;;  %v11557_v59 = vmul.u32.u64.low 3817748708, %v11530_v22  ;;  %v11558_v36 = vmul.u32.u64.high 3817748708, %v11530_v22, %v11557_v59  ;;  %vm11567_vm12 = vmand %vm3681_vm7, %vm3645_vm6 }
 0x1ae   : > { %v1708_v51 = vpop.f32.mrf.mxu0  ;;  %15279 = vst [vmem:[#allocation27_spill] sm:$0xff] %v11552_v46  ;;  %9679 = vmatprep.subr.bf16.mxu0 %v10285_v40  ;;  %v15281_v57 = vmov 0  ;;  %v3297_v10 = vshrl.u32 %v11489_v7, 4  ;;  %v11576_v48 = vadd.f32 %v11346_v25, %v1772_v5  ;;  %vm11593_vm13 = vmand %vm3679_vm9, %vm3643_vm8  ;;  %v15286_v25 = vmov 0  ;;  %v10282_v59 = vld [vmem:[%s15124_s3 + $0x50] sm:$0xff]  }
 0x1af   : > { %v1791_v45 = vadd.f32 %v1708_v51, %v11260_v31  ;;  %v11548_v27 = vadd.f32 %v9447_v2, %v1793_v47  ;;  %v2039_v12 = vpop.f32.mrf.mxu1  ;;  %v15282_v57 = vsel %vm11567_vm12, 4294967295, %v15281_v57  ;;  %v11583_v47 = vadd.s32 18, %v11502_v56  ;;  %9680 = vmatpush3.bf16.msra.mxu0 %v10285_v40  ;;  %vm11613_vm0 = vmand %vm3682_vm11, %vm3646_vm10  ;;  %9627 = vmatprep.subr.bf16.mxu1 %v10282_v59 }
 0x1b0   : > { %v9396_v3 = vpop.f32.mrf.mxu0  ;;  %15283 = vst [vmem:[#allocation29_spill] sm:$0xff] %v15282_v57  ;;  %v3320_v2 = vmul.u32 18, %v3319_v61  ;;  %v15287_v25 = vsel %vm11593_vm13, 4294967295, %v15286_v25  ;;  %vm3644_vm14 = vcmp.ne.s32.totalorder %v11552_v46, 0  ;;  %vm3680_vm15 = vcmp.lt.s32.totalorder %v11552_v46, 0  ;;  %9628 = vmatpush3.bf16.msra.mxu1 %v10282_v59 }
 0x1b1   : > { %15278 = vst [vmem:[#allocation26_spill] sm:$0xff] %v11548_v27  ;;  %v1794_v31 = vadd.f32 %v9396_v3, %v11265_v8  ;;  %v11561_v37 = vadd.f32 %v2039_v12, %v1791_v45  ;;  %v9448_v15 = vpop.f32.mrf.mxu1  ;;  %v1780_v8 = vadd.f32 %v11391_v38, %v11449_v29  ;;  %15284 = vst [vmem:[#allocation30_spill] sm:$0xff] %v11583_v47  ;;  %v11598_v38 = vadd.s32 18, %v11527_v41 }
 0x1b2   : > { %v11580_v30 = vpop.f32.mrf.mxu0  ;;  %15288 = vst [vmem:[#allocation32_spill] sm:$0xff] %v15287_v25  ;;  %v11603_v29 = vadd.f32 %v11369_v50, %v1776_v4  ;;  %v15290_v61 = vmov 0  ;;  %v11618_v40 = vadd.s32 18, %v11552_v46  ;;  %v11621_v50 = vadd.s32 64, %v11351_v14  ;;  %v10287_v4 = vld [vmem:[%s15124_s3 + $0x8] sm:$0xff]   ;;  %vm11645_vm3 = vmand %vm3680_vm15, %vm3644_vm14 }
 0x1b3   : > { %15280 = vst [vmem:[#allocation28_spill] sm:$0xff] %v11561_v37  ;;  %v11585_v51 = vadd.f32 %v9448_v15, %v1794_v31  ;;  %v11587_v43 = vpop.f32.mrf.mxu1  ;;  %15289 = vst [vmem:[#allocation33_spill] sm:$0xff] %v11598_v38  ;;  %v15291_v61 = vsel %vm11613_vm0, 4294967295, %v15290_v61  ;;  %v3298_v3 = vmul.u32 18, %v3297_v10  ;;  %v11635_v5 = vadd.f32 %v11399_v63, %v1780_v8  ;;  %9681 = vmatprep.subr.bf16.mxu0 %v10287_v4  ;;  %v15365_v37 = vld [vmem:[#allocation13_spill] sm:$0xff] }
 0x1b4   : > { %v9399_v7 = vpop.f32.mrf.mxu0  ;;  %15292 = vst [vmem:[#allocation34_spill] sm:$0xff] %v15291_v61  ;;  %15293 = vst [vmem:[#allocation35_spill] sm:$0xff] %v11618_v40  ;;  %v11631_v31 = vmul.u32.u64.low 3817748708, %v11573_v58  ;;  %v11632_v15 = vmul.u32.u64.high 3817748708, %v11573_v58, %v11631_v31  ;;  %v11650_v10 = vsub.s32 %v11434_v28, %v3320_v2  ;;  %v3330_v63 = vshrl.u32 %v11542_v0, 4  ;;  %9682 = vmatpush3.bf16.msra.mxu0 %v10287_v4 }
 0x1b5   : > { %15285 = vst [vmem:[#allocation31_spill] sm:$0xff] %v11585_v51  ;;  %v1797_v45 = vadd.f32 %v9399_v7, %v11275_v1  ;;  %v9451_v12 = vpop.f32.mrf.mxu1  ;;  %v15294_v1 = vmov 0  ;;  %v3308_v47 = vshrl.u32 %v11558_v36, 4  ;;  %v11676_v36 = vsub.s32 %v11457_v19, %v3298_v3 }
 0x1b6   : > { %v1724_v13 = vpop.f32.mrf.mxu0  ;;  %v15295_v1 = vsel %vm11645_vm3, 4294967295, %v15294_v1  ;;  %15297 = vst [vmem:[#allocation37_spill] sm:$0xff] %v11650_v10  ;;  %v11662_v28 = vmul.u32.u64.low 3817748708, %v11621_v50  ;;  %v11663_v0 = vmul.u32.u64.high 3817748708, %v11621_v50, %v11662_v28  ;;  %vm3649_vm4 = vcmp.ne.s32.totalorder %v11650_v10, 0 }
 0x1b7   : > { %15296 = vst [vmem:[#allocation36_spill] sm:$0xff] %v15295_v1  ;;  %v1795_v8 = vadd.f32 %v1724_v13, %v11278_v20  ;;  %v11654_v7 = vadd.f32 %v9451_v12, %v1797_v45  ;;  %v2055_v31 = vpop.f32.mrf.mxu1  ;;  %v11666_v20 = vadd.s32 88, %v11351_v14  ;;  %15300 = vst [vmem:[#allocation40_spill] sm:$0xff] %v11676_v36  ;;  %v11680_v12 = vadd.f32 %v11430_v26, %v11475_v54 }
 0x1b8   : > { %v9400_v56 = vpop.f32.mrf.mxu0  ;;  %v11693_v19 = vadd.f32 %v11499_v9, %v11479_v21  ;;  %vm3685_vm6 = vcmp.lt.s32.totalorder %v11650_v10, 0  ;;  %v11701_v54 = vadd.s32 18, %v11650_v10  ;;  %v10288_v21 = vld [vmem:[%s15124_s3] sm:$0xff]   ;;  %vm3647_vm7 = vcmp.ne.s32.totalorder %v11676_v36, 0 }
 0x1b9   : > { %15298 = vst [vmem:[#allocation38_spill] sm:$0xff] %v11654_v7  ;;  %v1798_v13 = vadd.f32 %v9400_v56, %v11283_v6  ;;  %v11669_v2 = vadd.f32 %v2055_v31, %v1795_v8  ;;  %v9452_v45 = vpop.f32.mrf.mxu1  ;;  %v3331_v6 = vmul.u32 18, %v3330_v63  ;;  %v11686_v56 = vadd.s32 72, %v11351_v14  ;;  %v10286_v8 = vld [vmem:[%s15124_s3 + $0x48] sm:$0xff]   ;;  %9683 = vmatprep.subr.bf16.mxu0 %v10288_v21  ;;  %vm11754_vm9 = vmand %vm3685_vm6, %vm3649_vm4 }
 0x1ba   : > { %v11682_v59 = vpop.f32.mrf.mxu0  ;;  %15302 = vst [vmem:[#allocation42_spill] sm:$0xff] %v11701_v54  ;;  %v3309_v31 = vmul.u32 18, %v3308_v47  ;;  %v11704_v28 = vmul.u32.u64.low 3817748708, %v11666_v20  ;;  %v11705_v4 = vmul.u32.u64.high 3817748708, %v11666_v20, %v11704_v28  ;;  %9629 = vmatprep.subr.bf16.mxu1 %v10286_v8  ;;  %v11717_v47 = vadd.s32 96, %v11351_v14  ;;  %9684 = vmatpush3.bf16.msra.mxu0 %v10288_v21 }
 0x1bb   : > { %15299 = vst [vmem:[#allocation39_spill] sm:$0xff] %v11669_v2  ;;  %v11695_v3 = vadd.f32 %v9452_v45, %v1798_v13  ;;  %v11697_v26 = vpop.f32.mrf.mxu1  ;;  %v3363_v45 = vshrl.u32 %v11632_v15, 4  ;;  %9630 = vmatpush3.bf16.msra.mxu1 %v10286_v8  ;;  %v11720_v46 = vsub.s32 %v11508_v55, %v3331_v6  ;;  %vm3683_vm8 = vcmp.lt.s32.totalorder %v11676_v36, 0 }
 0x1bc   : > { %v9403_v63 = vpop.f32.mrf.mxu0  ;;  %v11723_v40 = vmul.u32.u64.low 3817748708, %v11686_v56  ;;  %v11724_v1 = vmul.u32.u64.high 3817748708, %v11686_v56, %v11723_v40  ;;  %v11731_v15 = vadd.s32 120, %v11351_v14  ;;  %v10480_v8 = vmov 0   ;;  %vm11771_vm14 = vmand %vm3683_vm8, %vm3647_vm7 }
 0x1bd   : > { %15301 = vst [vmem:[#allocation41_spill] sm:$0xff] %v11695_v3  ;;  %v1801_v9 = vadd.f32 %v9403_v63, %v11296_v24  ;;  %v9455_v13 = vpop.f32.mrf.mxu1  ;;  %15303 = vst [vmem:[#allocation43_spill] sm:$0xff] %v11720_v46  ;;  %v11734_v40 = vsub.s32 %v11530_v22, %v3309_v31  ;;  %v11745_v38 = vmul.u32.u64.low 3817748708, %v11717_v47  ;;  %v11746_v61 = vmul.u32.u64.high 3817748708, %v11717_v47, %v11745_v38 }
 0x1be   : > { %v1740_v28 = vpop.f32.mrf.mxu0  ;;  %3895 = vst [vmem:[#allocation2] sm:$0xf] %v10480_v8  ;;  %3896 = vst [vmem:[#allocation2 + $0x4] sm:$0xf] %v10480_v8  ;;  %v15307_v22 = vmov 0  ;;  %vm3650_vm10 = vcmp.ne.s32.totalorder %v11720_v46, 0  ;;  %v11790_v60 = vadd.f32 %v11440_v42, %v11680_v12  ;;  %v11810_v42 = vadd.f32 %v11522_v33, %v11693_v19 }
 0x1bf   : > { %v1799_v24 = vadd.f32 %v1740_v28, %v11299_v32  ;;  %v11727_v63 = vadd.f32 %v9455_v13, %v1801_v9  ;;  %v2071_v41 = vpop.f32.mrf.mxu1  ;;  %3909 = vst [vmem:[#allocation2 + $0x9c] sm:$0xf] %v10480_v8  ;;  %3910 = vst [vmem:[#allocation2 + $0xa0] sm:$0x7] %v10480_v8  ;;  %v3341_v32 = vshrl.u32 %v11663_v0, 4  ;;  %v15308_v22 = vsel %vm11754_vm9, 4294967295, %v15307_v22 }
 0x1c0   : > { %v9404_v55 = vpop.f32.mrf.mxu0  ;;  %15305 = vst [vmem:[#allocation45_spill] sm:$0xff] %v11734_v40  ;;  %v11738_v6 = vmul.u32.u64.low 3817748708, %v11708_v11  ;;  %v11739_v9 = vmul.u32.u64.high 3817748708, %v11708_v11, %v11738_v6  ;;  %15309 = vst [vmem:[#allocation47_spill] sm:$0xff] %v15308_v22  ;;  %v11759_v0 = vadd.s32 18, %v11676_v36  ;;  %vm3686_vm11 = vcmp.lt.s32.totalorder %v11720_v46, 0 }
 0x1c1   : > { %15304 = vst [vmem:[#allocation44_spill] sm:$0xff] %v11727_v63  ;;  %v1802_v13 = vadd.f32 %v9404_v55, %v11304_v35  ;;  %v11742_v28 = vadd.f32 %v2071_v41, %v1799_v24  ;;  %v9456_v21 = vpop.f32.mrf.mxu1  ;;  %v3364_v35 = vmul.u32 18, %v3363_v45  ;;  %v15312_v31 = vmov 0  ;;  %v10289_v45 = vld [vmem:[%s15124_s3 + $0x40] sm:$0xff]   ;;  %15316 = vst [vmem:[#allocation52_spill] sm:$0xff] %v11790_v60  ;;  %v15323_v33 = vld [vmem:[#allocation7_spill] sm:$0xff] }
 0x1c2   : > { %v11748_v8 = vpop.f32.mrf.mxu0  ;;  %15310 = vst [vmem:[#allocation48_spill] sm:$0xff] %v11759_v0  ;;  %v15313_v31 = vsel %vm11771_vm14, 4294967295, %v15312_v31  ;;  %v11776_v24 = vadd.s32 18, %v11720_v46  ;;  %v11779_v55 = vmul.u32.u64.low 3817748708, %v11731_v15  ;;  %v11780_v6 = vmul.u32.u64.high 3817748708, %v11731_v15, %v11779_v55  ;;  %vm11801_vm6 = vmand %vm3686_vm11, %vm3650_vm10  ;;  %9631 = vmatprep.subr.bf16.mxu1 %v10289_v45 }
 0x1c3   : > { %15306 = vst [vmem:[#allocation46_spill] sm:$0xff] %v11742_v28  ;;  %v11763_v41 = vadd.f32 %v9456_v21, %v1802_v13  ;;  %v11765_v38 = vpop.f32.mrf.mxu1  ;;  %15314 = vst [vmem:[#allocation50_spill] sm:$0xff] %v15313_v31  ;;  %vm3648_vm15 = vcmp.ne.s32.totalorder %v11734_v40, 0  ;;  %vm3684_vm4 = vcmp.lt.s32.totalorder %v11734_v40, 0  ;;  %v3342_v21 = vmul.u32 18, %v3341_v32  ;;  %9632 = vmatpush3.bf16.msra.mxu1 %v10289_v45 }
 0x1c4   : > { %15315 = vst [vmem:[#allocation51_spill] sm:$0xff] %v11776_v24  ;;  %v9407_v13 = vpop.f32.mrf.mxu0  ;;  %v3374_v25 = vshrl.u32 %v11705_v4, 4  ;;  %v15318_v32 = vmov 0  ;;  %v11806_v4 = vadd.s32 18, %v11734_v40  ;;  %15322 = vst [vmem:[#allocation54_spill] sm:$0xff] %v11810_v42  ;;  %v11818_v55 = vadd.s32 104, %v11351_v14 }
 0x1c5   : > { %15311 = vst [vmem:[#allocation49_spill] sm:$0xff] %v11763_v41  ;;  %v1805_v57 = vadd.f32 %v9407_v13, %v15317_v52  ;;  %v9459_v41 = vpop.f32.mrf.mxu1  ;;  %v15319_v32 = vsel %vm11801_vm6, 4294967295, %v15318_v32  ;;  %v3352_v13 = vshrl.u32 %v11724_v1, 4  ;;  %v4458_v10 = vld [vmem:[#allocation2] sm:$0xf]  ;;  %v11822_v22 = vadd.f32 %v11580_v30, %v11493_v23  ;;  %vm11831_vm7 = vmand %vm3684_vm4, %vm3648_vm15 }
 0x1c6   : > { %15320 = vst [vmem:[#allocation6_spill] sm:$0xff] %v15319_v32  ;;  %15321 = vst [vmem:[#allocation53_spill] sm:$0xff] %v11806_v4  ;;  %v1756_v52 = vpop.f32.mrf.mxu0  ;;  %v4459_v54 = vld [vmem:[#allocation2 + $0x4] sm:$0xf]  ;;  %v15325_v1 = vmov 0  ;;  %v11836_v45 = vsub.s32 %v11573_v58, %v3364_v35  ;;  %v3375_v30 = vmul.u32 18, %v3374_v25 }
 0x1c7   : > { %v1803_v19 = vadd.f32 %v1756_v52, %v15323_v33  ;;  %v11825_v28 = vadd.f32 %v9459_v41, %v1805_v57  ;;  %v2087_v63 = vpop.f32.mrf.mxu1  ;;  %v15326_v1 = vsel %vm11831_vm7, 4294967295, %v15325_v1  ;;  %v11843_v57 = vsub.s32 %v11621_v50, %v3342_v21  ;;  %v15330_v52 = vld [vmem:[#allocation8_spill] sm:$0xff] }
 0x1c8   : > { %15327 = vst [vmem:[#allocation55_spill] sm:$0xff] %v15326_v1  ;;  %15328 = vst [vmem:[#allocation56_spill] sm:$0xff] %v11836_v45  ;;  %v9408_v12 = vpop.f32.mrf.mxu0  ;;  %v3407_v41 = vshrl.u32 %v11739_v9, 4  ;;  %v3385_v58 = vshrl.u32 %v11746_v61, 4  ;;  %v11850_v35 = vcombine.low %v4458_v10, %v4459_v54  ;;  %v3353_v21 = vmul.u32 18, %v3352_v13 }
 0x1c9   : > { %15324 = vst [vmem:[#allocation7_spill] sm:$0xff] %v11825_v28  ;;  %15329 = vst [vmem:[#allocation57_spill] sm:$0xff] %v11843_v57  ;;  %v1806_v33 = vadd.f32 %v9408_v12, %v15330_v52  ;;  %v11847_v36 = vadd.f32 %v2087_v63, %v1803_v19  ;;  %v9460_v0 = vpop.f32.mrf.mxu1  ;;  %v11859_v25 = vmul.u32.u64.low 3817748708, %v11818_v55  ;;  %v11860_v9 = vmul.u32.u64.high 3817748708, %v11818_v55, %v11859_v25  ;;  %v15334_v52 = vld [vmem:[#allocation9_spill] sm:$0xff]  ;;  %v15352_v28 = vld [vmem:[#allocation12_spill] sm:$0xff] }
 0x1ca   : > { %v11852_v31 = vpop.f32.mrf.mxu0  ;;  %vm3653_vm8 = vcmp.ne.s32.totalorder %v11836_v45, 0  ;;  %v3418_v61 = vshrl.u32 %v11780_v6, 4  ;;  %v11869_v10 = vadd.s32 144, %v11351_v14  ;;  %9685 = vmatprep.mubr.bf16.mxu0 %v11850_v35  ;;  %vm3689_vm10 = vcmp.lt.s32.totalorder %v11836_v45, 0 }
 0x1cb   : > { %15331 = vst [vmem:[#allocation8_spill] sm:$0xff] %v11847_v36  ;;  %v11862_v12 = vadd.f32 %v9460_v0, %v1806_v33  ;;  %v11864_v63 = vpop.f32.mrf.mxu1  ;;  %v11874_v13 = vadd.s32 18, %v11836_v45  ;;  %v3408_v19 = vmul.u32 18, %v3407_v41  ;;  %v11877_v0 = vadd.s32 128, %v11351_v14  ;;  %vm11942_vm15 = vmand %vm3689_vm10, %vm3653_vm8 }
 0x1cc   : > { %v9479_v54 = vpop.f32.mrf.mxu0  ;;  %v3386_v6 = vmul.u32 18, %v3385_v58  ;;  %v11886_v50 = vadd.s32 152, %v11351_v14  ;;  %v11890_v40 = vadd.s32 18, %v11843_v57  ;;  %v11893_v41 = vsub.s32 %v11666_v20, %v3375_v30 }
 0x1cd   : > { %15332 = vst [vmem:[#allocation58_spill] sm:$0xff] %v11862_v12  ;;  %15333 = vst [vmem:[#allocation59_spill] sm:$0xff] %v11874_v13  ;;  %v11880_v33 = vadd.f32 %v9479_v54, %v15334_v52  ;;  %v11882_v25 = vpop.f32.mrf.mxu1  ;;  %v11896_v54 = vsub.s32 %v11686_v56, %v3353_v21  ;;  %v15338_v52 = vld [vmem:[#allocation10_spill] sm:$0xff]  ;;  %v3419_v58 = vmul.u32 18, %v3418_v61  ;;  %v11908_v12 = vsub.s32 %v11708_v11, %v3408_v19 }
 0x1ce   : > { %v2290_v23 = vpop.f32.mrf.mxu0  ;;  %15335 = vst [vmem:[#allocation9_spill] sm:$0xff] %v11890_v40  ;;  %15336 = vst [vmem:[#allocation60_spill] sm:$0xff] %v11893_v41  ;;  %v11904_v46 = vmul.u32.u64.low 3817748708, %v11869_v10  ;;  %v11905_v24 = vmul.u32.u64.high 3817748708, %v11869_v10, %v11904_v46  ;;  %v11911_v20 = vmul.u32.u64.low 3817748708, %v11877_v0  ;;  %v11912_v30 = vmul.u32.u64.high 3817748708, %v11877_v0, %v11911_v20 }
 0x1cf   : > { %15337 = vst [vmem:[#allocation61_spill] sm:$0xff] %v11896_v54  ;;  %v11899_v4 = vadd.f32 %v2290_v23, %v15338_v52  ;;  %v11901_v1 = vpop.f32.mrf.mxu1  ;;  %15339 = vst [vmem:[#allocation10_spill] sm:$0xff] %v11908_v12  ;;  %v11915_v56 = vadd.s32 136, %v11351_v14  ;;  %v15340_v23 = vld [vmem:[#allocation11_spill] sm:$0xff]  ;;  %v11923_v61 = vsub.s32 %v11717_v47, %v3386_v6  ;;  %v1796_v11 = vadd.f32 %v11682_v59, %v11497_v53 }
 0x1d0   : > { %v9480_v32 = vpop.f32.mrf.mxu0  ;;  %v11926_v46 = vmul.u32.u64.low 3817748708, %v11886_v50  ;;  %v11927_v36 = vmul.u32.u64.high 3817748708, %v11886_v50, %v11926_v46  ;;  %v15342_v47 = vmov 0  ;;  %v11947_v53 = vadd.s32 18, %v11893_v41 }
 0x1d1   : > { %v11918_v21 = vadd.f32 %v9480_v32, %v15340_v23  ;;  %v11920_v52 = vpop.f32.mrf.mxu1  ;;  %15341 = vst [vmem:[#allocation11_spill] sm:$0xff] %v11923_v61  ;;  %v3396_v32 = vshrl.u32 %v11860_v9, 4  ;;  %v15343_v47 = vsel %vm11942_vm15, 4294967295, %v15342_v47  ;;  %vm3652_vm11 = vcmp.ne.s32.totalorder %v11896_v54, 0 }
 0x1d2   : > { %v11931_v19 = vpop.f32.mrf.mxu0  ;;  %15344 = vst [vmem:[#allocation62_spill] sm:$0xff] %v15343_v47  ;;  %15345 = vst [vmem:[#allocation63_spill] sm:$0xff] %v11947_v53  ;;  %v11952_v59 = vsub.s32 %v11731_v15, %v3419_v58  ;;  %vm15347_vm1 = vcmp.ne.s32.totalorder %v11843_v57, 0  ;;  %vm15348_vm2 = vcmp.lt.s32.totalorder %v11843_v57, 0  ;;  %v15349_v6 = vmov 0 }
 0x1d3   : > { %v11936_v20 = vpop.f32.mrf.mxu1  ;;  %vm11958_vm5 = vmand %vm15348_vm2, %vm15347_vm1  ;;  %v11965_v23 = vmul.u32.u64.low 3817748708, %v11915_v56  ;;  %v11966_v46 = vmul.u32.u64.high 3817748708, %v11915_v56, %v11965_v23  ;;  %vm15353_vm4 = vcmp.ne.s32.totalorder %v11893_v41, 0  ;;  %vm15354_vm1 = vcmp.lt.s32.totalorder %v11893_v41, 0 }
 0x1d4   : > { %15346 = vst [vmem:[#allocation64_spill] sm:$0xff] %v11952_v59  ;;  %v9483_v9 = vpop.f32.mrf.mxu0  ;;  %v15350_v6 = vsel %vm11958_vm5, 4294967295, %v15349_v6  ;;  %vm11977_vm2 = vmand %vm15354_vm1, %vm15353_vm4  ;;  %v15355_v3 = vmov 0  ;;  %v11982_v2 = vadd.s32 18, %v11896_v54  ;;  %vm3655_vm10 = vcmp.ne.s32.totalorder %v11923_v61, 0 }
 0x1d5   : > { %15351 = vst [vmem:[#allocation65_spill] sm:$0xff] %v15350_v6  ;;  %v11969_v15 = vadd.f32 %v9483_v9, %v15352_v28  ;;  %v11971_v58 = vpop.f32.mrf.mxu1  ;;  %v15356_v3 = vsel %vm11977_vm2, 4294967295, %v15355_v3  ;;  %v1800_v28 = vadd.f32 %v11748_v8, %v11515_v62  ;;  %vm15359_vm7 = vcmp.lt.s32.totalorder %v11896_v54, 0 }
 0x1d6   : > { %15357 = vst [vmem:[#allocation12_spill] sm:$0xff] %v15356_v3  ;;  %15358 = vst [vmem:[#allocation66_spill] sm:$0xff] %v11982_v2  ;;  %v2306_v9 = vpop.f32.mrf.mxu0  ;;  %v15360_v23 = vmov 0  ;;  %v11997_v7 = vadd.s32 18, %v11908_v12  ;;  %v12000_v42 = vadd.s32 18, %v11923_v61  ;;  %v3397_v51 = vmul.u32 18, %v3396_v32 }
 0x1d7   : > { %vm11992_vm6 = vmand %vm15359_vm7, %vm3652_vm11  ;;  %v12003_v27 = vadd.f32 %v2306_v9, %v15365_v37  ;;  %v12005_v62 = vpop.f32.mrf.mxu1  ;;  %vm15366_vm4 = vcmp.ne.s32.totalorder %v11908_v12, 0  ;;  %vm15367_vm1 = vcmp.lt.s32.totalorder %v11908_v12, 0  ;;  %v15368_v8 = vmov 0 }
 0x1d8   : > { %v15361_v23 = vsel %vm11992_vm6, 4294967295, %v15360_v23  ;;  %15363 = vst [vmem:[#allocation68_spill] sm:$0xff] %v11997_v7  ;;  %15364 = vst [vmem:[#allocation69_spill] sm:$0xff] %v12000_v42  ;;  %vm3658_vm11 = vcmp.ne.s32.totalorder %v11952_v59, 0  ;;  %vm3694_vm8 = vcmp.lt.s32.totalorder %v11952_v59, 0  ;;  %v3451_v49 = vshrl.u32 %v11905_v24, 4  ;;  %v9484_v9 = vpop.f32.mrf.mxu0 }
 0x1d9   : > { %15362 = vst [vmem:[#allocation67_spill] sm:$0xff] %v15361_v23  ;;  %vm12011_vm7 = vmand %vm15367_vm1, %vm15366_vm4  ;;  %v12020_v37 = vadd.f32 %v11587_v43, %v11822_v22  ;;  %v1804_v32 = vadd.f32 %v11852_v31, %v11518_v39  ;;  %vm15371_vm4 = vcmp.lt.s32.totalorder %v11923_v61, 0  ;;  %v15372_v18 = vmov 0  ;;  %v15375_v22 = vld [vmem:[#allocation14_spill] sm:$0xff]  ;;  %v12040_v39 = vpop.f32.mrf.mxu1 }
 0x1da   : > { %v15369_v8 = vsel %vm12011_vm7, 4294967295, %v15368_v8  ;;  %vm12032_vm1 = vmand %vm15371_vm4, %vm3655_vm10  ;;  %v3429_v43 = vshrl.u32 %v11912_v30, 4  ;;  %v12038_v24 = vadd.f32 %v9484_v9, %v15375_v22  ;;  %v12047_v60 = vadd.s32 18, %v11952_v59  ;;  %v2309_v47 = vpop.f32.mrf.mxu0  ;;  %v15381_v9 = vld [vmem:[#allocation15_spill] sm:$0xff] }
 0x1db   : > { %15370 = vst [vmem:[#allocation13_spill] sm:$0xff] %v15369_v8  ;;  %v15373_v18 = vsel %vm12032_vm1, 4294967295, %v15372_v18  ;;  %v3462_v45 = vshrl.u32 %v11927_v36, 4  ;;  %v12051_v13 = vadd.f32 %v11697_v26, %v1796_v11  ;;  %vm12065_vm10 = vmand %vm3694_vm8, %vm3658_vm11  ;;  %v15377_v36 = vmov 0  ;;  %v12075_v22 = vpop.f32.mrf.mxu1 }
 0x1dc   : > { %15374 = vst [vmem:[#allocation70_spill] sm:$0xff] %v15373_v18  ;;  %15376 = vst [vmem:[#allocation14_spill] sm:$0xff] %v12047_v60  ;;  %v15378_v36 = vsel %vm12065_vm10, 4294967295, %v15377_v36  ;;  %v12070_v26 = vsub.s32 %v11818_v55, %v3397_v51  ;;  %v12073_v11 = vadd.f32 %v11765_v38, %v1800_v28  ;;  %v3452_v31 = vmul.u32 18, %v3451_v49  ;;  %v9487_v51 = vpop.f32.mrf.mxu0 }
 0x1dd   : > { %15379 = vst [vmem:[#allocation71_spill] sm:$0xff] %v15378_v36  ;;  %v12086_v54 = vadd.f32 %v11864_v63, %v1804_v32  ;;  %v3430_v55 = vmul.u32 18, %v3429_v43  ;;  %v3440_v28 = vshrl.u32 %v11966_v46, 4  ;;  %v12092_v2 = vadd.f32 %v11882_v25, %v11880_v33  ;;  %v12097_v7 = vpop.f32.mrf.mxu1  ;;  %v15383_v43 = vld [vmem:[#allocation16_spill] sm:$0xff] }
 0x1de   : > { %15380 = vst [vmem:[#allocation72_spill] sm:$0xff] %v12070_v26  ;;  %v12095_v12 = vadd.f32 %v9487_v51, %v15381_v9  ;;  %v3463_v63 = vmul.u32 18, %v3462_v45  ;;  %v12105_v32 = vadd.f32 %v11901_v1, %v11899_v4  ;;  %v2322_v46 = vpop.f32.mrf.mxu0  ;;  %v12110_v33 = vadd.s32 18, %v12070_v26 }
 0x1df   : > { %v2434_v25 = vadd.f32 %v11931_v19, %v11576_v48  ;;  %v12115_v9 = vadd.f32 %v2322_v46, %v15383_v43  ;;  %v12117_v51 = vpop.f32.mrf.mxu1  ;;  %v12120_v45 = vsub.s32 %v11869_v10, %v3452_v31  ;;  %v12123_v4 = vadd.s32 176, %v11351_v14  ;;  %v15386_v10 = vld [vmem:[#allocation17_spill] sm:$0xff] }
 0x1e0   : > { %15382 = vst [vmem:[#allocation15_spill] sm:$0xff] %v12110_v33  ;;  %v9488_v1 = vpop.f32.mrf.mxu0  ;;  %v12126_v49 = vsub.s32 %v11877_v0, %v3430_v55  ;;  %v3441_v30 = vmul.u32 18, %v3440_v28  ;;  %v12129_v38 = vadd.s32 160, %v11351_v14  ;;  %v12132_v48 = vadd.s32 184, %v11351_v14  ;;  %v10294_v0 = vld [vmem:[%s15124_s3 + $0xb8] sm:$0xff]  }
 0x1e1   : > { %15384 = vst [vmem:[#allocation16_spill] sm:$0xff] %v12120_v45  ;;  %v12136_v19 = vadd.f32 %v11920_v52, %v11918_v21  ;;  %v12139_v31 = vadd.f32 %v9488_v1, %v15386_v10  ;;  %v12141_v46 = vpop.f32.mrf.mxu1  ;;  %v12144_v43 = vsub.s32 %v11886_v50, %v3463_v63  ;;  %v12150_v55 = vadd.s32 168, %v11351_v14  ;;  %9721 = vmatprep.subr.bf16.mxu1 %v10294_v0 }
 0x1e2   : > { %15385 = vst [vmem:[#allocation73_spill] sm:$0xff] %v12126_v49  ;;  %v2325_v28 = vpop.f32.mrf.mxu0  ;;  %v12153_v59 = vmul.u32.u64.low 3817748708, %v12123_v4  ;;  %v12154_v21 = vmul.u32.u64.high 3817748708, %v12123_v4, %v12153_v59  ;;  %v12157_v52 = vmul.u32.u64.low 3817748708, %v12129_v38  ;;  %v12158_v1 = vmul.u32.u64.high 3817748708, %v12129_v38, %v12157_v52 }
 0x1e3   : > { %15387 = vst [vmem:[#allocation17_spill] sm:$0xff] %v12144_v43  ;;  %v12160_v10 = vpop.f32.mrf.mxu1  ;;  %v12164_v50 = vmul.u32.u64.low 3817748708, %v12132_v48  ;;  %v12165_v63 = vmul.u32.u64.high 3817748708, %v12132_v48, %v12164_v50  ;;  %v12168_v60 = vadd.s32 208, %v11351_v14  ;;  %v12172_v59 = vadd.s32 18, %v12120_v45 }
 0x1e4   : > { %v9491_v36 = vpop.f32.mrf.mxu0  ;;  %v12176_v52 = vsub.s32 %v11915_v56, %v3441_v30  ;;  %v2438_v0 = vadd.f32 %v2309_v47, %v11603_v29  ;;  %v12186_v42 = vadd.s32 18, %v12126_v49  ;;  %v3495_v8 = vshrl.u32 %v12154_v21, 4 }
 0x1e5   : > { %15388 = vst [vmem:[#allocation74_spill] sm:$0xff] %v12172_v59  ;;  %v12180_v61 = vadd.f32 %v9491_v36, %v11421_v44  ;;  %v12182_v50 = vpop.f32.mrf.mxu1  ;;  %v12191_v56 = vmul.u32.u64.low 3817748708, %v12150_v55  ;;  %v12192_v30 = vmul.u32.u64.high 3817748708, %v12150_v55, %v12191_v56  ;;  %vm15391_vm8 = vcmp.ne.s32.totalorder %v12070_v26, 0 }
 0x1e6   : > { %15389 = vst [vmem:[#allocation75_spill] sm:$0xff] %v12176_v52  ;;  %15390 = vst [vmem:[#allocation76_spill] sm:$0xff] %v12186_v42  ;;  %v2338_v18 = vpop.f32.mrf.mxu0  ;;  %vm15392_vm4 = vcmp.lt.s32.totalorder %v12070_v26, 0  ;;  %v15393_v47 = vmov 0  ;;  %v12207_v36 = vmul.u32.u64.low 3817748708, %v12168_v60  ;;  %v12208_v21 = vmul.u32.u64.high 3817748708, %v12168_v60, %v12207_v36 }
 0x1e7   : > { %v12195_v29 = vadd.f32 %v2338_v18, %v11428_v34  ;;  %v2669_v44 = vpop.f32.mrf.mxu1  ;;  %vm12201_vm10 = vmand %vm15392_vm4, %vm15391_vm8  ;;  %vm15396_vm1 = vcmp.ne.s32.totalorder %v12120_v45, 0  ;;  %vm15397_vm7 = vcmp.lt.s32.totalorder %v12120_v45, 0  ;;  %v15398_v34 = vmov 0 }
 0x1e8   : > { %v15394_v47 = vsel %vm12201_vm10, 4294967295, %v15393_v47  ;;  %v9492_v23 = vpop.f32.mrf.mxu0  ;;  %vm12214_vm6 = vmand %vm15397_vm7, %vm15396_vm1  ;;  %vm3660_vm8 = vcmp.ne.s32.totalorder %v12176_v52, 0  ;;  %vm3696_vm4 = vcmp.lt.s32.totalorder %v12176_v52, 0  ;;  %v3496_v18 = vmul.u32 18, %v3495_v8 }
 0x1e9   : > { %15395 = vst [vmem:[#allocation77_spill] sm:$0xff] %v15394_v47  ;;  %v15399_v34 = vsel %vm12214_vm6, 4294967295, %v15398_v34  ;;  %v3473_v56 = vshrl.u32 %v12158_v1, 4  ;;  %v2448_v41 = vadd.f32 %v9492_v23, %v11438_v17  ;;  %v9544_v53 = vpop.f32.mrf.mxu1  ;;  %vm15401_vm11 = vcmp.ne.s32.totalorder %v12126_v49, 0 }
 0x1ea   : > { %15400 = vst [vmem:[#allocation78_spill] sm:$0xff] %v15399_v34  ;;  %vm15402_vm2 = vcmp.lt.s32.totalorder %v12126_v49, 0  ;;  %v15403_v36 = vmov 0  ;;  %v12231_v3 = vadd.s32 18, %v12144_v43  ;;  %v4622_v57 = vshrl.u32 %v11850_v35, 16  ;;  %v2341_v23 = vpop.f32.mrf.mxu0 }
 0x1eb   : > { %vm12226_vm5 = vmand %vm15402_vm2, %vm15401_vm11  ;;  %v15407_v8 = vshll.u32 %v11850_v35, 16  ;;  %v12237_v1 = vadd.f32 %v11936_v20, %v2434_v25  ;;  %v12241_v17 = vadd.f32 %v11971_v58, %v11969_v15  ;;  %vm15408_vm2 = vcmp.ne.s32.totalorder %v12144_v43, 0  ;;  %v2672_v25 = vpop.f32.mrf.mxu1 }
 0x1ec   : > { %v15404_v36 = vsel %vm12226_vm5, 4294967295, %v15403_v36  ;;  %15406 = vst [vmem:[#allocation80_spill] sm:$0xff] %v12231_v3  ;;  %vm15409_vm7 = vcmp.lt.s32.totalorder %v12144_v43, 0  ;;  %v15410_v35 = vmov 0  ;;  %v12256_v20 = vadd.s32 18, %v12176_v52  ;;  %vm12274_vm11 = vmand %vm3696_vm4, %vm3660_vm8 }
 0x1ed   : > { %15405 = vst [vmem:[#allocation79_spill] sm:$0xff] %v15404_v36  ;;  %v4626_v40 = vrot.slane %v15407_v8, 1  ;;  %vm12251_vm1 = vmand %vm15409_vm7, %vm15408_vm2  ;;  %v12260_v15 = vadd.f32 %v12005_v62, %v12003_v27  ;;  %v12264_v58 = vadd.f32 %v12040_v39, %v12038_v24  ;;  %v15414_v6 = vmov 0  ;;  %v9495_v24 = vpop.f32.mrf.mxu0  ;;  %v12293_v26 = vpop.f32.mrf.mxu1  ;;  %v15431_v39 = vld [vmem:[#allocation26_spill] sm:$0xff] }
 0x1ee   : > { %v15411_v35 = vsel %vm12251_vm1, 4294967295, %v15410_v35  ;;  %15413 = vst [vmem:[#allocation82_spill] sm:$0xff] %v12256_v20  ;;  %v15415_v6 = vsel %vm12274_vm11, 4294967295, %v15414_v6  ;;  %v3506_v27 = vshrl.u32 %v12165_v63, 4  ;;  %v12280_v62 = vadd.f32 %v12075_v22, %v2438_v0  ;;  %v15444_v36 = vld [vmem:[#allocation38_spill] sm:$0xff] }
 0x1ef   : > { %15412 = vst [vmem:[#allocation81_spill] sm:$0xff] %v15411_v35  ;;  %15416 = vst [vmem:[#allocation83_spill] sm:$0xff] %v15415_v6  ;;  %v12287_v8 = vsub.s32 %v12123_v4, %v3496_v18  ;;  %v3474_v45 = vmul.u32 18, %v3473_v56  ;;  %v2442_v59 = vadd.f32 %v2325_v28, %v11635_v5  ;;  %v12291_v34 = vadd.f32 %v9495_v24, %v11467_v16  ;;  %v2354_v5 = vpop.f32.mrf.mxu0  ;;  %v12320_v18 = vpop.f32.mrf.mxu1  ;;  %v15420_v24 = vld [vmem:[#allocation52_spill] sm:$0xff] }
 0x1f0   : > { %v12299_v63 = vor.u32 %v4626_v40, %v4622_v57  ;;  %v12303_v0 = vadd.f32 %v12097_v7, %v12095_v12  ;;  %v12307_v4 = vadd.f32 %v12117_v51, %v12115_v9  ;;  %v12311_v16 = vadd.f32 %v12141_v46, %v12139_v31  ;;  %v15419_v40 = vld [vmem:[#allocation21_spill] sm:$0xff] }
 0x1f1   : > { %15417 = vst [vmem:[#allocation84_spill] sm:$0xff] %v12287_v8  ;;  %v12318_v57 = vadd.f32 %v2354_v5, %v15419_v40  ;;  %v3507_v7 = vmul.u32 18, %v3506_v27  ;;  %v3484_v12 = vshrl.u32 %v12192_v30, 4  ;;  %v3539_v9 = vshrl.u32 %v12208_v21, 4  ;;  %v9496_v51 = vpop.f32.mrf.mxu0  ;;  %v15421_v5 = vld [vmem:[#allocation23_spill] sm:$0xff]  ;;  %v12339_v21 = vpop.f32.mrf.mxu1 }
 0x1f2   : > { %15418 = vst [vmem:[#allocation85_spill] sm:$0xff] %v12299_v63  ;;  %vm3665_vm8 = vcmp.ne.s32.totalorder %v12287_v8, 0  ;;  %vm3701_vm4 = vcmp.lt.s32.totalorder %v12287_v8, 0  ;;  %v12327_v31 = vsub.s32 %v12129_v38, %v3474_v45  ;;  %v12330_v46 = vadd.s32 192, %v11351_v14 }
 0x1f3   : > { %v12333_v56 = vadd.f32 %v12160_v10, %v2442_v59  ;;  %v2446_v27 = vadd.f32 %v2341_v23, %v15420_v24  ;;  %v12337_v30 = vadd.f32 %v9496_v51, %v15421_v5  ;;  %v12342_v40 = vadd.s32 216, %v11351_v14  ;;  %v2357_v28 = vpop.f32.mrf.mxu0  ;;  %v12359_v51 = vpop.f32.mrf.mxu1  ;;  %vm12365_vm2 = vmand %vm3701_vm4, %vm3665_vm8 }
 0x1f4   : > { %v12346_v38 = vadd.f32 %v12182_v50, %v12180_v61  ;;  %v12349_v45 = vadd.f32 %v2669_v44, %v12195_v29  ;;  %v12352_v10 = vadd.s32 18, %v12287_v8  ;;  %v12355_v59 = vadd.s32 200, %v11351_v14 }
 0x1f5   : > { %v12357_v23 = vadd.f32 %v9544_v53, %v2448_v41  ;;  %v15426_v61 = vmov 0  ;;  %v12370_v50 = vsub.s32 %v12132_v48, %v3507_v7  ;;  %v3485_v29 = vmul.u32 18, %v3484_v12  ;;  %v9499_v24 = vpop.f32.mrf.mxu0  ;;  %v12385_v52 = vpop.f32.mrf.mxu1 }
 0x1f6   : > { %15422 = vst [vmem:[#allocation21_spill] sm:$0xff] %v12346_v38  ;;  %15423 = vst [vmem:[#allocation52_spill] sm:$0xff] %v12349_v45  ;;  %v15427_v61 = vsel %vm12365_vm2, 4294967295, %v15426_v61  ;;  %v3540_v44 = vmul.u32 18, %v3539_v9  ;;  %v12374_v41 = vmul.u32.u64.low 3817748708, %v12330_v46  ;;  %v12375_v53 = vmul.u32.u64.high 3817748708, %v12330_v46, %v12374_v41 }
 0x1f7   : > { %15424 = vst [vmem:[#allocation23_spill] sm:$0xff] %v12352_v10  ;;  %15425 = vst [vmem:[#allocation86_spill] sm:$0xff] %v12357_v23  ;;  %v12378_v5 = vadd.s32 240, %v11351_v14  ;;  %v12380_v22 = vadd.f32 %v2672_v25, %v2446_v27  ;;  %v12383_v63 = vadd.f32 %v9499_v24, %v15431_v39  ;;  %v12389_v48 = vadd.s32 224, %v11351_v14  ;;  %v2370_v7 = vpop.f32.mrf.mxu0  ;;  %v15432_v27 = vld [vmem:[#allocation28_spill] sm:$0xff]  ;;  %v12405_v41 = vpop.f32.mrf.mxu1  ;;  %v15455_v45 = vld [vmem:[#allocation39_spill] sm:$0xff] }
 0x1f8   : > { %15428 = vst [vmem:[#allocation87_spill] sm:$0xff] %v15427_v61  ;;  %15429 = vst [vmem:[#allocation88_spill] sm:$0xff] %v12370_v50  ;;  %v12396_v9 = vadd.s32 18, %v12327_v31  ;;  %v12399_v25 = vmul.u32.u64.low 3817748708, %v12342_v40  ;;  %v12400_v39 = vmul.u32.u64.high 3817748708, %v12342_v40, %v12399_v25  ;;  %v12403_v24 = vadd.f32 %v2370_v7, %v15432_v27  ;;  %v15435_v7 = vld [vmem:[#allocation31_spill] sm:$0xff] }
 0x1f9   : > { %15430 = vst [vmem:[#allocation89_spill] sm:$0xff] %v12380_v22  ;;  %v12408_v20 = vsub.s32 %v12150_v55, %v3485_v29  ;;  %v12411_v6 = vmul.u32.u64.low 3817748708, %v12355_v59  ;;  %v12412_v43 = vmul.u32.u64.high 3817748708, %v12355_v59, %v12411_v6  ;;  %v9500_v12 = vpop.f32.mrf.mxu0  ;;  %v12415_v8 = vsub.s32 %v12168_v60, %v3540_v44  ;;  %v12425_v3 = vpop.f32.mrf.mxu1 }
 0x1fa   : > { %v3517_v10 = vshrl.u32 %v12375_v53, 4  ;;  %v12419_v25 = vmul.u32.u64.low 3817748708, %v12378_v5  ;;  %v12420_v61 = vmul.u32.u64.high 3817748708, %v12378_v5, %v12419_v25  ;;  %v12423_v27 = vadd.f32 %v9500_v12, %v15435_v7 }
 0x1fb   : > { %15433 = vst [vmem:[#allocation26_spill] sm:$0xff] %v12408_v20  ;;  %15434 = vst [vmem:[#allocation28_spill] sm:$0xff] %v12415_v8  ;;  %v12429_v55 = vmul.u32.u64.low 3817748708, %v12389_v48  ;;  %v12430_v6 = vmul.u32.u64.high 3817748708, %v12389_v48, %v12429_v55  ;;  %v2373_v29 = vpop.f32.mrf.mxu0  ;;  %v3550_v44 = vshrl.u32 %v12400_v39, 4  ;;  %v12435_v53 = vadd.s32 248, %v11351_v14  ;;  %v12437_v25 = vpop.f32.mrf.mxu1 }
 0x1fc   : > { %v3518_v60 = vmul.u32 18, %v3517_v10  ;;  %v12440_v12 = vadd.s32 18, %v12370_v50  ;;  %v3528_v7 = vshrl.u32 %v12412_v43, 4  ;;  %v12447_v55 = vadd.f32 %v12293_v26, %v12291_v34  ;;  %v15443_v43 = vld [vmem:[#allocation54_spill] sm:$0xff] }
 0x1fd   : > { %v9503_v10 = vpop.f32.mrf.mxu0  ;;  %vm15438_vm8 = vcmp.ne.s32.totalorder %v12327_v31, 0  ;;  %vm15439_vm2 = vcmp.lt.s32.totalorder %v12327_v31, 0  ;;  %v15440_v39 = vmov 0  ;;  %v12458_v35 = vadd.s32 18, %v12408_v20  ;;  %v9555_v34 = vpop.f32.mrf.mxu1 }
 0x1fe   : > { %15436 = vst [vmem:[#allocation31_spill] sm:$0xff] %v12440_v12  ;;  %15437 = vst [vmem:[#allocation90_spill] sm:$0xff] %v12447_v55  ;;  %v3551_v49 = vmul.u32 18, %v3550_v44  ;;  %v2450_v42 = vadd.f32 %v2357_v28, %v15443_v43  ;;  %v2459_v26 = vadd.f32 %v9503_v10, %v15444_v36  ;;  %vm15445_vm4 = vcmp.ne.s32.totalorder %v12370_v50, 0 }
 0x1ff   : > { %vm12453_vm11 = vmand %vm15439_vm2, %vm15438_vm8  ;;  %15442 = vst [vmem:[#allocation91_spill] sm:$0xff] %v12458_v35  ;;  %vm15446_vm1 = vcmp.lt.s32.totalorder %v12370_v50, 0  ;;  %v15447_v55 = vmov 0  ;;  %vm3705_vm2 = vcmp.lt.s32.totalorder %v12415_v8, 0  ;;  %v3529_v22 = vmul.u32 18, %v3528_v7  ;;  %v2386_v23 = vpop.f32.mrf.mxu0  ;;  %v2717_v33 = vpop.f32.mrf.mxu1  ;;  %v15472_v35 = vld [vmem:[#allocation46_spill] sm:$0xff] }
 0x200   : > { %v15441_v39 = vsel %vm12453_vm11, 4294967295, %v15440_v39  ;;  %vm12467_vm5 = vmand %vm15446_vm1, %vm15445_vm4  ;;  %vm15449_vm8 = vcmp.ne.s32.totalorder %v12408_v20, 0  ;;  %vm15450_vm7 = vcmp.lt.s32.totalorder %v12408_v20, 0  ;;  %v15451_v28 = vmov 0 }
 0x201   : > { %v15448_v55 = vsel %vm12467_vm5, 4294967295, %v15447_v55  ;;  %vm12476_vm6 = vmand %vm15450_vm7, %vm15449_vm8  ;;  %v12481_v36 = vsub.s32 %v12330_v46, %v3518_v60  ;;  %v3583_v44 = vshrl.u32 %v12420_v61, 4  ;;  %v2457_v7 = vadd.f32 %v2386_v23, %v15455_v45  ;;  %v9504_v45 = vpop.f32.mrf.mxu0 }
 0x202   : > { %v15452_v28 = vsel %vm12476_vm6, 4294967295, %v15451_v28  ;;  %v12485_v10 = vmul.u32.u64.low 3817748708, %v12435_v53  ;;  %v12486_v43 = vmul.u32.u64.high 3817748708, %v12435_v53, %v12485_v10  ;;  %v12494_v38 = vadd.s32 18, %v12415_v8 }
 0x203   : > { %15453 = vst [vmem:[#allocation54_spill] sm:$0xff] %v15452_v28  ;;  %15454 = vst [vmem:[#allocation38_spill] sm:$0xff] %v12481_v36  ;;  %v12497_v46 = vsub.s32 %v12342_v40, %v3551_v49  ;;  %v12501_v61 = vadd.f32 %v12320_v18, %v12318_v57  ;;  %v12505_v60 = vadd.f32 %v12339_v21, %v12337_v30  ;;  %vm15458_vm1 = vcmp.ne.s32.totalorder %v12415_v8, 0  ;;  %v15462_v30 = vld [vmem:[#allocation41_spill] sm:$0xff]  ;;  %v9556_v40 = vpop.f32.mrf.mxu1  ;;  %v2389_v47 = vpop.f32.mrf.mxu0  ;;  %v15465_v10 = vld [vmem:[#allocation44_spill] sm:$0xff] }
 0x204   : > { %15456 = vst [vmem:[#allocation39_spill] sm:$0xff] %v12494_v38  ;;  %vm12515_vm7 = vmand %vm3705_vm2, %vm15458_vm1  ;;  %v15459_v49 = vmov 0  ;;  %v3561_v57 = vshrl.u32 %v12430_v6, 4  ;;  %v12521_v18 = vadd.f32 %v12359_v51, %v2450_v42  ;;  %v2460_v21 = vadd.f32 %v9504_v45, %v15462_v30 }
 0x205   : > { %15457 = vst [vmem:[#allocation92_spill] sm:$0xff] %v12497_v46  ;;  %v15460_v49 = vsel %vm12515_vm7, 4294967295, %v15459_v49  ;;  %v12529_v23 = vsub.s32 %v12355_v59, %v3529_v22  ;;  %vm3667_vm4 = vcmp.ne.s32.totalorder %v12481_v36, 0  ;;  %vm3703_vm2 = vcmp.lt.s32.totalorder %v12481_v36, 0  ;;  %v12537_v45 = vpop.f32.mrf.mxu1 }
 0x206   : > { %15461 = vst [vmem:[#allocation93_spill] sm:$0xff] %v15460_v49  ;;  %v3584_v6 = vmul.u32 18, %v3583_v44  ;;  %v12534_v42 = vadd.s32 232, %v11351_v14  ;;  %v2454_v51 = vadd.f32 %v2373_v29, %v12020_v37  ;;  %vm3670_vm8 = vcmp.ne.s32.totalorder %v12497_v46, 0  ;;  %v9507_v37 = vpop.f32.mrf.mxu0  ;;  %vm12561_vm7 = vmand %vm3703_vm2, %vm3667_vm4 }
 0x207   : > { %15463 = vst [vmem:[#allocation41_spill] sm:$0xff] %v12529_v23  ;;  %vm3706_vm1 = vcmp.lt.s32.totalorder %v12497_v46, 0  ;;  %v12547_v22 = vadd.f32 %v12385_v52, %v12383_v63  ;;  %v12551_v59 = vadd.f32 %v12405_v41, %v12403_v24  ;;  %v12554_v29 = vadd.s32 18, %v12481_v36  ;;  %v9559_v30 = vpop.f32.mrf.mxu1 }
 0x208   : > { %v3562_v44 = vmul.u32 18, %v3561_v57  ;;  %v2463_v49 = vadd.f32 %v9507_v37, %v15465_v10  ;;  %v12566_v52 = vadd.s32 18, %v12497_v46  ;;  %vm3668_vm6 = vcmp.ne.s32.totalorder %v12529_v23, 0  ;;  %v2402_v63 = vpop.f32.mrf.mxu0  ;;  %vm12570_vm11 = vmand %vm3706_vm1, %vm3670_vm8 }
 0x209   : > { %15464 = vst [vmem:[#allocation94_spill] sm:$0xff] %v12554_v29  ;;  %vm3704_vm5 = vcmp.lt.s32.totalorder %v12529_v23, 0  ;;  %v15469_v24 = vmov 0  ;;  %v12575_v41 = vsub.s32 %v12378_v5, %v3584_v6  ;;  %v3594_v57 = vshrl.u32 %v12486_v43, 4  ;;  %v2733_v50 = vpop.f32.mrf.mxu1 }
 0x20a   : > { %15468 = vst [vmem:[#allocation44_spill] sm:$0xff] %v12566_v52  ;;  %v15470_v24 = vsel %vm12570_vm11, 4294967295, %v15469_v24  ;;  %v12579_v10 = vmul.u32.u64.low 3817748708, %v12534_v42  ;;  %v12580_v37 = vmul.u32.u64.high 3817748708, %v12534_v42, %v12579_v10  ;;  %v12584_v38 = vadd.f32 %v12425_v3, %v12423_v27  ;;  %v9508_v43 = vpop.f32.mrf.mxu0  ;;  %vm12601_vm4 = vmand %vm3704_vm5, %vm3668_vm6 }
 0x20b   : > { %15471 = vst [vmem:[#allocation95_spill] sm:$0xff] %v15470_v24  ;;  %v12587_v20 = vadd.f32 %v12437_v25, %v2454_v51  ;;  %v2461_v28 = vadd.f32 %v2402_v63, %v15472_v35  ;;  %v12591_v12 = vadd.s32 18, %v12529_v23  ;;  %v12593_v5 = vadd.f32 %v9555_v34, %v2459_v26  ;;  %v15479_v26 = vld [vmem:[#allocation49_spill] sm:$0xff]  ;;  %v9560_v51 = vpop.f32.mrf.mxu1 }
 0x20c   : > { %v15474_v3 = vmov 0  ;;  %v12606_v35 = vsub.s32 %v12389_v48, %v3562_v44  ;;  %v3595_v27 = vmul.u32 18, %v3594_v57  ;;  %v12608_v25 = vadd.f32 %v2717_v33, %v2457_v7  ;;  %v2405_v6 = vpop.f32.mrf.mxu0 }
 0x20d   : > { %15473 = vst [vmem:[#allocation46_spill] sm:$0xff] %v12591_v12  ;;  %v15475_v3 = vsel %vm12601_vm4, 4294967295, %v15474_v3  ;;  %v2464_v34 = vadd.f32 %v9508_v43, %v15479_v26  ;;  %v12616_v10 = vadd.s32 272, %v11351_v14  ;;  %vm3673_vm5 = vcmp.ne.s32.totalorder %v12575_v41, 0  ;;  %v2736_v57 = vpop.f32.mrf.mxu1  ;;  %v15486_v12 = vld [vmem:[#allocation8_spill] sm:$0xff] }
 0x20e   : > { %15476 = vst [vmem:[#allocation96_spill] sm:$0xff] %v15475_v3  ;;  %15477 = vst [vmem:[#allocation97_spill] sm:$0xff] %v12606_v35  ;;  %vm3709_vm6 = vcmp.lt.s32.totalorder %v12575_v41, 0  ;;  %v3572_v48 = vshrl.u32 %v12580_v37, 4  ;;  %v12622_v33 = vadd.s32 256, %v11351_v14  ;;  %v2458_v7 = vadd.f32 %v2389_v47, %v12051_v13  ;;  %v9511_v63 = vpop.f32.mrf.mxu0  ;;  %v15482_v47 = vld [vmem:[#allocation7_spill] sm:$0xff] }
 0x20f   : > { %15478 = vst [vmem:[#allocation98_spill] sm:$0xff] %v12608_v25  ;;  %v12625_v44 = vadd.f32 %v9556_v40, %v2460_v21  ;;  %v12632_v26 = vsub.s32 %v12435_v53, %v3595_v27  ;;  %v12635_v25 = vadd.s32 18, %v12575_v41  ;;  %vm3671_vm2 = vcmp.ne.s32.totalorder %v12606_v35, 0  ;;  %v9563_v40 = vpop.f32.mrf.mxu1  ;;  %vm12644_vm1 = vmand %vm3709_vm6, %vm3673_vm5 }
 0x210   : > { %vm3707_vm8 = vcmp.lt.s32.totalorder %v12606_v35, 0  ;;  %v3573_v13 = vmul.u32 18, %v3572_v48  ;;  %v2467_v21 = vadd.f32 %v9511_v63, %v15482_v47  ;;  %v15483_v37 = vmov 0 }
 0x211   : > { %15480 = vst [vmem:[#allocation49_spill] sm:$0xff] %v12625_v44  ;;  %15481 = vst [vmem:[#allocation99_spill] sm:$0xff] %v12632_v26  ;;  %v15484_v37 = vsel %vm12644_vm1, 4294967295, %v15483_v37  ;;  %v12649_v53 = vadd.s32 18, %v12606_v35  ;;  %v12652_v27 = vmul.u32.u64.low 3817748708, %v12616_v10  ;;  %v12653_v43 = vmul.u32.u64.high 3817748708, %v12616_v10, %v12652_v27  ;;  %v2418_v44 = vpop.f32.mrf.mxu0  ;;  %v2749_v46 = vpop.f32.mrf.mxu1 }
 0x212   : > { %v2462_v48 = vadd.f32 %v2405_v6, %v12073_v11  ;;  %v12657_v63 = vmul.u32.u64.low 3817748708, %v12622_v33  ;;  %v12658_v47 = vmul.u32.u64.high 3817748708, %v12622_v33, %v12657_v63  ;;  %v12661_v23 = vadd.s32 280, %v11351_v14  ;;  %vm12664_vm5 = vmand %vm3707_vm8, %vm3671_vm2  ;;  %v15515_v35 = vld [vmem:[#allocation24_spill] sm:$0xff] }
 0x213   : > { %15485 = vst [vmem:[#allocation7_spill] sm:$0xff] %v12649_v53  ;;  %v2465_v3 = vadd.f32 %v2418_v44, %v15486_v12  ;;  %v15487_v52 = vmov 0  ;;  %vm3674_vm6 = vcmp.ne.s32.totalorder %v12632_v26, 0  ;;  %vm3710_vm4 = vcmp.lt.s32.totalorder %v12632_v26, 0  ;;  %v9512_v63 = vpop.f32.mrf.mxu0  ;;  %v15493_v12 = vld [vmem:[#allocation25_spill] sm:$0xff]  ;;  %v15494_v44 = vld [vmem:[#allocation20_spill] sm:$0xff] }
 0x214   : > { %v15488_v52 = vsel %vm12664_vm5, 4294967295, %v15487_v52  ;;  %v12671_v11 = vsub.s32 %v12534_v42, %v3573_v13  ;;  %v12674_v6 = vadd.f32 %v12537_v45, %v2458_v7  ;;  %v12676_v27 = vadd.f32 %v9559_v30, %v2463_v49  ;;  %v15500_v30 = vld [vmem:[#allocation58_spill] sm:$0xff]  ;;  %vm12718_vm8 = vmand %vm3710_vm4, %vm3674_vm6 }
 0x215   : > { %15489 = vst [vmem:[#allocation8_spill] sm:$0xff] %v15488_v52  ;;  %v15495_v36 = vsel %vm11567_vm12, %v15493_v12, %v15494_v44  ;;  %v12692_v45 = vadd.s32 264, %v11351_v14  ;;  %v12694_v49 = vadd.f32 %v2733_v50, %v2461_v28  ;;  %v2468_v7 = vadd.f32 %v9512_v63, %v15500_v30  ;;  %v2421_v13 = vpop.f32.mrf.mxu0  ;;  %v15503_v44 = vld [vmem:[#allocation30_spill] sm:$0xff]  ;;  %v9564_v30 = vpop.f32.mrf.mxu1  ;;  %v12735_v14 = vld [vmem:[%s15123_s2] ss:$0 sm:$0xff]  ;;  %v15546_v52 = vld [vmem:[#allocation40_spill] sm:$0xff] }
 0x216   : > { %15490 = vst [vmem:[#allocation100_spill] sm:$0xff] %v12674_v6  ;;  %15491 = vst [vmem:[#allocation101_spill] sm:$0xff] %v12676_v27  ;;  %vm12683_vm2 = vcmp.lt.s32.totalorder %v15495_v36, 16  ;;  %v12698_v24 = vadd.s32 18, %v12632_v26  ;;  %v3627_v36 = vshrl.u32 %v12653_v43, 4  ;;  %v15504_v27 = vld [vmem:[#allocation22_spill] sm:$0xff]  ;;  %v12729_v63 = vadd.f32 %v2736_v57, %v2462_v48 }
 0x217   : > { %15498 = vst [vmem:[#allocation29_spill] sm:$0xff] %v12692_v45  ;;  %15499 = vst [vmem:[#allocation25_spill] sm:$0xff] %v12694_v49  ;;  %v15505_v6 = vsel %vm11593_vm13, %v15503_v44, %v15504_v27  ;;  %v15508_v50 = vmov 0  ;;  %v3605_v28 = vshrl.u32 %v12658_v47, 4  ;;  %v12727_v27 = vadd.f32 %v9560_v51, %v2464_v34  ;;  %v9583_v44 = vpop.f32.mrf.mxu0  ;;  %v15514_v47 = vld [vmem:[#allocation33_spill] sm:$0xff] }
 0x218   : > { %15501 = vst [vmem:[#allocation20_spill] sm:$0xff] %v12698_v24  ;;  %vm12706_vm12 = vcmp.lt.s32.totalorder %v15505_v6, 16  ;;  %v15509_v50 = vsel %vm12718_vm8, 4294967295, %v15508_v50  ;;  %v12724_v43 = vmul.u32.u64.low 3817748708, %v12661_v23  ;;  %v12725_v6 = vmul.u32.u64.high 3817748708, %v12661_v23, %v12724_v43  ;;  %15512 = vst [vmem:[#allocation30_spill] sm:$0xff] %v12729_v63 }
 0x219   : > { %15510 = vst [vmem:[#allocation58_spill] sm:$0xff] %v15509_v50  ;;  %15511 = vst [vmem:[#allocation32_spill] sm:$0xff] %v12727_v27  ;;  %vm3672_vm13 = vcmp.ne.s32.totalorder %v12671_v11, 0  ;;  %v3628_v12 = vmul.u32 18, %v3627_v36  ;;  %v15516_v53 = vsel %vm11613_vm0, %v15514_v47, %v15515_v35  ;;  %vm3708_vm6 = vcmp.lt.s32.totalorder %v12671_v11, 0  ;;  %v2952_v47 = vpop.f32.mrf.mxu0  ;;  %v15522_v63 = vld [vmem:[#allocation35_spill] sm:$0xff] }
 0x21a   : > { %vm12742_vm4 = vcmp.lt.s32.totalorder %v15516_v53, 16  ;;  %v3606_v51 = vmul.u32 18, %v3605_v28  ;;  %v12748_v57 = vmul.u32.u64.low 3817748708, %v12692_v45  ;;  %v12749_v48 = vmul.u32.u64.high 3817748708, %v12692_v45, %v12748_v57  ;;  %v15523_v45 = vld [vmem:[#allocation27_spill] sm:$0xff]  ;;  %v15545_v50 = vld [vmem:[#allocation48_spill] sm:$0xff] }
 0x21b   : > { %v12751_v36 = vadd.f32 %v9563_v40, %v2467_v21  ;;  %v3097_v43 = vadd.f32 %v9583_v44, %v12092_v2  ;;  %v12759_v53 = vsub.s32 %v12616_v10, %v3628_v12  ;;  %v2466_v49 = vadd.f32 %v2421_v13, %v12086_v54  ;;  %v12781_v54 = vld [vmem:[%s15124_s3 + $0xf8] sm:$0xff]   ;;  %v2752_v13 = vpop.f32.mrf.mxu1  ;;  %v15531_v44 = vld [vmem:[#allocation42_spill] sm:$0xff] }
 0x21c   : > { %15519 = vst [vmem:[#allocation22_spill] sm:$0xff] %v12749_v48  ;;  %v15524_v57 = vsel %vm11645_vm3, %v15522_v63, %v15523_v45  ;;  %v12772_v2 = vadd.s32 18, %v12671_v11  ;;  %v12775_v40 = vsub.s32 %v12622_v33, %v3606_v51  ;;  %v3638_v10 = vshrl.u32 %v12725_v6, 4  ;;  %vm12789_vm3 = vmand %vm3708_vm6, %vm3672_vm13  ;;  %v9584_v33 = vpop.f32.mrf.mxu0  ;;  %v15532_v51 = vld [vmem:[#allocation37_spill] sm:$0xff]  ;;  %9773 = vmatprep.subr.bf16.mxu0 %v12781_v54 }
 0x21d   : > { %15520 = vst [vmem:[#allocation34_spill] sm:$0xff] %v12751_v36  ;;  %vm12767_vm0 = vcmp.lt.s32.totalorder %v15524_v57, 16  ;;  %v3140_v45 = vadd.f32 %v12735_v14, %v3097_v43  ;;  %v3095_v63 = vadd.f32 %v2952_v47, %v12105_v32  ;;  %vm3677_vm8 = vcmp.ne.s32.totalorder %v12759_v53, 0 }
 0x21e   : > { %15527 = vst [vmem:[#allocation33_spill] sm:$0xff] %v12775_v40  ;;  %vm3713_vm5 = vcmp.lt.s32.totalorder %v12759_v53, 0  ;;  %v15533_v43 = vsel %vm11754_vm9, %v15531_v44, %v15532_v51  ;;  %v12809_v28 = vadd.s32 18, %v12759_v53  ;;  %vm3675_vm13 = vcmp.ne.s32.totalorder %v12775_v40, 0  ;;  %v2955_v26 = vpop.f32.mrf.mxu0 }
 0x21f   : > { %vm12800_vm1 = vcmp.lt.s32.totalorder %v15533_v43, 16  ;;  %vm12804_vm11 = vmand %vm3713_vm5, %vm3677_vm8  ;;  %vm3711_vm6 = vcmp.lt.s32.totalorder %v12775_v40, 0  ;;  %v12814_v57 = vadd.s32 18, %v12775_v40  ;;  %v12817_v6 = vadd.f32 %v2749_v46, %v2465_v3  ;;  %v15576_v40 = vld [vmem:[#allocation65_spill] sm:$0xff] }
 0x220   : > { %v3176_v44 = vmax.f32 %v3140_v45, 0.0  ;;  %v3138_v51 = vadd.f32 %v12735_v14, %v3095_v63  ;;  %v3098_v43 = vadd.f32 %v9584_v33, %v12136_v19  ;;  %vm12821_vm9 = vmand %vm3711_vm6, %vm3675_vm13  ;;  %v12825_v36 = vadd.f32 %v9564_v30, %v2468_v7 }
 0x221   : > { %15538 = vst [vmem:[#allocation24_spill] sm:$0xff] %v12814_v57  ;;  %15539 = vst [vmem:[#allocation36_spill] sm:$0xff] %v12817_v6  ;;  %v12827_v27 = vadd.f32 %v2752_v13, %v2466_v49  ;;  %v15547_v46 = vsel %vm11771_vm14, %v15545_v50, %v15546_v52  ;;  %v3639_v45 = vmul.u32 18, %v3638_v10  ;;  %vm4019_vm8 = vsmask.f32 5392  ;;  %v9587_v50 = vpop.f32.mrf.mxu0  ;;  %v15578_v57 = vld [vmem:[#allocation9_spill] sm:$0xff] }
 0x222   : > { %15542 = vst [vmem:[#allocation35_spill] sm:$0xff] %v12825_v36  ;;  %vm12834_vm5 = vcmp.lt.s32.totalorder %v15547_v46, 16  ;;  %v3861_v7 = vsel %vm12683_vm2, %v3176_v44, 0.0  ;;  %v3174_v30 = vmax.f32 %v3138_v51, 0.0  ;;  %v3141_v24 = vadd.f32 %v12735_v14, %v3098_v43 }
 0x223   : > { %15543 = vst [vmem:[#allocation27_spill] sm:$0xff] %v12827_v27  ;;  %v3096_v49 = vadd.f32 %v2955_v26, %v12237_v1  ;;  %v8647_v52 = vpack.c.bf16 %v3861_v7, %v3861_v7  ;;  %v3101_v26 = vadd.f32 %v9587_v50, %v12241_v17  ;;  %v2968_v46 = vpop.f32.mrf.mxu0  ;;  %v12860_v7 = vsub.s32 %v12661_v23, %v3639_v45 }
 0x224   : > { %v3859_v63 = vsel %vm12706_vm12, %v3174_v30, 0.0  ;;  %v3177_v33 = vmax.f32 %v3141_v24, 0.0  ;;  %v3099_v42 = vadd.f32 %v2968_v46, %v12260_v15 }
 0x225   : > { %v3139_v1 = vadd.f32 %v12735_v14, %v3096_v49  ;;  %v4041_v44 = vshrl.u32 %v8647_v52, 16  ;;  %v4044_v51 = vshll.u32 %v8647_v52, 16  ;;  %v8645_v43 = vpack.c.bf16 %v3859_v63, %v3859_v63  ;;  %15550 = vst [vmem:[#allocation47_spill] sm:$0xff] %v12860_v7  ;;  %v9588_v17 = vpop.f32.mrf.mxu0 }
 0x226   : > { %v3862_v10 = vsel %vm12742_vm4, %v3177_v33, 0.0  ;;  %v3144_v29 = vadd.f32 %v12735_v14, %v3101_v26  ;;  %v3142_v23 = vadd.f32 %v12735_v14, %v3099_v42  ;;  %v4417_v26 = vld [vmem:[#allocation2 + $0x8] sm:$0xe]  ;;  %v15554_v42 = vld [vmem:[#allocation43_spill] sm:$0xff] }
 0x227   : > { %v3175_v13 = vmax.f32 %v3139_v1, 0.0  ;;  %v4043_v30 = vrot.slane %v4041_v44, 6  ;;  %v4046_v24 = vrot.slane %v4044_v51, 7  ;;  %v4022_v49 = vshrl.u32 %v8645_v43, 16  ;;  %v2971_v48 = vpop.f32.mrf.mxu0 }
 0x228   : > { %v4025_v19 = vshll.u32 %v8645_v43, 16  ;;  %v8648_v50 = vpack.c.bf16 %v3862_v10, %v3862_v10  ;;  %v3180_v63 = vmax.f32 %v3144_v29, 0.0  ;;  %v3178_v51 = vmax.f32 %v3142_v23, 0.0  ;;  %v15553_v29 = vld [vmem:[#allocation51_spill] sm:$0xff] }
 0x229   : > { %v3860_v52 = vsel %vm12767_vm0, %v3175_v13, 0.0  ;;  %v4047_v45 = vor.u32 %v4046_v24, %v4043_v30  ;;  %v4024_v34 = vrot.slane %v4022_v49, 6  ;;  %v15551_v13 = vld [vmem:[#allocation6_spill] sm:$0xff]  ;;  %v15558_v24 = vld [vmem:[#allocation55_spill] sm:$0xff]  ;;  %v15560_v49 = vld [vmem:[#allocation53_spill] sm:$0xff]  ;;  %v3100_v36 = vadd.f32 %v2971_v48, %v12280_v62 }
 0x22a   : > { %v4027_v33 = vrot.slane %v4025_v19, 7  ;;  %v8646_v1 = vpack.c.bf16 %v3860_v52, %v3860_v52  ;;  %v4051_v27 = vshrl.u32 %v8648_v50, 16  ;;  %v4054_v15 = vshll.u32 %v8648_v50, 16  ;;  %v15561_v50 = vld [vmem:[#allocation45_spill] sm:$0xff] }
 0x22b   : > { %v3865_v44 = vsel %vm12800_vm1, %v3180_v63, 0.0  ;;  %v4049_v43 = vrot.slane %v4047_v45, 4  ;;  %vm15552_vm14 = vnez %v15551_v13  ;;  %vm15559_vm12 = vnez %v15558_v24  ;;  %v9591_v63 = vpop.f32.mrf.mxu0 }
 0x22c   : > { %v4028_v10 = vor.u32 %v4027_v33, %v4024_v34  ;;  %v4031_v46 = vshrl.u32 %v8646_v1, 16  ;;  %v4034_v21 = vshll.u32 %v8646_v1, 16  ;;  %v15555_v30 = vsel %vm15552_vm14, %v15553_v29, %v15554_v42  ;;  %v15566_v34 = vld [vmem:[#allocation59_spill] sm:$0xff]  ;;  %v15567_v33 = vld [vmem:[#allocation56_spill] sm:$0xff] }
 0x22d   : > { %vm12876_vm2 = vcmp.lt.s32.totalorder %v15555_v30, 16  ;;  %v15562_v32 = vsel %vm15559_vm12, %v15560_v49, %v15561_v50  ;;  %v15568_v1 = vsel %vm11942_vm15, %v15566_v34, %v15567_v33  ;;  %v4053_v29 = vrot.slane %v4051_v27, 6 }
 0x22e   : > { %vm12885_vm1 = vcmp.lt.s32.totalorder %v15562_v32, 16  ;;  %vm12894_vm4 = vcmp.lt.s32.totalorder %v15568_v1, 16  ;;  %v4056_v42 = vrot.slane %v4054_v15, 7  ;;  %v8651_v30 = vpack.c.bf16 %v3865_v44, %v3865_v44  ;;  %v15574_v32 = vld [vmem:[#allocation19_spill] sm:$0xff]  ;;  %v2984_v1 = vpop.f32.mrf.mxu0 }
 0x22f   : > { %v3863_v24 = vsel %vm12834_vm5, %v3178_v51, 0.0  ;;  %vm15571_vm0 = vsmask.f32 1280  ;;  %v4029_v50 = vrot.slane %v4028_v10, 4  ;;  %vm15575_vm6 = vnez %v15574_v32  ;;  %v15579_v32 = vld [vmem:[#allocation57_spill] sm:$0xff] }
 0x230   : > { %vm12902_vm13 = vmor %vm15571_vm0, %vm4019_vm8  ;;  %v4418_v23 = vsel %vm15575_vm6, %v4028_v10, %v4417_v26  ;;  %v4033_v34 = vrot.slane %v4031_v46, 6  ;;  %v4036_v33 = vrot.slane %v4034_v21, 7  ;;  %v4057_v27 = vor.u32 %v4056_v42, %v4053_v29  ;;  %v9592_v46 = vpop.f32.mrf.mxu0 }
 0x231   : > { %4419 = vst [vmem:[#allocation2 + $0x8] sm:$0xe] %v4418_v23  ;;  %v4081_v15 = vshrl.u32 %v8651_v30, 16  ;;  %v4084_v44 = vshll.u32 %v8651_v30, 16  ;;  %v8649_v7 = vpack.c.bf16 %v3863_v24, %v3863_v24  ;;  %v3102_v51 = vadd.f32 %v9588_v17, %v12264_v58  ;;  %v15583_v17 = vld [vmem:[#allocation12_spill] sm:$0xff]  ;;  %v10312_v24 = vld [vmem:[%s15124_s3 + $0xe8] sm:$0xff]  }
 0x232   : > { %v4037_v3 = vor.u32 %v4036_v33, %v4033_v34  ;;  %v3105_v6 = vadd.f32 %v9591_v63, %v12303_v0  ;;  %vm15577_vm15 = vnez %v15576_v40  ;;  %v4058_v21 = vsel %vm12902_vm13, %v4049_v43, %v4057_v27  ;;  %v15586_v63 = vld [vmem:[#allocation60_spill] sm:$0xff]  ;;  %v2987_v43 = vpop.f32.mrf.mxu0 }
 0x233   : > { %v15580_v26 = vsel %vm15577_vm15, %v15578_v57, %v15579_v32  ;;  %v4059_v29 = vrot.slane %v4057_v27, 4  ;;  %v4083_v42 = vrot.slane %v4081_v15, 6  ;;  %v4086_v58 = vrot.slane %v4084_v44, 7  ;;  %4422 = vst [vmem:[#allocation2 + $0x14] sm:$0xf] %v4058_v21  ;;  %v15585_v57 = vld [vmem:[#allocation63_spill] sm:$0xff] }
 0x234   : > { %vm12916_vm5 = vcmp.lt.s32.totalorder %v15580_v26, 16  ;;  %v4038_v62 = vsel %vm12902_vm13, %v4029_v50, %v4037_v3  ;;  %v4039_v0 = vrot.slane %v4037_v3, 4  ;;  %v4061_v48 = vshrl.u32 %v8649_v7, 16  ;;  %v9595_v3 = vpop.f32.mrf.mxu0 }
 0x235   : > { %v4064_v40 = vshll.u32 %v8649_v7, 16  ;;  %vm15584_vm8 = vnez %v15583_v17  ;;  %4420 = vst [vmem:[#allocation2 + $0xc] sm:$0xf] %v4038_v62  ;;  %v12933_v23 = vor.u32 %v4086_v58, %v4083_v42  ;;  %v3145_v34 = vadd.f32 %v12735_v14, %v3102_v51 }
 0x236   : > { %v15587_v30 = vsel %vm15584_vm8, %v15585_v57, %v15586_v63  ;;  %v3143_v50 = vadd.f32 %v12735_v14, %v3100_v36  ;;  %v3148_v33 = vadd.f32 %v12735_v14, %v3105_v6  ;;  %v4048_v7 = vsel %vm12902_vm13, %v4039_v0, %v4047_v45  ;;  %v12945_v62 = vpop.f32.mrf.mxu0  ;;  %v15590_v0 = vld [vmem:[#allocation67_spill] sm:$0xff] }
 0x237   : > { %vm12929_vm14 = vcmp.lt.s32.totalorder %v15587_v30, 16  ;;  %v4063_v27 = vrot.slane %v4061_v48, 6  ;;  %v4066_v15 = vrot.slane %v4064_v40, 7  ;;  %v3103_v44 = vadd.f32 %v2984_v1, %v12307_v4  ;;  %4421 = vst [vmem:[#allocation2 + $0x10] sm:$0xf] %v4048_v7  ;;  %v15592_v48 = vld [vmem:[#allocation66_spill] sm:$0xff] }
 0x238   : > { %v4089_v32 = vrot.slane %v12933_v23, 4  ;;  %v3181_v26 = vmax.f32 %v3145_v34, 0.0  ;;  %v3179_v21 = vmax.f32 %v3143_v50, 0.0  ;;  %v3184_v42 = vmax.f32 %v3148_v33, 0.0  ;;  %v15593_v40 = vld [vmem:[#allocation61_spill] sm:$0xff]  ;;  %v12965_v30 = vpop.f32.mrf.mxu0  ;;  %v15600_v7 = vld [vmem:[#allocation68_spill] sm:$0xff] }
 0x239   : > { %v4067_v58 = vor.u32 %v4066_v15, %v4063_v27  ;;  %v3146_v51 = vadd.f32 %v12735_v14, %v3103_v44  ;;  %v3106_v36 = vadd.f32 %v9592_v46, %v12311_v16  ;;  %v3104_v6 = vadd.f32 %v2987_v43, %v12333_v56  ;;  %v15597_v56 = vld [vmem:[#allocation21_spill] sm:$0xff]  ;;  %v15601_v27 = vld [vmem:[#allocation10_spill] sm:$0xff] }
 0x23a   : > { %v3866_v45 = vsel %vm12876_vm2, %v3181_v26, 0.0  ;;  %v3864_v4 = vsel %vm12885_vm1, %v3179_v21, 0.0  ;;  %v3869_v1 = vsel %vm12894_vm4, %v3184_v42, 0.0  ;;  %vm15591_vm12 = vnez %v15590_v0  ;;  %v15598_v33 = vld [vmem:[#allocation13_spill] sm:$0xff] }
 0x23b   : > { %v15594_v17 = vsel %vm15591_vm12, %v15592_v48, %v15593_v40  ;;  %v3109_v46 = vadd.f32 %v9595_v3, %v15597_v56  ;;  %v4068_v19 = vsel %vm12902_vm13, %v4059_v29, %v4067_v58  ;;  %v4069_v57 = vrot.slane %v4067_v58, 4 }
 0x23c   : > { %vm12958_vm0 = vcmp.lt.s32.totalorder %v15594_v17, 16  ;;  %v8652_v52 = vpack.c.bf16 %v3866_v45, %v3866_v45  ;;  %v8650_v63 = vpack.c.bf16 %v3864_v4, %v3864_v4  ;;  %4423 = vst [vmem:[#allocation2 + $0x18] sm:$0xf] %v4068_v19  ;;  %v8655_v13 = vpack.c.bf16 %v3869_v1, %v3869_v1  ;;  %v12980_v45 = vld [vmem:[#allocation2 + $0x8] sm:$0xff]   ;;  %v10310_v4 = vld [vmem:[%s15124_s3 + $0xf0] sm:$0xff]  }
 0x23d   : > { %v3182_v43 = vmax.f32 %v3146_v51, 0.0  ;;  %v3149_v34 = vadd.f32 %v12735_v14, %v3106_v36  ;;  %v3147_v50 = vadd.f32 %v12735_v14, %v3104_v6  ;;  %vm15599_vm2 = vnez %v15598_v33  ;;  %v3003_v6 = vpop.f32.mrf.mxu0  ;;  %9686 = vmatmul.mubr.bf16.vlgmr.msra.gmra.mxu0 %v12980_v45 }
 0x23e   : > { %v15602_v15 = vsel %vm15599_vm2, %v15600_v7, %v15601_v27  ;;  %v4091_v29 = vshrl.u32 %v8652_v52, 16  ;;  %v4094_v3 = vshll.u32 %v8652_v52, 16  ;;  %v4071_v26 = vshrl.u32 %v8650_v63, 16  ;;  %v12988_v10 = vld [vmem:[#allocation2 + $0x10] sm:$0xff]   ;;  %9774 = vmatpush3.bf16.msra.mxu0 %v12781_v54 }
 0x23f   : > { %vm12974_vm1 = vcmp.lt.s32.totalorder %v15602_v15, 16  ;;  %v4074_v21 = vshll.u32 %v8650_v63, 16  ;;  %v4121_v42 = vshrl.u32 %v8655_v13, 16  ;;  %v4124_v58 = vshll.u32 %v8655_v13, 16  ;;  %9689 = vmatprep.mubr.bf16.mxu0 %v12988_v10  ;;  %9775 = vmatprep.subr.bf16.mxu0 %v10310_v4 }
 0x240   : > { %v3867_v51 = vsel %vm12916_vm5, %v3182_v43, 0.0  ;;  %v3185_v36 = vmax.f32 %v3149_v34, 0.0  ;;  %v4093_v1 = vrot.slane %v4091_v29, 6  ;;  %v4096_v0 = vrot.slane %v4094_v3, 7  ;;  %v9599_v29 = vpop.f32.mrf.mxu0 }
 0x241   : > { %v4073_v48 = vrot.slane %v4071_v26, 6  ;;  %v4076_v40 = vrot.slane %v4074_v21, 7  ;;  %v4123_v17 = vrot.slane %v4121_v42, 6  ;;  %v4126_v56 = vrot.slane %v4124_v58, 7  ;;  %v15605_v21 = vld [vmem:[#allocation70_spill] sm:$0xff]  ;;  %v15607_v42 = vld [vmem:[#allocation69_spill] sm:$0xff] }
 0x242   : > { %v8653_v19 = vpack.c.bf16 %v3867_v51, %v3867_v51  ;;  %v3870_v52 = vsel %vm12929_vm14, %v3185_v36, 0.0  ;;  %v4097_v63 = vor.u32 %v4096_v0, %v4093_v1  ;;  %v3183_v34 = vmax.f32 %v3147_v50, 0.0  ;;  %v15612_v36 = vld [vmem:[#allocation71_spill] sm:$0xff]  ;;  %v15614_v1 = vld [vmem:[#allocation14_spill] sm:$0xff]  ;;  %v15615_v0 = vld [vmem:[#allocation64_spill] sm:$0xff]  ;;  %9776 = vmatpush3.bf16.msra.mxu0 %v10310_v4 }
 0x243   : > { %v4077_v13 = vor.u32 %v4076_v40, %v4073_v48  ;;  %v8656_v43 = vpack.c.bf16 %v3870_v52, %v3870_v52  ;;  %v12991_v33 = vor.u32 %v4126_v56, %v4123_v17  ;;  %v3152_v15 = vadd.f32 %v12735_v14, %v3109_v46  ;;  %v15608_v46 = vld [vmem:[#allocation11_spill] sm:$0xff]  ;;  %9777 = vmatprep.subr.bf16.mxu0 %v10312_v24 }
 0x244   : > { %v4101_v7 = vshrl.u32 %v8653_v19, 16  ;;  %v4104_v27 = vshll.u32 %v8653_v19, 16  ;;  %v4098_v3 = vsel %vm12902_vm13, %v4089_v32, %v4097_v63  ;;  %v4099_v50 = vrot.slane %v4097_v63, 4  ;;  %v15620_v52 = vld [vmem:[#allocation15_spill] sm:$0xff]  ;;  %v15621_v63 = vld [vmem:[#allocation72_spill] sm:$0xff] }
 0x245   : > { %v4078_v54 = vsel %vm12902_vm13, %v4069_v57, %v4077_v13  ;;  %v4079_v26 = vrot.slane %v4077_v13, 4  ;;  %vm15606_vm4 = vnez %v15605_v21  ;;  %vm15613_vm15 = vnez %v15612_v36  ;;  %4426 = vst [vmem:[#allocation2 + $0x24] sm:$0xf] %v4098_v3  ;;  %v15625_v36 = vld [vmem:[#allocation52_spill] sm:$0xff] }
 0x246   : > { %v15609_v58 = vsel %vm15606_vm4, %v15607_v42, %v15608_v46  ;;  %v15616_v48 = vsel %vm15613_vm15, %v15614_v1, %v15615_v0  ;;  %4424 = vst [vmem:[#allocation2 + $0x1c] sm:$0xf] %v4078_v54  ;;  %v4129_v57 = vrot.slane %v12991_v33, 4  ;;  %v4103_v40 = vrot.slane %v4101_v7, 6  ;;  %v3016_v0 = vpop.f32.mrf.mxu0  ;;  %9778 = vmatpush3.bf16.msra.mxu0 %v10312_v24  ;;  %v10319_v51 = vld [vmem:[%s15124_s3 + $0xd0] sm:$0xff]  }
 0x247   : > { %vm13007_vm6 = vcmp.lt.s32.totalorder %v15609_v58, 16  ;;  %vm13016_vm5 = vcmp.lt.s32.totalorder %v15616_v48, 16  ;;  %v4106_v17 = vrot.slane %v4104_v27, 7  ;;  %v4131_v56 = vshrl.u32 %v8656_v43, 16  ;;  %v10315_v48 = vld [vmem:[%s15124_s3 + $0xe0] sm:$0xff]  }
 0x248   : > { %v15622_v13 = vsel %vm12201_vm10, %v15620_v52, %v15621_v63  ;;  %v4088_v42 = vsel %vm12902_vm13, %v4079_v26, %v12933_v23  ;;  %v4134_v3 = vshll.u32 %v8656_v43, 16  ;;  %v3868_v54 = vsel %vm12958_vm0, %v3183_v34, 0.0  ;;  %v15626_v43 = vld [vmem:[#allocation86_spill] sm:$0xff]  ;;  %v15627_v34 = vld [vmem:[#allocation89_spill] sm:$0xff]  ;;  %9779 = vmatprep.subr.bf16.mxu0 %v10315_v48 }
 0x249   : > { %vm13026_vm8 = vcmp.lt.s32.totalorder %v15622_v13, 16  ;;  %v3188_v7 = vmax.f32 %v3152_v15, 0.0  ;;  %4425 = vst [vmem:[#allocation2 + $0x20] sm:$0xf] %v4088_v42  ;;  %v4107_v27 = vor.u32 %v4106_v17, %v4103_v40  ;;  %v4133_v46 = vrot.slane %v4131_v56, 6  ;;  %v15628_v26 = vld [vmem:[#allocation78_spill] sm:$0xff] }
 0x24a   : > { %v8654_v58 = vpack.c.bf16 %v3868_v54, %v3868_v54  ;;  %v3107_v1 = vadd.f32 %v12945_v62, %v15625_v36  ;;  %v4136_v23 = vrot.slane %v4134_v3, 7  ;;  %v3110_v4 = vadd.f32 %v12965_v30, %v15626_v43  ;;  %v15630_v40 = vld [vmem:[#allocation74_spill] sm:$0xff]  ;;  %v15631_v17 = vld [vmem:[#allocation16_spill] sm:$0xff]  ;;  %9780 = vmatpush3.bf16.msra.mxu0 %v10315_v48 }
 0x24b   : > { %v3873_v16 = vsel %vm12974_vm1, %v3188_v7, 0.0  ;;  %v3108_v15 = vadd.f32 %v3003_v6, %v15627_v34  ;;  %vm15629_vm10 = vnez %v15628_v26  ;;  %v4108_v19 = vsel %vm12902_vm13, %v4099_v50, %v4107_v27  ;;  %v15635_v36 = vld [vmem:[#allocation90_spill] sm:$0xff]  ;;  %v13062_v34 = vpop.f32.mrf.mxu0  ;;  %v10317_v50 = vld [vmem:[%s15124_s3 + $0xd8] sm:$0xff]  }
 0x24c   : > { %v15632_v62 = vsel %vm15629_vm10, %v15630_v40, %v15631_v17  ;;  %v4109_v52 = vrot.slane %v4107_v27, 4  ;;  %v4111_v44 = vshrl.u32 %v8654_v58, 16  ;;  %v4114_v63 = vshll.u32 %v8654_v58, 16  ;;  %4427 = vst [vmem:[#allocation2 + $0x28] sm:$0xf] %v4108_v19  ;;  %9781 = vmatprep.subr.bf16.mxu0 %v10317_v50 }
 0x24d   : > { %vm13050_vm14 = vcmp.lt.s32.totalorder %v15632_v62, 16  ;;  %v13056_v13 = vor.u32 %v4136_v23, %v4133_v46  ;;  %v8659_v30 = vpack.c.bf16 %v3873_v16, %v3873_v16  ;;  %v3150_v6 = vadd.f32 %v12735_v14, %v3107_v1  ;;  %v15636_v1 = vld [vmem:[#allocation79_spill] sm:$0xff]  ;;  %v15638_v23 = vld [vmem:[#allocation76_spill] sm:$0xff]  ;;  %v15639_v16 = vld [vmem:[#allocation73_spill] sm:$0xff] }
 0x24e   : > { %v3153_v42 = vadd.f32 %v12735_v14, %v3110_v4  ;;  %v4113_v3 = vrot.slane %v4111_v44, 6  ;;  %v4116_v54 = vrot.slane %v4114_v63, 7  ;;  %v3151_v7 = vadd.f32 %v12735_v14, %v3108_v15  ;;  %v13080_v15 = vld [vmem:[#allocation2 + $0x18] sm:$0xff]   ;;  %9782 = vmatpush3.bf16.msra.mxu0 %v10317_v50 }
 0x24f   : > { %v3113_v43 = vadd.f32 %v9599_v29, %v15635_v36  ;;  %v4138_v27 = vsel %vm12902_vm13, %v4129_v57, %v13056_v13  ;;  %v4139_v46 = vrot.slane %v13056_v13, 4  ;;  %v4161_v24 = vshrl.u32 %v8659_v30, 16  ;;  %9690 = vmatmul.mubr.bf16.gmra.mxu0 %v13080_v15  ;;  %9783 = vmatprep.subr.bf16.mxu0 %v10319_v51  ;;  %v13559_v49 = vld [vmem:[#allocation2 + $0x18] sm:$0xff]  }
 0x250   : > { %v4164_v58 = vshll.u32 %v8659_v30, 16  ;;  %vm15637_vm12 = vnez %v15636_v1  ;;  %4430 = vst [vmem:[#allocation2 + $0x34] sm:$0xf] %v4138_v27  ;;  %v4117_v26 = vor.u32 %v4116_v54, %v4113_v3  ;;  %v3186_v40 = vmax.f32 %v3150_v6, 0.0  ;;  %v13085_v30 = vld [vmem:[#allocation2 + $0x20] sm:$0xff]  }
 0x251   : > { %v15640_v29 = vsel %vm15637_vm12, %v15638_v23, %v15639_v16  ;;  %v3189_v17 = vmax.f32 %v3153_v42, 0.0  ;;  %v3187_v57 = vmax.f32 %v3151_v7, 0.0  ;;  %v4163_v62 = vrot.slane %v4161_v24, 6  ;;  %v3019_v42 = vpop.f32.mrf.mxu0  ;;  %9693 = vmatprep.mubr.bf16.mxu0 %v13085_v30 }
 0x252   : > { %vm13076_vm0 = vcmp.lt.s32.totalorder %v15640_v29, 16  ;;  %v4166_v19 = vrot.slane %v4164_v58, 7  ;;  %v3156_v44 = vadd.f32 %v12735_v14, %v3113_v43  ;;  %v3111_v63 = vadd.f32 %v3016_v0, %v12501_v61  ;;  %9784 = vmatpush3.bf16.msra.mxu0 %v10319_v51  ;;  %v15657_v51 = vld [vmem:[#allocation87_spill] sm:$0xff] }
 0x253   : > { %v4118_v36 = vsel %vm12902_vm13, %v4109_v52, %v4117_v26  ;;  %v4119_v1 = vrot.slane %v4117_v26, 4  ;;  %v3871_v3 = vsel %vm13007_vm6, %v3186_v40, 0.0  ;;  %v3874_v6 = vsel %vm13016_vm5, %v3189_v17, 0.0  ;;  %v15643_v40 = vld [vmem:[#allocation81_spill] sm:$0xff]  ;;  %v15645_v17 = vld [vmem:[#allocation80_spill] sm:$0xff]  ;;  %v9603_v56 = vpop.f32.mrf.mxu0 }
 0x254   : > { %4428 = vst [vmem:[#allocation2 + $0x2c] sm:$0xf] %v4118_v36  ;;  %v13093_v54 = vor.u32 %v4166_v19, %v4163_v62  ;;  %v8657_v61 = vpack.c.bf16 %v3871_v3, %v3871_v3  ;;  %v8660_v0 = vpack.c.bf16 %v3874_v6, %v3874_v6  ;;  %v3872_v7 = vsel %vm13026_vm8, %v3187_v57, 0.0  ;;  %v15650_v19 = vld [vmem:[#allocation83_spill] sm:$0xff] }
 0x255   : > { %v4128_v32 = vsel %vm12902_vm13, %v4119_v1, %v12991_v33  ;;  %v8658_v48 = vpack.c.bf16 %v3872_v7, %v3872_v7  ;;  %v3192_v52 = vmax.f32 %v3156_v44, 0.0  ;;  %v3154_v43 = vadd.f32 %v12735_v14, %v3111_v63  ;;  %v15646_v33 = vld [vmem:[#allocation17_spill] sm:$0xff]  ;;  %v15652_v44 = vld [vmem:[#allocation82_spill] sm:$0xff]  ;;  %v15653_v63 = vld [vmem:[#allocation75_spill] sm:$0xff] }
 0x256   : > { %4429 = vst [vmem:[#allocation2 + $0x30] sm:$0xf] %v4128_v32  ;;  %v4169_v27 = vrot.slane %v13093_v54, 4  ;;  %v4141_v21 = vshrl.u32 %v8657_v61, 16  ;;  %v4144_v24 = vshll.u32 %v8657_v61, 16  ;;  %v4171_v58 = vshrl.u32 %v8660_v0, 16 }
 0x257   : > { %v4174_v23 = vshll.u32 %v8660_v0, 16  ;;  %v4151_v16 = vshrl.u32 %v8658_v48, 16  ;;  %v4154_v29 = vshll.u32 %v8658_v48, 16  ;;  %v3877_v26 = vsel %vm13050_vm14, %v3192_v52, 0.0  ;;  %v10322_v7 = vld [vmem:[%s15124_s3 + $0xc8] sm:$0xff]  }
 0x258   : > { %vm15644_vm2 = vnez %v15643_v40  ;;  %vm15651_vm4 = vnez %v15650_v19  ;;  %v4143_v3 = vrot.slane %v4141_v21, 6  ;;  %v4146_v6 = vrot.slane %v4144_v24, 7  ;;  %v3032_v19 = vpop.f32.mrf.mxu0  ;;  %9785 = vmatprep.subr.bf16.mxu0 %v10322_v7 }
 0x259   : > { %v15647_v57 = vsel %vm15644_vm2, %v15645_v17, %v15646_v33  ;;  %v15654_v36 = vsel %vm15651_vm4, %v15652_v44, %v15653_v63  ;;  %v4173_v61 = vrot.slane %v4171_v58, 6  ;;  %v8663_v0 = vpack.c.bf16 %v3877_v26, %v3877_v26  ;;  %9786 = vmatpush3.bf16.msra.mxu0 %v10322_v7 }
 0x25a   : > { %vm13113_vm1 = vcmp.lt.s32.totalorder %v15647_v57, 16  ;;  %vm13122_vm6 = vcmp.lt.s32.totalorder %v15654_v36, 16  ;;  %vm4620_vm15 = vsmask.f32 7424  ;;  %v4176_v32 = vrot.slane %v4174_v23, 7  ;;  %v10301_v36 = vld [vmem:[%s15124_s3 + $0xa8] sm:$0xff]  }
 0x25b   : > { %v4153_v48 = vrot.slane %v4151_v16, 6  ;;  %v4156_v52 = vrot.slane %v4154_v29, 7  ;;  %v3190_v40 = vmax.f32 %v3154_v43, 0.0  ;;  %v4147_v17 = vor.u32 %v4146_v6, %v4143_v3  ;;  %v13136_v44 = vld [vmem:[#allocation2 + $0x28] sm:$0xff]   ;;  %v15660_v29 = vld [vmem:[#allocation84_spill] sm:$0xff] }
 0x25c   : > { %v4201_v33 = vshrl.u32 %v8663_v0, 16  ;;  %v4204_v57 = vshll.u32 %v8663_v0, 16  ;;  %v3114_v50 = vadd.f32 %v13062_v34, %v12505_v60  ;;  %v13131_v21 = vor.u32 %v4176_v32, %v4173_v61  ;;  %v10325_v34 = vld [vmem:[%s15124_s3 + $0xc0] sm:$0xff]   ;;  %9694 = vmatmul.mubr.bf16.gmra.mxu0 %v13136_v44 }
 0x25d   : > { %v4157_v24 = vor.u32 %v4156_v52, %v4153_v48  ;;  %v3875_v58 = vsel %vm13076_vm0, %v3190_v40, 0.0  ;;  %v3112_v26 = vadd.f32 %v3019_v42, %v12521_v18  ;;  %v4148_v43 = vsel %vm12902_vm13, %v4139_v46, %v4147_v17  ;;  %v15659_v46 = vld [vmem:[#allocation23_spill] sm:$0xff]  ;;  %9787 = vmatprep.subr.bf16.mxu0 %v10325_v34 }
 0x25e   : > { %v4149_v23 = vrot.slane %v4147_v17, 4  ;;  %v4203_v16 = vrot.slane %v4201_v33, 6  ;;  %v4206_v60 = vrot.slane %v4204_v57, 7  ;;  %4431 = vst [vmem:[#allocation2 + $0x38] sm:$0xf] %v4148_v43  ;;  %v4178_v18 = vsel %vm12902_vm13, %v4169_v27, %v13131_v21  ;;  %v13159_v3 = vld [vmem:[#allocation2 + $0x30] sm:$0xff]   ;;  %v9604_v57 = vpop.f32.mrf.mxu0  ;;  %9788 = vmatpush3.bf16.msra.mxu0 %v10325_v34 }
 0x25f   : > { %v4179_v4 = vrot.slane %v13131_v21, 4  ;;  %v4159_v42 = vrot.slane %v4157_v24, 4  ;;  %v8661_v13 = vpack.c.bf16 %v3875_v58, %v3875_v58  ;;  %vm15658_vm5 = vnez %v15657_v51  ;;  %4434 = vst [vmem:[#allocation2 + $0x44] sm:$0xf] %v4178_v18  ;;  %9697 = vmatprep.mubr.bf16.mxu0 %v13159_v3  ;;  %v15678_v34 = vld [vmem:[#allocation26_spill] sm:$0xff] }
 0x260   : > { %v15661_v63 = vsel %vm15658_vm5, %v15659_v46, %v15660_v29  ;;  %v4158_v27 = vsel %vm12902_vm13, %v4149_v23, %v4157_v24  ;;  %v13163_v6 = vor.u32 %v4206_v60, %v4203_v16  ;;  %v3157_v61 = vadd.f32 %v12735_v14, %v3114_v50  ;;  %v15671_v46 = vld [vmem:[#allocation88_spill] sm:$0xff]  ;;  %v15675_v29 = vld [vmem:[#allocation54_spill] sm:$0xff] }
 0x261   : > { %vm13154_vm8 = vcmp.lt.s32.totalorder %v15661_v63, 16  ;;  %v3155_v0 = vadd.f32 %v12735_v14, %v3112_v26  ;;  %vm15664_vm10 = vnez %v15441_v39  ;;  %v4168_v52 = vsel %vm12902_vm13, %v4159_v42, %v13093_v54  ;;  %4432 = vst [vmem:[#allocation2 + $0x3c] sm:$0xf] %v4158_v27  ;;  %v15677_v63 = vld [vmem:[#allocation91_spill] sm:$0xff] }
 0x262   : > { %v15665_v32 = vsel %vm15664_vm10, %v12396_v9, %v12327_v31  ;;  %v4181_v40 = vshrl.u32 %v8661_v13, 16  ;;  %v4184_v17 = vshll.u32 %v8661_v13, 16  ;;  %v4629_v33 = vshll.u32 %v12980_v45, 16  ;;  %4433 = vst [vmem:[#allocation2 + $0x40] sm:$0xf] %v4168_v52  ;;  %v3035_v13 = vpop.f32.mrf.mxu0 }
 0x263   : > { %vm13172_vm14 = vcmp.lt.s32.totalorder %v15665_v32, 16  ;;  %v4209_v31 = vrot.slane %v13163_v6, 4  ;;  %v3193_v9 = vmax.f32 %v3157_v61, 0.0  ;;  %v3191_v39 = vmax.f32 %v3155_v0, 0.0 }
 0x264   : > { %v4633_v50 = vshrl.u32 %v12980_v45, 16  ;;  %v4183_v21 = vrot.slane %v4181_v40, 6  ;;  %v4186_v24 = vrot.slane %v4184_v17, 7  ;;  %v4631_v54 = vrot.slane %v4629_v33, 1  ;;  %v15668_v45 = vld [vmem:[#allocation85_spill] sm:$0xff]  ;;  %v10298_v40 = vld [vmem:[%s15124_s3 + $0xb0] sm:$0xff]  }
 0x265   : > { %v3117_v58 = vadd.f32 %v9603_v56, %v12547_v22  ;;  %v3878_v26 = vsel %vm13113_vm1, %v3193_v9, 0.0  ;;  %v3876_v43 = vsel %vm13122_vm6, %v3191_v39, 0.0  ;;  %v4637_v7 = vshll.u32 %v12988_v10, 16  ;;  %v15670_v56 = vld [vmem:[#allocation31_spill] sm:$0xff] }
 0x266   : > { %v3115_v23 = vadd.f32 %v3032_v19, %v12551_v59  ;;  %v4187_v16 = vor.u32 %v4186_v24, %v4183_v21  ;;  %v8664_v60 = vpack.c.bf16 %v3878_v26, %v3878_v26  ;;  %v8662_v18 = vpack.c.bf16 %v3876_v43, %v3876_v43 }
 0x267   : > { %v4632_v42 = vsel %vm4620_vm15, %v15668_v45, %v4631_v54  ;;  %v4635_v51 = vor.u32 %v4633_v50, %v4631_v54  ;;  %v3160_v22 = vadd.f32 %v12735_v14, %v3117_v58  ;;  %v4639_v62 = vrot.slane %v4637_v7, 1  ;;  %v9607_v58 = vpop.f32.mrf.mxu0 }
 0x268   : > { %9633 = vmatprep.mubr.bf16.mxu1 %v4632_v42  ;;  %v3158_v1 = vadd.f32 %v12735_v14, %v3115_v23  ;;  %vm15669_vm12 = vnez %v15448_v55  ;;  %vm15676_vm2 = vnez %v15675_v29  ;;  %v4188_v0 = vsel %vm12902_vm13, %v4179_v4, %v4187_v16  ;;  %v13218_v50 = vld [vmem:[#allocation2 + $0x38] sm:$0xff]  }
 0x269   : > { %v15672_v59 = vsel %vm15669_vm12, %v15670_v56, %v15671_v46  ;;  %v15679_v27 = vsel %vm15676_vm2, %v15677_v63, %v15678_v34  ;;  %v4189_v55 = vrot.slane %v4187_v16, 4  ;;  %v4211_v32 = vshrl.u32 %v8664_v60, 16  ;;  %4435 = vst [vmem:[#allocation2 + $0x48] sm:$0xf] %v4188_v0  ;;  %v13221_v26 = vld [vmem:[#allocation2 + $0x40] sm:$0xff]   ;;  %v10408_v16 = vld [vmem:[%s15124_s3 + $0xb8] sm:$0xff]   ;;  %9698 = vmatmul.mubr.bf16.gmra.mxu0 %v13218_v50  ;;  %v3048_v46 = vpop.f32.mrf.mxu0 }
 0x26a   : > { %vm13199_vm0 = vcmp.lt.s32.totalorder %v15672_v59, 16  ;;  %vm13208_vm1 = vcmp.lt.s32.totalorder %v15679_v27, 16  ;;  %v4214_v52 = vshll.u32 %v8664_v60, 16  ;;  %v4191_v17 = vshrl.u32 %v8662_v18, 16  ;;  %9701 = vmatprep.mubr.bf16.mxu0 %v13221_v26  ;;  %v15682_v27 = vld [vmem:[#allocation93_spill] sm:$0xff]  ;;  %v15684_v0 = vld [vmem:[#allocation39_spill] sm:$0xff] }
 0x26b   : > { %v4194_v33 = vshll.u32 %v8662_v18, 16  ;;  %v3196_v9 = vmax.f32 %v3160_v22, 0.0  ;;  %v4640_v39 = vsel %vm4620_vm15, %v4635_v51, %v4639_v62  ;;  %v4213_v21 = vrot.slane %v4211_v32, 6 }
 0x26c   : > { %v4216_v24 = vrot.slane %v4214_v52, 7  ;;  %9634 = vmatmul.mubr.bf16.vlgmr.msra.gmra.mxu1 %v4640_v39  ;;  %v3194_v54 = vmax.f32 %v3158_v1, 0.0  ;;  %v3118_v4 = vadd.f32 %v9604_v57, %v12584_v38  ;;  %v4193_v43 = vrot.slane %v4191_v17, 6 }
 0x26d   : > { %v4196_v7 = vrot.slane %v4194_v33, 7  ;;  %v3881_v23 = vsel %vm13154_vm8, %v3196_v9, 0.0  ;;  %9722 = vmatpush3.bf16.msra.mxu1 %v10408_v16  ;;  %v3116_v60 = vadd.f32 %v3035_v13, %v12587_v20  ;;  %v4641_v13 = vshrl.u32 %v12988_v10, 16  ;;  %v15685_v10 = vld [vmem:[#allocation28_spill] sm:$0xff] }
 0x26e   : > { %v4217_v18 = vor.u32 %v4216_v24, %v4213_v21  ;;  %v8667_v45 = vpack.c.bf16 %v3881_v23, %v3881_v23  ;;  %v3879_v38 = vsel %vm13172_vm14, %v3194_v54, 0.0  ;;  %v3161_v57 = vadd.f32 %v12735_v14, %v3118_v4  ;;  %9723 = vmatprep.subr.bf16.mxu1 %v10298_v40 }
 0x26f   : > { %v4197_v42 = vor.u32 %v4196_v7, %v4193_v43  ;;  %v8665_v51 = vpack.c.bf16 %v3879_v38, %v3879_v38  ;;  %v3159_v20 = vadd.f32 %v12735_v14, %v3116_v60  ;;  %vm15683_vm4 = vnez %v15682_v27  ;;  %v15690_v38 = vld [vmem:[#allocation38_spill] sm:$0xff] }
 0x270   : > { %v4218_v48 = vsel %vm12902_vm13, %v4209_v31, %v4217_v18  ;;  %v4219_v22 = vrot.slane %v4217_v18, 4  ;;  %v4241_v1 = vshrl.u32 %v8667_v45, 16  ;;  %v4244_v56 = vshll.u32 %v8667_v45, 16  ;;  %v10305_v31 = vld [vmem:[%s15124_s3 + $0xa0] sm:$0xff]  }
 0x271   : > { %4438 = vst [vmem:[#allocation2 + $0x54] sm:$0xf] %v4218_v48  ;;  %v4198_v59 = vsel %vm12902_vm13, %v4189_v55, %v4197_v42  ;;  %v4199_v29 = vrot.slane %v4197_v42, 4  ;;  %v4221_v63 = vshrl.u32 %v8665_v51, 16  ;;  %v4224_v34 = vshll.u32 %v8665_v51, 16  ;;  %9724 = vmatpush3.bf16.msra.mxu1 %v10298_v40  ;;  %v13263_v40 = vld [vmem:[%s15124_s3 + $0x178] sm:$0xff]  }
 0x272   : > { %v15686_v32 = vsel %vm15683_vm4, %v15684_v0, %v15685_v10  ;;  %4436 = vst [vmem:[#allocation2 + $0x4c] sm:$0xf] %v4198_v59  ;;  %v4243_v17 = vrot.slane %v4241_v1, 6  ;;  %v4246_v55 = vrot.slane %v4244_v56, 7  ;;  %v3197_v33 = vmax.f32 %v3161_v57, 0.0  ;;  %9725 = vmatprep.subr.bf16.mxu1 %v10301_v36  ;;  %v15689_v45 = vld [vmem:[#allocation94_spill] sm:$0xff]  ;;  %9877 = vmatprep.subr.bf16.mxu0 %v13263_v40 }
 0x273   : > { %vm13250_vm6 = vcmp.lt.s32.totalorder %v15686_v32, 16  ;;  %v3195_v9 = vmax.f32 %v3159_v20, 0.0  ;;  %v4208_v39 = vsel %vm12902_vm13, %v4199_v29, %v13163_v6  ;;  %v4223_v21 = vrot.slane %v4221_v63, 6  ;;  %v9608_v6 = vpop.f32.mrf.mxu0  ;;  %v15701_v29 = vld [vmem:[#allocation96_spill] sm:$0xff]  ;;  %v15703_v63 = vld [vmem:[#allocation46_spill] sm:$0xff] }
 0x274   : > { %v4226_v24 = vrot.slane %v4224_v34, 7  ;;  %v4643_v54 = vor.u32 %v4641_v13, %v4639_v62  ;;  %4437 = vst [vmem:[#allocation2 + $0x50] sm:$0xf] %v4208_v39  ;;  %v13265_v4 = vor.u32 %v4246_v55, %v4243_v17  ;;  %v3882_v43 = vsel %vm13199_vm0, %v3197_v33, 0.0  ;;  %v15694_v13 = vld [vmem:[#allocation95_spill] sm:$0xff]  ;;  %v15704_v34 = vld [vmem:[#allocation41_spill] sm:$0xff] }
 0x275   : > { %v3880_v7 = vsel %vm13208_vm1, %v3195_v9, 0.0  ;;  %v4645_v23 = vshll.u32 %v13080_v15, 16  ;;  %v8668_v60 = vpack.c.bf16 %v3882_v43, %v3882_v43  ;;  %v3121_v18 = vadd.f32 %v9607_v58, %v12593_v5  ;;  %9726 = vmatpush3.bf16.msra.mxu1 %v10301_v36  ;;  %v15696_v5 = vld [vmem:[#allocation44_spill] sm:$0xff] }
 0x276   : > { %v4227_v16 = vor.u32 %v4226_v24, %v4223_v21  ;;  %v8666_v62 = vpack.c.bf16 %v3880_v7, %v3880_v7  ;;  %v15691_v57 = vsel %vm12561_vm7, %v15689_v45, %v15690_v38  ;;  %v4249_v19 = vrot.slane %v13265_v4, 4  ;;  %v15697_v58 = vld [vmem:[#allocation92_spill] sm:$0xff]  ;;  %9727 = vmatprep.subr.bf16.mxu1 %v10305_v31 }
 0x277   : > { %vm13278_vm5 = vcmp.lt.s32.totalorder %v15691_v57, 16  ;;  %v4647_v61 = vrot.slane %v4645_v23, 1  ;;  %v4649_v51 = vshrl.u32 %v13080_v15, 16  ;;  %v4653_v20 = vshll.u32 %v13085_v30, 16  ;;  %v10309_v36 = vld [vmem:[%s15124_s3 + $0x98] sm:$0xff]  }
 0x278   : > { %vm15695_vm8 = vnez %v15694_v13  ;;  %v4228_v15 = vsel %vm12902_vm13, %v4219_v22, %v4227_v16  ;;  %v4229_v1 = vrot.slane %v4227_v16, 4  ;;  %v4251_v56 = vshrl.u32 %v8668_v60, 16  ;;  %v3051_v22 = vpop.f32.mrf.mxu0  ;;  %v15708_v16 = vld [vmem:[#allocation98_spill] sm:$0xff]  ;;  %v15710_v38 = vld [vmem:[#allocation100_spill] sm:$0xff] }
 0x279   : > { %v15698_v8 = vsel %vm15695_vm8, %v15696_v5, %v15697_v58  ;;  %v4254_v59 = vshll.u32 %v8668_v60, 16  ;;  %vm15702_vm7 = vnez %v15701_v29  ;;  %4439 = vst [vmem:[#allocation2 + $0x58] sm:$0xf] %v4228_v15  ;;  %v4231_v10 = vshrl.u32 %v8666_v62, 16  ;;  %v13311_v24 = vld [vmem:[#allocation2 + $0x48] sm:$0xff]   ;;  %9728 = vmatpush3.bf16.msra.mxu1 %v10305_v31 }
 0x27a   : > { %vm13290_vm10 = vcmp.lt.s32.totalorder %v15698_v8, 16  ;;  %v15705_v27 = vsel %vm15702_vm7, %v15703_v63, %v15704_v34  ;;  %v4234_v32 = vshll.u32 %v8666_v62, 16  ;;  %v4648_v17 = vsel %vm4620_vm15, %v4643_v54, %v4647_v61  ;;  %9729 = vmatprep.subr.bf16.mxu1 %v10309_v36  ;;  %v10314_v54 = vld [vmem:[%s15124_s3 + $0x90] sm:$0xff]   ;;  %9702 = vmatmul.mubr.bf16.gmra.mxu0 %v13311_v24  ;;  %v9611_v13 = vpop.f32.mrf.mxu0 }
 0x27b   : > { %vm13305_vm14 = vcmp.lt.s32.totalorder %v15705_v27, 16  ;;  %v3164_v55 = vadd.f32 %v12735_v14, %v3121_v18  ;;  %v4253_v33 = vrot.slane %v4251_v56, 6  ;;  %v4256_v9 = vrot.slane %v4254_v59, 7  ;;  %9637 = vmatprep.mubr.bf16.mxu1 %v4648_v17  ;;  %v15709_v18 = vld [vmem:[#allocation49_spill] sm:$0xff]  ;;  %v13323_v31 = vld [vmem:[#allocation2 + $0x50] sm:$0xff]  }
 0x27c   : > { %v4651_v39 = vor.u32 %v4649_v51, %v4647_v61  ;;  %v4655_v21 = vrot.slane %v4653_v20, 1  ;;  %v4233_v43 = vrot.slane %v4231_v10, 6  ;;  %v4236_v7 = vrot.slane %v4234_v32, 7  ;;  %v13330_v51 = vld [vmem:[%s15123_s2] ss:$0 sm:$0xff]  ;;  %9705 = vmatprep.mubr.bf16.mxu0 %v13323_v31  ;;  %v3064_v32 = vpop.f32.mrf.mxu0 }
 0x27d   : > { %v3200_v23 = vmax.f32 %v3164_v55, 0.0  ;;  %v3119_v60 = vadd.f32 %v3048_v46, %v15708_v16  ;;  %v13317_v14 = vor.u32 %v4256_v9, %v4253_v33  ;;  %v3122_v45 = vadd.f32 %v9608_v6, %v15709_v18  ;;  %9730 = vmatpush3.bf16.msra.mxu1 %v10309_v36  ;;  %v15716_v18 = vld [vmem:[#allocation8_spill] sm:$0xff] }
 0x27e   : > { %v4656_v62 = vsel %vm4620_vm15, %v4651_v39, %v4655_v21  ;;  %v3120_v57 = vadd.f32 %v3051_v22, %v15710_v38  ;;  %v4237_v61 = vor.u32 %v4236_v7, %v4233_v43  ;;  %v4657_v6 = vshrl.u32 %v13085_v30, 16  ;;  %v10320_v30 = vld [vmem:[%s15124_s3 + $0x88] sm:$0xff]   ;;  %9731 = vmatprep.subr.bf16.mxu1 %v10314_v54  ;;  %v10326_v43 = vld [vmem:[%s15124_s3 + $0x80] sm:$0xff]  }
 0x27f   : > { %v3885_v46 = vsel %vm13250_vm6, %v3200_v23, 0.0  ;;  %9638 = vmatmul.mubr.bf16.gmra.mxu1 %v4656_v62  ;;  %v3162_v20 = vadd.f32 %v13330_v51, %v3119_v60  ;;  %v4258_v5 = vsel %vm12902_vm13, %v4249_v19, %v13317_v14  ;;  %v4259_v58 = vrot.slane %v13317_v14, 4  ;;  %v15719_v38 = vld [vmem:[#allocation97_spill] sm:$0xff] }
 0x280   : > { %v8671_v8 = vpack.c.bf16 %v3885_v46, %v3885_v46  ;;  %v3165_v52 = vadd.f32 %v13330_v51, %v3122_v45  ;;  %vm15711_vm12 = vnez %v15484_v37  ;;  %4442 = vst [vmem:[#allocation2 + $0x64] sm:$0xf] %v4258_v5  ;;  %v4238_v19 = vsel %vm12902_vm13, %v4229_v1, %v4237_v61  ;;  %v15718_v45 = vld [vmem:[#allocation7_spill] sm:$0xff]  ;;  %v9612_v46 = vpop.f32.mrf.mxu0 }
 0x281   : > { %v15712_v15 = vsel %vm15711_vm12, %v12635_v25, %v12575_v41  ;;  %v4239_v59 = vrot.slane %v4237_v61, 4  ;;  %v3198_v37 = vmax.f32 %v3162_v20, 0.0  ;;  %v3163_v29 = vadd.f32 %v13330_v51, %v3120_v57  ;;  %4440 = vst [vmem:[#allocation2 + $0x5c] sm:$0xf] %v4238_v19  ;;  %9732 = vmatpush3.bf16.msra.mxu1 %v10314_v54  ;;  %v13385_v20 = vld [vmem:[%s15124_s3 + $0x138] sm:$0xff]  }
 0x282   : > { %vm13344_vm0 = vcmp.lt.s32.totalorder %v15712_v15, 16  ;;  %v4281_v41 = vshrl.u32 %v8671_v8, 16  ;;  %v4284_v25 = vshll.u32 %v8671_v8, 16  ;;  %v3201_v63 = vmax.f32 %v3165_v52, 0.0  ;;  %9733 = vmatprep.subr.bf16.mxu1 %v10320_v30 }
 0x283   : > { %v4659_v34 = vor.u32 %v4657_v6, %v4655_v21  ;;  %v4248_v36 = vsel %vm12902_vm13, %v4239_v59, %v13265_v4  ;;  %v3883_v27 = vsel %vm13278_vm5, %v3198_v37, 0.0  ;;  %v3199_v10 = vmax.f32 %v3163_v29, 0.0  ;;  %v15715_v21 = vld [vmem:[#allocation101_spill] sm:$0xff]  ;;  %v15723_v37 = vld [vmem:[#allocation58_spill] sm:$0xff]  ;;  %v15725_v29 = vld [vmem:[#allocation20_spill] sm:$0xff] }
 0x284   : > { %v4661_v1 = vshll.u32 %v13136_v44, 16  ;;  %4441 = vst [vmem:[#allocation2 + $0x60] sm:$0xf] %v4248_v36  ;;  %v4283_v17 = vrot.slane %v4281_v41, 6  ;;  %v4286_v55 = vrot.slane %v4284_v25, 7  ;;  %v8669_v22 = vpack.c.bf16 %v3883_v27, %v3883_v27  ;;  %v15726_v41 = vld [vmem:[#allocation99_spill] sm:$0xff] }
 0x285   : > { %v3886_v33 = vsel %vm13290_vm10, %v3201_v63, 0.0  ;;  %v3884_v39 = vsel %vm13305_vm14, %v3199_v10, 0.0  ;;  %v3125_v42 = vadd.f32 %v9611_v13, %v15715_v21  ;;  %vm15717_vm2 = vnez %v15716_v18  ;;  %9734 = vmatpush3.bf16.msra.mxu1 %v10320_v30 }
 0x286   : > { %v8672_v9 = vpack.c.bf16 %v3886_v33, %v3886_v33  ;;  %v4663_v4 = vrot.slane %v4661_v1, 1  ;;  %v13369_v7 = vor.u32 %v4286_v55, %v4283_v17  ;;  %v4261_v23 = vshrl.u32 %v8669_v22, 16  ;;  %9735 = vmatprep.subr.bf16.mxu1 %v10326_v43 }
 0x287   : > { %v4264_v16 = vshll.u32 %v8669_v22, 16  ;;  %v8670_v60 = vpack.c.bf16 %v3884_v39, %v3884_v39  ;;  %v3168_v0 = vadd.f32 %v13330_v51, %v3125_v42  ;;  %v15720_v57 = vsel %vm15717_vm2, %v15718_v45, %v15719_v38  ;;  %v3067_v39 = vpop.f32.mrf.mxu0 }
 0x288   : > { %v4291_v48 = vshrl.u32 %v8672_v9, 16  ;;  %v4294_v62 = vshll.u32 %v8672_v9, 16  ;;  %v4664_v54 = vsel %vm4620_vm15, %v4659_v34, %v4663_v4  ;;  %vm13378_vm1 = vcmp.lt.s32.totalorder %v15720_v57, 16  ;;  %v13408_v17 = vld [vmem:[#allocation2 + $0x58] sm:$0xff]  }
 0x289   : > { %v4289_v6 = vrot.slane %v13369_v7, 4  ;;  %v4263_v13 = vrot.slane %v4261_v23, 6  ;;  %v4266_v5 = vrot.slane %v4264_v16, 7  ;;  %v4271_v8 = vshrl.u32 %v8670_v60, 16  ;;  %9641 = vmatprep.mubr.bf16.mxu1 %v4664_v54  ;;  %9706 = vmatmul.mubr.bf16.gmra.mxu0 %v13408_v17  ;;  %v9615_v18 = vpop.f32.mrf.mxu0 }
 0x28a   : > { %v4293_v52 = vrot.slane %v4291_v48, 6  ;;  %v4296_v15 = vrot.slane %v4294_v62, 7  ;;  %v4274_v19 = vshll.u32 %v8670_v60, 16  ;;  %v3204_v59 = vmax.f32 %v3168_v0, 0.0  ;;  %9736 = vmatpush3.bf16.msra.mxu1 %v10326_v43  ;;  %v15737_v48 = vld [vmem:[#allocation32_spill] sm:$0xff] }
 0x28b   : > { %vm15724_vm4 = vnez %v15723_v37  ;;  %v4267_v34 = vor.u32 %v4266_v5, %v4263_v13  ;;  %v4273_v36 = vrot.slane %v4271_v8, 6  ;;  %v4665_v27 = vshrl.u32 %v13136_v44, 16  ;;  %v15733_v44 = vld [vmem:[#allocation25_spill] sm:$0xff]  ;;  %9825 = vmatprep.subr.bf16.mxu1 %v13385_v20 }
 0x28c   : > { %v15727_v25 = vsel %vm15724_vm4, %v15725_v29, %v15726_v41  ;;  %v4669_v30 = vshll.u32 %v13159_v3, 16  ;;  %v15730_v10 = vsel %vm12789_vm3, %v12772_v2, %v12671_v11  ;;  %v13410_v55 = vor.u32 %v4296_v15, %v4293_v52  ;;  %v13415_v21 = vld [vmem:[#allocation2 + $0x60] sm:$0xff]  }
 0x28d   : > { %vm13393_vm6 = vcmp.lt.s32.totalorder %v15727_v25, 16  ;;  %vm13404_vm5 = vcmp.lt.s32.totalorder %v15730_v10, 16  ;;  %v4276_v22 = vrot.slane %v4274_v19, 7  ;;  %v3889_v33 = vsel %vm13344_vm0, %v3204_v59, 0.0  ;;  %9709 = vmatprep.mubr.bf16.mxu0 %v13415_v21  ;;  %v15739_v59 = vld [vmem:[#allocation34_spill] sm:$0xff] }
 0x28e   : > { %v3123_v9 = vadd.f32 %v3064_v32, %v15733_v44  ;;  %v4268_v11 = vsel %vm12902_vm13, %v4259_v58, %v4267_v34  ;;  %v4269_v2 = vrot.slane %v4267_v34, 4  ;;  %v8675_v12 = vpack.c.bf16 %v3889_v33, %v3889_v33  ;;  %v15740_v44 = vld [vmem:[#allocation24_spill] sm:$0xff] }
 0x28f   : > { %v4667_v42 = vor.u32 %v4665_v27, %v4663_v4  ;;  %4443 = vst [vmem:[#allocation2 + $0x68] sm:$0xf] %v4268_v11  ;;  %v4298_v56 = vsel %vm12902_vm13, %v4289_v6, %v13410_v55  ;;  %v4299_v32 = vrot.slane %v13410_v55, 4  ;;  %v4277_v23 = vor.u32 %v4276_v22, %v4273_v36 }
 0x290   : > { %v4671_v16 = vrot.slane %v4669_v30, 1  ;;  %v15734_v14 = vsel %vm12804_vm11, %v12809_v28, %v12759_v53  ;;  %4446 = vst [vmem:[#allocation2 + $0x74] sm:$0xf] %v4298_v56  ;;  %v4321_v4 = vshrl.u32 %v8675_v12, 16  ;;  %v4324_v43 = vshll.u32 %v8675_v12, 16  ;;  %v15738_v28 = vld [vmem:[#allocation30_spill] sm:$0xff]  ;;  %v3080_v30 = vpop.f32.mrf.mxu0 }
 0x291   : > { %vm13431_vm3 = vcmp.lt.s32.totalorder %v15734_v14, 16  ;;  %v3166_v60 = vadd.f32 %v13330_v51, %v3123_v9  ;;  %v3126_v62 = vadd.f32 %v9612_v46, %v15737_v48  ;;  %v4278_v47 = vsel %vm12902_vm13, %v4269_v2, %v4277_v23  ;;  %v15741_v9 = vld [vmem:[#allocation33_spill] sm:$0xff] }
 0x292   : > { %v4279_v54 = vrot.slane %v4277_v23, 4  ;;  %v4672_v53 = vsel %vm4620_vm15, %v4667_v42, %v4671_v16  ;;  %v3124_v0 = vadd.f32 %v3067_v39, %v15738_v28  ;;  %4444 = vst [vmem:[#allocation2 + $0x6c] sm:$0xf] %v4278_v47  ;;  %v4323_v45 = vrot.slane %v4321_v4, 6 }
 0x293   : > { %v4326_v38 = vrot.slane %v4324_v43, 7  ;;  %9642 = vmatmul.mubr.bf16.gmra.mxu1 %v4672_v53  ;;  %v3202_v57 = vmax.f32 %v3166_v60, 0.0  ;;  %v3169_v6 = vadd.f32 %v13330_v51, %v3126_v62  ;;  %v4673_v5 = vshrl.u32 %v13159_v3, 16  ;;  %v9616_v60 = vpop.f32.mrf.mxu0 }
 0x294   : > { %v4288_v46 = vsel %vm12902_vm13, %v4279_v54, %v13369_v7  ;;  %v3167_v13 = vadd.f32 %v13330_v51, %v3124_v0  ;;  %v4677_v8 = vshll.u32 %v13218_v50, 16  ;;  %v3129_v37 = vadd.f32 %v9615_v18, %v15739_v59 }
 0x295   : > { %4445 = vst [vmem:[#allocation2 + $0x70] sm:$0xf] %v4288_v46  ;;  %v13450_v52 = vor.u32 %v4326_v38, %v4323_v45  ;;  %v3887_v15 = vsel %vm13378_vm1, %v3202_v57, 0.0  ;;  %v3205_v19 = vmax.f32 %v3169_v6, 0.0  ;;  %v4675_v25 = vor.u32 %v4673_v5, %v4671_v16  ;;  %v15745_v38 = vld [vmem:[#allocation36_spill] sm:$0xff]  ;;  %v3083_v59 = vpop.f32.mrf.mxu0 }
 0x296   : > { %v8673_v29 = vpack.c.bf16 %v3887_v15, %v3887_v15  ;;  %v3203_v41 = vmax.f32 %v3167_v13, 0.0  ;;  %v4679_v34 = vrot.slane %v4677_v8, 1  ;;  %v3172_v36 = vadd.f32 %v13330_v51, %v3129_v37 }
 0x297   : > { %v4329_v7 = vrot.slane %v13450_v52, 4  ;;  %v3890_v3 = vsel %vm13393_vm6, %v3205_v19, 0.0  ;;  %v4681_v27 = vshrl.u32 %v13218_v50, 16  ;;  %v15742_v39 = vsel %vm12821_vm9, %v15740_v44, %v15741_v9  ;;  %v15749_v44 = vld [vmem:[#allocation22_spill] sm:$0xff] }
 0x298   : > { %v4301_v10 = vshrl.u32 %v8673_v29, 16  ;;  %v4304_v61 = vshll.u32 %v8673_v29, 16  ;;  %v8676_v22 = vpack.c.bf16 %v3890_v3, %v3890_v3  ;;  %v3888_v33 = vsel %vm13404_vm5, %v3203_v41, 0.0  ;;  %v15747_v41 = vld [vmem:[#allocation47_spill] sm:$0xff] }
 0x299   : > { %vm13467_vm11 = vcmp.lt.s32.totalorder %v15742_v39, 16  ;;  %v8674_v63 = vpack.c.bf16 %v3888_v33, %v3888_v33  ;;  %v4680_v2 = vsel %vm4620_vm15, %v4675_v25, %v4679_v34  ;;  %v3208_v12 = vmax.f32 %v3172_v36, 0.0  ;;  %v13475_v48 = vld [vmem:[#allocation2 + $0x68] sm:$0xff]  }
 0x29a   : > { %v4683_v42 = vor.u32 %v4681_v27, %v4679_v34  ;;  %v4303_v56 = vrot.slane %v4301_v10, 6  ;;  %v4306_v23 = vrot.slane %v4304_v61, 7  ;;  %v4331_v16 = vshrl.u32 %v8676_v22, 16  ;;  %9645 = vmatprep.mubr.bf16.mxu1 %v4680_v2  ;;  %9710 = vmatmul.mubr.bf16.gmra.mxu0 %v13475_v48 }
 0x29b   : > { %v4334_v14 = vshll.u32 %v8676_v22, 16  ;;  %v4311_v1 = vshrl.u32 %v8674_v63, 16  ;;  %v4314_v4 = vshll.u32 %v8674_v63, 16  ;;  %v3893_v35 = vsel %vm13431_vm3, %v3208_v12, 0.0 }
 0x29c   : > { %v4685_v43 = vshll.u32 %v13221_v26, 16  ;;  %v4307_v62 = vor.u32 %v4306_v23, %v4303_v56  ;;  %v4333_v47 = vrot.slane %v4331_v16, 6  ;;  %v8679_v53 = vpack.c.bf16 %v3893_v35, %v3893_v35  ;;  %v13477_v28 = vld [vmem:[#allocation2 + $0x70] sm:$0xff]  }
 0x29d   : > { %v4336_v54 = vrot.slane %v4334_v14, 7  ;;  %v4313_v0 = vrot.slane %v4311_v1, 6  ;;  %v4316_v18 = vrot.slane %v4314_v4, 7  ;;  %v3127_v57 = vadd.f32 %v3080_v30, %v15745_v38  ;;  %9713 = vmatprep.mubr.bf16.mxu0 %v13477_v28  ;;  %v15748_v30 = vld [vmem:[#allocation27_spill] sm:$0xff] }
 0x29e   : > { %v4687_v45 = vrot.slane %v4685_v43, 1  ;;  %v4308_v58 = vsel %vm12902_vm13, %v4299_v32, %v4307_v62  ;;  %v4309_v6 = vrot.slane %v4307_v62, 4  ;;  %v4361_v13 = vshrl.u32 %v8679_v53, 16  ;;  %v15746_v32 = vld [vmem:[#allocation35_spill] sm:$0xff] }
 0x29f   : > { %v13485_v46 = vor.u32 %v4336_v54, %v4333_v47  ;;  %4447 = vst [vmem:[#allocation2 + $0x78] sm:$0xf] %v4308_v58  ;;  %v4317_v5 = vor.u32 %v4316_v18, %v4313_v0  ;;  %v4364_v8 = vshll.u32 %v8679_v53, 16  ;;  %v3170_v19 = vadd.f32 %v13330_v51, %v3127_v57 }
 0x2a0   : > { %v4688_v15 = vsel %vm4620_vm15, %v4683_v42, %v4687_v45  ;;  %v4363_v37 = vrot.slane %v4361_v13, 6  ;;  %v3130_v29 = vadd.f32 %v9616_v60, %v15746_v32  ;;  %vm3678_vm9 = vcmp.ne.s32.totalorder %v15747_v41, 0  ;;  %v4455_v32 = vld [vmem:[#allocation2 + $0x98] sm:$0x3] }
 0x2a1   : > { %v4338_v55 = vsel %vm12902_vm13, %v4329_v7, %v13485_v46  ;;  %9646 = vmatmul.mubr.bf16.gmra.mxu1 %v4688_v15  ;;  %v4318_v25 = vsel %vm12902_vm13, %v4309_v6, %v4317_v5  ;;  %v4319_v34 = vrot.slane %v4317_v5, 4  ;;  %v4366_v3 = vrot.slane %v4364_v8, 7 }
 0x2a2   : > { %4450 = vst [vmem:[#allocation2 + $0x84] sm:$0xf] %v4338_v55  ;;  %v3206_v36 = vmax.f32 %v3170_v19, 0.0  ;;  %4448 = vst [vmem:[#allocation2 + $0x7c] sm:$0xf] %v4318_v25  ;;  %v3173_v27 = vadd.f32 %v13330_v51, %v3130_v29  ;;  %vm3714_vm8 = vcmp.lt.s32.totalorder %v15747_v41, 0  ;;  %v3128_v10 = vadd.f32 %v3083_v59, %v15748_v30 }
 0x2a3   : > { %v3786_v7 = vadd.s32 18, %v15747_v41  ;;  %v4328_v61 = vsel %vm12902_vm13, %v4319_v34, %v13450_v52  ;;  %v13504_v22 = vor.u32 %v4366_v3, %v4363_v37  ;;  %vm3750_vm10 = vmand %vm3714_vm8, %vm3678_vm9  ;;  %v15750_v9 = vshrl.u32 %v15749_v44, 4  ;;  %v15751_v52 = vld [vmem:[#allocation29_spill] sm:$0xff] }
 0x2a4   : > { %v3891_v33 = vsel %vm13467_vm11, %v3206_v36, 0.0  ;;  %4449 = vst [vmem:[#allocation2 + $0x80] sm:$0xf] %v4328_v61  ;;  %v3209_v2 = vmax.f32 %v3173_v27, 0.0  ;;  %v3171_v42 = vadd.f32 %v13330_v51, %v3128_v10  ;;  %v4339_v56 = vrot.slane %v13485_v46, 4 }
 0x2a5   : > { %v3617_v39 = vmul.u32 18, %v15750_v9  ;;  %v8677_v63 = vpack.c.bf16 %v3891_v33, %v3891_v33  ;;  %v3822_v12 = vsel %vm3750_vm10, %v3786_v7, %v15747_v41  ;;  %v4689_v16 = vshrl.u32 %v13221_v26, 16 }
 0x2a6   : > { %vm3858_vm7 = vcmp.lt.s32.totalorder %v3822_v12, 16  ;;  %v3207_v4 = vmax.f32 %v3171_v42, 0.0  ;;  %v4369_v60 = vrot.slane %v13504_v22, 4  ;;  %v4693_v51 = vshll.u32 %v13311_v24, 16 }
 0x2a7   : > { %v3618_v23 = vsub.s32 %v15751_v52, %v3617_v39  ;;  %v4341_v11 = vshrl.u32 %v8677_v63, 16  ;;  %v4344_v14 = vshll.u32 %v8677_v63, 16  ;;  %v3894_v1 = vsel %vm3858_vm7, %v3209_v2, 0.0  ;;  %v15752_v63 = vld [vmem:[#allocation18_spill] sm:$0xff] }
 0x2a8   : > { %v8680_v35 = vpack.c.bf16 %v3894_v1, %v3894_v1  ;;  %v4691_v18 = vor.u32 %v4689_v16, %v4687_v45  ;;  %v4695_v58 = vrot.slane %v4693_v51, 1  ;;  %v4701_v6 = vshll.u32 %v13323_v31, 16  ;;  %v5592_v51 = vld [vmem:[#allocation2 + $0x8] sm:$0xe] }
 0x2a9   : > { %vm3676_vm14 = vcmp.ne.s32.totalorder %v3618_v23, 0  ;;  %vm3712_vm12 = vcmp.lt.s32.totalorder %v3618_v23, 0  ;;  %v3784_v43 = vadd.s32 18, %v3618_v23  ;;  %v4343_v62 = vrot.slane %v4341_v11, 6  ;;  %v13517_v38 = vld [vmem:[#allocation2 + $0x78] sm:$0xff]  }
 0x2aa   : > { %v4346_v47 = vrot.slane %v4344_v14, 7  ;;  %vm3748_vm0 = vmand %vm3712_vm12, %vm3676_vm14  ;;  %v4371_v54 = vshrl.u32 %v8680_v35, 16  ;;  %v4374_v53 = vshll.u32 %v8680_v35, 16  ;;  %v4697_v8 = vshrl.u32 %v13311_v24, 16  ;;  %9714 = vmatmul.mubr.bf16.gmra.mxu0 %v13517_v38  ;;  %v5255_v11 = vld [vmem:[#allocation2] sm:$0xe] }
 0x2ab   : > { %v3820_v0 = vsel %vm3748_vm0, %v3784_v43, %v3618_v23  ;;  %v4696_v45 = vsel %vm4620_vm15, %v4691_v18, %v4695_v58  ;;  %v4705_v59 = vshrl.u32 %v13323_v31, 16  ;;  %v13526_v55 = vld [vmem:[#allocation2 + $0x80] sm:$0xff]   ;;  %v4703_v41 = vrot.slane %v4701_v6, 1 }
 0x2ac   : > { %v4347_v57 = vor.u32 %v4346_v47, %v4343_v62  ;;  %vm3856_vm2 = vcmp.lt.s32.totalorder %v3820_v0, 16  ;;  %v4373_v46 = vrot.slane %v4371_v54, 6  ;;  %v4376_v13 = vrot.slane %v4374_v53, 7  ;;  %9649 = vmatprep.mubr.bf16.mxu1 %v4696_v45  ;;  %9717 = vmatprep.mubr.bf16.mxu0 %v13526_v55  ;;  %v13566_v45 = vld [vmem:[#allocation2 + $0x30] sm:$0xff]  }
 0x2ad   : > { %v3892_v5 = vsel %vm3856_vm2, %v3207_v4, 0.0  ;;  %v4699_v29 = vor.u32 %v4697_v8, %v4695_v58  ;;  %v4709_v25 = vshll.u32 %v13408_v17, 16  ;;  %v4713_v36 = vshrl.u32 %v13408_v17, 16  ;;  %v13542_v4 = vld [vmem:[#allocation2 + $0xc] sm:$0xf] }
 0x2ae   : > { %v4348_v15 = vsel %vm12902_vm13, %v4339_v56, %v4347_v57  ;;  %v8678_v19 = vpack.c.bf16 %v3892_v5, %v3892_v5  ;;  %v4377_v37 = vor.u32 %v4376_v13, %v4373_v46  ;;  %v4717_v27 = vshll.u32 %v13415_v21, 16  ;;  %v10410_v58 = vld [vmem:[#allocation2 + $0x4] sm:$0xf] }
 0x2af   : > { %4451 = vst [vmem:[#allocation2 + $0x88] sm:$0xf] %v4348_v15  ;;  %v4704_v30 = vsel %vm4620_vm15, %v4699_v29, %v4703_v41  ;;  %v4707_v10 = vor.u32 %v4705_v59, %v4703_v41  ;;  %v4711_v44 = vrot.slane %v4709_v25, 1  ;;  %v4349_v39 = vrot.slane %v4347_v57, 4  ;;  %v13555_v57 = vld [vmem:[#allocation2 + $0x10] sm:$0xff]   ;;  %v13570_v29 = vld [vmem:[#allocation2 + $0x38] sm:$0xff]  }
 0x2b0   : > { %v4351_v34 = vshrl.u32 %v8678_v19, 16  ;;  %v4354_v3 = vshll.u32 %v8678_v19, 16  ;;  %v4378_v31 = vsel %vm12902_vm13, %v4369_v60, %v4377_v37  ;;  %v4379_v7 = vrot.slane %v4377_v37, 4  ;;  %9650 = vmatmul.mubr.bf16.gmra.mxu1 %v4704_v30  ;;  %v13564_v19 = vld [vmem:[#allocation2 + $0x28] sm:$0xff]  }
 0x2b1   : > { %4454 = vst [vmem:[#allocation2 + $0x94] sm:$0xf] %v4378_v31  ;;  %v4719_v9 = vrot.slane %v4717_v27, 1  ;;  %vm15753_vm1 = vnez %v15752_v63  ;;  %v4721_v12 = vshrl.u32 %v13415_v21, 16  ;;  %v4725_v42 = vshll.u32 %v13475_v48, 16 }
 0x2b2   : > { %v4353_v61 = vrot.slane %v4351_v34, 6  ;;  %v4356_v33 = vrot.slane %v4354_v3, 7  ;;  %v4456_v2 = vsel %vm15753_vm1, %v4379_v7, %v4455_v32  ;;  %v4712_v52 = vsel %vm4620_vm15, %v4707_v10, %v4711_v44  ;;  %v10411_v7 = vld [vmem:[#allocation2 + $0x8] sm:$0xff]  }
 0x2b3   : > { %4457 = vst [vmem:[#allocation2 + $0x98] sm:$0x3] %v4456_v2  ;;  %v4715_v23 = vor.u32 %v4713_v36, %v4711_v44  ;;  %v4733_v16 = vshll.u32 %v13477_v28, 16  ;;  %9653 = vmatprep.mubr.bf16.mxu1 %v4712_v52  ;;  %v4727_v14 = vrot.slane %v4725_v42, 1  ;;  %v4741_v1 = vshll.u32 %v13517_v38, 16  ;;  %v13573_v36 = vld [vmem:[#allocation2 + $0x40] sm:$0xff]  }
 0x2b4   : > { %v4357_v56 = vor.u32 %v4356_v33, %v4353_v61  ;;  %v4723_v60 = vor.u32 %v4721_v12, %v4719_v9  ;;  %v4729_v47 = vshrl.u32 %v13475_v48, 16  ;;  %v13553_v18 = vcombine.low %v5592_v51, %v13542_v4  ;;  %v10412_v33 = vld [vmem:[#allocation2 + $0x10] sm:$0xff]  }
 0x2b5   : > { %v4720_v62 = vsel %vm4620_vm15, %v4715_v23, %v4719_v9  ;;  %v4735_v0 = vrot.slane %v4733_v16, 1  ;;  %v8542_v6 = vcombine.low %v5255_v11, %v10410_v58  ;;  %v4743_v46 = vrot.slane %v4741_v1, 1  ;;  %v10413_v9 = vld [vmem:[#allocation2 + $0x18] sm:$0xff]   ;;  %v10414_v16 = vld [vmem:[#allocation2 + $0x20] sm:$0xff]  }
 0x2b6   : > { %v4358_v35 = vsel %vm12902_vm13, %v4349_v39, %v4357_v56  ;;  %v4359_v43 = vrot.slane %v4357_v56, 4  ;;  %v4728_v53 = vsel %vm4620_vm15, %v4723_v60, %v4727_v14  ;;  %v4749_v13 = vshll.u32 %v13526_v55, 16 }
 0x2b7   : > { %4452 = vst [vmem:[#allocation2 + $0x8c] sm:$0xf] %v4358_v35  ;;  %v4731_v5 = vor.u32 %v4729_v47, %v4727_v14  ;;  %v4737_v8 = vshrl.u32 %v13477_v28, 16  ;;  %v4745_v15 = vshrl.u32 %v13517_v38, 16  ;;  %v5738_v37 = vrot.slane %v13553_v18, 1  ;;  %v10415_v14 = vld [vmem:[#allocation2 + $0x28] sm:$0xff]  }
 0x2b8   : > { %v4368_v54 = vsel %vm12902_vm13, %v4359_v43, %v13504_v22  ;;  %9654 = vmatmul.mubr.bf16.gmra.mxu1 %v4720_v62  ;;  %v13561_v22 = vld [vmem:[#allocation2 + $0x20] sm:$0xff]   ;;  %vm5275_vm13 = vcmask 1046528   ;;  %v5739_v32 = vrot.slane %v13555_v57, 1  ;;  %v4751_v25 = vrot.slane %v4749_v13, 1  ;;  %v10416_v47 = vld [vmem:[#allocation2 + $0x30] sm:$0xff]  }
 0x2b9   : > { %4453 = vst [vmem:[#allocation2 + $0x90] sm:$0xf] %v4368_v54  ;;  %9657 = vmatprep.mubr.bf16.mxu1 %v4728_v53  ;;  %v4739_v59 = vor.u32 %v4737_v8, %v4735_v0  ;;  %v4747_v41 = vor.u32 %v4745_v15, %v4743_v46  ;;  %v4753_v34 = vshrl.u32 %v13526_v55, 16  ;;  %v5276_v3 = vrot.slane %v8542_v6, 1  ;;  %v13594_v54 = vld [vmem:[#allocation2 + $0x48] sm:$0xff]  }
 0x2ba   : > { %v4736_v27 = vsel %vm4620_vm15, %v4731_v5, %v4735_v0  ;;  %v5277_v30 = vrot.slane %v10411_v7, 1  ;;  %v5741_v10 = vrot.slane %v13559_v49, 1  ;;  %v5743_v61 = vrot.slane %v13561_v22, 1 }
 0x2bb   : > { %v5279_v44 = vrot.slane %v10412_v33, 1  ;;  %v5281_v39 = vrot.slane %v10413_v9, 1  ;;  %v5745_v63 = vrot.slane %v13564_v19, 1  ;;  %v5747_v2 = vrot.slane %v13566_v45, 1  ;;  %v10346_v33 = vld [vmem:[%s15124_s3 + $0x170] sm:$0xff]  }
 0x2bc   : > { %v4744_v12 = vsel %vm4620_vm15, %v4739_v59, %v4743_v46  ;;  %v5740_v42 = vsel %vm5275_vm13, %v5738_v37, %v5739_v32  ;;  %v4752_v23 = vsel %vm4620_vm15, %v4747_v41, %v4751_v25  ;;  %v5283_v11 = vrot.slane %v10414_v16, 1  ;;  %v13601_v46 = vld [vmem:[#allocation2 + $0x50] sm:$0xff]   ;;  %v13611_v59 = vld [vmem:[#allocation2 + $0x58] sm:$0xff]  }
 0x2bd   : > { %v5285_v1 = vrot.slane %v10415_v14, 1  ;;  %v5749_v35 = vrot.slane %v13570_v29, 1  ;;  %v4755_v43 = vor.u32 %v4753_v34, %v4751_v25  ;;  %v13591_v60 = vsel %vm5275_vm13, %v5276_v3, %v5277_v30  ;;  %v13623_v34 = vld [vmem:[#allocation2 + $0x60] sm:$0xff]   ;;  %v13625_v3 = vld [vmem:[#allocation2 + $0x68] sm:$0xff]  }
 0x2be   : > { %v13576_v31 = vld [vmem:[#allocation2 + $0x88] sm:$0xff]   ;;  %v5751_v62 = vrot.slane %v13573_v36, 1  ;;  %v5287_v51 = vrot.slane %v10416_v47, 1  ;;  %v5742_v0 = vsel %vm5275_vm13, %v5739_v32, %v5741_v10  ;;  %v5744_v58 = vsel %vm5275_vm13, %v5741_v10, %v5743_v61 }
 0x2bf   : > { %9718 = vmatmul.mubr.bf16.gmra.mxu0 %v13576_v31  ;;  %v4757_v56 = vshll.u32 %v13576_v31, 16  ;;  %v13599_v6 = vsel %vm5275_vm13, %v5277_v30, %v5279_v44  ;;  %v13605_v5 = vsel %vm5275_vm13, %v5279_v44, %v5281_v39  ;;  %v5746_v8 = vsel %vm5275_vm13, %v5743_v61, %v5745_v63  ;;  %v13635_v61 = vld [vmem:[#allocation2 + $0x70] sm:$0xff]  }
 0x2c0   : > { %v13586_v52 = vld [vmem:[#allocation2 + $0x90] ss:$0 sps:$4 sm:$0x11]   ;;  %9789 = vmatprep.mubr.bf16.mxu0 %v5740_v42  ;;  %9658 = vmatmul.mubr.bf16.gmra.mxu1 %v4736_v27  ;;  %v13609_v15 = vsel %vm5275_vm13, %v5745_v63, %v5747_v2  ;;  %v4761_v37 = vshrl.u32 %v13576_v31, 16  ;;  %v13615_v32 = vsel %vm5275_vm13, %v5281_v39, %v5283_v11  ;;  %v13618_v41 = vsel %vm5275_vm13, %v5283_v11, %v5285_v1 }
 0x2c1   : > { %9661 = vmatprep.mubr.bf16.mxu1 %v4744_v12  ;;  %v4759_v53 = vrot.slane %v4757_v56, 1  ;;  %v4765_v13 = vshll.u32 %v13586_v52, 16  ;;  %v13621_v25 = vsel %vm5275_vm13, %v5747_v2, %v5749_v35  ;;  %v13628_v27 = vsel %vm5275_vm13, %v5749_v35, %v5751_v62 }
 0x2c2   : > { %v13631_v7 = vsel %vm5275_vm13, %v5285_v1, %v5287_v51  ;;  %v15246_v30 = vrot.slane %v13218_v50, 1  ;;  %v5753_v10 = vrot.slane %v13594_v54, 1  ;;  %v5755_v9 = vrot.slane %v13601_v46, 1 }
 0x2c3   : > { %v4760_v44 = vsel %vm4620_vm15, %v4755_v43, %v4759_v53  ;;  %v5299_v63 = vrot.slane %v13415_v21, 1  ;;  %v4763_v2 = vor.u32 %v4761_v37, %v4759_v53  ;;  %v4767_v12 = vrot.slane %v4765_v13, 1  ;;  %v10348_v43 = vld [vmem:[%s15124_s3 + $0x168] sm:$0xff]  }
 0x2c4   : > { %v15244_v42 = vrot.slane %v13408_v17, 1  ;;  %v5301_v56 = vrot.slane %v13475_v48, 1  ;;  %v5757_v11 = vrot.slane %v13611_v59, 1  ;;  %v5759_v14 = vrot.slane %v13623_v34, 1 }
 0x2c5   : > { %v5761_v1 = vrot.slane %v13625_v3, 1  ;;  %v15245_v21 = vrot.slane %v13635_v61, 1  ;;  %v5303_v47 = vrot.slane %v13477_v28, 1  ;;  %v13673_v53 = vsel %vm5275_vm13, %v5753_v10, %v5755_v9 }
 0x2c6   : > { %v13655_v35 = vsel %vm5275_vm13, %v15244_v42, %v5299_v63  ;;  %v13658_v48 = vsel %vm5275_vm13, %v5299_v63, %v5301_v56  ;;  %v5307_v28 = vrot.slane %v13526_v55, 1  ;;  %v5309_v37 = vrot.slane %v13576_v31, 1  ;;  %v10351_v31 = vld [vmem:[%s15124_s3 + $0x160] sm:$0xff]  }
 0x2c7   : > { %9790 = vmatmul.mubr.bf16.vlgmr.msra.gmra.mxu0 %v5742_v0  ;;  %v5305_v0 = vrot.slane %v13517_v38, 1  ;;  %v13678_v13 = vsel %vm5275_vm13, %v5301_v56, %v5303_v47  ;;  %v13697_v55 = vsel %vm5275_vm13, %v5761_v1, %v15245_v21  ;;  %vm6074_vm4 = vsmask.f32 6400 }
 0x2c8   : > { %9793 = vmatprep.mubr.bf16.mxu0 %v5744_v58  ;;  %9878 = vmatpush3.bf16.msra.mxu0 %v13263_v40  ;;  %v13667_v40 = vsel %vm5275_vm13, %v5287_v51, %v15246_v30  ;;  %v4768_v58 = vsel %vm4620_vm15, %v4763_v2, %v4767_v12  ;;  %v13683_v51 = vsel %vm5275_vm13, %v5755_v9, %v5757_v11  ;;  %vm6544_vm15 = vcmask 1045504  }
 0x2c9   : > { %9662 = vmatmul.mubr.bf16.gmra.mxu1 %v4752_v23  ;;  %9879 = vmatprep.subr.bf16.mxu0 %v10346_v33  ;;  %v13670_v23 = vsel %vm5275_vm13, %v5751_v62, %v5753_v10  ;;  %v13686_v62 = vsel %vm5275_vm13, %v5757_v11, %v5759_v14  ;;  %v13689_v10 = vsel %vm5275_vm13, %v5759_v14, %v5761_v1  ;;  %v6546_v2 = vrot.slane %v13555_v57, 2 }
 0x2ca   : > { %9665 = vmatprep.mubr.bf16.mxu1 %v4760_v44  ;;  %v13692_v38 = vsel %vm5275_vm13, %v5303_v47, %v5305_v0  ;;  %v6524_v44 = vld [vmem:[#allocation2 + $0x8] sm:$0xc]  ;;  %v13703_v9 = vsel %vm5275_vm13, %v5305_v0, %v5307_v28  ;;  %v13706_v63 = vsel %vm5275_vm13, %v5307_v28, %v5309_v37  ;;  %v5311_v12 = vrot.slane %v13586_v52, 1 }
 0x2cb   : > { %v6076_v11 = vshrl.u32 %v13553_v18, 16  ;;  %v6079_v14 = vshll.u32 %v13553_v18, 16  ;;  %v6084_v1 = vshrl.u32 %v13555_v57, 16  ;;  %v6548_v0 = vrot.slane %v13559_v49, 2  ;;  %v10353_v18 = vld [vmem:[%s15124_s3 + $0x158] sm:$0xff]  }
 0x2cc   : > { %9880 = vmatpush3.bf16.msra.mxu0 %v10346_v33  ;;  %v8587_v33 = vcombine.low %v6524_v44, %v13542_v4  ;;  %v13716_v47 = vsel %vm5275_vm13, %v5309_v37, %v5311_v12  ;;  %v6087_v4 = vshll.u32 %v13555_v57, 16  ;;  %v6550_v52 = vrot.slane %v13561_v22, 2 }
 0x2cd   : > { %9881 = vmatprep.subr.bf16.mxu0 %v10348_v43  ;;  %v6086_v28 = vrot.slane %v6084_v1, 1  ;;  %v13729_v57 = vsel %vm6544_vm15, %v6546_v2, %v6548_v0  ;;  %v6096_v12 = vshll.u32 %v13559_v49, 16  ;;  %vm7813_vm6 = vcmask 1044480  }
 0x2ce   : > { %v6545_v56 = vrot.slane %v8587_v33, 2  ;;  %v6089_v37 = vrot.slane %v6087_v4, 2  ;;  %v13732_v44 = vsel %vm6544_vm15, %v6548_v0, %v6550_v52  ;;  %v10355_v4 = vld [vmem:[%s15124_s3 + $0x150] sm:$0xff]   ;;  %vm7343_vm5 = vsmask.f32 5376 }
 0x2cf   : > { %9794 = vmatmul.mubr.bf16.gmra.mxu0 %v5746_v8  ;;  %v6098_v0 = vrot.slane %v6096_v12, 2 }
 0x2d0   : > { %9797 = vmatprep.mubr.bf16.mxu0 %v13609_v15  ;;  %9882 = vmatpush3.bf16.msra.mxu0 %v10348_v43  ;;  %v13725_v8 = vsel %vm6544_vm15, %v6545_v56, %v6546_v2  ;;  %v6078_v15 = vrot.slane %v6076_v11, 1  ;;  %v6081_v43 = vrot.slane %v6079_v14, 2  ;;  %v6102_v56 = vshrl.u32 %v13561_v22, 16 }
 0x2d1   : > { %9666 = vmatmul.mubr.bf16.gmra.mxu1 %v4768_v58  ;;  %9883 = vmatprep.subr.bf16.mxu0 %v10351_v31  ;;  %v6093_v58 = vshrl.u32 %v13559_v49, 16  ;;  %v6105_v11 = vshll.u32 %v13561_v22, 16  ;;  %v6090_v14 = vor.u32 %v6089_v37, %v6086_v28  ;;  %v6554_v2 = vrot.slane %v13566_v45, 2  ;;  %v10334_v37 = vld [vmem:[%s15124_s3 + $0x130] sm:$0xff]  }
 0x2d2   : > { %9737 = vmatprep.mubr.bf16.mxu1 %v13591_v60  ;;  %v6082_v33 = vor.u32 %v6081_v43, %v6078_v15  ;;  %v6552_v60 = vrot.slane %v13564_v19, 2  ;;  %v6104_v15 = vrot.slane %v6102_v56, 1  ;;  %v6111_v49 = vshrl.u32 %v13564_v19, 16 }
 0x2d3   : > { %v6095_v1 = vrot.slane %v6093_v58, 1  ;;  %v6107_v43 = vrot.slane %v6105_v11, 2  ;;  %v6114_v28 = vshll.u32 %v13564_v19, 16  ;;  %v6123_v11 = vshll.u32 %v13566_v45, 16 }
 0x2d4   : > { %9884 = vmatpush3.bf16.msra.mxu0 %v10351_v31  ;;  %v13745_v42 = vsel %vm6074_vm4, %v6082_v33, %v6090_v14  ;;  %v13748_v22 = vsel %vm6544_vm15, %v6550_v52, %v6552_v60  ;;  %v13751_v31 = vsel %vm6544_vm15, %v6552_v60, %v6554_v2  ;;  %v6113_v56 = vrot.slane %v6111_v49, 1 }
 0x2d5   : > { %9885 = vmatprep.subr.bf16.mxu0 %v10353_v18  ;;  %v6099_v58 = vor.u32 %v6098_v0, %v6095_v1  ;;  %v6108_v12 = vor.u32 %v6107_v43, %v6104_v15  ;;  %v6120_v33 = vshrl.u32 %v13566_v45, 16  ;;  %v6116_v52 = vrot.slane %v6114_v28, 2 }
 0x2d6   : > { %v6556_v60 = vrot.slane %v13570_v29, 2  ;;  %v6558_v19 = vrot.slane %v13573_v36, 2  ;;  %v6129_v45 = vshrl.u32 %v13570_v29, 16  ;;  %v6132_v28 = vshll.u32 %v13570_v29, 16 }
 0x2d7   : > { %9798 = vmatmul.mubr.bf16.gmra.mxu0 %v13621_v25  ;;  %v10358_v25 = vld [vmem:[%s15124_s3 + $0x148] sm:$0xff]   ;;  %v13768_v1 = vsel %vm6074_vm4, %v6090_v14, %v6099_v58  ;;  %v6117_v0 = vor.u32 %v6116_v52, %v6113_v56  ;;  %v6560_v56 = vrot.slane %v13594_v54, 2  ;;  %v10360_v52 = vld [vmem:[%s15124_s3 + $0x140] sm:$0xff]  }
 0x2d8   : > { %9801 = vmatprep.mubr.bf16.mxu0 %v13628_v27  ;;  %9886 = vmatpush3.bf16.msra.mxu0 %v10353_v18  ;;  %v13771_v27 = vsel %vm6074_vm4, %v6099_v58, %v6108_v12  ;;  %v6122_v18 = vrot.slane %v6120_v33, 1  ;;  %v13777_v15 = vsel %vm6544_vm15, %v6554_v2, %v6556_v60  ;;  %v13780_v43 = vsel %vm6544_vm15, %v6556_v60, %v6558_v19  ;;  %v10338_v14 = vld [vmem:[%s15124_s3 + $0x128] sm:$0xff]  }
 0x2d9   : > { %9738 = vmatmul.mubr.bf16.vlgmr.msra.gmra.mxu1 %v13599_v6  ;;  %9887 = vmatprep.subr.bf16.mxu0 %v10355_v4  ;;  %v6125_v6 = vrot.slane %v6123_v11, 2  ;;  %v6131_v49 = vrot.slane %v6129_v45, 1  ;;  %v13789_v58 = vsel %vm6074_vm4, %v6108_v12, %v6117_v0  ;;  %v6562_v33 = vrot.slane %v13601_v46, 2 }
 0x2da   : > { %9741 = vmatprep.mubr.bf16.mxu1 %v13605_v5  ;;  %9826 = vmatpush3.bf16.msra.mxu1 %v13385_v20  ;;  %v6138_v5 = vshrl.u32 %v13573_v36, 16  ;;  %v6141_v20 = vshll.u32 %v13573_v36, 16  ;;  %v6134_v11 = vrot.slane %v6132_v28, 2  ;;  %v6147_v45 = vshrl.u32 %v13594_v54, 16 }
 0x2db   : > { %9827 = vmatprep.subr.bf16.mxu1 %v10334_v37  ;;  %v6126_v2 = vor.u32 %v6125_v6, %v6122_v18  ;;  %v13804_v12 = vsel %vm6544_vm15, %v6560_v56, %v6562_v33  ;;  %v6150_v18 = vshll.u32 %v13594_v54, 16  ;;  %v10341_v6 = vld [vmem:[%s15124_s3 + $0x120] sm:$0xff]   ;;  %v6564_v54 = vrot.slane %v13611_v59, 2 }
 0x2dc   : > { %9888 = vmatpush3.bf16.msra.mxu0 %v10355_v4  ;;  %v6140_v29 = vrot.slane %v6138_v5, 1  ;;  %v6143_v60 = vrot.slane %v6141_v20, 2  ;;  %v13801_v4 = vsel %vm6544_vm15, %v6558_v19, %v6560_v56  ;;  %v6135_v28 = vor.u32 %v6134_v11, %v6131_v49 }
 0x2dd   : > { %9889 = vmatprep.subr.bf16.mxu0 %v10358_v25  ;;  %v13798_v36 = vsel %vm6074_vm4, %v6117_v0, %v6126_v2  ;;  %v6149_v5 = vrot.slane %v6147_v45, 1  ;;  %v6156_v0 = vshrl.u32 %v13601_v46, 16  ;;  %v6152_v19 = vrot.slane %v6150_v18, 2 }
 0x2de   : > { %9828 = vmatpush3.bf16.msra.mxu1 %v10334_v37  ;;  %v6144_v37 = vor.u32 %v6143_v60, %v6140_v29  ;;  %v6159_v20 = vshll.u32 %v13601_v46, 16  ;;  %v13818_v56 = vsel %vm6074_vm4, %v6126_v2, %v6135_v28  ;;  %v13827_v46 = vld [vmem:[%s15124_s3 + $0x1f8] sm:$0xff]   ;;  %v13831_v29 = vsel %vm6544_vm15, %v6562_v33, %v6564_v54 }
 0x2df   : > { %9802 = vmatmul.mubr.bf16.gmra.mxu0 %v13670_v23  ;;  %9829 = vmatprep.subr.bf16.mxu1 %v10338_v14  ;;  %v6566_v23 = vrot.slane %v13623_v34, 2  ;;  %v6158_v11 = vrot.slane %v6156_v0, 1  ;;  %v10345_v60 = vld [vmem:[%s15124_s3 + $0x118] sm:$0xff]   ;;  %v6168_v18 = vshll.u32 %v13611_v59, 16 }
 0x2e0   : > { %9805 = vmatprep.mubr.bf16.mxu0 %v13673_v53  ;;  %9890 = vmatpush3.bf16.msra.mxu0 %v10358_v25  ;;  %v13821_v49 = vsel %vm6074_vm4, %v6135_v28, %v6144_v37  ;;  %v6165_v53 = vshrl.u32 %v13611_v59, 16  ;;  %v6153_v25 = vor.u32 %v6152_v19, %v6149_v5  ;;  %v6174_v28 = vshrl.u32 %v13623_v34, 16  ;;  %v13844_v5 = vld [vmem:[#allocation2 + $0x80] sm:$0xff]  }
 0x2e1   : > { %9742 = vmatmul.mubr.bf16.gmra.mxu1 %v13615_v32  ;;  %9891 = vmatprep.subr.bf16.mxu0 %v10360_v52  ;;  %v6161_v32 = vrot.slane %v6159_v20, 2  ;;  %v13834_v2 = vsel %vm6544_vm15, %v6564_v54, %v6566_v23  ;;  %v6568_v19 = vrot.slane %v13625_v3, 2  ;;  %v6570_v20 = vrot.slane %v13635_v61, 2 }
 0x2e2   : > { %9745 = vmatprep.mubr.bf16.mxu1 %v13618_v41  ;;  %9830 = vmatpush3.bf16.msra.mxu1 %v10338_v14  ;;  %v6167_v45 = vrot.slane %v6165_v53, 1  ;;  %v6177_v41 = vshll.u32 %v13623_v34, 16  ;;  %v13842_v14 = vld [vmem:[#allocation2 + $0x78] sm:$0xff]   ;;  %v13847_v33 = vsel %vm6074_vm4, %v6144_v37, %v6153_v25  ;;  %v6170_v54 = vrot.slane %v6168_v18, 2 }
 0x2e3   : > { %9831 = vmatprep.subr.bf16.mxu1 %v10341_v6  ;;  %v6162_v0 = vor.u32 %v6161_v32, %v6158_v11  ;;  %v6176_v53 = vrot.slane %v6174_v28, 1  ;;  %v6183_v34 = vshrl.u32 %v13625_v3, 16  ;;  %v13860_v37 = vsel %vm6544_vm15, %v6568_v19, %v6570_v20  ;;  %v10350_v32 = vld [vmem:[%s15124_s3 + $0x110] sm:$0xff]  }
 0x2e4   : > { %9892 = vmatpush3.bf16.msra.mxu0 %v10360_v52  ;;  %v6179_v59 = vrot.slane %v6177_v41, 2  ;;  %v13857_v52 = vsel %vm6544_vm15, %v6566_v23, %v6568_v19  ;;  %v6186_v11 = vshll.u32 %v13625_v3, 16  ;;  %v6171_v18 = vor.u32 %v6170_v54, %v6167_v45  ;;  %v13869_v23 = vld [vmem:[#allocation2 + $0x88] sm:$0xff]   ;;  %v13871_v41 = vld [vmem:[#allocation2 + $0x90] sm:$0xff]  }
 0x2e5   : > { %9981 = vmatprep.subr.bf16.mxu0 %v13827_v46  ;;  %v13854_v21 = vsel %vm6074_vm4, %v6153_v25, %v6162_v0  ;;  %v6185_v28 = vrot.slane %v6183_v34, 1  ;;  %v6192_v25 = vshrl.u32 %v13635_v61, 16  ;;  %v6195_v3 = vshll.u32 %v13635_v61, 16 }
 0x2e6   : > { %9832 = vmatpush3.bf16.msra.mxu1 %v10341_v6  ;;  %v6180_v6 = vor.u32 %v6179_v59, %v6176_v53  ;;  %v6188_v19 = vrot.slane %v6186_v11, 2  ;;  %v6574_v16 = vrot.slane %v13844_v5, 2  ;;  %v13878_v45 = vsel %vm6074_vm4, %v6162_v0, %v6171_v18 }
 0x2e7   : > { %9806 = vmatmul.mubr.bf16.gmra.mxu0 %v13683_v51  ;;  %9833 = vmatprep.subr.bf16.mxu1 %v10345_v60  ;;  %v6572_v51 = vrot.slane %v13842_v14, 2  ;;  %15754 = vst [vmem:[#allocation42_spill] sm:$0xff] %v13878_v45  ;;  %v6201_v53 = vshrl.u32 %v13842_v14, 16  ;;  %v6197_v34 = vrot.slane %v6195_v3, 2 }
 0x2e8   : > { %9809 = vmatprep.mubr.bf16.mxu0 %v13686_v62  ;;  %v13881_v54 = vsel %vm6074_vm4, %v6171_v18, %v6180_v6  ;;  %v6194_v62 = vrot.slane %v6192_v25, 1  ;;  %v6189_v59 = vor.u32 %v6188_v19, %v6185_v28  ;;  %v6204_v18 = vshll.u32 %v13842_v14, 16 }
 0x2e9   : > { %9746 = vmatmul.mubr.bf16.gmra.mxu1 %v13631_v7  ;;  %15755 = vst [vmem:[#allocation37_spill] sm:$0xff] %v13881_v54  ;;  %v13886_v11 = vsel %vm6544_vm15, %v6570_v20, %v6572_v51  ;;  %v13889_v30 = vsel %vm6544_vm15, %v6572_v51, %v6574_v16  ;;  %v10356_v7 = vld [vmem:[%s15124_s3 + $0x108] sm:$0xff]   ;;  %v6203_v0 = vrot.slane %v6201_v53, 1  ;;  %v6210_v25 = vshrl.u32 %v13844_v5, 16 }
 0x2ea   : > { %9749 = vmatprep.mubr.bf16.mxu1 %v13667_v40  ;;  %9834 = vmatpush3.bf16.msra.mxu1 %v10345_v60  ;;  %v6213_v40 = vshll.u32 %v13844_v5, 16  ;;  %v13898_v60 = vsel %vm6074_vm4, %v6180_v6, %v6189_v59  ;;  %v6198_v20 = vor.u32 %v6197_v34, %v6194_v62  ;;  %v6576_v28 = vrot.slane %v13869_v23, 2 }
 0x2eb   : > { %9835 = vmatprep.subr.bf16.mxu1 %v10350_v32  ;;  %v15247_v19 = vrot.slane %v13871_v41, 2  ;;  %v6206_v3 = vrot.slane %v6204_v18, 2  ;;  %v6212_v51 = vrot.slane %v6210_v25, 1  ;;  %v6219_v54 = vshrl.u32 %v13869_v23, 16 }
 0x2ec   : > { %v6215_v39 = vrot.slane %v6213_v40, 2  ;;  %v13904_v53 = vsel %vm6074_vm4, %v6189_v59, %v6198_v20  ;;  %v13907_v45 = vsel %vm6544_vm15, %v6574_v16, %v6576_v28  ;;  %v6222_v62 = vshll.u32 %v13869_v23, 16  ;;  %v13920_v25 = vld [vmem:[#allocation2 + $0x98] ss:$0 sps:$4 sm:$0x33]  }
 0x2ed   : > { %15756 = vst [vmem:[#allocation50_spill] sm:$0xff] %v13904_v53  ;;  %v13912_v6 = vsel %vm6544_vm15, %v6576_v28, %v15247_v19  ;;  %v6207_v34 = vor.u32 %v6206_v3, %v6203_v0  ;;  %v6221_v18 = vrot.slane %v6219_v54, 1  ;;  %v6228_v16 = vshrl.u32 %v13871_v41, 16 }
 0x2ee   : > { %9836 = vmatpush3.bf16.msra.mxu1 %v10350_v32  ;;  %v10361_v32 = vld [vmem:[%s15124_s3 + $0x100] sm:$0xff]   ;;  %v6216_v59 = vor.u32 %v6215_v39, %v6212_v51  ;;  %v15757_v40 = vrot.slane %v13221_v26, 1  ;;  %v15758_v28 = vrot.slane %v13218_v50, 1  ;;  %v6231_v53 = vshll.u32 %v13871_v41, 16  ;;  %v13945_v26 = vld [vmem:[%s15124_s3 + $0x1b8] sm:$0xff]  }
 0x2ef   : > { %9810 = vmatmul.mubr.bf16.gmra.mxu0 %v13689_v10  ;;  %9837 = vmatprep.subr.bf16.mxu1 %v10356_v7  ;;  %v6224_v10 = vrot.slane %v6222_v62, 2  ;;  %v15759_v0 = vrot.slane %v13311_v24, 1  ;;  %v13935_v3 = vsel %vm6074_vm4, %v6198_v20, %v6207_v34  ;;  %v6230_v50 = vrot.slane %v6228_v16, 1 }
 0x2f0   : > { %v5292_v19 = vsel %vm5275_vm13, %v15758_v28, %v15757_v40  ;;  %9813 = vmatprep.mubr.bf16.mxu0 %v13697_v55  ;;  %v15760_v39 = vmov %v15757_v40  ;;  %v13938_v51 = vsel %vm6074_vm4, %v6207_v34, %v6216_v59  ;;  %v5765_v55 = vrot.slane %v13842_v14, 1  ;;  %v10417_v28 = vld [vmem:[#allocation2 + $0x50] sm:$0xff]  }
 0x2f1   : > { %9750 = vmatmul.mubr.bf16.gmra.mxu1 %v5292_v19  ;;  %v5294_v54 = vsel %vm5275_vm13, %v15760_v39, %v15759_v0  ;;  %v6225_v62 = vor.u32 %v6224_v10, %v6221_v18  ;;  %v6233_v40 = vrot.slane %v6231_v53, 2  ;;  %v5767_v19 = vrot.slane %v13844_v5, 1 }
 0x2f2   : > { %9753 = vmatprep.mubr.bf16.mxu1 %v5294_v54  ;;  %9838 = vmatpush3.bf16.msra.mxu1 %v10356_v7  ;;  %v6237_v20 = vshrl.u32 %v13920_v25, 16  ;;  %v5295_v34 = vrot.slane %v10417_v28, 1  ;;  %v6240_v14 = vshll.u32 %v13920_v25, 16  ;;  %v15761_v53 = vrot.slane %v13635_v61, 1 }
 0x2f3   : > { %9839 = vmatprep.subr.bf16.mxu1 %v10361_v32  ;;  %v13949_v16 = vsel %vm6074_vm4, %v6216_v59, %v6225_v62  ;;  %v6234_v0 = vor.u32 %v6233_v40, %v6230_v50  ;;  %v5768_v39 = vsel %vm5275_vm13, %v5765_v55, %v5767_v19  ;;  %v15762_v59 = vrot.slane %v13311_v24, 1  ;;  %v10357_v28 = vld [vmem:[#allocation2 + $0x98] ss:$0 sps:$4 sm:$0x11]  }
 0x2f4   : > { %v6239_v7 = vrot.slane %v6237_v20, 1  ;;  %v5766_v5 = vsel %vm5275_vm13, %v15761_v53, %v5765_v55  ;;  %v6242_v10 = vrot.slane %v6240_v14, 2  ;;  %v15763_v61 = vrot.slane %v13408_v17, 1  ;;  %v14013_v14 = vld [vmem:[#allocation2 + $0x40] sm:$0xff]  }
 0x2f5   : > { %v13956_v18 = vsel %vm6074_vm4, %v6225_v62, %v6234_v0  ;;  %v5296_v54 = vsel %vm5275_vm13, %v15762_v59, %v5295_v34  ;;  %v5769_v62 = vrot.slane %v13869_v23, 1  ;;  %v5771_v55 = vrot.slane %v13871_v41, 1  ;;  %v10368_v23 = vld [vmem:[%s15124_s3 + $0x1f0] sm:$0xff]  }
 0x2f6   : > { %9840 = vmatpush3.bf16.msra.mxu1 %v10361_v32  ;;  %v6243_v50 = vor.u32 %v6242_v10, %v6239_v7  ;;  %v5298_v32 = vsel %vm5275_vm13, %v5295_v34, %v15763_v61  ;;  %v5773_v17 = vrot.slane %v10357_v28, 1  ;;  %v14015_v7 = vld [vmem:[#allocation2 + $0x48] sm:$0xff]   ;;  %v14027_v10 = vld [vmem:[#allocation2 + $0x58] sm:$0xff]  }
 0x2f7   : > { %9814 = vmatmul.mubr.bf16.gmra.mxu0 %v5766_v5  ;;  %9929 = vmatprep.subr.bf16.mxu1 %v13945_v26  ;;  %v5770_v20 = vsel %vm5275_vm13, %v5767_v19, %v5769_v62  ;;  %v5772_v24 = vsel %vm5275_vm13, %v5769_v62, %v5771_v55  ;;  %v14008_v19 = vld [vmem:[#allocation2 + $0x30] sm:$0xff]   ;;  %15765 = vst [vmem:[#allocation40_spill] sm:$0xff] %v14015_v7  ;;  %v14039_v62 = vld [vmem:[#allocation2 + $0x78] sm:$0xff]  }
 0x2f8   : > { %9817 = vmatprep.mubr.bf16.mxu0 %v5768_v39  ;;  %v13968_v40 = vsel %vm6074_vm4, %v6234_v0, %v6243_v50  ;;  %v5774_v34 = vsel %vm5275_vm13, %v5771_v55, %v5773_v17  ;;  %v14011_v0 = vld [vmem:[#allocation2 + $0x38] sm:$0xff]   ;;  %v14025_v5 = vld [vmem:[#allocation2 + $0x50] sm:$0xff]   ;;  %v14041_v55 = vld [vmem:[#allocation2 + $0x80] sm:$0xff]   ;;  %v7825_v17 = vrot.slane %v14013_v14, 3 }
 0x2f9   : > { %9754 = vmatmul.mubr.bf16.gmra.mxu1 %v5296_v54  ;;  %15764 = vst [vmem:[#allocation48_spill] sm:$0xff] %v13968_v40  ;;  %v14030_v54 = vld [vmem:[#allocation2 + $0x60] sm:$0xff]   ;;  %v14034_v50 = vld [vmem:[#allocation2 + $0x70] sm:$0xff]   ;;  %v7823_v28 = vrot.slane %v14011_v0, 3 }
 0x2fa   : > { %9757 = vmatprep.mubr.bf16.mxu1 %v5298_v32 }
 0x2ff   : > { %9818 = vmatmul.mubr.bf16.gmra.mxu0 %v5770_v20  ;;  %v14043_v20 = vld [vmem:[#allocation2 + $0x88] sm:$0xff]  }
 0x300   : > { %9821 = vmatprep.mubr.bf16.mxu0 %v5772_v24  ;;  %15767 = vst [vmem:[#allocation51_spill] sm:$0xff] %v14043_v20 }
 0x301   : > { %9758 = vmatmul.mubr.bf16.gmra.mxu1 %v13655_v35  ;;  %v13986_v35 = vpop.f32.mrf.mxu0 }
 0x302   : > { %9761 = vmatprep.mubr.bf16.mxu1 %v13658_v48  ;;  %v10369_v48 = vld [vmem:[%s15124_s3 + $0x1e8] sm:$0xff]  }
 0x307   : > { %9822 = vmatmul.mubr.bf16.gmra.mxu0 %v5774_v34  ;;  %v7827_v34 = vrot.slane %v14015_v7, 3  ;;  %v14075_v7 = vsel %vm7813_vm6, %v7823_v28, %v7825_v17 }
 0x308   : > { %9893 = vmatprep.mubr.bf16.mxu0 %v13725_v8  ;;  %v7793_v8 = vld [vmem:[#allocation2 + $0x10] sm:$0x8]  ;;  %15773 = vst [vmem:[#allocation59_spill] sm:$0xff] %v14075_v7  ;;  %v7841_v7 = vrot.slane %v14041_v55, 3 }
 0x309   : > { %9762 = vmatmul.mubr.bf16.gmra.mxu1 %v13678_v13  ;;  %v13992_v13 = vpop.f32.mrf.mxu0 }
 0x30a   : > { %9765 = vmatprep.mubr.bf16.mxu1 %v13692_v38  ;;  %v10371_v38 = vld [vmem:[%s15124_s3 + $0x1e0] sm:$0xff]  }
 0x30f   : > { %9894 = vmatmul.mubr.bf16.vlgmr.msra.gmra.mxu0 %v13729_v57  ;;  %v13997_v57 = vpop.f32.mrf.mxu0 }
 0x310   : > { %9897 = vmatprep.mubr.bf16.mxu0 %v13732_v44  ;;  %9982 = vmatpush3.bf16.msra.mxu0 %v13827_v46  ;;  %v14001_v44 = vld [vmem:[#allocation2 + $0x18] sm:$0xff]   ;;  %v14004_v46 = vld [vmem:[#allocation2 + $0x20] sm:$0xff]  }
 0x311   : > { %9766 = vmatmul.mubr.bf16.gmra.mxu1 %v13703_v9  ;;  %9983 = vmatprep.subr.bf16.mxu0 %v10368_v23  ;;  %v13999_v9 = vld [vmem:[#allocation2 + $0x14] sm:$0xf]  ;;  %v7815_v59 = vrot.slane %v14001_v44, 3  ;;  %v7817_v61 = vrot.slane %v14004_v46, 3 }
 0x312   : > { %9769 = vmatprep.mubr.bf16.mxu1 %v13706_v63  ;;  %v14006_v63 = vld [vmem:[#allocation2 + $0x28] sm:$0xff]   ;;  %v8632_v53 = vcombine.low %v7793_v8, %v13999_v9 }
 0x313   : > { %v7819_v32 = vrot.slane %v14006_v63, 3 }
 0x314   : > { %9984 = vmatpush3.bf16.msra.mxu0 %v10368_v23  ;;  %v7814_v39 = vrot.slane %v8632_v53, 3  ;;  %v10373_v23 = vld [vmem:[%s15124_s3 + $0x1d0] sm:$0xff]  }
 0x315   : > { %9985 = vmatprep.subr.bf16.mxu0 %v10369_v48  ;;  %v14060_v8 = vsel %vm7813_vm6, %v7817_v61, %v7819_v32 }
 0x316   : > { %v14046_v24 = vsel %vm7813_vm6, %v7814_v39, %v7815_v59  ;;  %15770 = vst [vmem:[#allocation53_spill] sm:$0xff] %v14060_v8  ;;  %v7833_v8 = vrot.slane %v14030_v54, 3 }
 0x317   : > { %9898 = vmatmul.mubr.bf16.gmra.mxu0 %v13748_v22  ;;  %v10372_v22 = vld [vmem:[%s15124_s3 + $0x1d8] sm:$0xff]   ;;  %15768 = vst [vmem:[#allocation43_spill] sm:$0xff] %v14046_v24 }
 0x318   : > { %9901 = vmatprep.mubr.bf16.mxu0 %v13751_v31  ;;  %9986 = vmatpush3.bf16.msra.mxu0 %v10369_v48  ;;  %v14023_v31 = vpop.f32.mrf.mxu0  ;;  %v14054_v48 = vld [vmem:[#allocation2 + $0x90] sm:$0xff]   ;;  %v14067_v24 = vld [vmem:[#allocation2 + $0x98] sm:$0xff]  }
 0x319   : > { %9770 = vmatmul.mubr.bf16.gmra.mxu1 %v13716_v47  ;;  %9987 = vmatprep.subr.bf16.mxu0 %v10371_v38  ;;  %15766 = vst [vmem:[#allocation6_spill] sm:$0xff] %v14023_v31  ;;  %v14032_v47 = vld [vmem:[#allocation2 + $0x68] sm:$0xff]   ;;  %v14069_v31 = vld [vmem:[#allocation2 + $0xa0] ss:$0 sps:$4 sm:$0x77]  }
 0x31a   : > { %9841 = vmatprep.mubr.bf16.mxu1 %v13745_v42  ;;  %v7821_v42 = vrot.slane %v14008_v19, 3  ;;  %v14065_v39 = vpop.f32.mrf.mxu0 }
 0x31c   : > { %9988 = vmatpush3.bf16.msra.mxu0 %v10371_v38  ;;  %v14057_v38 = vsel %vm7813_vm6, %v7815_v59, %v7817_v61  ;;  %v14063_v53 = vsel %vm7813_vm6, %v7819_v32, %v7821_v42  ;;  %v14072_v40 = vsel %vm7813_vm6, %v7821_v42, %v7823_v28  ;;  %v14078_v59 = vsel %vm7813_vm6, %v7825_v17, %v7827_v34  ;;  %v10363_v32 = vld [vmem:[%s15124_s3 + $0x1b0] sm:$0xff]   ;;  %v14090_v17 = vpop.f32.mrf.mxu0 }
 0x31d   : > { %9989 = vmatprep.subr.bf16.mxu0 %v10372_v22  ;;  %15769 = vst [vmem:[#allocation55_spill] sm:$0xff] %v14057_v38  ;;  %15771 = vst [vmem:[#allocation45_spill] sm:$0xff] %v14063_v53  ;;  %v7829_v61 = vrot.slane %v14025_v5, 3  ;;  %v7831_v53 = vrot.slane %v14027_v10, 3  ;;  %v7835_v42 = vrot.slane %v14032_v47, 3  ;;  %v7837_v28 = vrot.slane %v14034_v50, 3 }
 0x31e   : > { %15772 = vst [vmem:[#allocation62_spill] sm:$0xff] %v14072_v40  ;;  %15774 = vst [vmem:[#allocation56_spill] sm:$0xff] %v14078_v59  ;;  %v7843_v40 = vrot.slane %v14043_v20, 3  ;;  %v10376_v38 = vld [vmem:[%s15124_s3 + $0x1c8] sm:$0xff]  }
 0x31f   : > { %9902 = vmatmul.mubr.bf16.gmra.mxu0 %v13777_v15  ;;  %v14093_v59 = vsel %vm7813_vm6, %v7827_v34, %v7829_v61  ;;  %v7839_v15 = vrot.slane %v14039_v62, 3  ;;  %v14109_v34 = vsel %vm7813_vm6, %v7833_v8, %v7835_v42  ;;  %v14117_v20 = vsel %vm7813_vm6, %v7835_v42, %v7837_v28 }
 0x320   : > { %9905 = vmatprep.mubr.bf16.mxu0 %v13780_v43  ;;  %9990 = vmatpush3.bf16.msra.mxu0 %v10372_v22  ;;  %15775 = vst [vmem:[#allocation19_spill] sm:$0xff] %v14093_v59  ;;  %v14103_v43 = vsel %vm7813_vm6, %v7829_v61, %v7831_v53  ;;  %v14106_v22 = vsel %vm7813_vm6, %v7831_v53, %v7833_v8  ;;  %15778 = vst [vmem:[#allocation57_spill] sm:$0xff] %v14109_v34  ;;  %v7845_v59 = vrot.slane %v14054_v48, 3 }
 0x321   : > { %9842 = vmatmul.mubr.bf16.vlgmr.msra.gmra.mxu1 %v13768_v1  ;;  %9991 = vmatprep.subr.bf16.mxu0 %v10373_v23  ;;  %15776 = vst [vmem:[#allocation65_spill] sm:$0xff] %v14103_v43  ;;  %15777 = vst [vmem:[#allocation9_spill] sm:$0xff] %v14106_v22  ;;  %v14114_v1 = vpop.f32.mrf.mxu0  ;;  %v14120_v61 = vsel %vm7813_vm6, %v7837_v28, %v7839_v15  ;;  %v14123_v53 = vsel %vm7813_vm6, %v7839_v15, %v7841_v7  ;;  %v7847_v8 = vrot.slane %v14067_v24, 3 }
 0x322   : > { %9845 = vmatprep.mubr.bf16.mxu1 %v13771_v27  ;;  %9930 = vmatpush3.bf16.msra.mxu1 %v13945_v26  ;;  %15779 = vst [vmem:[#allocation12_spill] sm:$0xff] %v14117_v20  ;;  %15780 = vst [vmem:[#allocation63_spill] sm:$0xff] %v14120_v61  ;;  %v10364_v27 = vld [vmem:[%s15124_s3 + $0x1a8] sm:$0xff]   ;;  %v14130_v26 = vsel %vm7813_vm6, %v7841_v7, %v7843_v40  ;;  %v14133_v34 = vsel %vm7813_vm6, %v7843_v40, %v7845_v59  ;;  %v7849_v42 = vrot.slane %v14069_v31, 3  ;;  %v10365_v40 = vld [vmem:[%s15124_s3 + $0x1a0] sm:$0xff]  }
 0x323   : > { %15781 = vst [vmem:[#allocation60_spill] sm:$0xff] %v14123_v53  ;;  %9931 = vmatprep.subr.bf16.mxu1 %v10363_v32  ;;  %15782 = vst [vmem:[#allocation67_spill] sm:$0xff] %v14130_v26  ;;  %v14137_v28 = vsel %vm7813_vm6, %v7845_v59, %v7847_v8  ;;  %v14139_v15 = vpop.f32.mrf.mxu0  ;;  %v10379_v53 = vld [vmem:[%s15124_s3 + $0x1c0] sm:$0xff]  }
 0x324   : > { %15783 = vst [vmem:[#allocation66_spill] sm:$0xff] %v14133_v34  ;;  %9992 = vmatpush3.bf16.msra.mxu0 %v10373_v23  ;;  %15784 = vst [vmem:[#allocation61_spill] sm:$0xff] %v14137_v28  ;;  %v14145_v61 = vsel %vm7813_vm6, %v7847_v8, %v7849_v42  ;;  %v10380_v8 = vld [vmem:[%s15124_s3 + $0x180] sm:$0xff]  }
 0x325   : > { %9993 = vmatprep.subr.bf16.mxu0 %v10376_v38  ;;  %15785 = vst [vmem:[#allocation21_spill] sm:$0xff] %v14145_v61  ;;  %v14153_v7 = vpop.f32.mrf.mxu0  ;;  %v15788_v34 = vld [vmem:[#allocation50_spill] sm:$0xff] }
 0x326   : > { %9932 = vmatpush3.bf16.msra.mxu1 %v10363_v32 }
 0x327   : > { %9906 = vmatmul.mubr.bf16.gmra.mxu0 %v13801_v4  ;;  %9933 = vmatprep.subr.bf16.mxu1 %v10364_v27  ;;  %v10367_v4 = vld [vmem:[%s15124_s3 + $0x198] sm:$0xff]   ;;  %v14159_v23 = vpop.f32.mrf.mxu0 }
 0x328   : > { %9909 = vmatprep.mubr.bf16.mxu0 %v13804_v12  ;;  %9994 = vmatpush3.bf16.msra.mxu0 %v10376_v38 }
 0x329   : > { %9846 = vmatmul.mubr.bf16.gmra.mxu1 %v13789_v58  ;;  %9995 = vmatprep.subr.bf16.mxu0 %v10379_v53  ;;  %v14161_v59 = vpop.f32.mrf.mxu0  ;;  %v10370_v58 = vld [vmem:[%s15124_s3 + $0x190] sm:$0xff]  }
 0x32a   : > { %9849 = vmatprep.mubr.bf16.mxu1 %v13798_v36  ;;  %9934 = vmatpush3.bf16.msra.mxu1 %v10364_v27  ;;  %v6861_v27 = vld [vmem:[#allocation2 + $0x10] sm:$0xc] }
 0x32b   : > { %9935 = vmatprep.subr.bf16.mxu1 %v10365_v40  ;;  %v14168_v36 = vpop.f32.mrf.mxu0 }
 0x32c   : > { %9996 = vmatpush3.bf16.msra.mxu0 %v10379_v53  ;;  %v9635_v12 = vpop.f32.mrf.mxu1 }
 0x32d   : > { %v14176_v38 = vadd.f32 %v13986_v35, %v9635_v12  ;;  %v14178_v32 = vpop.f32.mrf.mxu0 }
 0x32e   : > { %9936 = vmatpush3.bf16.msra.mxu1 %v10365_v40  ;;  %v4869_v53 = vpop.f32.mrf.mxu1 }
 0x32f   : > { %9910 = vmatmul.mubr.bf16.gmra.mxu0 %v13831_v29  ;;  %9937 = vmatprep.subr.bf16.mxu1 %v10367_v4  ;;  %v10374_v29 = vld [vmem:[%s15124_s3 + $0x188] sm:$0xff]  }
 0x330   : > { %9913 = vmatprep.mubr.bf16.mxu0 %v13834_v2  ;;  %v14181_v2 = vadd.f32 %v13992_v13, %v4869_v53 }
 0x331   : > { %9850 = vmatmul.mubr.bf16.gmra.mxu1 %v13818_v56  ;;  %v14183_v56 = vpop.f32.mrf.mxu0 }
 0x332   : > { %9853 = vmatprep.mubr.bf16.mxu1 %v13821_v49  ;;  %9938 = vmatpush3.bf16.msra.mxu1 %v10367_v4  ;;  %v9636_v49 = vpop.f32.mrf.mxu1 }
 0x333   : > { %9939 = vmatprep.subr.bf16.mxu1 %v10370_v58  ;;  %v14191_v35 = vadd.f32 %v13997_v57, %v9636_v49  ;;  %v14195_v13 = vpop.f32.mrf.mxu0  ;;  %v15787_v57 = vld [vmem:[#allocation37_spill] sm:$0xff] }
 0x335   : > { %v14202_v42 = vpop.f32.mrf.mxu0 }
 0x336   : > { %9940 = vmatpush3.bf16.msra.mxu1 %v10370_v58  ;;  %v7353_v58 = vshrl.u32 %v14001_v44, 16 }
 0x337   : > { %9914 = vmatmul.mubr.bf16.gmra.mxu0 %v13857_v52  ;;  %9941 = vmatprep.subr.bf16.mxu1 %v10374_v29  ;;  %v14200_v52 = vld [vmem:[%s15124_s3 + $0x238] sm:$0xff]  }
 0x338   : > { %9917 = vmatprep.mubr.bf16.mxu0 %v13860_v37  ;;  %v14205_v37 = vpop.f32.mrf.mxu1 }
 0x339   : > { %9854 = vmatmul.mubr.bf16.gmra.mxu1 %v13847_v33  ;;  %v14211_v33 = vcombine.low %v6861_v27, %v13999_v9 }
 0x33a   : > { %9857 = vmatprep.mubr.bf16.mxu1 %v13854_v21  ;;  %9942 = vmatpush3.bf16.msra.mxu1 %v10374_v29  ;;  %v15786_v21 = vld [vmem:[#allocation42_spill] sm:$0xff]  ;;  %v14214_v40 = vpop.f32.mrf.mxu0 }
 0x33b   : > { %9943 = vmatprep.subr.bf16.mxu1 %v10380_v8  ;;  %v7345_v53 = vshrl.u32 %v14211_v33, 16  ;;  %v7348_v9 = vshll.u32 %v14211_v33, 16 }
 0x33c   : > { %v14221_v29 = vpop.f32.mrf.mxu0 }
 0x33d   : > { %v7350_v61 = vrot.slane %v7348_v9, 3 }
 0x33e   : > { %9944 = vmatpush3.bf16.msra.mxu1 %v10380_v8  ;;  %v7355_v8 = vrot.slane %v7353_v58, 2  ;;  %v7365_v58 = vshll.u32 %v14004_v46, 16 }
 0x33f   : > { %9918 = vmatmul.mubr.bf16.gmra.mxu0 %v13886_v11  ;;  %10033 = vmatprep.subr.bf16.mxu1 %v14200_v52  ;;  %v9639_v4 = vpop.f32.mrf.mxu1  ;;  %v7356_v11 = vshll.u32 %v14001_v44, 16 }
 0x340   : > { %9921 = vmatprep.mubr.bf16.mxu0 %v13889_v30  ;;  %v14219_v12 = vadd.f32 %v14065_v39, %v9639_v4  ;;  %v7347_v4 = vrot.slane %v7345_v53, 2  ;;  %v7367_v9 = vrot.slane %v7365_v58, 3  ;;  %v7392_v58 = vshll.u32 %v14011_v0, 16 }
 0x341   : > { %9858 = vmatmul.mubr.bf16.gmra.mxu1 %v15786_v21  ;;  %v4885_v30 = vpop.f32.mrf.mxu1  ;;  %v7358_v27 = vrot.slane %v7356_v11, 3  ;;  %v7374_v11 = vshll.u32 %v14006_v63, 16 }
 0x342   : > { %9861 = vmatprep.mubr.bf16.mxu1 %v15787_v57  ;;  %v14226_v49 = vadd.f32 %v14090_v17, %v4885_v30  ;;  %v14233_v57 = vpop.f32.mrf.mxu0  ;;  %v6580_v30 = vrot.slane %v13920_v25, 2  ;;  %v7351_v53 = vor.u32 %v7350_v61, %v7347_v4  ;;  %v7380_v61 = vshrl.u32 %v14008_v19, 16 }
 0x343   : > { %v9640_v21 = vpop.f32.mrf.mxu1 }
 0x344   : > { %v14231_v39 = vadd.f32 %v14114_v1, %v9640_v21  ;;  %v7371_v1 = vshrl.u32 %v14006_v63, 16 }
 0x345   : > { %v4888_v28 = vpop.f32.mrf.mxu1 }
 0x346   : > { %v14238_v17 = vadd.f32 %v14139_v15, %v4888_v28 }
 0x347   : > { %9922 = vmatmul.mubr.bf16.gmra.mxu0 %v13907_v45  ;;  %v7362_v45 = vshrl.u32 %v14004_v46, 16 }
 0x348   : > { %9925 = vmatprep.mubr.bf16.mxu0 %v13912_v6  ;;  %v7359_v6 = vor.u32 %v7358_v27, %v7355_v8  ;;  %v7373_v8 = vrot.slane %v7371_v1, 2  ;;  %v7376_v27 = vrot.slane %v7374_v11, 3 }
 0x349   : > { %9862 = vmatmul.mubr.bf16.gmra.mxu1 %v13898_v60  ;;  %v14245_v60 = vpop.f32.mrf.mxu0  ;;  %v7364_v15 = vrot.slane %v7362_v45, 2  ;;  %v7389_v45 = vshrl.u32 %v14011_v0, 16 }
 0x34a   : > { %9865 = vmatprep.mubr.bf16.mxu1 %v15788_v34  ;;  %v15789_v34 = vrot.slane %v13871_v41, 2  ;;  %v7360_v21 = vsel %vm7343_vm5, %v7351_v53, %v7359_v6  ;;  %v7383_v41 = vshll.u32 %v14008_v19, 16  ;;  %v7377_v4 = vor.u32 %v7376_v27, %v7373_v8 }
 0x34b   : > { %v14251_v26 = vpop.f32.mrf.mxu0  ;;  %v7368_v25 = vor.u32 %v7367_v9, %v7364_v15  ;;  %v7391_v9 = vrot.slane %v7389_v45, 2 }
 0x34c   : > { %v6581_v28 = vsel %vm6544_vm15, %v15789_v34, %v6580_v30  ;;  %v7385_v34 = vrot.slane %v7383_v41, 3  ;;  %v7401_v41 = vshll.u32 %v14013_v14, 16 }
 0x34d   : > { %v14259_v30 = vpop.f32.mrf.mxu0  ;;  %v7378_v15 = vsel %vm7343_vm5, %v7368_v25, %v7377_v4 }
 0x34f   : > { %9926 = vmatmul.mubr.bf16.gmra.mxu0 %v6581_v28  ;;  %v14269_v8 = vpop.f32.mrf.mxu0 }
 0x350   : > { %9997 = vmatprep.mubr.bf16.mxu0 %v7360_v21  ;;  %v7394_v21 = vrot.slane %v7392_v58, 3  ;;  %v15790_v58 = vld [vmem:[#allocation40_spill] sm:$0xff] }
 0x351   : > { %9866 = vmatmul.mubr.bf16.gmra.mxu1 %v13935_v3  ;;  %v7369_v3 = vsel %vm7343_vm5, %v7359_v6, %v7368_v25 }
 0x352   : > { %9869 = vmatprep.mubr.bf16.mxu1 %v13938_v51  ;;  %v7382_v51 = vrot.slane %v7380_v61, 2  ;;  %v7395_v45 = vor.u32 %v7394_v21, %v7391_v9  ;;  %v15791_v21 = vld [vmem:[#allocation48_spill] sm:$0xff] }
 0x353   : > { %v9643_v1 = vpop.f32.mrf.mxu1 }
 0x354   : > { %v14262_v11 = vadd.f32 %v14153_v7, %v9643_v1  ;;  %v7386_v61 = vor.u32 %v7385_v34, %v7382_v51  ;;  %v7407_v1 = vshrl.u32 %v15790_v58, 16  ;;  %v7403_v51 = vrot.slane %v7401_v41, 3 }
 0x355   : > { %v4901_v53 = vpop.f32.mrf.mxu1  ;;  %v7007_v34 = vrot.slane %v14211_v33, 2  ;;  %v7416_v33 = vshrl.u32 %v14025_v5, 16 }
 0x356   : > { %v14266_v28 = vadd.f32 %v14159_v23, %v4901_v53  ;;  %v7398_v23 = vshrl.u32 %v14013_v14, 16 }
 0x357   : > { %9998 = vmatmul.mubr.bf16.vlgmr.msra.gmra.mxu0 %v7369_v3  ;;  %v9644_v27 = vpop.f32.mrf.mxu1  ;;  %v7410_v3 = vshll.u32 %v15790_v58, 16 }
 0x358   : > { %10001 = vmatprep.mubr.bf16.mxu0 %v7378_v15  ;;  %v14273_v7 = vadd.f32 %v14161_v59, %v9644_v27  ;;  %v7008_v59 = vrot.slane %v14001_v44, 2  ;;  %v7400_v53 = vrot.slane %v7398_v23, 2  ;;  %v7396_v15 = vsel %vm7343_vm5, %v7386_v61, %v7395_v45 }
 0x359   : > { %9870 = vmatmul.mubr.bf16.gmra.mxu1 %v13949_v16  ;;  %v4904_v6 = vpop.f32.mrf.mxu1  ;;  %v14283_v16 = vpop.f32.mrf.mxu0  ;;  %v7412_v27 = vrot.slane %v7410_v3, 3  ;;  %v7419_v23 = vshll.u32 %v14025_v5, 16  ;;  %v7428_v3 = vshll.u32 %v14027_v10, 16 }
 0x35a   : > { %9873 = vmatprep.mubr.bf16.mxu1 %v13956_v18  ;;  %v14279_v25 = vadd.f32 %v14168_v36, %v4904_v6  ;;  %v7387_v18 = vsel %vm7343_vm5, %v7377_v4, %v7386_v61  ;;  %v7409_v36 = vrot.slane %v7407_v1, 2  ;;  %v7009_v6 = vsel %vm6544_vm15, %v7007_v34, %v7008_v59 }
 0x35b   : > { %v14289_v9 = vpop.f32.mrf.mxu0  ;;  %v7404_v4 = vor.u32 %v7403_v51, %v7400_v53  ;;  %v7425_v1 = vshrl.u32 %v14027_v10, 16  ;;  %v7010_v34 = vrot.slane %v14004_v46, 2 }
 0x35c   : > { %v7413_v41 = vor.u32 %v7412_v27, %v7409_v36  ;;  %v7418_v36 = vrot.slane %v7416_v33, 2  ;;  %v7421_v27 = vrot.slane %v7419_v23, 3  ;;  %v7434_v23 = vshrl.u32 %v14030_v54, 16 }
 0x35d   : > { %v7405_v51 = vsel %vm7343_vm5, %v7395_v45, %v7404_v4 }
 0x35e   : > { %v7414_v46 = vsel %vm7343_vm5, %v7404_v4, %v7413_v41  ;;  %v7422_v33 = vor.u32 %v7421_v27, %v7418_v36  ;;  %v7437_v4 = vshll.u32 %v14030_v54, 16  ;;  %v7436_v36 = vrot.slane %v7434_v23, 2 }
 0x35f   : > { %10002 = vmatmul.mubr.bf16.gmra.mxu0 %v7387_v18  ;;  %v14300_v18 = vpop.f32.mrf.mxu0  ;;  %v7455_v23 = vshll.u32 %v14034_v50, 16 }
 0x360   : > { %10005 = vmatprep.mubr.bf16.mxu0 %v7396_v15  ;;  %v7439_v27 = vrot.slane %v7437_v4, 3 }
 0x361   : > { %9874 = vmatmul.mubr.bf16.gmra.mxu1 %v15791_v21  ;;  %v9647_v20 = vpop.f32.mrf.mxu1  ;;  %v14315_v22 = vpop.f32.mrf.mxu0 }
 0x362   : > { %9945 = vmatprep.mubr.bf16.mxu1 %v7009_v6  ;;  %v14294_v44 = vadd.f32 %v14178_v32, %v9647_v20  ;;  %v7012_v20 = vrot.slane %v14006_v63, 2  ;;  %v10387_v6 = vld [vmem:[%s15124_s3 + $0x230] sm:$0xff]   ;;  %v7011_v63 = vsel %vm6544_vm15, %v7008_v59, %v7010_v34  ;;  %v10391_v59 = vld [vmem:[%s15124_s3 + $0x228] sm:$0xff]  }
 0x363   : > { %v4917_v61 = vpop.f32.mrf.mxu1 }
 0x364   : > { %v14304_v15 = vadd.f32 %v14183_v56, %v4917_v61  ;;  %v7427_v56 = vrot.slane %v7425_v1, 2  ;;  %v7430_v61 = vrot.slane %v7428_v3, 3  ;;  %v7013_v45 = vsel %vm6544_vm15, %v7010_v34, %v7012_v20 }
 0x365   : > { %v9648_v32 = vpop.f32.mrf.mxu1  ;;  %v7443_v3 = vshrl.u32 %v14032_v47, 16  ;;  %v7446_v34 = vshll.u32 %v14032_v47, 16 }
 0x366   : > { %v14308_v53 = vadd.f32 %v14195_v13, %v9648_v32  ;;  %v7431_v1 = vor.u32 %v7430_v61, %v7427_v56  ;;  %v7014_v32 = vrot.slane %v14008_v19, 2 }
 0x367   : > { %v4920_v21 = vpop.f32.mrf.mxu1  ;;  %10006 = vmatmul.mubr.bf16.gmra.mxu0 %v7405_v51  ;;  %v7423_v51 = vsel %vm7343_vm5, %v7413_v41, %v7422_v33  ;;  %v7445_v56 = vrot.slane %v7443_v3, 2  ;;  %v7448_v61 = vrot.slane %v7446_v34, 3 }
 0x368   : > { %v14319_v13 = vadd.f32 %v14202_v42, %v4920_v21  ;;  %10009 = vmatprep.mubr.bf16.mxu0 %v7414_v46  ;;  %v14328_v42 = vpop.f32.mrf.mxu0  ;;  %v7432_v21 = vsel %vm7343_vm5, %v7422_v33, %v7431_v1  ;;  %v7015_v19 = vsel %vm6544_vm15, %v7012_v20, %v7014_v32  ;;  %v7452_v33 = vshrl.u32 %v14034_v50, 16 }
 0x369   : > { %9946 = vmatmul.mubr.bf16.vlgmr.msra.gmra.mxu1 %v7011_v63  ;;  %v10394_v63 = vld [vmem:[%s15124_s3 + $0x220] sm:$0xff]   ;;  %v7449_v3 = vor.u32 %v7448_v61, %v7445_v56  ;;  %v7461_v20 = vshrl.u32 %v14039_v62, 16 }
 0x36a   : > { %9949 = vmatprep.mubr.bf16.mxu1 %v7013_v45  ;;  %10034 = vmatpush3.bf16.msra.mxu1 %v14200_v52  ;;  %v7016_v52 = vrot.slane %v14011_v0, 2  ;;  %v14336_v46 = vpop.f32.mrf.mxu0  ;;  %v7440_v45 = vor.u32 %v7439_v27, %v7436_v36  ;;  %v7020_v27 = vrot.slane %v15790_v58, 2  ;;  %v7454_v61 = vrot.slane %v7452_v33, 2 }
 0x36b   : > { %10035 = vmatprep.subr.bf16.mxu1 %v10387_v6 }
 0x36c   : > { %v7017_v41 = vsel %vm6544_vm15, %v7014_v32, %v7016_v52  ;;  %v14348_v34 = vpop.f32.mrf.mxu0  ;;  %v7018_v32 = vrot.slane %v14013_v14, 2  ;;  %v7441_v56 = vsel %vm7343_vm5, %v7431_v1, %v7440_v45  ;;  %v10400_v14 = vld [vmem:[%s15124_s3 + $0x210] sm:$0xff]  }
 0x36e   : > { %10036 = vmatpush3.bf16.msra.mxu1 %v10387_v6  ;;  %v14365_v43 = vpop.f32.mrf.mxu0  ;;  %v7019_v58 = vsel %vm6544_vm15, %v7016_v52, %v7018_v32  ;;  %v15792_v52 = vld [vmem:[#allocation51_spill] sm:$0xff] }
 0x36f   : > { %10010 = vmatmul.mubr.bf16.gmra.mxu0 %v7423_v51  ;;  %10037 = vmatprep.subr.bf16.mxu1 %v10391_v59  ;;  %v7464_v51 = vshll.u32 %v14039_v62, 16 }
 0x370   : > { %10013 = vmatprep.mubr.bf16.mxu0 %v7432_v21  ;;  %v9651_v0 = vpop.f32.mrf.mxu1 }
 0x371   : > { %9950 = vmatmul.mubr.bf16.gmra.mxu1 %v7015_v19  ;;  %v14344_v6 = vadd.f32 %v14214_v40, %v9651_v0  ;;  %v10397_v40 = vld [vmem:[%s15124_s3 + $0x218] sm:$0xff]   ;;  %v7457_v19 = vrot.slane %v7455_v23, 3  ;;  %v7470_v23 = vshrl.u32 %v14041_v55, 16 }
 0x372   : > { %9953 = vmatprep.mubr.bf16.mxu1 %v7017_v41  ;;  %10038 = vmatpush3.bf16.msra.mxu1 %v10391_v59  ;;  %v4933_v4 = vpop.f32.mrf.mxu1  ;;  %v7450_v41 = vsel %vm7343_vm5, %v7440_v45, %v7449_v3 }
 0x373   : > { %10039 = vmatprep.subr.bf16.mxu1 %v10394_v63  ;;  %v14356_v59 = vadd.f32 %v14221_v29, %v4933_v4  ;;  %v7463_v29 = vrot.slane %v7461_v20, 2  ;;  %v7466_v4 = vrot.slane %v7464_v51, 3  ;;  %v7458_v33 = vor.u32 %v7457_v19, %v7454_v61 }
 0x374   : > { %v9652_v36 = vpop.f32.mrf.mxu1  ;;  %v7473_v20 = vshll.u32 %v14041_v55, 16  ;;  %v7024_v19 = vrot.slane %v14027_v10, 2 }
 0x375   : > { %v14361_v21 = vadd.f32 %v14233_v57, %v9652_v36  ;;  %v7467_v36 = vor.u32 %v7466_v4, %v7463_v29  ;;  %v7459_v29 = vsel %vm7343_vm5, %v7449_v3, %v7458_v33  ;;  %v7472_v4 = vrot.slane %v7470_v23, 2 }
 0x376   : > { %10040 = vmatpush3.bf16.msra.mxu1 %v10394_v63  ;;  %v4936_v0 = vpop.f32.mrf.mxu1  ;;  %v7021_v63 = vsel %vm6544_vm15, %v7018_v32, %v7020_v27 }
 0x377   : > { %10014 = vmatmul.mubr.bf16.gmra.mxu0 %v7441_v56  ;;  %10041 = vmatprep.subr.bf16.mxu1 %v10397_v40  ;;  %v14371_v57 = vadd.f32 %v14245_v60, %v4936_v0  ;;  %v14380_v60 = vpop.f32.mrf.mxu0  ;;  %v7479_v56 = vshrl.u32 %v15792_v52, 16  ;;  %v7482_v0 = vshll.u32 %v15792_v52, 16 }
 0x378   : > { %10017 = vmatprep.mubr.bf16.mxu0 %v7450_v41  ;;  %v9655_v1 = vpop.f32.mrf.mxu1 }
 0x379   : > { %9954 = vmatmul.mubr.bf16.gmra.mxu1 %v7019_v58  ;;  %v14376_v45 = vadd.f32 %v14251_v26, %v9655_v1  ;;  %v10403_v26 = vld [vmem:[%s15124_s3 + $0x208] sm:$0xff]   ;;  %v7475_v58 = vrot.slane %v7473_v20, 3 }
 0x37a   : > { %9957 = vmatprep.mubr.bf16.mxu1 %v7021_v63  ;;  %10042 = vmatpush3.bf16.msra.mxu1 %v10397_v40  ;;  %v4949_v51 = vpop.f32.mrf.mxu1  ;;  %v7022_v40 = vrot.slane %v14025_v5, 2  ;;  %v10405_v5 = vld [vmem:[%s15124_s3 + $0x200] sm:$0xff]  }
 0x37b   : > { %10043 = vmatprep.subr.bf16.mxu1 %v10400_v14  ;;  %v14388_v32 = vadd.f32 %v14259_v30, %v4949_v51  ;;  %v7468_v30 = vsel %vm7343_vm5, %v7458_v33, %v7467_v36  ;;  %v7481_v51 = vrot.slane %v7479_v56, 2  ;;  %v7476_v20 = vor.u32 %v7475_v58, %v7472_v4 }
 0x37c   : > { %v9656_v61 = vpop.f32.mrf.mxu1  ;;  %v7488_v56 = vshrl.u32 %v14054_v48, 16  ;;  %v7497_v4 = vshrl.u32 %v14067_v24, 16  ;;  %v7500_v58 = vshll.u32 %v14067_v24, 16 }
 0x37d   : > { %15793 = vst [vmem:[#allocation13_spill] sm:$0xff] %v14388_v32  ;;  %v14393_v41 = vadd.f32 %v14269_v8, %v9656_v61  ;;  %v7484_v32 = vrot.slane %v7482_v0, 3  ;;  %v7023_v8 = vsel %vm6544_vm15, %v7020_v27, %v7022_v40  ;;  %v7491_v0 = vshll.u32 %v14054_v48, 16 }
 0x37e   : > { %10044 = vmatpush3.bf16.msra.mxu1 %v10400_v14  ;;  %v4952_v1 = vpop.f32.mrf.mxu1  ;;  %v7025_v14 = vsel %vm6544_vm15, %v7022_v40, %v7024_v19  ;;  %v7026_v40 = vrot.slane %v14030_v54, 2 }
 0x37f   : > { %v14396_v63 = vpop.f32.mrf.mxu0  ;;  %10018 = vmatmul.mubr.bf16.gmra.mxu0 %v7459_v29  ;;  %10045 = vmatprep.subr.bf16.mxu1 %v10403_v26  ;;  %v14403_v10 = vadd.f32 %v14283_v16, %v4952_v1  ;;  %v7485_v27 = vor.u32 %v7484_v32, %v7481_v51  ;;  %v7477_v32 = vsel %vm7343_vm5, %v7467_v36, %v7476_v20  ;;  %v7490_v51 = vrot.slane %v7488_v56, 2 }
 0x380   : > { %10021 = vmatprep.mubr.bf16.mxu0 %v7468_v30  ;;  %v9659_v3 = vpop.f32.mrf.mxu1  ;;  %v7499_v56 = vrot.slane %v7497_v4, 2  ;;  %v7032_v4 = vrot.slane %v14039_v62, 2 }
 0x381   : > { %9958 = vmatmul.mubr.bf16.gmra.mxu1 %v7023_v8  ;;  %v14407_v23 = vpop.f32.mrf.mxu0  ;;  %v14410_v33 = vadd.f32 %v14289_v9, %v9659_v3  ;;  %v7028_v9 = vrot.slane %v14032_v47, 2  ;;  %v7493_v8 = vrot.slane %v7491_v0, 3  ;;  %v7486_v54 = vsel %vm7343_vm5, %v7476_v20, %v7485_v27 }
 0x382   : > { %9961 = vmatprep.mubr.bf16.mxu1 %v7025_v14  ;;  %10046 = vmatpush3.bf16.msra.mxu1 %v10403_v26  ;;  %v4965_v16 = vpop.f32.mrf.mxu1  ;;  %v7027_v14 = vsel %vm6544_vm15, %v7024_v19, %v7026_v40  ;;  %v7506_v20 = vshrl.u32 %v14069_v31, 16 }
 0x383   : > { %v14414_v61 = vpop.f32.mrf.mxu0  ;;  %10047 = vmatprep.subr.bf16.mxu1 %v10405_v5  ;;  %v14417_v29 = vadd.f32 %v14300_v18, %v4965_v16 }
 0x384   : > { %v9660_v1 = vpop.f32.mrf.mxu1 }
 0x385   : > { %v14421_v30 = vpop.f32.mrf.mxu0  ;;  %v14426_v26 = vadd.f32 %v14315_v22, %v9660_v1  ;;  %v7029_v22 = vsel %vm6544_vm15, %v7026_v40, %v7028_v9  ;;  %v7494_v1 = vor.u32 %v7493_v8, %v7490_v51  ;;  %v7030_v40 = vrot.slane %v14034_v50, 2 }
 0x386   : > { %10048 = vmatpush3.bf16.msra.mxu1 %v10405_v5  ;;  %v4968_v18 = vpop.f32.mrf.mxu1  ;;  %v7502_v5 = vrot.slane %v7500_v58, 3  ;;  %v7508_v8 = vrot.slane %v7506_v20, 2 }
 0x387   : > { %v14429_v3 = vpop.f32.mrf.mxu0  ;;  %10022 = vmatmul.mubr.bf16.gmra.mxu0 %v7477_v32  ;;  %v14433_v47 = vadd.f32 %v14328_v42, %v4968_v18  ;;  %v7509_v42 = vshll.u32 %v14069_v31, 16  ;;  %v7495_v51 = vsel %vm7343_vm5, %v7485_v27, %v7494_v1  ;;  %v7031_v62 = vsel %vm6544_vm15, %v7028_v9, %v7030_v40 }
 0x388   : > { %10025 = vmatprep.mubr.bf16.mxu0 %v7486_v54  ;;  %v7036_v9 = vrot.slane %v15792_v52, 2 }
 0x389   : > { %v9663_v16 = vpop.f32.mrf.mxu1  ;;  %9962 = vmatmul.mubr.bf16.gmra.mxu1 %v7027_v14  ;;  %v14437_v36 = vpop.f32.mrf.mxu0  ;;  %v7511_v31 = vrot.slane %v7509_v42, 3 }
 0x38a   : > { %v14440_v0 = vadd.f32 %v14336_v46, %v9663_v16  ;;  %9965 = vmatprep.mubr.bf16.mxu1 %v7029_v22  ;;  %v7503_v46 = vor.u32 %v7502_v5, %v7499_v56 }
 0x38b   : > { %v4981_v32 = vpop.f32.mrf.mxu1  ;;  %v9792_v19 = vpop.f32.mrf.mxu0  ;;  %v7512_v5 = vor.u32 %v7511_v31, %v7508_v8 }
 0x38c   : > { %v14445_v18 = vadd.f32 %v14348_v34, %v4981_v32  ;;  %v7504_v34 = vsel %vm7343_vm5, %v7494_v1, %v7503_v46 }
 0x38d   : > { %v9664_v54 = vpop.f32.mrf.mxu1  ;;  %v14449_v58 = vpop.f32.mrf.mxu0 }
 0x38e   : > { %v14452_v14 = vadd.f32 %v14365_v43, %v9664_v54  ;;  %v7033_v43 = vsel %vm6544_vm15, %v7030_v40, %v7032_v4  ;;  %v7513_v40 = vsel %vm7343_vm5, %v7503_v46, %v7512_v5 }
 0x38f   : > { %v4984_v16 = vpop.f32.mrf.mxu1  ;;  %v9795_v22 = vpop.f32.mrf.mxu0  ;;  %10026 = vmatmul.mubr.bf16.gmra.mxu0 %v7495_v51 }
 0x390   : > { %v14457_v50 = vadd.f32 %v14380_v60, %v4984_v16  ;;  %10029 = vmatprep.mubr.bf16.mxu0 %v7504_v34  ;;  %v7034_v60 = vrot.slane %v14041_v55, 2 }
 0x391   : > { %v9667_v32 = vpop.f32.mrf.mxu1  ;;  %9966 = vmatmul.mubr.bf16.gmra.mxu1 %v7031_v62  ;;  %v5891_v56 = vpop.f32.mrf.mxu0 }
 0x392   : > { %v14462_v27 = vadd.f32 %v14396_v63, %v9667_v32  ;;  %9969 = vmatprep.mubr.bf16.mxu1 %v7033_v43  ;;  %v7037_v55 = vsel %vm6544_vm15, %v7034_v60, %v7036_v9  ;;  %v7038_v43 = vrot.slane %v14054_v48, 2 }
 0x393   : > { %v4997_v20 = vpop.f32.mrf.mxu1  ;;  %v9796_v42 = vpop.f32.mrf.mxu0 }
 0x394   : > { %v14465_v1 = vadd.f32 %v14407_v23, %v4997_v20  ;;  %v7035_v23 = vsel %vm6544_vm15, %v7032_v4, %v7034_v60  ;;  %v15794_v4 = vld [vmem:[#allocation6_spill] sm:$0xff]  ;;  %v7039_v48 = vsel %vm6544_vm15, %v7036_v9, %v7038_v43 }
 0x395   : > { %v9668_v54 = vpop.f32.mrf.mxu1  ;;  %v5894_v51 = vpop.f32.mrf.mxu0 }
 0x396   : > { %v14470_v16 = vadd.f32 %v14414_v61, %v9668_v54  ;;  %v5116_v54 = vadd.f32 %v15794_v4, %v14205_v37 }
 0x397   : > { %v5000_v63 = vpop.f32.mrf.mxu1  ;;  %v9799_v34 = vpop.f32.mrf.mxu0  ;;  %10030 = vmatmul.mubr.bf16.gmra.mxu0 %v7513_v40 }
 0x398   : > { %v14474_v8 = vadd.f32 %v14421_v30, %v5000_v63  ;;  %v7040_v63 = vrot.slane %v14067_v24, 2 }
 0x399   : > { %v9739_v31 = vpop.f32.mrf.mxu1  ;;  %9970 = vmatmul.mubr.bf16.gmra.mxu1 %v7035_v23  ;;  %v5907_v62 = vpop.f32.mrf.mxu0 }
 0x39a   : > { %v5558_v52 = vadd.f32 %v9739_v31, %v14176_v38  ;;  %9973 = vmatprep.mubr.bf16.mxu1 %v7037_v55  ;;  %v10406_v31 = vld [vmem:[#allocation2 + $0xa0] ss:$0 sps:$4 sm:$0x33]  }
 0x39b   : > { %v5413_v61 = vpop.f32.mrf.mxu1  ;;  %v9800_v32 = vpop.f32.mrf.mxu0 }
 0x39c   : > { %v5556_v46 = vadd.f32 %v5413_v61, %v14181_v2  ;;  %v14482_v5 = vadd.f32 %v14429_v3, %v5558_v52  ;;  %v7041_v52 = vsel %vm6544_vm15, %v7038_v43, %v7040_v63 }
 0x39d   : > { %v9740_v30 = vpop.f32.mrf.mxu1  ;;  %v5910_v20 = vpop.f32.mrf.mxu0 }
 0x39e   : > { %v5559_v60 = vadd.f32 %v9740_v30, %v14191_v35  ;;  %v14488_v40 = vadd.f32 %v14437_v36, %v5556_v46  ;;  %v7042_v30 = vrot.slane %v10406_v31, 2  ;;  %v15795_v31 = vld [vmem:[#allocation43_spill] sm:$0xff] }
 0x39f   : > { %v5416_v38 = vpop.f32.mrf.mxu1  ;;  %v9803_v23 = vpop.f32.mrf.mxu0 }
 0x3a0   : > { %v5557_v2 = vadd.f32 %v5416_v38, %v5116_v54  ;;  %v14492_v3 = vadd.f32 %v9792_v19, %v5559_v60 }
 0x3a1   : > { %v9743_v55 = vpop.f32.mrf.mxu1  ;;  %9974 = vmatmul.mubr.bf16.gmra.mxu1 %v7039_v48  ;;  %v5923_v37 = vpop.f32.mrf.mxu0 }
 0x3a2   : > { %v5562_v35 = vadd.f32 %v9743_v55, %v14219_v12  ;;  %9977 = vmatprep.mubr.bf16.mxu1 %v7041_v52  ;;  %v14497_v36 = vadd.f32 %v14449_v58, %v5557_v2  ;;  %v7043_v58 = vsel %vm6544_vm15, %v7040_v63, %v7042_v30 }
 0x3a3   : > { %v5429_v61 = vpop.f32.mrf.mxu1  ;;  %v9804_v24 = vpop.f32.mrf.mxu0 }
 0x3a4   : > { %v5560_v46 = vadd.f32 %v5429_v61, %v14226_v49  ;;  %v14500_v9 = vadd.f32 %v9795_v22, %v5562_v35 }
 0x3a5   : > { %v9744_v19 = vpop.f32.mrf.mxu1  ;;  %v5926_v4 = vpop.f32.mrf.mxu0 }
 0x3a6   : > { %v5563_v54 = vadd.f32 %v9744_v19, %v14231_v39  ;;  %v14503_v60 = vadd.f32 %v5891_v56, %v5560_v46 }
 0x3a7   : > { %v5432_v43 = vpop.f32.mrf.mxu1  ;;  %v9807_v38 = vpop.f32.mrf.mxu0 }
 0x3a8   : > { %v5561_v12 = vadd.f32 %v5432_v43, %v14238_v17  ;;  %v14507_v2 = vadd.f32 %v9796_v42, %v5563_v54  ;;  %v15796_v54 = vld [vmem:[#allocation55_spill] sm:$0xff] }
 0x3a9   : > { %v9747_v48 = vpop.f32.mrf.mxu1  ;;  %9978 = vmatmul.mubr.bf16.gmra.mxu1 %v7043_v58  ;;  %v5939_v49 = vpop.f32.mrf.mxu0 }
 0x3aa   : > { %v5566_v22 = vadd.f32 %v9747_v48, %v14262_v11  ;;  %10049 = vmatprep.mubr.bf16.mxu1 %v15795_v31  ;;  %v14511_v55 = vadd.f32 %v5894_v51, %v5561_v12 }
 0x3ab   : > { %v5445_v39 = vpop.f32.mrf.mxu1  ;;  %v9808_v56 = vpop.f32.mrf.mxu0 }
 0x3ac   : > { %v5564_v52 = vadd.f32 %v5445_v39, %v14266_v28  ;;  %v14514_v35 = vadd.f32 %v9799_v34, %v5566_v22  ;;  %v15797_v34 = vld [vmem:[#allocation53_spill] sm:$0xff] }
 0x3ad   : > { %v9748_v17 = vpop.f32.mrf.mxu1  ;;  %v5942_v61 = vpop.f32.mrf.mxu0 }
 0x3ae   : > { %v5567_v42 = vadd.f32 %v9748_v17, %v14273_v7  ;;  %v14517_v63 = vadd.f32 %v5907_v62, %v5564_v52 }
 0x3af   : > { %v5448_v46 = vpop.f32.mrf.mxu1  ;;  %v9811_v30 = vpop.f32.mrf.mxu0 }
 0x3b0   : > { %v5565_v11 = vadd.f32 %v5448_v46, %v14279_v25  ;;  %v14520_v19 = vadd.f32 %v9800_v32, %v5567_v42  ;;  %v15798_v42 = vld [vmem:[#allocation45_spill] sm:$0xff] }
 0x3b1   : > { %v9751_v51 = vpop.f32.mrf.mxu1  ;;  %10050 = vmatmul.mubr.bf16.vlgmr.msra.gmra.mxu1 %v15796_v54  ;;  %v5955_v43 = vpop.f32.mrf.mxu0 }
 0x3b2   : > { %v5570_v28 = vadd.f32 %v9751_v51, %v14294_v44  ;;  %10053 = vmatprep.mubr.bf16.mxu1 %v15797_v34  ;;  %v14525_v12 = vadd.f32 %v5910_v20, %v5565_v11 }
 0x3b3   : > { %v5461_v58 = vpop.f32.mrf.mxu1  ;;  %v9812_v7 = vpop.f32.mrf.mxu0 }
 0x3b4   : > { %v5568_v62 = vadd.f32 %v5461_v58, %v14304_v15  ;;  %v14528_v48 = vadd.f32 %v9803_v23, %v5570_v28  ;;  %v15799_v23 = vld [vmem:[#allocation62_spill] sm:$0xff] }
 0x3b5   : > { %v9752_v22 = vpop.f32.mrf.mxu1  ;;  %v5958_v25 = vpop.f32.mrf.mxu0 }
 0x3b6   : > { %v5571_v32 = vadd.f32 %v9752_v22, %v14308_v53  ;;  %v14531_v31 = vadd.f32 %v5923_v37, %v5568_v62 }
 0x3b7   : > { %v5464_v39 = vpop.f32.mrf.mxu1  ;;  %v9815_v52 = vpop.f32.mrf.mxu0 }
 0x3b8   : > { %v5569_v44 = vadd.f32 %v5464_v39, %v14319_v13  ;;  %v14534_v17 = vadd.f32 %v9804_v24, %v5571_v32  ;;  %v15800_v32 = vld [vmem:[#allocation59_spill] sm:$0xff] }
 0x3b9   : > { %v9755_v20 = vpop.f32.mrf.mxu1  ;;  %10054 = vmatmul.mubr.bf16.gmra.mxu1 %v15798_v42  ;;  %v5971_v46 = vpop.f32.mrf.mxu0 }
 0x3ba   : > { %v5574_v15 = vadd.f32 %v9755_v20, %v14344_v6  ;;  %10057 = vmatprep.mubr.bf16.mxu1 %v15799_v23  ;;  %v14539_v11 = vadd.f32 %v5926_v4, %v5569_v44 }
 0x3bb   : > { %v5477_v51 = vpop.f32.mrf.mxu1  ;;  %v9816_v53 = vpop.f32.mrf.mxu0 }
 0x3bc   : > { %v5572_v37 = vadd.f32 %v5477_v51, %v14356_v59  ;;  %v14542_v54 = vadd.f32 %v9807_v38, %v5574_v15  ;;  %v15801_v38 = vld [vmem:[#allocation56_spill] sm:$0xff] }
 0x3bd   : > { %v9756_v28 = vpop.f32.mrf.mxu1  ;;  %v5974_v13 = vpop.f32.mrf.mxu0 }
 0x3be   : > { %v5575_v24 = vadd.f32 %v9756_v28, %v14361_v21  ;;  %v14545_v34 = vadd.f32 %v5939_v49, %v5572_v37  ;;  %v15802_v49 = vld [vmem:[#allocation13_spill] sm:$0xff] }
 0x3bf   : > { %v5480_v58 = vpop.f32.mrf.mxu1  ;;  %v9819_v62 = vpop.f32.mrf.mxu0 }
 0x3c0   : > { %v5573_v6 = vadd.f32 %v5480_v58, %v14371_v57  ;;  %v14548_v22 = vadd.f32 %v9808_v56, %v5575_v24  ;;  %v15803_v58 = vld [vmem:[#allocation19_spill] sm:$0xff] }
 0x3c1   : > { %v9759_v4 = vpop.f32.mrf.mxu1  ;;  %10058 = vmatmul.mubr.bf16.gmra.mxu1 %v15800_v32  ;;  %v5987_v39 = vpop.f32.mrf.mxu0 }
 0x3c2   : > { %v5578_v59 = vadd.f32 %v9759_v4, %v14376_v45  ;;  %10061 = vmatprep.mubr.bf16.mxu1 %v15801_v38  ;;  %v14553_v44 = vadd.f32 %v5942_v61, %v5573_v6 }
 0x3c3   : > { %v5493_v20 = vpop.f32.mrf.mxu1  ;;  %v9820_v21 = vpop.f32.mrf.mxu0 }
 0x3c4   : > { %v5576_v42 = vadd.f32 %v5493_v20, %v15802_v49  ;;  %v14556_v15 = vadd.f32 %v9811_v30, %v5578_v59  ;;  %v15804_v30 = vld [vmem:[#allocation65_spill] sm:$0xff] }
 0x3c5   : > { %v9760_v23 = vpop.f32.mrf.mxu1  ;;  %v5990_v57 = vpop.f32.mrf.mxu0 }
 0x3c6   : > { %v5579_v56 = vadd.f32 %v9760_v23, %v14393_v41  ;;  %v14559_v51 = vadd.f32 %v5955_v43, %v5576_v42 }
 0x3c7   : > { %v5496_v37 = vpop.f32.mrf.mxu1  ;;  %v9823_v28 = vpop.f32.mrf.mxu0 }
 0x3c8   : > { %v5577_v45 = vadd.f32 %v5496_v37, %v14403_v10  ;;  %v14562_v24 = vadd.f32 %v9812_v7, %v5579_v56  ;;  %v15805_v37 = vld [vmem:[#allocation9_spill] sm:$0xff] }
 0x3c9   : > { %v9763_v61 = vpop.f32.mrf.mxu1  ;;  %10062 = vmatmul.mubr.bf16.gmra.mxu1 %v15803_v58  ;;  %v6003_v6 = vpop.f32.mrf.mxu0 }
 0x3ca   : > { %v5582_v4 = vadd.f32 %v9763_v61, %v14410_v33  ;;  %10065 = vmatprep.mubr.bf16.mxu1 %v15804_v30  ;;  %v14567_v32 = vadd.f32 %v5958_v25, %v5577_v45 }
 0x3cb   : > { %v5509_v59 = vpop.f32.mrf.mxu1  ;;  %v9824_v41 = vpop.f32.mrf.mxu0 }
 0x3cc   : > { %v5580_v43 = vadd.f32 %v5509_v59, %v14417_v29  ;;  %v14570_v38 = vadd.f32 %v9815_v52, %v5582_v4  ;;  %v15806_v52 = vld [vmem:[#allocation57_spill] sm:$0xff] }
 0x3cd   : > { %v9764_v20 = vpop.f32.mrf.mxu1  ;;  %v6006_v10 = vpop.f32.mrf.mxu0 }
 0x3ce   : > { %v5583_v7 = vadd.f32 %v9764_v20, %v14426_v26  ;;  %v14573_v49 = vadd.f32 %v5971_v46, %v5580_v43 }
 0x3cf   : > { %v5512_v42 = vpop.f32.mrf.mxu1  ;;  %v9895_v23 = vpop.f32.mrf.mxu0 }
 0x3d0   : > { %v5581_v33 = vadd.f32 %v5512_v42, %v14433_v47  ;;  %v14576_v56 = vadd.f32 %v9816_v53, %v5583_v7  ;;  %v15807_v42 = vld [vmem:[#allocation12_spill] sm:$0xff] }
 0x3d1   : > { %v9767_v25 = vpop.f32.mrf.mxu1  ;;  %10066 = vmatmul.mubr.bf16.gmra.mxu1 %v15805_v37  ;;  %v6682_v45 = vpop.f32.mrf.mxu0 }
 0x3d2   : > { %v5586_v29 = vadd.f32 %v9767_v25, %v14440_v0  ;;  %10069 = vmatprep.mubr.bf16.mxu1 %v15806_v52  ;;  %v14581_v61 = vadd.f32 %v5974_v13, %v5581_v33 }
 0x3d3   : > { %v5525_v58 = vpop.f32.mrf.mxu1  ;;  %v9896_v26 = vpop.f32.mrf.mxu0 }
 0x3d4   : > { %v5584_v46 = vadd.f32 %v5525_v58, %v14445_v18  ;;  %v14584_v4 = vadd.f32 %v9819_v62, %v5586_v29  ;;  %v15808_v62 = vld [vmem:[#allocation63_spill] sm:$0xff] }
 0x3d5   : > { %v9768_v30 = vpop.f32.mrf.mxu1  ;;  %v6685_v47 = vpop.f32.mrf.mxu0 }
 0x3d6   : > { %v5587_v53 = vadd.f32 %v9768_v30, %v14452_v14  ;;  %v14587_v59 = vadd.f32 %v5987_v39, %v5584_v46 }
 0x3d7   : > { %v5528_v43 = vpop.f32.mrf.mxu1  ;;  %v9899_v20 = vpop.f32.mrf.mxu0 }
 0x3d8   : > { %v5585_v0 = vadd.f32 %v5528_v43, %v14457_v50  ;;  %v14590_v7 = vadd.f32 %v9820_v21, %v5587_v53  ;;  %v15809_v43 = vld [vmem:[#allocation60_spill] sm:$0xff] }
 0x3d9   : > { %v9771_v13 = vpop.f32.mrf.mxu1  ;;  %10070 = vmatmul.mubr.bf16.gmra.mxu1 %v15807_v42  ;;  %v6698_v33 = vpop.f32.mrf.mxu0 }
 0x3da   : > { %v5590_v18 = vadd.f32 %v9771_v13, %v14462_v27  ;;  %10073 = vmatprep.mubr.bf16.mxu1 %v15808_v62  ;;  %v14595_v25 = vadd.f32 %v5990_v57, %v5585_v0 }
 0x3db   : > { %v5541_v37 = vpop.f32.mrf.mxu1  ;;  %v9900_v14 = vpop.f32.mrf.mxu0 }
 0x3dc   : > { %v5588_v39 = vadd.f32 %v5541_v37, %v14465_v1  ;;  %v14598_v29 = vadd.f32 %v9823_v28, %v5590_v18  ;;  %v15810_v28 = vld [vmem:[#allocation67_spill] sm:$0xff] }
 0x3dd   : > { %v9772_v52 = vpop.f32.mrf.mxu1  ;;  %v6701_v50 = vpop.f32.mrf.mxu0 }
 0x3de   : > { %v5591_v21 = vadd.f32 %v9772_v52, %v14470_v16  ;;  %v14601_v58 = vadd.f32 %v6003_v6, %v5588_v39 }
 0x3df   : > { %v5544_v46 = vpop.f32.mrf.mxu1  ;;  %v9903_v30 = vpop.f32.mrf.mxu0 }
 0x3e0   : > { %v5589_v27 = vadd.f32 %v5544_v46, %v14474_v8  ;;  %v14604_v53 = vadd.f32 %v9824_v41, %v5591_v21  ;;  %v15811_v46 = vld [vmem:[#allocation66_spill] sm:$0xff] }
 0x3e1   : > { %v9843_v57 = vpop.f32.mrf.mxu1  ;;  %10074 = vmatmul.mubr.bf16.gmra.mxu1 %v15809_v43  ;;  %v6714_v0 = vpop.f32.mrf.mxu0 }
 0x3e2   : > { %v6490_v1 = vadd.f32 %v9843_v57, %v14482_v5  ;;  %10077 = vmatprep.mubr.bf16.mxu1 %v15810_v28  ;;  %v14609_v13 = vadd.f32 %v6006_v10, %v5589_v27 }
 0x3e3   : > { %v6345_v42 = vpop.f32.mrf.mxu1  ;;  %v9904_v16 = vpop.f32.mrf.mxu0 }
 0x3e4   : > { %v6488_v6 = vadd.f32 %v6345_v42, %v14488_v40  ;;  %v14612_v18 = vadd.f32 %v9895_v23, %v6490_v1  ;;  %v15812_v23 = vld [vmem:[#allocation61_spill] sm:$0xff] }
 0x3e5   : > { %v9844_v62 = vpop.f32.mrf.mxu1  ;;  %v6717_v8 = vpop.f32.mrf.mxu0 }
 0x3e6   : > { %v6491_v41 = vadd.f32 %v9844_v62, %v14492_v3  ;;  %v14615_v37 = vadd.f32 %v6682_v45, %v6488_v6 }
 0x3e7   : > { %v6348_v39 = vpop.f32.mrf.mxu1  ;;  %v9907_v52 = vpop.f32.mrf.mxu0 }
 0x3e8   : > { %v6489_v5 = vadd.f32 %v6348_v39, %v14497_v36  ;;  %v14618_v21 = vadd.f32 %v9896_v26, %v6491_v41  ;;  %v15813_v39 = vld [vmem:[#allocation21_spill] sm:$0xff] }
 0x3e9   : > { %v9847_v10 = vpop.f32.mrf.mxu1  ;;  %10078 = vmatmul.mubr.bf16.gmra.mxu1 %v15811_v46  ;;  %v6730_v27 = vpop.f32.mrf.mxu0 }
 0x3ea   : > { %v6494_v40 = vadd.f32 %v9847_v10, %v14500_v9  ;;  %10081 = vmatprep.mubr.bf16.mxu1 %v15812_v23  ;;  %v14623_v57 = vadd.f32 %v6685_v47, %v6489_v5 }
 0x3eb   : > { %v6361_v43 = vpop.f32.mrf.mxu1  ;;  %v9908_v3 = vpop.f32.mrf.mxu0 }
 0x3ec   : > { %v6492_v45 = vadd.f32 %v6361_v43, %v14503_v60  ;;  %v14626_v1 = vadd.f32 %v9899_v20, %v6494_v40 }
 0x3ed   : > { %v9848_v28 = vpop.f32.mrf.mxu1  ;;  %v6733_v36 = vpop.f32.mrf.mxu0 }
 0x3ee   : > { %v6495_v26 = vadd.f32 %v9848_v28, %v14507_v2  ;;  %v14629_v42 = vadd.f32 %v6698_v33, %v6492_v45 }
 0x3ef   : > { %v6364_v6 = vpop.f32.mrf.mxu1  ;;  %v9911_v62 = vpop.f32.mrf.mxu0 }
 0x3f0   : > { %v6493_v9 = vadd.f32 %v6364_v6, %v14511_v55  ;;  %v14632_v41 = vadd.f32 %v9900_v14, %v6495_v26 }
 0x3f1   : > { %v9851_v47 = vpop.f32.mrf.mxu1  ;;  %10082 = vmatmul.mubr.bf16.gmra.mxu1 %v15813_v39  ;;  %v6746_v5 = vpop.f32.mrf.mxu0 }
 0x3f2   : > { %v6498_v60 = vadd.f32 %v9851_v47, %v14514_v35  ;;  %v14636_v20 = vadd.f32 %v6701_v50, %v6493_v9 }
 0x3f3   : > { %v6377_v10 = vpop.f32.mrf.mxu1  ;;  %v9912_v46 = vpop.f32.mrf.mxu0 }
 0x3f4   : > { %v6496_v2 = vadd.f32 %v6377_v10, %v14517_v63  ;;  %v14639_v33 = vadd.f32 %v9903_v30, %v6498_v60 }
 0x3f5   : > { %v9852_v40 = vpop.f32.mrf.mxu1  ;;  %v6749_v23 = vpop.f32.mrf.mxu0 }
 0x3f6   : > { %v6499_v55 = vadd.f32 %v9852_v40, %v14520_v19  ;;  %v14642_v14 = vadd.f32 %v6714_v0, %v6496_v2 }
 0x3f7   : > { %v6380_v43 = vpop.f32.mrf.mxu1  ;;  %v9915_v45 = vpop.f32.mrf.mxu0 }
 0x3f8   : > { %v6497_v28 = vadd.f32 %v6380_v43, %v14525_v12  ;;  %v14645_v26 = vadd.f32 %v9904_v16, %v6499_v55 }
 0x3f9   : > { %v9855_v35 = vpop.f32.mrf.mxu1  ;;  %v6762_v50 = vpop.f32.mrf.mxu0 }
 0x3fa   : > { %v6502_v6 = vadd.f32 %v9855_v35, %v14528_v48  ;;  %v14648_v9 = vadd.f32 %v6717_v8, %v6497_v28 }
 0x3fb   : > { %v6393_v63 = vpop.f32.mrf.mxu1  ;;  %v9916_v30 = vpop.f32.mrf.mxu0 }
 0x3fc   : > { %v6500_v47 = vadd.f32 %v6393_v63, %v14531_v31  ;;  %v14651_v39 = vadd.f32 %v9907_v52, %v6502_v6 }
 0x3fd   : > { %v9856_v19 = vpop.f32.mrf.mxu1  ;;  %v6765_v0 = vpop.f32.mrf.mxu0 }
 0x3fe   : > { %v6503_v60 = vadd.f32 %v9856_v19, %v14534_v17  ;;  %v14654_v10 = vadd.f32 %v6730_v27, %v6500_v47 }
 0x3ff   : > { %v6396_v12 = vpop.f32.mrf.mxu1  ;;  %v9919_v16 = vpop.f32.mrf.mxu0 }
 0x400   : > { %v6501_v2 = vadd.f32 %v6396_v12, %v14539_v11  ;;  %v14657_v40 = vadd.f32 %v9908_v3, %v6503_v60 }
 0x401   : > { %v9859_v48 = vpop.f32.mrf.mxu1  ;;  %v6778_v8 = vpop.f32.mrf.mxu0 }
 0x402   : > { %v6506_v55 = vadd.f32 %v9859_v48, %v14542_v54  ;;  %v14660_v43 = vadd.f32 %v6733_v36, %v6501_v2 }
 0x403   : > { %v6409_v31 = vpop.f32.mrf.mxu1  ;;  %v9920_v52 = vpop.f32.mrf.mxu0 }
 0x404   : > { %v6504_v28 = vadd.f32 %v6409_v31, %v14545_v34  ;;  %v14663_v35 = vadd.f32 %v9911_v62, %v6506_v55 }
 0x405   : > { %v9860_v17 = vpop.f32.mrf.mxu1  ;;  %v6781_v27 = vpop.f32.mrf.mxu0 }
 0x406   : > { %v6507_v6 = vadd.f32 %v9860_v17, %v14548_v22  ;;  %v14666_v63 = vadd.f32 %v6746_v5, %v6504_v28 }
 0x407   : > { %v6412_v11 = vpop.f32.mrf.mxu1  ;;  %v9923_v47 = vpop.f32.mrf.mxu0 }
 0x408   : > { %v6505_v3 = vadd.f32 %v6412_v11, %v14553_v44  ;;  %v14669_v19 = vadd.f32 %v9912_v46, %v6507_v6 }
 0x409   : > { %v9863_v54 = vpop.f32.mrf.mxu1  ;;  %v6794_v12 = vpop.f32.mrf.mxu0 }
 0x40a   : > { %v6510_v36 = vadd.f32 %v9863_v54, %v14556_v15  ;;  %v14672_v60 = vadd.f32 %v6749_v23, %v6505_v3 }
 0x40b   : > { %v6425_v34 = vpop.f32.mrf.mxu1  ;;  %v9924_v55 = vpop.f32.mrf.mxu0 }
 0x40c   : > { %v6508_v62 = vadd.f32 %v6425_v34, %v14559_v51  ;;  %v14675_v2 = vadd.f32 %v9915_v45, %v6510_v36 }
 0x40d   : > { %v9864_v22 = vpop.f32.mrf.mxu1  ;;  %v6797_v17 = vpop.f32.mrf.mxu0 }
 0x40e   : > { %v6511_v5 = vadd.f32 %v9864_v22, %v14562_v24  ;;  %v14678_v48 = vadd.f32 %v6762_v50, %v6508_v62 }
 0x40f   : > { %v6428_v44 = vpop.f32.mrf.mxu1  ;;  %v9927_v3 = vpop.f32.mrf.mxu0 }
 0x410   : > { %v6509_v46 = vadd.f32 %v6428_v44, %v14567_v32  ;;  %v14681_v31 = vadd.f32 %v9916_v30, %v6511_v5 }
 0x411   : > { %v9867_v15 = vpop.f32.mrf.mxu1  ;;  %v6810_v34 = vpop.f32.mrf.mxu0 }
 0x412   : > { %v6514_v23 = vadd.f32 %v9867_v15, %v14570_v38  ;;  %v14684_v28 = vadd.f32 %v6765_v0, %v6509_v46 }
 0x413   : > { %v6441_v51 = vpop.f32.mrf.mxu1  ;;  %v9928_v5 = vpop.f32.mrf.mxu0 }
 0x414   : > { %v6512_v45 = vadd.f32 %v6441_v51, %v14573_v49  ;;  %v14687_v6 = vadd.f32 %v9919_v16, %v6514_v23 }
 0x415   : > { %v9868_v24 = vpop.f32.mrf.mxu1  ;;  %v6813_v15 = vpop.f32.mrf.mxu0 }
 0x416   : > { %v6515_v50 = vadd.f32 %v9868_v24, %v14576_v56  ;;  %v14690_v11 = vadd.f32 %v6778_v8, %v6512_v45 }
 0x417   : > { %v6444_v32 = vpop.f32.mrf.mxu1 }
 0x418   : > { %v6513_v30 = vadd.f32 %v6444_v32, %v14581_v61  ;;  %v14693_v54 = vadd.f32 %v9920_v52, %v6515_v50 }
 0x419   : > { %v9871_v38 = vpop.f32.mrf.mxu1 }
 0x41a   : > { %v6518_v0 = vadd.f32 %v9871_v38, %v14584_v4  ;;  %v14696_v36 = vadd.f32 %v6781_v27, %v6513_v30 }
 0x41b   : > { %v6457_v49 = vpop.f32.mrf.mxu1 }
 0x41c   : > { %v6516_v16 = vadd.f32 %v6457_v49, %v14587_v59  ;;  %v14699_v62 = vadd.f32 %v9923_v47, %v6518_v0 }
 0x41d   : > { %v9872_v56 = vpop.f32.mrf.mxu1 }
 0x41e   : > { %v6519_v8 = vadd.f32 %v9872_v56, %v14590_v7  ;;  %v14702_v22 = vadd.f32 %v6794_v12, %v6516_v16 }
 0x41f   : > { %v6460_v61 = vpop.f32.mrf.mxu1 }
 0x420   : > { %v6517_v52 = vadd.f32 %v6460_v61, %v14595_v25  ;;  %v14705_v44 = vadd.f32 %v9924_v55, %v6519_v8  ;;  %v14716_v25 = vpop.f32.mrf.mxu0 }
 0x421   : > { %v9875_v4 = vpop.f32.mrf.mxu1 }
 0x422   : > { %v6522_v27 = vadd.f32 %v9875_v4, %v14598_v29  ;;  %v14708_v46 = vadd.f32 %v6797_v17, %v6517_v52  ;;  %v14726_v32 = vpop.f32.mrf.mxu0 }
 0x423   : > { %v6473_v59 = vpop.f32.mrf.mxu1 }
 0x424   : > { %v6520_v47 = vadd.f32 %v6473_v59, %v14601_v58  ;;  %v14711_v23 = vadd.f32 %v9927_v3, %v6522_v27 }
 0x425   : > { %v9876_v7 = vpop.f32.mrf.mxu1 }
 0x426   : > { %v6523_v12 = vadd.f32 %v9876_v7, %v14604_v53  ;;  %v14714_v51 = vadd.f32 %v6810_v34, %v6520_v47 }
 0x427   : > { %v6476_v45 = vpop.f32.mrf.mxu1 }
 0x428   : > { %v6521_v55 = vadd.f32 %v6476_v45, %v14609_v13  ;;  %v14719_v24 = vadd.f32 %v9928_v5, %v6523_v12  ;;  %v14734_v13 = vpop.f32.mrf.mxu0 }
 0x429   : > { %v9947_v29 = vpop.f32.mrf.mxu1 }
 0x42a   : > { %v14722_v17 = vadd.f32 %v9947_v29, %v14612_v18  ;;  %v14724_v50 = vadd.f32 %v6813_v15, %v6521_v55  ;;  %v14742_v34 = vpop.f32.mrf.mxu0 }
 0x42b   : > { %v7144_v58 = vpop.f32.mrf.mxu1 }
 0x42c   : > { %v14729_v53 = vadd.f32 %v7144_v58, %v14615_v37  ;;  %v14750_v61 = vpop.f32.mrf.mxu0 }
 0x42d   : > { %v9948_v30 = vpop.f32.mrf.mxu1 }
 0x42e   : > { %v14732_v3 = vadd.f32 %v9948_v30, %v14618_v21  ;;  %v14758_v4 = vpop.f32.mrf.mxu0 }
 0x42f   : > { %v7147_v38 = vpop.f32.mrf.mxu1 }
 0x430   : > { %v14737_v0 = vadd.f32 %v7147_v38, %v14623_v57  ;;  %v14766_v15 = vpop.f32.mrf.mxu0 }
 0x431   : > { %v9951_v18 = vpop.f32.mrf.mxu1 }
 0x432   : > { %v14740_v49 = vadd.f32 %v9951_v18, %v14626_v1  ;;  %v14774_v12 = vpop.f32.mrf.mxu0 }
 0x433   : > { %v7160_v16 = vpop.f32.mrf.mxu1 }
 0x434   : > { %v14745_v37 = vadd.f32 %v7160_v16, %v14629_v42  ;;  %v14782_v29 = vpop.f32.mrf.mxu0 }
 0x435   : > { %v9952_v56 = vpop.f32.mrf.mxu1 }
 0x436   : > { %v14748_v21 = vadd.f32 %v9952_v56, %v14632_v41  ;;  %v14790_v38 = vpop.f32.mrf.mxu0 }
 0x437   : > { %v7163_v8 = vpop.f32.mrf.mxu1 }
 0x438   : > { %v14753_v57 = vadd.f32 %v7163_v8, %v14636_v20  ;;  %v14798_v56 = vpop.f32.mrf.mxu0 }
 0x439   : > { %v9955_v5 = vpop.f32.mrf.mxu1 }
 0x43a   : > { %v14756_v1 = vadd.f32 %v9955_v5, %v14639_v33 }
 0x43b   : > { %v7176_v52 = vpop.f32.mrf.mxu1 }
 0x43c   : > { %v14761_v42 = vadd.f32 %v7176_v52, %v14642_v14  ;;  %v14806_v52 = vpop.f32.mrf.mxu0 }
 0x43d   : > { %v9956_v27 = vpop.f32.mrf.mxu1 }
 0x43e   : > { %v14764_v41 = vadd.f32 %v9956_v27, %v14645_v26 }
 0x43f   : > { %v7179_v59 = vpop.f32.mrf.mxu1 }
 0x440   : > { %v14769_v20 = vadd.f32 %v7179_v59, %v14648_v9 }
 0x441   : > { %v9959_v47 = vpop.f32.mrf.mxu1 }
 0x442   : > { %v14772_v33 = vadd.f32 %v9959_v47, %v14651_v39  ;;  %v14814_v47 = vpop.f32.mrf.mxu0 }
 0x443   : > { %v7192_v7 = vpop.f32.mrf.mxu1 }
 0x444   : > { %v14777_v14 = vadd.f32 %v7192_v7, %v14654_v10 }
 0x445   : > { %v9960_v45 = vpop.f32.mrf.mxu1 }
 0x446   : > { %v14780_v26 = vadd.f32 %v9960_v45, %v14657_v40 }
 0x447   : > { %v7195_v55 = vpop.f32.mrf.mxu1 }
 0x448   : > { %v14785_v9 = vadd.f32 %v7195_v55, %v14660_v43  ;;  %v14822_v55 = vpop.f32.mrf.mxu0 }
 0x449   : > { %v9963_v58 = vpop.f32.mrf.mxu1 }
 0x44a   : > { %v14788_v39 = vadd.f32 %v9963_v58, %v14663_v35 }
 0x44b   : > { %v7208_v30 = vpop.f32.mrf.mxu1 }
 0x44c   : > { %v14793_v10 = vadd.f32 %v7208_v30, %v14666_v63 }
 0x44d   : > { %v9964_v18 = vpop.f32.mrf.mxu1 }
 0x44e   : > { %v14796_v40 = vadd.f32 %v9964_v18, %v14669_v19  ;;  %v14830_v18 = vpop.f32.mrf.mxu0 }
 0x44f   : > { %v7211_v16 = vpop.f32.mrf.mxu1 }
 0x450   : > { %v14801_v43 = vadd.f32 %v7211_v16, %v14672_v60 }
 0x451   : > { %v9967_v8 = vpop.f32.mrf.mxu1 }
 0x452   : > { %v14804_v35 = vadd.f32 %v9967_v8, %v14675_v2 }
 0x453   : > { %v7224_v5 = vpop.f32.mrf.mxu1 }
 0x454   : > { %v14809_v63 = vadd.f32 %v7224_v5, %v14678_v48  ;;  %v14838_v5 = vpop.f32.mrf.mxu0 }
 0x455   : > { %v9968_v27 = vpop.f32.mrf.mxu1 }
 0x456   : > { %v14812_v19 = vadd.f32 %v9968_v27, %v14681_v31 }
 0x457   : > { %v7227_v59 = vpop.f32.mrf.mxu1 }
 0x458   : > { %v14817_v60 = vadd.f32 %v7227_v59, %v14684_v28 }
 0x459   : > { %v9971_v7 = vpop.f32.mrf.mxu1 }
 0x45a   : > { %v14820_v2 = vadd.f32 %v9971_v7, %v14687_v6  ;;  %v14846_v7 = vpop.f32.mrf.mxu0 }
 0x45b   : > { %v7240_v45 = vpop.f32.mrf.mxu1 }
 0x45c   : > { %v14825_v48 = vadd.f32 %v7240_v45, %v14690_v11 }
 0x45d   : > { %v9972_v58 = vpop.f32.mrf.mxu1 }
 0x45e   : > { %v14828_v31 = vadd.f32 %v9972_v58, %v14693_v54 }
 0x45f   : > { %v7243_v30 = vpop.f32.mrf.mxu1 }
 0x460   : > { %v14833_v28 = vadd.f32 %v7243_v30, %v14696_v36 }
 0x461   : > { %v9975_v16 = vpop.f32.mrf.mxu1 }
 0x462   : > { %v14836_v6 = vadd.f32 %v9975_v16, %v14699_v62 }
 0x463   : > { %v7256_v8 = vpop.f32.mrf.mxu1 }
 0x464   : > { %v14841_v11 = vadd.f32 %v7256_v8, %v14702_v22  ;;  %v14854_v22 = vpop.f32.mrf.mxu0 }
 0x465   : > { %v9976_v27 = vpop.f32.mrf.mxu1 }
 0x466   : > { %v14844_v54 = vadd.f32 %v9976_v27, %v14705_v44 }
 0x467   : > { %v7259_v59 = vpop.f32.mrf.mxu1 }
 0x468   : > { %v14849_v36 = vadd.f32 %v7259_v59, %v14708_v46  ;;  %v14862_v46 = vpop.f32.mrf.mxu0 }
 0x469   : > { %v9979_v45 = vpop.f32.mrf.mxu1 }
 0x46a   : > { %15814 = vst [vmem:[#allocation68_spill] sm:$0xff] %v14849_v36  ;;  %v14852_v62 = vadd.f32 %v9979_v45, %v14711_v23  ;;  %v7759_v23 = vadd.f32 %v14716_v25, %v14722_v17  ;;  %v7757_v45 = vadd.f32 %v14726_v32, %v14729_v53  ;;  %v7760_v17 = vadd.f32 %v14734_v13, %v14732_v3  ;;  %v8176_v53 = vld [vmem:[%s10597_s13 + $0x2b] sm:$0xff] }
 0x46b   : > { %v7272_v58 = vpop.f32.mrf.mxu1  ;;  %v7758_v32 = vadd.f32 %v14742_v34, %v14737_v0 }
 0x46c   : > { %15815 = vst [vmem:[#allocation10_spill] sm:$0xff] %v14852_v62  ;;  %v14857_v30 = vadd.f32 %v7272_v58, %v14714_v51  ;;  %v14873_v51 = vld [vmem:[%s15125_s4] ss:$0 sm:$0xff]  ;;  %v8175_v58 = vld [vmem:[%s10597_s13 + $0x23] sm:$0xff] }
 0x46d   : > { %v9980_v44 = vpop.f32.mrf.mxu1 }
 0x46e   : > { %15816 = vst [vmem:[#allocation70_spill] sm:$0xff] %v14857_v30  ;;  %v14860_v16 = vadd.f32 %v9980_v44, %v14719_v24  ;;  %v14880_v44 = vpop.f32.mrf.mxu0 }
 0x46f   : > { %v7275_v8 = vpop.f32.mrf.mxu1 }
 0x470   : > { %15817 = vst [vmem:[#allocation69_spill] sm:$0xff] %v14860_v16  ;;  %v14865_v27 = vadd.f32 %v7275_v8, %v14724_v50 }
 0x471   : > { %v10051_v59 = vpop.f32.mrf.mxu1 }
 0x472   : > { %15818 = vst [vmem:[#allocation11_spill] sm:$0xff] %v14865_v27  ;;  %v8096_v24 = vadd.f32 %v10051_v59, %v7759_v23  ;;  %v8173_v27 = vld [vmem:[%s10597_s13 + $0x13] sm:$0xff] }
 0x473   : > { %v7951_v50 = vpop.f32.mrf.mxu1 }
 0x474   : > { %v8139_v8 = vadd.f32 %v14873_v51, %v8096_v24  ;;  %v8094_v25 = vadd.f32 %v7951_v50, %v7757_v45  ;;  %v7763_v24 = vadd.f32 %v14750_v61, %v14740_v49  ;;  %v14892_v45 = vpop.f32.mrf.mxu0 }
 0x475   : > { %v10052_v16 = vpop.f32.mrf.mxu1 }
 0x476   : > { %v8211_v30 = vadd.f32 %v8175_v58, %v8139_v8  ;;  %v8137_v23 = vadd.f32 %v14873_v51, %v8094_v25  ;;  %v8097_v59 = vadd.f32 %v10052_v16, %v7760_v17  ;;  %v8174_v58 = vld [vmem:[%s10597_s13 + $0x1b] sm:$0xff]  ;;  %v7761_v16 = vadd.f32 %v14758_v4, %v14745_v37  ;;  %v14905_v25 = vpop.f32.mrf.mxu0 }
 0x477   : > { %v7954_v62 = vpop.f32.mrf.mxu1 }
 0x478   : > { %v8247_v50 = vmax.f32 %v8211_v30, 0.0  ;;  %v8209_v36 = vadd.f32 %v8173_v27, %v8137_v23  ;;  %v8140_v3 = vadd.f32 %v14873_v51, %v8097_v59  ;;  %v8095_v13 = vadd.f32 %v7954_v62, %v7758_v32  ;;  %v8179_v30 = vld [vmem:[%s10597_s13 + $0x43] sm:$0xff]  ;;  %v8177_v23 = vld [vmem:[%s10597_s13 + $0x33] sm:$0xff] }
 0x479   : > { %v10055_v8 = vpop.f32.mrf.mxu1  ;;  %v7764_v62 = vadd.f32 %v14766_v15, %v14748_v21  ;;  %v7762_v32 = vadd.f32 %v14774_v12, %v14753_v57 }
 0x47a   : > { %8283 = vst [vmem:[%s14898_s6 + $0x10] sm:$0xff] %v8247_v50  ;;  %v8245_v0 = vmax.f32 %v8209_v36, 0.0  ;;  %v8212_v49 = vadd.f32 %v8176_v53, %v8140_v3  ;;  %v8138_v34 = vadd.f32 %v14873_v51, %v8095_v13  ;;  %v8100_v61 = vadd.f32 %v10055_v8, %v7763_v24  ;;  %v8180_v50 = vld [vmem:[%s10597_s13 + $0x4b] sm:$0xff] }
 0x47b   : > { %v7967_v27 = vpop.f32.mrf.mxu1  ;;  %v7767_v13 = vadd.f32 %v14782_v29, %v14756_v1 }
 0x47c   : > { %8281 = vst [vmem:[%s14898_s6] sm:$0xff] %v8245_v0  ;;  %v8248_v37 = vmax.f32 %v8212_v49, 0.0  ;;  %v8210_v4 = vadd.f32 %v8174_v58, %v8138_v34  ;;  %v8143_v17 = vadd.f32 %v14873_v51, %v8100_v61  ;;  %v8098_v36 = vadd.f32 %v7967_v27, %v7761_v16  ;;  %v14917_v58 = vpop.f32.mrf.mxu0  ;;  %v8178_v0 = vld [vmem:[%s10597_s13 + $0x3b] sm:$0xff]  ;;  %v8183_v27 = vld [vmem:[%s10597_s13 + $0x63] sm:$0xff] }
 0x47d   : > { %v10056_v59 = vpop.f32.mrf.mxu1  ;;  %v7765_v34 = vadd.f32 %v14790_v38, %v14761_v42 }
 0x47e   : > { %8284 = vst [vmem:[%s14898_s6 + $0x18] sm:$0xff] %v8248_v37  ;;  %v8246_v53 = vmax.f32 %v8210_v4, 0.0  ;;  %v8215_v24 = vadd.f32 %v8179_v30, %v8143_v17  ;;  %v8141_v21 = vadd.f32 %v14873_v51, %v8098_v36  ;;  %v8101_v15 = vadd.f32 %v10056_v59, %v7764_v62  ;;  %v14929_v4 = vpop.f32.mrf.mxu0 }
 0x47f   : > { %v7970_v3 = vpop.f32.mrf.mxu1  ;;  %v7768_v37 = vadd.f32 %v14798_v56, %v14764_v41 }
 0x480   : > { %8282 = vst [vmem:[%s14898_s6 + $0x8] sm:$0xff] %v8246_v53  ;;  %v8251_v8 = vmax.f32 %v8215_v24, 0.0  ;;  %v8213_v16 = vadd.f32 %v8177_v23, %v8141_v21  ;;  %v8144_v57 = vadd.f32 %v14873_v51, %v8101_v15  ;;  %v8099_v12 = vadd.f32 %v7970_v3, %v7762_v32  ;;  %v8181_v23 = vld [vmem:[%s10597_s13 + $0x53] sm:$0xff]  ;;  %v8184_v21 = vld [vmem:[%s10597_s13 + $0x6b] sm:$0xff]  ;;  %v14941_v3 = vpop.f32.mrf.mxu0 }
 0x481   : > { %v10059_v49 = vpop.f32.mrf.mxu1  ;;  %v7766_v32 = vadd.f32 %v14806_v52, %v14769_v20 }
 0x482   : > { %8287 = vst [vmem:[%s14898_s6 + $0x30] sm:$0xff] %v8251_v8  ;;  %v8249_v61 = vmax.f32 %v8213_v16, 0.0  ;;  %v8216_v30 = vadd.f32 %v8180_v50, %v8144_v57  ;;  %v8142_v1 = vadd.f32 %v14873_v51, %v8099_v12  ;;  %v8104_v29 = vadd.f32 %v10059_v49, %v7767_v13  ;;  %v8182_v16 = vld [vmem:[%s10597_s13 + $0x5b] sm:$0xff] }
 0x483   : > { %v7983_v62 = vpop.f32.mrf.mxu1  ;;  %v7771_v50 = vadd.f32 %v14814_v47, %v14772_v33  ;;  %v7769_v12 = vadd.f32 %v14822_v55, %v14777_v14 }
 0x484   : > { %8285 = vst [vmem:[%s14898_s6 + $0x20] sm:$0xff] %v8249_v61  ;;  %v8252_v17 = vmax.f32 %v8216_v30, 0.0  ;;  %v8214_v36 = vadd.f32 %v8178_v0, %v8142_v1  ;;  %v8147_v42 = vadd.f32 %v14873_v51, %v8104_v29  ;;  %v8102_v38 = vadd.f32 %v7983_v62, %v7765_v34  ;;  %v8187_v34 = vld [vmem:[%s10597_s13 + $0x83] sm:$0xff]  ;;  %v14953_v1 = vpop.f32.mrf.mxu0  ;;  %v8185_v62 = vld [vmem:[%s10597_s13 + $0x73] sm:$0xff] }
 0x485   : > { %v10060_v59 = vpop.f32.mrf.mxu1  ;;  %v7772_v30 = vadd.f32 %v14830_v18, %v14780_v26 }
 0x486   : > { %8288 = vst [vmem:[%s14898_s6 + $0x38] sm:$0xff] %v8252_v17  ;;  %v8250_v53 = vmax.f32 %v8214_v36, 0.0  ;;  %v8219_v24 = vadd.f32 %v8183_v27, %v8147_v42  ;;  %v8145_v41 = vadd.f32 %v14873_v51, %v8102_v38  ;;  %v8105_v56 = vadd.f32 %v10060_v59, %v7768_v37  ;;  %v8188_v38 = vld [vmem:[%s10597_s13 + $0x8b] sm:$0xff] }
 0x487   : > { %v7986_v15 = vpop.f32.mrf.mxu1  ;;  %v7770_v17 = vadd.f32 %v14838_v5, %v14785_v9  ;;  %v7775_v59 = vadd.f32 %v14846_v7, %v14788_v39 }
 0x488   : > { %8286 = vst [vmem:[%s14898_s6 + $0x28] sm:$0xff] %v8250_v53  ;;  %v8255_v13 = vmax.f32 %v8219_v24, 0.0  ;;  %v8217_v8 = vadd.f32 %v8181_v23, %v8145_v41  ;;  %v8148_v20 = vadd.f32 %v14873_v51, %v8105_v56  ;;  %v8103_v52 = vadd.f32 %v7986_v15, %v7766_v32  ;;  %v14965_v32 = vpop.f32.mrf.mxu0  ;;  %v8186_v41 = vld [vmem:[%s10597_s13 + $0x7b] sm:$0xff] }
 0x489   : > { %v10063_v57 = vpop.f32.mrf.mxu1 }
 0x48a   : > { %8291 = vst [vmem:[%s14898_s6 + $0x50] sm:$0xff] %v8255_v13  ;;  %v8253_v0 = vmax.f32 %v8217_v8, 0.0  ;;  %v8220_v49 = vadd.f32 %v8184_v21, %v8148_v20  ;;  %v8146_v33 = vadd.f32 %v14873_v51, %v8103_v52  ;;  %v8108_v47 = vadd.f32 %v10063_v57, %v7771_v50  ;;  %v8191_v13 = vld [vmem:[%s10597_s13 + $0xa3] sm:$0xff]  ;;  %v14977_v52 = vpop.f32.mrf.mxu0 }
 0x48b   : > { %v7999_v61 = vpop.f32.mrf.mxu1  ;;  %v7773_v21 = vadd.f32 %v14854_v22, %v14793_v10  ;;  %v7776_v20 = vadd.f32 %v14862_v46, %v14796_v40 }
 0x48c   : > { %8289 = vst [vmem:[%s14898_s6 + $0x40] sm:$0xff] %v8253_v0  ;;  %v8256_v29 = vmax.f32 %v8220_v49, 0.0  ;;  %v8218_v27 = vadd.f32 %v8182_v16, %v8146_v33  ;;  %v8151_v14 = vadd.f32 %v14873_v51, %v8108_v47  ;;  %v8106_v55 = vadd.f32 %v7999_v61, %v7769_v12  ;;  %v8189_v12 = vld [vmem:[%s10597_s13 + $0x93] sm:$0xff] }
 0x48d   : > { %v10064_v37 = vpop.f32.mrf.mxu1  ;;  %v7774_v49 = vadd.f32 %v14880_v44, %v14801_v43 }
 0x48e   : > { %8292 = vst [vmem:[%s14898_s6 + $0x58] sm:$0xff] %v8256_v29  ;;  %v8254_v36 = vmax.f32 %v8218_v27, 0.0  ;;  %v8223_v42 = vadd.f32 %v8187_v34, %v8151_v14  ;;  %v8149_v26 = vadd.f32 %v14873_v51, %v8106_v55  ;;  %v8109_v18 = vadd.f32 %v10064_v37, %v7772_v30  ;;  %v8192_v34 = vld [vmem:[%s10597_s13 + $0xab] sm:$0xff]  ;;  %v14989_v29 = vpop.f32.mrf.mxu0  ;;  %v8190_v55 = vld [vmem:[%s10597_s13 + $0x9b] sm:$0xff] }
 0x48f   : > { %v8002_v23 = vpop.f32.mrf.mxu1  ;;  %v7779_v30 = vadd.f32 %v14892_v45, %v14804_v35  ;;  %v7777_v37 = vadd.f32 %v14905_v25, %v14809_v63 }
 0x490   : > { %8290 = vst [vmem:[%s14898_s6 + $0x48] sm:$0xff] %v8254_v36  ;;  %v8259_v53 = vmax.f32 %v8223_v42, 0.0  ;;  %v8221_v24 = vadd.f32 %v8185_v62, %v8149_v26  ;;  %v8152_v9 = vadd.f32 %v14873_v51, %v8109_v18  ;;  %v8107_v5 = vadd.f32 %v8002_v23, %v7770_v17  ;;  %v8195_v42 = vld [vmem:[%s10597_s13 + $0xc3] sm:$0xff] }
 0x491   : > { %v10067_v56 = vpop.f32.mrf.mxu1  ;;  %v7780_v18 = vadd.f32 %v14917_v58, %v14812_v19 }
 0x492   : > { %8295 = vst [vmem:[%s14898_s6 + $0x70] sm:$0xff] %v8259_v53  ;;  %v8257_v15 = vmax.f32 %v8221_v24, 0.0  ;;  %v8224_v50 = vadd.f32 %v8188_v38, %v8152_v9  ;;  %v8150_v39 = vadd.f32 %v14873_v51, %v8107_v5  ;;  %v8112_v7 = vadd.f32 %v10067_v56, %v7775_v59  ;;  %v7726_v38 = vpop.f32.mrf.mxu0  ;;  %v8193_v53 = vld [vmem:[%s10597_s13 + $0xb3] sm:$0xff]  ;;  %v8196_v56 = vld [vmem:[%s10597_s13 + $0xcb] sm:$0xff] }
 0x493   : > { %v8015_v8 = vpop.f32.mrf.mxu1  ;;  %v7778_v9 = vadd.f32 %v14929_v4, %v14817_v60 }
 0x494   : > { %8293 = vst [vmem:[%s14898_s6 + $0x60] sm:$0xff] %v8257_v15  ;;  %v8260_v16 = vmax.f32 %v8224_v50, 0.0  ;;  %v8222_v57 = vadd.f32 %v8186_v41, %v8150_v39  ;;  %v8155_v10 = vadd.f32 %v14873_v51, %v8112_v7  ;;  %v8110_v22 = vadd.f32 %v8015_v8, %v7773_v21  ;;  %v10028_v50 = vpop.f32.mrf.mxu0 }
 0x495   : > { %v10068_v0 = vpop.f32.mrf.mxu1  ;;  %v7783_v15 = vadd.f32 %v14941_v3, %v14820_v2 }
 0x496   : > { %8296 = vst [vmem:[%s14898_s6 + $0x78] sm:$0xff] %v8260_v16  ;;  %v8258_v33 = vmax.f32 %v8222_v57, 0.0  ;;  %v8227_v47 = vadd.f32 %v8191_v13, %v8155_v10  ;;  %v8153_v40 = vadd.f32 %v14873_v51, %v8110_v22  ;;  %v8113_v46 = vadd.f32 %v10068_v0, %v7776_v20  ;;  %v8194_v13 = vld [vmem:[%s10597_s13 + $0xbb] sm:$0xff]  ;;  %v8199_v10 = vld [vmem:[%s10597_s13 + $0xe3] sm:$0xff]  ;;  %v7729_v0 = vpop.f32.mrf.mxu0 }
 0x497   : > { %v8018_v61 = vpop.f32.mrf.mxu1  ;;  %v7781_v20 = vadd.f32 %v14953_v1, %v14825_v48 }
 0x498   : > { %8294 = vst [vmem:[%s14898_s6 + $0x68] sm:$0xff] %v8258_v33  ;;  %v8263_v27 = vmax.f32 %v8227_v47, 0.0  ;;  %v8225_v14 = vadd.f32 %v8189_v12, %v8153_v40  ;;  %v8156_v43 = vadd.f32 %v14873_v51, %v8113_v46  ;;  %v8111_v44 = vadd.f32 %v8018_v61, %v7774_v49  ;;  %v8197_v47 = vld [vmem:[%s10597_s13 + $0xd3] sm:$0xff] }
 0x499   : > { %v10071_v62 = vpop.f32.mrf.mxu1  ;;  %v7784_v12 = vadd.f32 %v14965_v32, %v14828_v31  ;;  %v7782_v46 = vadd.f32 %v14977_v52, %v14833_v28 }
 0x49a   : > { %8299 = vst [vmem:[%s14898_s6 + $0x90] sm:$0xff] %v8263_v27  ;;  %v8261_v17 = vmax.f32 %v8225_v14, 0.0  ;;  %v8228_v36 = vadd.f32 %v8192_v34, %v8156_v43  ;;  %v8154_v35 = vadd.f32 %v14873_v51, %v8111_v44  ;;  %v8116_v45 = vadd.f32 %v10071_v62, %v7779_v30  ;;  %v8200_v30 = vld [vmem:[%s10597_s13 + $0xeb] sm:$0xff]  ;;  %v10031_v43 = vpop.f32.mrf.mxu0  ;;  %v8198_v62 = vld [vmem:[%s10597_s13 + $0xdb] sm:$0xff] }
 0x49b   : > { %v8031_v26 = vpop.f32.mrf.mxu1  ;;  %v7787_v14 = vadd.f32 %v14989_v29, %v14836_v6  ;;  %v8203_v29 = vld [vmem:[%s10597_s13 + $0x103] sm:$0xff] }
 0x49c   : > { %8297 = vst [vmem:[%s14898_s6 + $0x80] sm:$0xff] %v8261_v17  ;;  %v8264_v23 = vmax.f32 %v8228_v36, 0.0  ;;  %v8226_v59 = vadd.f32 %v8190_v55, %v8154_v35  ;;  %v8159_v63 = vadd.f32 %v14873_v51, %v8116_v45  ;;  %v8114_v25 = vadd.f32 %v8031_v26, %v7777_v37 }
 0x49d   : > { %v10072_v24 = vpop.f32.mrf.mxu1  ;;  %v7785_v17 = vadd.f32 %v7726_v38, %v14841_v11  ;;  %v7788_v26 = vadd.f32 %v10028_v50, %v14844_v54  ;;  %v8201_v38 = vld [vmem:[%s10597_s13 + $0xf3] sm:$0xff] }
 0x49e   : > { %8300 = vst [vmem:[%s14898_s6 + $0x98] sm:$0xff] %v8264_v23  ;;  %v8262_v5 = vmax.f32 %v8226_v59, 0.0  ;;  %v8231_v41 = vadd.f32 %v8195_v42, %v8159_v63  ;;  %v8157_v19 = vadd.f32 %v14873_v51, %v8114_v25  ;;  %v8117_v58 = vadd.f32 %v10072_v24, %v7780_v18  ;;  %v7742_v18 = vpop.f32.mrf.mxu0 }
 0x49f   : > { %v8034_v21 = vpop.f32.mrf.mxu1 }
 0x4a0   : > { %8298 = vst [vmem:[%s14898_s6 + $0x88] sm:$0xff] %v8262_v5  ;;  %v8267_v39 = vmax.f32 %v8231_v41, 0.0  ;;  %v8229_v7 = vadd.f32 %v8193_v53, %v8157_v19  ;;  %v8160_v60 = vadd.f32 %v14873_v51, %v8117_v58  ;;  %v8115_v4 = vadd.f32 %v8034_v21, %v7778_v9  ;;  %v15819_v53 = vld [vmem:[#allocation68_spill] sm:$0xff]  ;;  %v8204_v19 = vld [vmem:[%s10597_s13 + $0x10b] sm:$0xff] }
 0x4a1   : > { %v10075_v8 = vpop.f32.mrf.mxu1  ;;  %v7786_v24 = vadd.f32 %v7729_v0, %v15819_v53 }
 0x4a2   : > { %8303 = vst [vmem:[%s14898_s6 + $0xb0] sm:$0xff] %v8267_v39  ;;  %v8265_v16 = vmax.f32 %v8229_v7, 0.0  ;;  %v8232_v57 = vadd.f32 %v8196_v56, %v8160_v60  ;;  %v8158_v2 = vadd.f32 %v14873_v51, %v8115_v4  ;;  %v8120_v3 = vadd.f32 %v10075_v8, %v7783_v15  ;;  %v15820_v56 = vld [vmem:[#allocation10_spill] sm:$0xff]  ;;  %v10032_v15 = vpop.f32.mrf.mxu0  ;;  %v8202_v4 = vld [vmem:[%s10597_s13 + $0xfb] sm:$0xff] }
 0x4a3   : > { %v8047_v22 = vpop.f32.mrf.mxu1  ;;  %v7791_v21 = vadd.f32 %v10031_v43, %v15820_v56  ;;  %v15821_v8 = vld [vmem:[#allocation70_spill] sm:$0xff] }
 0x4a4   : > { %8301 = vst [vmem:[%s14898_s6 + $0xa0] sm:$0xff] %v8265_v16  ;;  %v8268_v49 = vmax.f32 %v8232_v57, 0.0  ;;  %v8230_v33 = vadd.f32 %v8194_v13, %v8158_v2  ;;  %v8163_v48 = vadd.f32 %v14873_v51, %v8120_v3  ;;  %v8118_v1 = vadd.f32 %v8047_v22, %v7781_v20 }
 0x4a5   : > { %v10076_v40 = vpop.f32.mrf.mxu1  ;;  %v7789_v20 = vadd.f32 %v7742_v18, %v15821_v8 }
 0x4a6   : > { %8304 = vst [vmem:[%s14898_s6 + $0xb8] sm:$0xff] %v8268_v49  ;;  %v8266_v34 = vmax.f32 %v8230_v33, 0.0  ;;  %v8235_v61 = vadd.f32 %v8199_v10, %v8163_v48  ;;  %v8161_v31 = vadd.f32 %v14873_v51, %v8118_v1  ;;  %v8121_v32 = vadd.f32 %v10076_v40, %v7784_v12  ;;  %v8207_v10 = vld [vmem:[%s10597_s13 + $0x123] sm:$0xff]  ;;  %v7745_v49 = vpop.f32.mrf.mxu0  ;;  %v8205_v40 = vld [vmem:[%s10597_s13 + $0x113] sm:$0xff] }
 0x4a7   : > { %v8050_v27 = vpop.f32.mrf.mxu1  ;;  %v15822_v12 = vld [vmem:[#allocation69_spill] sm:$0xff] }
 0x4a8   : > { %8302 = vst [vmem:[%s14898_s6 + $0xa8] sm:$0xff] %v8266_v34  ;;  %v8271_v44 = vmax.f32 %v8235_v61, 0.0  ;;  %v8233_v55 = vadd.f32 %v8197_v47, %v8161_v31  ;;  %v8164_v28 = vadd.f32 %v14873_v51, %v8121_v32  ;;  %v8119_v52 = vadd.f32 %v8050_v27, %v7782_v46  ;;  %v15823_v34 = vld [vmem:[#allocation11_spill] sm:$0xff] }
 0x4a9   : > { %v10079_v37 = vpop.f32.mrf.mxu1  ;;  %v7792_v0 = vadd.f32 %v10032_v15, %v15822_v12  ;;  %v7790_v61 = vadd.f32 %v7745_v49, %v15823_v34 }
 0x4aa   : > { %8307 = vst [vmem:[%s14898_s6 + $0xd0] sm:$0xff] %v8271_v44  ;;  %v8269_v36 = vmax.f32 %v8233_v55, 0.0  ;;  %v8236_v35 = vadd.f32 %v8200_v30, %v8164_v28  ;;  %v8162_v45 = vadd.f32 %v14873_v51, %v8119_v52  ;;  %v8124_v6 = vadd.f32 %v10079_v37, %v7787_v14  ;;  %v8208_v14 = vld [vmem:[%s10597_s13 + $0x12b] sm:$0xff] }
 0x4ab   : > { %v8063_v42 = vpop.f32.mrf.mxu1 }
 0x4ac   : > { %8305 = vst [vmem:[%s14898_s6 + $0xc0] sm:$0xff] %v8269_v36  ;;  %v8272_v23 = vmax.f32 %v8236_v35, 0.0  ;;  %v8234_v59 = vadd.f32 %v8198_v62, %v8162_v45  ;;  %v8167_v63 = vadd.f32 %v14873_v51, %v8124_v6  ;;  %v8122_v11 = vadd.f32 %v8063_v42, %v7785_v17  ;;  %v8206_v62 = vld [vmem:[%s10597_s13 + $0x11b] sm:$0xff]  ;;  %s10418_s13 = scalar_lea.vmem %s15076_s8, 4608 }
 0x4ad   : > { %v10080_v25 = vpop.f32.mrf.mxu1  ;;  %p10419_p11 = scmp.ne.s32.totalorder %s15076_s8, %s10418_s13  ;;  %p10426_p1 = scmp.lt.s32.totalorder %s10424_s15, %s10418_s13 }
 0x4ae   : > { %8308 = vst [vmem:[%s14898_s6 + $0xd8] sm:$0xff] %v8272_v23  ;;  %v8270_v9 = vmax.f32 %v8234_v59, 0.0  ;;  %v8239_v5 = vadd.f32 %v8203_v29, %v8167_v63  ;;  %v8165_v41 = vadd.f32 %v14873_v51, %v8122_v11  ;;  %v8125_v54 = vadd.f32 %v10080_v25, %v7788_v26 }
 0x4af   : > { %v8066_v58 = vpop.f32.mrf.mxu1  ;;  %p10420_p12 = pnand %p10419_p11, %p10552_p5  ;;  %p10427_p2 = por %p10426_p1, %p10425_p0 }
 0x4b0   : > { %8306 = vst [vmem:[%s14898_s6 + $0xc8] sm:$0xff] %v8270_v9  ;;  %v8275_v50 = vmax.f32 %v8239_v5, 0.0  ;;  %v8237_v39 = vadd.f32 %v8201_v38, %v8165_v41  ;;  %v8168_v7 = vadd.f32 %v14873_v51, %v8125_v54  ;;  %v8123_v60 = vadd.f32 %v8066_v58, %v7786_v24 }
 0x4b1   : > { %v10083_v13 = vpop.f32.mrf.mxu1  ;;  %p10421_p13 = pneg %p10420_p12 }
 0x4b2   : > { %8311 = vst [vmem:[%s14898_s6 + $0xf0] sm:$0xff] %v8275_v50  ;;  %v8273_v16 = vmax.f32 %v8237_v39, 0.0  ;;  %v8240_v57 = vadd.f32 %v8204_v19, %v8168_v7  ;;  %v8166_v2 = vadd.f32 %v14873_v51, %v8123_v60  ;;  %v8128_v3 = vadd.f32 %v10083_v13, %v7791_v21 }
 0x4b3   : > { %v8079_v22 = vpop.f32.mrf.mxu1  ;;  %p10428_p3 = pnand %p10427_p2, %p10421_p13 }
 0x4b4   : > { %8309 = vst [vmem:[%s14898_s6 + $0xe0] sm:$0xff] %v8273_v16  ;;  %v8276_v33 = vmax.f32 %v8240_v57, 0.0  ;;  %v8238_v48 = vadd.f32 %v8202_v4, %v8166_v2  ;;  %v8171_v1 = vadd.f32 %v14873_v51, %v8128_v3  ;;  %v8126_v47 = vadd.f32 %v8079_v22, %v7789_v20 }
 0x4b5   : > { %v10084_v46 = vpop.f32.mrf.mxu1 }
 0x4b6   : > { %8312 = vst [vmem:[%s14898_s6 + $0xf8] sm:$0xff] %v8276_v33  ;;  %v8274_v31 = vmax.f32 %v8238_v48, 0.0  ;;  %v8243_v32 = vadd.f32 %v8207_v10, %v8171_v1  ;;  %v8169_v30 = vadd.f32 %v14873_v51, %v8126_v47  ;;  %v8129_v27 = vadd.f32 %v10084_v46, %v7792_v0 }
 0x4b7   : > { %v8082_v43 = vpop.f32.mrf.mxu1 }
 0x4b8   : > { %8310 = vst [vmem:[%s14898_s6 + $0xe8] sm:$0xff] %v8274_v31  ;;  %v8279_v44 = vmax.f32 %v8243_v32, 0.0  ;;  %v8241_v55 = vadd.f32 %v8205_v40, %v8169_v30  ;;  %v8172_v28 = vadd.f32 %v14873_v51, %v8129_v27  ;;  %v8127_v52 = vadd.f32 %v8082_v43, %v7790_v61 }
 0x4ba   : > { %8315 = vst [vmem:[%s14898_s6 + $0x110] sm:$0xff] %v8279_v44  ;;  %v8277_v37 = vmax.f32 %v8241_v55, 0.0  ;;  %v8244_v17 = vadd.f32 %v8208_v14, %v8172_v28  ;;  %v8170_v36 = vadd.f32 %v14873_v51, %v8127_v52 }
 0x4bc   : > { %8313 = vst [vmem:[%s14898_s6 + $0x100] sm:$0xff] %v8277_v37  ;;  %v8280_v35 = vmax.f32 %v8244_v17, 0.0  ;;  %v8242_v45 = vadd.f32 %v8206_v62, %v8170_v36 }
 0x4be   : > { %8316 = vst [vmem:[%s14898_s6 + $0x118] sm:$0xff] %v8280_v35  ;;  %v8278_v6 = vmax.f32 %v8242_v45, 0.0 }
 0x4c0   : > { %8314 = vst [vmem:[%s14898_s6 + $0x108] sm:$0xff] %v8278_v6 }
 0x4c1   : > { %10431 = shalt.err (!%p10428_p3)
}
 0x4c2   : > { %s10432_s16 = scalar_lea.hbm %s15073_s11, 4608  ;;  %s10436_s25 = scalar_lea.hbm %s15126_s5, 9216 }
 0x4c3   : > { %p10433_p4 = scmp.ne.s32.totalorder %s15073_s11, %s10432_s16  ;;  %p10437_p9 = scmp.lt.s32.totalorder %s15073_s11, %s15126_s5 }
 0x4c4   : > { %p10438_p10 = scmp.lt.s32.totalorder %s10436_s25, %s10432_s16 }
 0x4c5   : > { %p10434_p7 = pnand %p10433_p4, %p10552_p5 }
 0x4c6   : > { %p10439_p11 = por %p10438_p10, %p10437_p9 }
 0x4c7   : > { %p10435_p8 = pneg %p10434_p7 }
 0x4c9   : > { %p10440_p12 = pnand %p10439_p11, %p10435_p8 }
 0x4cb   : > { %10443 = shalt.err (!%p10440_p12)
}
 0x4cc   : > { %s10482_s6 = smov 128   ;;  %s10483_s7 = smov 8  }
 0x4cd   : > { %10160 = dma.vmem_to_hbm [thread:$0]  (%p10552_p5), %s15076_s8, 4608, %s15073_s11, %s15081_s22, %s10482_s6, %s10482_s6, %s10483_s7  }
 0x4ce PF: > { %p10166_p13 = scmp.ge.s32.totalorder %s10478_s21, 2  ;;  %s8346_s9 = sand.u32 1, %s10466_s18  }
 0x4cf   : > { %s8347_s10 = scalar_lea.sflag [#allocation4], %s8346_s9 }
 0x4d0   : > { %p10163_p0 = pnand %p10166_p13, %p10556_p6 }
 0x4d2   : > { %p10164_p1 = pneg %p10163_p0 }
 0x4d4   : > { %10461 = dma.done.wait (%p10164_p1), %s8347_s10, 4608  }
 0x4d5   : > { %10463 = vsyncadd (%p10164_p1), %s8347_s10, 4294962688  ;;  %p15_p2 = scmp.ge.s32.totalorder %s10539_s24, 4   ;;  %s15824_s18 = smov %s10470_s19 }
 0x4d6   : > { %s15825_s19 = smov %s10474_s20  ;;  %s15826_s20 = smov %s10550_s27 }
 0x4d7   : > { %s15827_s21 = smov %s10539_s24  ;;  %17 = sbr.rel (!%p15_p2) target bundleno = 3 (0x3), region = 75 }
 0x4dc   :  { %8352 = vsyncpa [#allocation4], 1 }
 0x4dd   :  { %8354 = vsyncpa [#allocation4 + $0x1], 1 }

</bundles_post_ra>
